<compile_context>
chip_gen: v7x
topology: tpu7x:2x2x1
jax: 0.10.0
libtpu: 0.0.40
codegen_flags: <defaults>
</compile_context>

<pallas_src>
import functools

import jax
import jax.numpy as jnp
from jax.experimental import pallas as pl
from jax.experimental.pallas import tpu as pltpu

EPS = 1e-5
LANE = 128
# Explicit VMEM budget: the working set here is ~2 MiB.  32 MiB is load-bearing
# on v5e (default scoped limit is 16 MiB) and equals the v7x scoped default;
# it leaves headroom on v7x's 64 MiB physical VMEM.  Re-derive before adopting
# multi-image grid blocks or deeper buffering.
VMEM_LIMIT_BYTES = 32 * 1024 * 1024


def _round_up(c, m=LANE):
    return ((c + m - 1) // m) * m


# --------------------------------------------------------------------------
# Kernel A: conv1 (3x3, im2col -> one big-K bf16 matmul with f32 accumulation)
#           + optional 1x1 shortcut conv (reuses the centre im2col tap)
#           + per-image BN partial statistics (sum, sum-of-squares).
# Grid-state-free => batch axis is "parallel" (megacore sharding on v7x).
# --------------------------------------------------------------------------
def _conv1_kernel(*refs, H, W, Cinp, Cmp, has_shortcut):
    if has_shortcut:
        (xpad_ref, w1_ref, ws_ref,
         y1_ref, st1_ref, sc_ref, sts_ref, col_ref) = refs
    else:
        xpad_ref, w1_ref, y1_ref, st1_ref, col_ref = refs
        ws_ref = sc_ref = sts_ref = None

    HW = H * W

    # Build the lane-dense im2col operand (HW, 9*Cinp) once, bf16.
    # TODO(synk): derive the 6 off-centre taps from the centre tap with
    # pltpu.roll / flat shifted slices + boundary masks to move this work off
    # the vld/vst slots; kept as proven strided window slices for robustness.
    for ky in range(3):
        for kx in range(3):
            idx = ky * 3 + kx
            win = xpad_ref[:, ky:ky + H, kx:kx + W, :].reshape(HW, Cinp)
            col_ref[:, idx * Cinp:(idx + 1) * Cinp] = win

    # Single MXU matmul, bf16 operands, f32 accumulation.
    y1 = jnp.dot(col_ref[...], w1_ref[...], preferred_element_type=jnp.float32)
    y1_ref[...] = y1.astype(y1_ref.dtype).reshape(1, H, W, Cmp)

    # Per-image BN1 partial statistics (batch reduction happens in the wrapper,
    # so there is no resident accumulator and no 'arbitrary' grid axis).
    st1_ref[:, 0:1, :] = jnp.sum(y1, axis=0, keepdims=True).reshape(1, 1, Cmp)
    st1_ref[:, 1:2, :] = jnp.sum(y1 * y1, axis=0,
                                 keepdims=True).reshape(1, 1, Cmp)

    if has_shortcut:
        # Unpadded x == centre tap (ky=1, kx=1) already sitting in col scratch;
        # no extra strided slice of the halo input.
        x_flat = col_ref[:, 4 * Cinp:5 * Cinp]
        sc = jnp.dot(x_flat, ws_ref[...], preferred_element_type=jnp.float32)
        sc_ref[...] = sc.astype(sc_ref.dtype).reshape(1, H, W, Cmp)
        sts_ref[:, 0:1, :] = jnp.sum(sc, axis=0,
                                     keepdims=True).reshape(1, 1, Cmp)
        sts_ref[:, 1:2, :] = jnp.sum(sc * sc, axis=0,
                                     keepdims=True).reshape(1, 1, Cmp)


# --------------------------------------------------------------------------
# Kernel B: apply BN1 (precomputed scale/shift) + ReLU, conv2 (im2col single
#           matmul), per-image BN2 partial statistics.
# Grid-state-free => batch axis is "parallel".
# --------------------------------------------------------------------------
def _conv2_kernel(y1_ref, sc1_ref, sh1_ref, w2_ref, y2_ref, st2_ref,
                  h1pad_ref, col_ref, *, H, W, Cmp):
    HW = H * W

    # BN1 apply + ReLU in f32, then bf16 for the conv2 operand.
    h1 = jnp.maximum(
        y1_ref[...].reshape(HW, Cmp).astype(jnp.float32) * sc1_ref[...]
        + sh1_ref[...], 0.0)

    # 1-pixel zero halo.  Zeroed EVERY step (no cross-iteration scratch
    # persistence) so the batch axis can be safely 'parallel' / megacore-split.
    # TODO(synk): replace the halo scratch with flat shifted-slice taps and
    # boundary masks to drop this zero pass and the strided interior store.
    h1pad_ref[...] = jnp.zeros_like(h1pad_ref)
    h1pad_ref[1:H + 1, 1:W + 1, :] = (
        h1.reshape(H, W, Cmp).astype(h1pad_ref.dtype))

    for ky in range(3):
        for kx in range(3):
            idx = ky * 3 + kx
            col_ref[:, idx * Cmp:(idx + 1) * Cmp] = (
                h1pad_ref[ky:ky + H, kx:kx + W, :].reshape(HW, Cmp))

    y2 = jnp.dot(col_ref[...], w2_ref[...], preferred_element_type=jnp.float32)
    y2_ref[...] = y2.astype(y2_ref.dtype).reshape(1, H, W, Cmp)

    st2_ref[:, 0:1, :] = jnp.sum(y2, axis=0, keepdims=True).reshape(1, 1, Cmp)
    st2_ref[:, 1:2, :] = jnp.sum(y2 * y2, axis=0,
                                 keepdims=True).reshape(1, 1, Cmp)


# --------------------------------------------------------------------------
# Wrapper
# --------------------------------------------------------------------------
def basic_block(x_nhwc, params, *, stride=1):
    # TODO(synk): stride != 1 not implemented (the reference module applies the
    # stride to BOTH 3x3 convs, making the residual add shape-inconsistent).
    assert stride == 1
    N, H, W, Cin = x_nhwc.shape
    Cm = params["w1"].shape[-1]
    has_shortcut = (stride != 1) or (Cin != Cm)

    # TODO(synk): for Cin << 128, padding the im2col K axis (9*Cin -> 128)
    # instead of Cin -> 128 would cut wasted MXU FLOPs / col VMEM, at the cost
    # of lane-misaligned tap stores; real ResNet layers (Cin >= 128) are
    # unaffected, so the simple lane-dense channel padding is kept.
    Cinp = _round_up(Cin)
    Cmp = _round_up(Cm)
    HW = H * W
    M = N * HW
    f32, bf16 = jnp.float32, jnp.bfloat16

    # Channel padding to lane width + 1-pixel spatial halo (cheap XLA glue).
    xpad = jnp.pad(x_nhwc,
                   ((0, 0), (1, 1), (1, 1), (0, Cinp - Cin))).astype(bf16)

    w1 = jnp.pad(params["w1"],
                 ((0, 0), (0, 0), (0, Cinp - Cin), (0, Cmp - Cm))
                 ).reshape(9 * Cinp, Cmp).astype(bf16)
    w2 = jnp.pad(params["w2"],
                 ((0, 0), (0, 0), (0, Cmp - Cm), (0, Cmp - Cm))
                 ).reshape(9 * Cmp, Cmp).astype(bf16)

    def pad_c(v):
        return jnp.pad(v.reshape(-1), (0, Cmp - Cm)).astype(f32)

    g1, b1 = pad_c(params["g1"]), pad_c(params["b1"])
    g2, b2 = pad_c(params["g2"]), pad_c(params["b2"])

    cp = pltpu.CompilerParams(dimension_semantics=("parallel",),
                              vmem_limit_bytes=VMEM_LIMIT_BYTES)

    img_spec = lambda c: pl.BlockSpec((1, H, W, c), lambda n: (n, 0, 0, 0))
    vec_spec = pl.BlockSpec((1, Cmp), lambda n: (0, 0))
    stat_spec = pl.BlockSpec((1, 2, Cmp), lambda n: (n, 0, 0))

    # ---- kernel A: conv1 (+ 1x1 shortcut conv) + per-image BN stats --------
    in_specs_a = [pl.BlockSpec((1, H + 2, W + 2, Cinp), lambda n: (n, 0, 0, 0)),
                  pl.BlockSpec((9 * Cinp, Cmp), lambda n: (0, 0))]
    args_a = [xpad, w1]
    out_shape_a = [jax.ShapeDtypeStruct((N, H, W, Cmp), bf16),
                   jax.ShapeDtypeStruct((N, 2, Cmp), f32)]
    out_specs_a = [img_spec(Cmp), stat_spec]
    if has_shortcut:
        ws = jnp.pad(params["ws"],
                     ((0, Cinp - Cin), (0, Cmp - Cm))).astype(bf16)
        in_specs_a.append(pl.BlockSpec((Cinp, Cmp), lambda n: (0, 0)))
        args_a.append(ws)
        out_shape_a += [jax.ShapeDtypeStruct((N, H, W, Cmp), bf16),
                        jax.ShapeDtypeStruct((N, 2, Cmp), f32)]
        out_specs_a += [img_spec(Cmp), stat_spec]

    outs_a = pl.pallas_call(
        functools.partial(_conv1_kernel, H=H, W=W, Cinp=Cinp, Cmp=Cmp,
                          has_shortcut=has_shortcut),
        out_shape=tuple(out_shape_a),
        grid_spec=pltpu.PrefetchScalarGridSpec(
            num_scalar_prefetch=0, grid=(N,),
            in_specs=in_specs_a, out_specs=out_specs_a,
            scratch_shapes=[pltpu.VMEM((HW, 9 * Cinp), bf16)]),
        compiler_params=cp,
    )(*args_a)

    if has_shortcut:
        y1, st1, sc, sts = outs_a
    else:
        y1, st1 = outs_a

    def scale_shift(stats, gamma, beta):
        # stats: (N, 2, Cmp) per-image partial sums -> reduce over batch here.
        tot = jnp.sum(stats, axis=0)
        mean = tot[0] / M
        var = jnp.maximum(tot[1] / M - mean * mean, 0.0)
        s = gamma * jax.lax.rsqrt(var + EPS)
        return s.reshape(1, Cmp), (beta - mean * s).reshape(1, Cmp)

    scale1, shift1 = scale_shift(st1, g1, b1)

    # ---- kernel B: BN1+ReLU apply, conv2, per-image BN2 stats ---------------
    y2, st2 = pl.pallas_call(
        functools.partial(_conv2_kernel, H=H, W=W, Cmp=Cmp),
        out_shape=(jax.ShapeDtypeStruct((N, H, W, Cmp), bf16),
                   jax.ShapeDtypeStruct((N, 2, Cmp), f32)),
        grid_spec=pltpu.PrefetchScalarGridSpec(
            num_scalar_prefetch=0, grid=(N,),
            in_specs=[img_spec(Cmp), vec_spec, vec_spec,
                      pl.BlockSpec((9 * Cmp, Cmp), lambda n: (0, 0))],
            out_specs=[img_spec(Cmp), stat_spec],
            scratch_shapes=[pltpu.VMEM((H + 2, W + 2, Cmp), bf16),
                            pltpu.VMEM((HW, 9 * Cmp), bf16)]),
        compiler_params=cp,
    )(y1, scale1, shift1, w2)

    scale2, shift2 = scale_shift(st2, g2, b2)

    # ---- epilogue: BN2 + shortcut BN (or identity) + add + ReLU -------------
    # Plain JAX on purpose (perf review): XLA fuses this purely elementwise op
    # with the channel un-pad slice and the caller's NHWC->NCHW transpose,
    # avoiding another pallas_call and a padded-width output write.
    main = y2[..., :Cm].astype(f32) * scale2[0, :Cm] + shift2[0, :Cm]
    if has_shortcut:
        gs, bs = pad_c(params["gs"]), pad_c(params["bs"])
        scale_s, shift_s = scale_shift(sts, gs, bs)
        short = sc[..., :Cm].astype(f32) * scale_s[0, :Cm] + shift_s[0, :Cm]
    else:
        short = x_nhwc
    return jnp.maximum(main + short, 0.0)


def init_params(key, in_planes, planes):
    k1, k2, k3 = jax.random.split(key, 3)
    w1 = 0.1 * jax.random.normal(k1, (3, 3, in_planes, planes), jnp.float32)
    w2 = 0.1 * jax.random.normal(k2, (3, 3, planes, planes), jnp.float32)
    ws = 0.1 * jax.random.normal(k3, (in_planes, planes), jnp.float32)

    def bn(c):
        gamma = 1.0 + 0.05 * jnp.arange(c, dtype=jnp.float32)
        beta = 0.01 * jnp.arange(c, dtype=jnp.float32)
        return gamma, beta

    g1, b1 = bn(planes)
    g2, b2 = bn(planes)
    gs, bs = bn(planes)
    return dict(w1=w1, g1=g1, b1=b1, w2=w2, g2=g2, b2=b2,
                ws=ws, gs=gs, bs=bs)


if __name__ == "__main__":
    key = jax.random.PRNGKey(0)
    kx, kp = jax.random.split(key)

    N, in_planes, H, W, planes = 2, 4, 16, 16, 8   # in_planes != planes -> conv shortcut
    x_nchw = jax.random.normal(kx, (N, in_planes, H, W), jnp.float32)
    params = init_params(kp, in_planes, planes)

    x_nhwc = jnp.transpose(x_nchw, (0, 2, 3, 1))              # NCHW -> NHWC
    fwd = jax.jit(functools.partial(basic_block, stride=1))
    out_nhwc = fwd(x_nhwc, params)
    out_nchw = jnp.transpose(out_nhwc, (0, 3, 1, 2))          # back to NCHW

    jax.block_until_ready(out_nchw)
    print("KERNEL_OK")
</pallas_src>

<mosaic_0001>
module attributes {stable_mosaic.version = 11 : i64} {
  func.func @_conv1_kernel(%arg0: i32, %arg1: memref<1x18x18x128xbf16, #tpu.memory_space<vmem>>, %arg2: memref<1152x128xbf16, #tpu.memory_space<vmem>>, %arg3: memref<128x128xbf16, #tpu.memory_space<vmem>>, %arg4: memref<1x16x16x128xbf16, #tpu.memory_space<vmem>>, %arg5: memref<1x2x128xf32, #tpu.memory_space<vmem>>, %arg6: memref<1x16x16x128xbf16, #tpu.memory_space<vmem>>, %arg7: memref<1x2x128xf32, #tpu.memory_space<vmem>>, %arg8: memref<256x1152xbf16, #tpu.memory_space<vmem>>) attributes {dimension_semantics = [#tpu.dimension_semantics<parallel>], iteration_bounds = array<i64: 2>, scalar_prefetch = 0 : i64, scratch_operands = 1 : i64, tpu.core_type = #tpu.core_type<tc>, window_params = [{transform_indices = @transform_0, window_bounds = array<i64: 1, 18, 18, 128>}, {pipeline_mode = #tpu.pipeline_mode<synchronous>, transform_indices = @transform_1, window_bounds = array<i64: 1152, 128>}, {pipeline_mode = #tpu.pipeline_mode<synchronous>, transform_indices = @transform_2, window_bounds = array<i64: 128, 128>}, {transform_indices = @transform_3, window_bounds = array<i64: 1, 16, 16, 128>}, {transform_indices = @transform_4, window_bounds = array<i64: 1, 2, 128>}, {transform_indices = @transform_5, window_bounds = array<i64: 1, 16, 16, 128>}, {transform_indices = @transform_6, window_bounds = array<i64: 1, 2, 128>}]} {
    %c0 = arith.constant 0 : index
    %c0_0 = arith.constant 0 : index
    %c0_1 = arith.constant 0 : index
    %c0_2 = arith.constant 0 : index
    %0 = vector.load %arg1[%c0, %c0_0, %c0_1, %c0_2] : memref<1x18x18x128xbf16, #tpu.memory_space<vmem>>, vector<1x16x16x128xbf16>
    %1 = vector.shape_cast %0 : vector<1x16x16x128xbf16> to vector<256x128xbf16>
    %c0_3 = arith.constant 0 : index
    %c0_4 = arith.constant 0 : index
    %2 = vector.load %arg8[%c0_3, %c0_4] : memref<256x1152xbf16, #tpu.memory_space<vmem>>, vector<256x128xbf16>
    tpu.vector_store %arg8[%c0_3, %c0_4], %1 {strides = array<i32>} : memref<256x1152xbf16, #tpu.memory_space<vmem>>, vector<256x128xbf16>,
    %c0_5 = arith.constant 0 : index
    %c0_6 = arith.constant 0 : index
    %c1 = arith.constant 1 : index
    %c0_7 = arith.constant 0 : index
    %3 = vector.load %arg1[%c0_5, %c0_6, %c1, %c0_7] : memref<1x18x18x128xbf16, #tpu.memory_space<vmem>>, vector<1x16x16x128xbf16>
    %4 = vector.shape_cast %3 : vector<1x16x16x128xbf16> to vector<256x128xbf16>
    %c0_8 = arith.constant 0 : index
    %c128 = arith.constant 128 : index
    %5 = vector.load %arg8[%c0_8, %c128] : memref<256x1152xbf16, #tpu.memory_space<vmem>>, vector<256x128xbf16>
    tpu.vector_store %arg8[%c0_8, %c128], %4 {strides = array<i32>} : memref<256x1152xbf16, #tpu.memory_space<vmem>>, vector<256x128xbf16>,
    %c0_9 = arith.constant 0 : index
    %c0_10 = arith.constant 0 : index
    %c2 = arith.constant 2 : index
    %c0_11 = arith.constant 0 : index
    %6 = vector.load %arg1[%c0_9, %c0_10, %c2, %c0_11] : memref<1x18x18x128xbf16, #tpu.memory_space<vmem>>, vector<1x16x16x128xbf16>
    %7 = vector.shape_cast %6 : vector<1x16x16x128xbf16> to vector<256x128xbf16>
    %c0_12 = arith.constant 0 : index
    %c256 = arith.constant 256 : index
    %8 = vector.load %arg8[%c0_12, %c256] : memref<256x1152xbf16, #tpu.memory_space<vmem>>, vector<256x128xbf16>
    tpu.vector_store %arg8[%c0_12, %c256], %7 {strides = array<i32>} : memref<256x1152xbf16, #tpu.memory_space<vmem>>, vector<256x128xbf16>,
    %c0_13 = arith.constant 0 : index
    %c1_14 = arith.constant 1 : index
    %c0_15 = arith.constant 0 : index
    %c0_16 = arith.constant 0 : index
    %9 = vector.load %arg1[%c0_13, %c1_14, %c0_15, %c0_16] : memref<1x18x18x128xbf16, #tpu.memory_space<vmem>>, vector<1x16x16x128xbf16>
    %10 = vector.shape_cast %9 : vector<1x16x16x128xbf16> to vector<256x128xbf16>
    %c0_17 = arith.constant 0 : index
    %c384 = arith.constant 384 : index
    %11 = vector.load %arg8[%c0_17, %c384] : memref<256x1152xbf16, #tpu.memory_space<vmem>>, vector<256x128xbf16>
    tpu.vector_store %arg8[%c0_17, %c384], %10 {strides = array<i32>} : memref<256x1152xbf16, #tpu.memory_space<vmem>>, vector<256x128xbf16>,
    %c0_18 = arith.constant 0 : index
    %c1_19 = arith.constant 1 : index
    %c1_20 = arith.constant 1 : index
    %c0_21 = arith.constant 0 : index
    %12 = vector.load %arg1[%c0_18, %c1_19, %c1_20, %c0_21] : memref<1x18x18x128xbf16, #tpu.memory_space<vmem>>, vector<1x16x16x128xbf16>
    %13 = vector.shape_cast %12 : vector<1x16x16x128xbf16> to vector<256x128xbf16>
    %c0_22 = arith.constant 0 : index
    %c512 = arith.constant 512 : index
    %14 = vector.load %arg8[%c0_22, %c512] : memref<256x1152xbf16, #tpu.memory_space<vmem>>, vector<256x128xbf16>
    tpu.vector_store %arg8[%c0_22, %c512], %13 {strides = array<i32>} : memref<256x1152xbf16, #tpu.memory_space<vmem>>, vector<256x128xbf16>,
    %c0_23 = arith.constant 0 : index
    %c1_24 = arith.constant 1 : index
    %c2_25 = arith.constant 2 : index
    %c0_26 = arith.constant 0 : index
    %15 = vector.load %arg1[%c0_23, %c1_24, %c2_25, %c0_26] : memref<1x18x18x128xbf16, #tpu.memory_space<vmem>>, vector<1x16x16x128xbf16>
    %16 = vector.shape_cast %15 : vector<1x16x16x128xbf16> to vector<256x128xbf16>
    %c0_27 = arith.constant 0 : index
    %c640 = arith.constant 640 : index
    %17 = vector.load %arg8[%c0_27, %c640] : memref<256x1152xbf16, #tpu.memory_space<vmem>>, vector<256x128xbf16>
    tpu.vector_store %arg8[%c0_27, %c640], %16 {strides = array<i32>} : memref<256x1152xbf16, #tpu.memory_space<vmem>>, vector<256x128xbf16>,
    %c0_28 = arith.constant 0 : index
    %c2_29 = arith.constant 2 : index
    %c0_30 = arith.constant 0 : index
    %c0_31 = arith.constant 0 : index
    %18 = vector.load %arg1[%c0_28, %c2_29, %c0_30, %c0_31] : memref<1x18x18x128xbf16, #tpu.memory_space<vmem>>, vector<1x16x16x128xbf16>
    %19 = vector.shape_cast %18 : vector<1x16x16x128xbf16> to vector<256x128xbf16>
    %c0_32 = arith.constant 0 : index
    %c768 = arith.constant 768 : index
    %20 = vector.load %arg8[%c0_32, %c768] : memref<256x1152xbf16, #tpu.memory_space<vmem>>, vector<256x128xbf16>
    tpu.vector_store %arg8[%c0_32, %c768], %19 {strides = array<i32>} : memref<256x1152xbf16, #tpu.memory_space<vmem>>, vector<256x128xbf16>,
    %c0_33 = arith.constant 0 : index
    %c2_34 = arith.constant 2 : index
    %c1_35 = arith.constant 1 : index
    %c0_36 = arith.constant 0 : index
    %21 = vector.load %arg1[%c0_33, %c2_34, %c1_35, %c0_36] : memref<1x18x18x128xbf16, #tpu.memory_space<vmem>>, vector<1x16x16x128xbf16>
    %22 = vector.shape_cast %21 : vector<1x16x16x128xbf16> to vector<256x128xbf16>
    %c0_37 = arith.constant 0 : index
    %c896 = arith.constant 896 : index
    %23 = vector.load %arg8[%c0_37, %c896] : memref<256x1152xbf16, #tpu.memory_space<vmem>>, vector<256x128xbf16>
    tpu.vector_store %arg8[%c0_37, %c896], %22 {strides = array<i32>} : memref<256x1152xbf16, #tpu.memory_space<vmem>>, vector<256x128xbf16>,
    %c0_38 = arith.constant 0 : index
    %c2_39 = arith.constant 2 : index
    %c2_40 = arith.constant 2 : index
    %c0_41 = arith.constant 0 : index
    %24 = vector.load %arg1[%c0_38, %c2_39, %c2_40, %c0_41] : memref<1x18x18x128xbf16, #tpu.memory_space<vmem>>, vector<1x16x16x128xbf16>
    %25 = vector.shape_cast %24 : vector<1x16x16x128xbf16> to vector<256x128xbf16>
    %c0_42 = arith.constant 0 : index
    %c1024 = arith.constant 1024 : index
    %26 = vector.load %arg8[%c0_42, %c1024] : memref<256x1152xbf16, #tpu.memory_space<vmem>>, vector<256x128xbf16>
    tpu.vector_store %arg8[%c0_42, %c1024], %25 {strides = array<i32>} : memref<256x1152xbf16, #tpu.memory_space<vmem>>, vector<256x128xbf16>,
    %c0_43 = arith.constant 0 : index
    %c0_44 = arith.constant 0 : index
    %27 = vector.load %arg8[%c0_43, %c0_44] : memref<256x1152xbf16, #tpu.memory_space<vmem>>, vector<256x1152xbf16>
    %c0_45 = arith.constant 0 : index
    %c0_46 = arith.constant 0 : index
    %28 = vector.load %arg2[%c0_45, %c0_46] : memref<1152x128xbf16, #tpu.memory_space<vmem>>, vector<1152x128xbf16>
    %cst = arith.constant dense<0.000000e+00> : vector<256x128xf32>
    %29 = tpu.matmul %27, %28, %cst {dimension_numbers = #tpu.dot_dimension_numbers<[1], [0], [0], [1], [0, 0, 1, 1], [], []>} : vector<256x1152xbf16>, vector<1152x128xbf16>, vector<256x128xf32> -> vector<256x128xf32>
    %30 = arith.truncf %29 : vector<256x128xf32> to vector<256x128xbf16>
    %31 = vector.shape_cast %30 : vector<256x128xbf16> to vector<1x16x16x128xbf16>
    %c0_47 = arith.constant 0 : index
    %c0_48 = arith.constant 0 : index
    %c0_49 = arith.constant 0 : index
    %c0_50 = arith.constant 0 : index
    %32 = vector.load %arg4[%c0_47, %c0_48, %c0_49, %c0_50] : memref<1x16x16x128xbf16, #tpu.memory_space<vmem>>, vector<1x16x16x128xbf16>
    tpu.vector_store %arg4[%c0_47, %c0_48, %c0_49, %c0_50], %31 {strides = array<i32>} : memref<1x16x16x128xbf16, #tpu.memory_space<vmem>>, vector<1x16x16x128xbf16>,
    %cst_51 = arith.constant dense<0.000000e+00> : vector<128xf32>
    %33 = vector.multi_reduction <add>, %29, %cst_51 [0] : vector<256x128xf32> to vector<128xf32>
    %34 = vector.shape_cast %33 : vector<128xf32> to vector<1x128xf32>
    %35 = vector.shape_cast %34 : vector<1x128xf32> to vector<1x1x128xf32>
    %c0_52 = arith.constant 0 : index
    %c0_53 = arith.constant 0 : index
    %c0_54 = arith.constant 0 : index
    %36 = vector.load %arg5[%c0_52, %c0_53, %c0_54] : memref<1x2x128xf32, #tpu.memory_space<vmem>>, vector<1x1x128xf32>
    tpu.vector_store %arg5[%c0_52, %c0_53, %c0_54], %35 {strides = array<i32>} : memref<1x2x128xf32, #tpu.memory_space<vmem>>, vector<1x1x128xf32>,
    %37 = arith.mulf %29, %29 : vector<256x128xf32>
    %cst_55 = arith.constant dense<0.000000e+00> : vector<128xf32>
    %38 = vector.multi_reduction <add>, %37, %cst_55 [0] : vector<256x128xf32> to vector<128xf32>
    %39 = vector.shape_cast %38 : vector<128xf32> to vector<1x128xf32>
    %40 = vector.shape_cast %39 : vector<1x128xf32> to vector<1x1x128xf32>
    %c0_56 = arith.constant 0 : index
    %c1_57 = arith.constant 1 : index
    %c0_58 = arith.constant 0 : index
    %41 = vector.load %arg5[%c0_56, %c1_57, %c0_58] : memref<1x2x128xf32, #tpu.memory_space<vmem>>, vector<1x1x128xf32>
    tpu.vector_store %arg5[%c0_56, %c1_57, %c0_58], %40 {strides = array<i32>} : memref<1x2x128xf32, #tpu.memory_space<vmem>>, vector<1x1x128xf32>,
    %c0_59 = arith.constant 0 : index
    %c512_60 = arith.constant 512 : index
    %42 = vector.load %arg8[%c0_59, %c512_60] : memref<256x1152xbf16, #tpu.memory_space<vmem>>, vector<256x128xbf16>
    %c0_61 = arith.constant 0 : index
    %c0_62 = arith.constant 0 : index
    %43 = vector.load %arg3[%c0_61, %c0_62] : memref<128x128xbf16, #tpu.memory_space<vmem>>, vector<128x128xbf16>
    %cst_63 = arith.constant dense<0.000000e+00> : vector<256x128xf32>
    %44 = tpu.matmul %42, %43, %cst_63 {dimension_numbers = #tpu.dot_dimension_numbers<[1], [0], [0], [1], [0, 0, 1, 1], [], []>} : vector<256x128xbf16>, vector<128x128xbf16>, vector<256x128xf32> -> vector<256x128xf32>
    %45 = arith.truncf %44 : vector<256x128xf32> to vector<256x128xbf16>
    %46 = vector.shape_cast %45 : vector<256x128xbf16> to vector<1x16x16x128xbf16>
    %c0_64 = arith.constant 0 : index
    %c0_65 = arith.constant 0 : index
    %c0_66 = arith.constant 0 : index
    %c0_67 = arith.constant 0 : index
    %47 = vector.load %arg6[%c0_64, %c0_65, %c0_66, %c0_67] : memref<1x16x16x128xbf16, #tpu.memory_space<vmem>>, vector<1x16x16x128xbf16>
    tpu.vector_store %arg6[%c0_64, %c0_65, %c0_66, %c0_67], %46 {strides = array<i32>} : memref<1x16x16x128xbf16, #tpu.memory_space<vmem>>, vector<1x16x16x128xbf16>,
    %cst_68 = arith.constant dense<0.000000e+00> : vector<128xf32>
    %48 = vector.multi_reduction <add>, %44, %cst_68 [0] : vector<256x128xf32> to vector<128xf32>
    %49 = vector.shape_cast %48 : vector<128xf32> to vector<1x128xf32>
    %50 = vector.shape_cast %49 : vector<1x128xf32> to vector<1x1x128xf32>
    %c0_69 = arith.constant 0 : index
    %c0_70 = arith.constant 0 : index
    %c0_71 = arith.constant 0 : index
    %51 = vector.load %arg7[%c0_69, %c0_70, %c0_71] : memref<1x2x128xf32, #tpu.memory_space<vmem>>, vector<1x1x128xf32>
    tpu.vector_store %arg7[%c0_69, %c0_70, %c0_71], %50 {strides = array<i32>} : memref<1x2x128xf32, #tpu.memory_space<vmem>>, vector<1x1x128xf32>,
    %52 = arith.mulf %44, %44 : vector<256x128xf32>
    %cst_72 = arith.constant dense<0.000000e+00> : vector<128xf32>
    %53 = vector.multi_reduction <add>, %52, %cst_72 [0] : vector<256x128xf32> to vector<128xf32>
    %54 = vector.shape_cast %53 : vector<128xf32> to vector<1x128xf32>
    %55 = vector.shape_cast %54 : vector<1x128xf32> to vector<1x1x128xf32>
    %c0_73 = arith.constant 0 : index
    %c1_74 = arith.constant 1 : index
    %c0_75 = arith.constant 0 : index
    %56 = vector.load %arg7[%c0_73, %c1_74, %c0_75] : memref<1x2x128xf32, #tpu.memory_space<vmem>>, vector<1x1x128xf32>
    tpu.vector_store %arg7[%c0_73, %c1_74, %c0_75], %55 {strides = array<i32>} : memref<1x2x128xf32, #tpu.memory_space<vmem>>, vector<1x1x128xf32>,
    return
  }
  func.func @transform_0(%arg0: i32) -> (i32, i32, i32, i32) {
    %c0_i32 = arith.constant 0 : i32
    %c0_i32_0 = arith.constant 0 : i32
    %c0_i32_1 = arith.constant 0 : i32
    %c0_i32_2 = arith.constant 0 : i32
    return %arg0, %c0_i32, %c0_i32_0, %c0_i32_1 : i32, i32, i32, i32
  }
  func.func @transform_1(%arg0: i32) -> (i32, i32) {
    %c0_i32 = arith.constant 0 : i32
    %c0_i32_0 = arith.constant 0 : i32
    %c0_i32_1 = arith.constant 0 : i32
    return %c0_i32, %c0_i32_0 : i32, i32
  }
  func.func @transform_2(%arg0: i32) -> (i32, i32) {
    %c0_i32 = arith.constant 0 : i32
    %c0_i32_0 = arith.constant 0 : i32
    %c0_i32_1 = arith.constant 0 : i32
    return %c0_i32, %c0_i32_0 : i32, i32
  }
  func.func @transform_3(%arg0: i32) -> (i32, i32, i32, i32) {
    %c0_i32 = arith.constant 0 : i32
    %c0_i32_0 = arith.constant 0 : i32
    %c0_i32_1 = arith.constant 0 : i32
    %c0_i32_2 = arith.constant 0 : i32
    return %arg0, %c0_i32, %c0_i32_0, %c0_i32_1 : i32, i32, i32, i32
  }
  func.func @transform_4(%arg0: i32) -> (i32, i32, i32) {
    %c0_i32 = arith.constant 0 : i32
    %c0_i32_0 = arith.constant 0 : i32
    %c0_i32_1 = arith.constant 0 : i32
    return %arg0, %c0_i32, %c0_i32_0 : i32, i32, i32
  }
  func.func @transform_5(%arg0: i32) -> (i32, i32, i32, i32) {
    %c0_i32 = arith.constant 0 : i32
    %c0_i32_0 = arith.constant 0 : i32
    %c0_i32_1 = arith.constant 0 : i32
    %c0_i32_2 = arith.constant 0 : i32
    return %arg0, %c0_i32, %c0_i32_0, %c0_i32_1 : i32, i32, i32, i32
  }
  func.func @transform_6(%arg0: i32) -> (i32, i32, i32) {
    %c0_i32 = arith.constant 0 : i32
    %c0_i32_0 = arith.constant 0 : i32
    %c0_i32_1 = arith.constant 0 : i32
    return %arg0, %c0_i32, %c0_i32_0 : i32, i32, i32
  }
}

module attributes {stable_mosaic.version = 11 : i64} {
  func.func @_conv2_kernel(%arg0: i32, %arg1: memref<1x16x16x128xbf16, #tpu.memory_space<vmem>>, %arg2: memref<1x128xf32, #tpu.memory_space<vmem>>, %arg3: memref<1x128xf32, #tpu.memory_space<vmem>>, %arg4: memref<1152x128xbf16, #tpu.memory_space<vmem>>, %arg5: memref<1x16x16x128xbf16, #tpu.memory_space<vmem>>, %arg6: memref<1x2x128xf32, #tpu.memory_space<vmem>>, %arg7: memref<18x18x128xbf16, #tpu.memory_space<vmem>>, %arg8: memref<256x1152xbf16, #tpu.memory_space<vmem>>) attributes {dimension_semantics = [#tpu.dimension_semantics<parallel>], iteration_bounds = array<i64: 2>, scalar_prefetch = 0 : i64, scratch_operands = 2 : i64, tpu.core_type = #tpu.core_type<tc>, window_params = [{transform_indices = @transform_0, window_bounds = array<i64: 1, 16, 16, 128>}, {pipeline_mode = #tpu.pipeline_mode<synchronous>, transform_indices = @transform_1, window_bounds = array<i64: 1, 128>}, {pipeline_mode = #tpu.pipeline_mode<synchronous>, transform_indices = @transform_2, window_bounds = array<i64: 1, 128>}, {pipeline_mode = #tpu.pipeline_mode<synchronous>, transform_indices = @transform_3, window_bounds = array<i64: 1152, 128>}, {transform_indices = @transform_4, window_bounds = array<i64: 1, 16, 16, 128>}, {transform_indices = @transform_5, window_bounds = array<i64: 1, 2, 128>}]} {
    %c0 = arith.constant 0 : index
    %c0_0 = arith.constant 0 : index
    %c0_1 = arith.constant 0 : index
    %c0_2 = arith.constant 0 : index
    %0 = vector.load %arg1[%c0, %c0_0, %c0_1, %c0_2] : memref<1x16x16x128xbf16, #tpu.memory_space<vmem>>, vector<1x16x16x128xbf16>
    %1 = vector.shape_cast %0 : vector<1x16x16x128xbf16> to vector<256x128xbf16>
    %2 = arith.extf %1 : vector<256x128xbf16> to vector<256x128xf32>
    %c0_3 = arith.constant 0 : index
    %c0_4 = arith.constant 0 : index
    %3 = vector.load %arg2[%c0_3, %c0_4] : memref<1x128xf32, #tpu.memory_space<vmem>>, vector<1x128xf32>
    %4 = vector.broadcast %3 : vector<1x128xf32> to vector<256x128xf32>
    %5 = arith.mulf %2, %4 : vector<256x128xf32>
    %c0_5 = arith.constant 0 : index
    %c0_6 = arith.constant 0 : index
    %6 = vector.load %arg3[%c0_5, %c0_6] : memref<1x128xf32, #tpu.memory_space<vmem>>, vector<1x128xf32>
    %7 = vector.broadcast %6 : vector<1x128xf32> to vector<256x128xf32>
    %8 = arith.addf %5, %7 : vector<256x128xf32>
    %cst = arith.constant 0.000000e+00 : f32
    %9 = vector.broadcast %cst : f32 to vector<256x128xf32>
    %10 = arith.maximumf %8, %9 : vector<256x128xf32>
    %cst_7 = arith.constant 0.000000e+00 : bf16
    %11 = vector.broadcast %cst_7 : bf16 to vector<18x18x128xbf16>
    %c0_8 = arith.constant 0 : index
    %c0_9 = arith.constant 0 : index
    %c0_10 = arith.constant 0 : index
    %12 = vector.load %arg7[%c0_8, %c0_9, %c0_10] : memref<18x18x128xbf16, #tpu.memory_space<vmem>>, vector<18x18x128xbf16>
    tpu.vector_store %arg7[%c0_8, %c0_9, %c0_10], %11 {strides = array<i32>} : memref<18x18x128xbf16, #tpu.memory_space<vmem>>, vector<18x18x128xbf16>,
    %13 = vector.shape_cast %10 : vector<256x128xf32> to vector<16x16x128xf32>
    %14 = arith.truncf %13 : vector<16x16x128xf32> to vector<16x16x128xbf16>
    %c1 = arith.constant 1 : index
    %c1_11 = arith.constant 1 : index
    %c0_12 = arith.constant 0 : index
    %15 = vector.load %arg7[%c1, %c1_11, %c0_12] : memref<18x18x128xbf16, #tpu.memory_space<vmem>>, vector<16x16x128xbf16>
    tpu.vector_store %arg7[%c1, %c1_11, %c0_12], %14 {strides = array<i32>} : memref<18x18x128xbf16, #tpu.memory_space<vmem>>, vector<16x16x128xbf16>,
    %c0_13 = arith.constant 0 : index
    %c0_14 = arith.constant 0 : index
    %c0_15 = arith.constant 0 : index
    %16 = vector.load %arg7[%c0_13, %c0_14, %c0_15] : memref<18x18x128xbf16, #tpu.memory_space<vmem>>, vector<16x16x128xbf16>
    %17 = vector.shape_cast %16 : vector<16x16x128xbf16> to vector<256x128xbf16>
    %c0_16 = arith.constant 0 : index
    %c0_17 = arith.constant 0 : index
    %18 = vector.load %arg8[%c0_16, %c0_17] : memref<256x1152xbf16, #tpu.memory_space<vmem>>, vector<256x128xbf16>
    tpu.vector_store %arg8[%c0_16, %c0_17], %17 {strides = array<i32>} : memref<256x1152xbf16, #tpu.memory_space<vmem>>, vector<256x128xbf16>,
    %c0_18 = arith.constant 0 : index
    %c1_19 = arith.constant 1 : index
    %c0_20 = arith.constant 0 : index
    %19 = vector.load %arg7[%c0_18, %c1_19, %c0_20] : memref<18x18x128xbf16, #tpu.memory_space<vmem>>, vector<16x16x128xbf16>
    %20 = vector.shape_cast %19 : vector<16x16x128xbf16> to vector<256x128xbf16>
    %c0_21 = arith.constant 0 : index
    %c128 = arith.constant 128 : index
    %21 = vector.load %arg8[%c0_21, %c128] : memref<256x1152xbf16, #tpu.memory_space<vmem>>, vector<256x128xbf16>
    tpu.vector_store %arg8[%c0_21, %c128], %20 {strides = array<i32>} : memref<256x1152xbf16, #tpu.memory_space<vmem>>, vector<256x128xbf16>,
    %c0_22 = arith.constant 0 : index
    %c2 = arith.constant 2 : index
    %c0_23 = arith.constant 0 : index
    %22 = vector.load %arg7[%c0_22, %c2, %c0_23] : memref<18x18x128xbf16, #tpu.memory_space<vmem>>, vector<16x16x128xbf16>
    %23 = vector.shape_cast %22 : vector<16x16x128xbf16> to vector<256x128xbf16>
    %c0_24 = arith.constant 0 : index
    %c256 = arith.constant 256 : index
    %24 = vector.load %arg8[%c0_24, %c256] : memref<256x1152xbf16, #tpu.memory_space<vmem>>, vector<256x128xbf16>
    tpu.vector_store %arg8[%c0_24, %c256], %23 {strides = array<i32>} : memref<256x1152xbf16, #tpu.memory_space<vmem>>, vector<256x128xbf16>,
    %c1_25 = arith.constant 1 : index
    %c0_26 = arith.constant 0 : index
    %c0_27 = arith.constant 0 : index
    %25 = vector.load %arg7[%c1_25, %c0_26, %c0_27] : memref<18x18x128xbf16, #tpu.memory_space<vmem>>, vector<16x16x128xbf16>
    %26 = vector.shape_cast %25 : vector<16x16x128xbf16> to vector<256x128xbf16>
    %c0_28 = arith.constant 0 : index
    %c384 = arith.constant 384 : index
    %27 = vector.load %arg8[%c0_28, %c384] : memref<256x1152xbf16, #tpu.memory_space<vmem>>, vector<256x128xbf16>
    tpu.vector_store %arg8[%c0_28, %c384], %26 {strides = array<i32>} : memref<256x1152xbf16, #tpu.memory_space<vmem>>, vector<256x128xbf16>,
    %c1_29 = arith.constant 1 : index
    %c1_30 = arith.constant 1 : index
    %c0_31 = arith.constant 0 : index
    %28 = vector.load %arg7[%c1_29, %c1_30, %c0_31] : memref<18x18x128xbf16, #tpu.memory_space<vmem>>, vector<16x16x128xbf16>
    %29 = vector.shape_cast %28 : vector<16x16x128xbf16> to vector<256x128xbf16>
    %c0_32 = arith.constant 0 : index
    %c512 = arith.constant 512 : index
    %30 = vector.load %arg8[%c0_32, %c512] : memref<256x1152xbf16, #tpu.memory_space<vmem>>, vector<256x128xbf16>
    tpu.vector_store %arg8[%c0_32, %c512], %29 {strides = array<i32>} : memref<256x1152xbf16, #tpu.memory_space<vmem>>, vector<256x128xbf16>,
    %c1_33 = arith.constant 1 : index
    %c2_34 = arith.constant 2 : index
    %c0_35 = arith.constant 0 : index
    %31 = vector.load %arg7[%c1_33, %c2_34, %c0_35] : memref<18x18x128xbf16, #tpu.memory_space<vmem>>, vector<16x16x128xbf16>
    %32 = vector.shape_cast %31 : vector<16x16x128xbf16> to vector<256x128xbf16>
    %c0_36 = arith.constant 0 : index
    %c640 = arith.constant 640 : index
    %33 = vector.load %arg8[%c0_36, %c640] : memref<256x1152xbf16, #tpu.memory_space<vmem>>, vector<256x128xbf16>
    tpu.vector_store %arg8[%c0_36, %c640], %32 {strides = array<i32>} : memref<256x1152xbf16, #tpu.memory_space<vmem>>, vector<256x128xbf16>,
    %c2_37 = arith.constant 2 : index
    %c0_38 = arith.constant 0 : index
    %c0_39 = arith.constant 0 : index
    %34 = vector.load %arg7[%c2_37, %c0_38, %c0_39] : memref<18x18x128xbf16, #tpu.memory_space<vmem>>, vector<16x16x128xbf16>
    %35 = vector.shape_cast %34 : vector<16x16x128xbf16> to vector<256x128xbf16>
    %c0_40 = arith.constant 0 : index
    %c768 = arith.constant 768 : index
    %36 = vector.load %arg8[%c0_40, %c768] : memref<256x1152xbf16, #tpu.memory_space<vmem>>, vector<256x128xbf16>
    tpu.vector_store %arg8[%c0_40, %c768], %35 {strides = array<i32>} : memref<256x1152xbf16, #tpu.memory_space<vmem>>, vector<256x128xbf16>,
    %c2_41 = arith.constant 2 : index
    %c1_42 = arith.constant 1 : index
    %c0_43 = arith.constant 0 : index
    %37 = vector.load %arg7[%c2_41, %c1_42, %c0_43] : memref<18x18x128xbf16, #tpu.memory_space<vmem>>, vector<16x16x128xbf16>
    %38 = vector.shape_cast %37 : vector<16x16x128xbf16> to vector<256x128xbf16>
    %c0_44 = arith.constant 0 : index
    %c896 = arith.constant 896 : index
    %39 = vector.load %arg8[%c0_44, %c896] : memref<256x1152xbf16, #tpu.memory_space<vmem>>, vector<256x128xbf16>
    tpu.vector_store %arg8[%c0_44, %c896], %38 {strides = array<i32>} : memref<256x1152xbf16, #tpu.memory_space<vmem>>, vector<256x128xbf16>,
    %c2_45 = arith.constant 2 : index
    %c2_46 = arith.constant 2 : index
    %c0_47 = arith.constant 0 : index
    %40 = vector.load %arg7[%c2_45, %c2_46, %c0_47] : memref<18x18x128xbf16, #tpu.memory_space<vmem>>, vector<16x16x128xbf16>
    %41 = vector.shape_cast %40 : vector<16x16x128xbf16> to vector<256x128xbf16>
    %c0_48 = arith.constant 0 : index
    %c1024 = arith.constant 1024 : index
    %42 = vector.load %arg8[%c0_48, %c1024] : memref<256x1152xbf16, #tpu.memory_space<vmem>>, vector<256x128xbf16>
    tpu.vector_store %arg8[%c0_48, %c1024], %41 {strides = array<i32>} : memref<256x1152xbf16, #tpu.memory_space<vmem>>, vector<256x128xbf16>,
    %c0_49 = arith.constant 0 : index
    %c0_50 = arith.constant 0 : index
    %43 = vector.load %arg8[%c0_49, %c0_50] : memref<256x1152xbf16, #tpu.memory_space<vmem>>, vector<256x1152xbf16>
    %c0_51 = arith.constant 0 : index
    %c0_52 = arith.constant 0 : index
    %44 = vector.load %arg4[%c0_51, %c0_52] : memref<1152x128xbf16, #tpu.memory_space<vmem>>, vector<1152x128xbf16>
    %cst_53 = arith.constant dense<0.000000e+00> : vector<256x128xf32>
    %45 = tpu.matmul %43, %44, %cst_53 {dimension_numbers = #tpu.dot_dimension_numbers<[1], [0], [0], [1], [0, 0, 1, 1], [], []>} : vector<256x1152xbf16>, vector<1152x128xbf16>, vector<256x128xf32> -> vector<256x128xf32>
    %46 = arith.truncf %45 : vector<256x128xf32> to vector<256x128xbf16>
    %47 = vector.shape_cast %46 : vector<256x128xbf16> to vector<1x16x16x128xbf16>
    %c0_54 = arith.constant 0 : index
    %c0_55 = arith.constant 0 : index
    %c0_56 = arith.constant 0 : index
    %c0_57 = arith.constant 0 : index
    %48 = vector.load %arg5[%c0_54, %c0_55, %c0_56, %c0_57] : memref<1x16x16x128xbf16, #tpu.memory_space<vmem>>, vector<1x16x16x128xbf16>
    tpu.vector_store %arg5[%c0_54, %c0_55, %c0_56, %c0_57], %47 {strides = array<i32>} : memref<1x16x16x128xbf16, #tpu.memory_space<vmem>>, vector<1x16x16x128xbf16>,
    %cst_58 = arith.constant dense<0.000000e+00> : vector<128xf32>
    %49 = vector.multi_reduction <add>, %45, %cst_58 [0] : vector<256x128xf32> to vector<128xf32>
    %50 = vector.shape_cast %49 : vector<128xf32> to vector<1x128xf32>
    %51 = vector.shape_cast %50 : vector<1x128xf32> to vector<1x1x128xf32>
    %c0_59 = arith.constant 0 : index
    %c0_60 = arith.constant 0 : index
    %c0_61 = arith.constant 0 : index
    %52 = vector.load %arg6[%c0_59, %c0_60, %c0_61] : memref<1x2x128xf32, #tpu.memory_space<vmem>>, vector<1x1x128xf32>
    tpu.vector_store %arg6[%c0_59, %c0_60, %c0_61], %51 {strides = array<i32>} : memref<1x2x128xf32, #tpu.memory_space<vmem>>, vector<1x1x128xf32>,
    %53 = arith.mulf %45, %45 : vector<256x128xf32>
    %cst_62 = arith.constant dense<0.000000e+00> : vector<128xf32>
    %54 = vector.multi_reduction <add>, %53, %cst_62 [0] : vector<256x128xf32> to vector<128xf32>
    %55 = vector.shape_cast %54 : vector<128xf32> to vector<1x128xf32>
    %56 = vector.shape_cast %55 : vector<1x128xf32> to vector<1x1x128xf32>
    %c0_63 = arith.constant 0 : index
    %c1_64 = arith.constant 1 : index
    %c0_65 = arith.constant 0 : index
    %57 = vector.load %arg6[%c0_63, %c1_64, %c0_65] : memref<1x2x128xf32, #tpu.memory_space<vmem>>, vector<1x1x128xf32>
    tpu.vector_store %arg6[%c0_63, %c1_64, %c0_65], %56 {strides = array<i32>} : memref<1x2x128xf32, #tpu.memory_space<vmem>>, vector<1x1x128xf32>,
    return
  }
  func.func @transform_0(%arg0: i32) -> (i32, i32, i32, i32) {
    %c0_i32 = arith.constant 0 : i32
    %c0_i32_0 = arith.constant 0 : i32
    %c0_i32_1 = arith.constant 0 : i32
    %c0_i32_2 = arith.constant 0 : i32
    return %arg0, %c0_i32, %c0_i32_0, %c0_i32_1 : i32, i32, i32, i32
  }
  func.func @transform_1(%arg0: i32) -> (i32, i32) {
    %c0_i32 = arith.constant 0 : i32
    %c0_i32_0 = arith.constant 0 : i32
    %c0_i32_1 = arith.constant 0 : i32
    return %c0_i32, %c0_i32_0 : i32, i32
  }
  func.func @transform_2(%arg0: i32) -> (i32, i32) {
    %c0_i32 = arith.constant 0 : i32
    %c0_i32_0 = arith.constant 0 : i32
    %c0_i32_1 = arith.constant 0 : i32
    return %c0_i32, %c0_i32_0 : i32, i32
  }
  func.func @transform_3(%arg0: i32) -> (i32, i32) {
    %c0_i32 = arith.constant 0 : i32
    %c0_i32_0 = arith.constant 0 : i32
    %c0_i32_1 = arith.constant 0 : i32
    return %c0_i32, %c0_i32_0 : i32, i32
  }
  func.func @transform_4(%arg0: i32) -> (i32, i32, i32, i32) {
    %c0_i32 = arith.constant 0 : i32
    %c0_i32_0 = arith.constant 0 : i32
    %c0_i32_1 = arith.constant 0 : i32
    %c0_i32_2 = arith.constant 0 : i32
    return %arg0, %c0_i32, %c0_i32_0, %c0_i32_1 : i32, i32, i32, i32
  }
  func.func @transform_5(%arg0: i32) -> (i32, i32, i32) {
    %c0_i32 = arith.constant 0 : i32
    %c0_i32_0 = arith.constant 0 : i32
    %c0_i32_1 = arith.constant 0 : i32
    return %arg0, %c0_i32, %c0_i32_0 : i32, i32, i32
  }
}

</mosaic_0001>

<bundles_post_ra>
// kernel: basic_block.2
= control target key start
LH: loop header
LB: loop body
LE: loop exit
PB: predicated region body
PF: predicated region fallthrough
CT: control target
= control target key end

     0   :  { %s7212_s21 = smov 0   ;;  %s8839_s0 = inlined_call_operand.vmem [shape: bf16[2,18,18,128], index: 0, kind: input, shape index: {}]   ;;  %s8840_s1 = inlined_call_operand.vmem [shape: bf16[1152,128], index: 1, kind: input, shape index: {}]   ;;  %s8841_s2 = inlined_call_operand.vmem [shape: bf16[128,128], index: 2, kind: input, shape index: {}]   ;;  %s8842_s3 = inlined_call_operand.vmem [shape: bf16[2,16,16,128], index: 3, kind: output, shape index: {0}]   ;;  %s8843_s4 = inlined_call_operand.vmem [shape: f32[2,2,128], index: 4, kind: output, shape index: {1}]   ;;  %s8844_s5 = inlined_call_operand.vmem [shape: bf16[2,16,16,128], index: 5, kind: output, shape index: {2}]   ;;  %s8845_s6 = inlined_call_operand.vmem [shape: f32[2,2,128], index: 6, kind: output, shape index: {3}]  }
   0x1 LB: > { %s5578_s22 = sadd.s32 4294967295, %s7175_s21   ;;  %p5582_p0 = scmp.ge.s32.totalorder %s7175_s21, 1  ;;  %s7175_s21 = sphi %s7212_s21, %s17_s21  }
   0x2   : > { %p219_p1 = scmp.lt.s32.totalorder %s7175_s21, 3 }
   0x4   : > { %p220_p2 = pnand %p5582_p0, %p219_p1 }
   0x6   : > { %223 = sbr.rel (%p220_p2) target bundleno = 633 (0x279), region = 32 }
   0xd   : > { %v7041_v0 = vld [vmem:[%s8840_s1 + $0x40] sm:$0xff]   ;;  %v7045_v4 = vld [vmem:[%s8840_s1 + $0x48] sm:$0xff]   ;;  %v7049_v8 = vld [vmem:[%s8840_s1 + $0x50] sm:$0xff]   ;;  %p262_p3 = scmp.lt.s32.totalorder %s5578_s22, 1  ;;  %vm1041_vm0 = vcmask 1042432   ;;  %vm1042_vm1 = vcmask 1046532  }
   0xe   : > { %v7042_v1 = vld [vmem:[%s8840_s1 + $0xc0] sm:$0xff]   ;;  %6440 = vmatprep.subr.bf16.mxu0 %v7041_v0  ;;  %v7046_v5 = vld [vmem:[%s8840_s1 + $0xc8] sm:$0xff]   ;;  %v7050_v9 = vld [vmem:[%s8840_s1 + $0xd0] sm:$0xff]   ;;  %vm478_vm2 = vsmask.f32 3328 }
   0xf   : > { %v7043_v2 = vld [vmem:[%s8840_s1] sm:$0xff]   ;;  %6552 = vmatprep.subr.bf16.mxu1 %v7042_v1  ;;  %v7047_v6 = vld [vmem:[%s8840_s1 + $0x8] sm:$0xff]   ;;  %v7051_v10 = vld [vmem:[%s8840_s1 + $0x10] sm:$0xff]   ;;  %s8901_s22 = smov (!%p262_p3, %s5578_s22), 1  ;;  %vm479_vm3 = vsmask.f32 7440 }
  0x10   : > { %v7044_v3 = vld [vmem:[%s8840_s1 + $0x80] sm:$0xff]   ;;  %6441 = vmatpush3.bf16.msra.mxu0 %v7043_v2  ;;  %v7048_v7 = vld [vmem:[%s8840_s1 + $0x88] sm:$0xff]   ;;  %v7052_v11 = vld [vmem:[%s8840_s1 + $0x90] sm:$0xff]   ;;  %s7032_s7 = smul.u32 216, %s8901_s22  ;;  %s5586_s20 = sshll.u32 %s8901_s22, 1 }
  0x11   : > { %6553 = vmatpush3.bf16.msra.mxu1 %v7044_v3  ;;  %6442 = vmatprep.subr.bf16.mxu0 %v7045_v4  ;;  %v7053_v12 = vld [vmem:[%s8840_s1 + $0x58] sm:$0xff]   ;;  %v7057_v16 = vld [vmem:[%s8840_s1 + $0x60] sm:$0xff]   ;;  %v7061_v20 = vld [vmem:[%s8840_s1 + $0x68] sm:$0xff]   ;;  %s284_s25 = scalar_lea.vmem %s8845_s6, %s5586_s20 }
  0x12   : > { %6554 = vmatprep.subr.bf16.mxu1 %v7046_v5  ;;  %v7054_v13 = vld [vmem:[%s8840_s1 + $0xd8] sm:$0xff]   ;;  %v7058_v17 = vld [vmem:[%s8840_s1 + $0xe0] sm:$0xff]   ;;  %v7062_v21 = vld [vmem:[%s8840_s1 + $0xe8] sm:$0xff]   ;;  %s7320_s18 = scalar_lea.vmem %s8839_s0, %s7032_s7 }
  0x13   : > { %v7055_v14 = vld [vmem:[%s8840_s1 + $0x18] sm:$0xff]   ;;  %v7059_v18 = vld [vmem:[%s8840_s1 + $0x20] sm:$0xff]   ;;  %v7063_v22 = vld [vmem:[%s8840_s1 + $0x28] sm:$0xff]  }
  0x14   : > { %6443 = vmatpush3.bf16.msra.mxu0 %v7047_v6  ;;  %v7056_v15 = vld [vmem:[%s8840_s1 + $0x98] sm:$0xff]   ;;  %v7060_v19 = vld [vmem:[%s8840_s1 + $0xa0] sm:$0xff]   ;;  %v7064_v23 = vld [vmem:[%s8840_s1 + $0xa8] sm:$0xff]  }
  0x15   : > { %6555 = vmatpush3.bf16.msra.mxu1 %v7048_v7  ;;  %6444 = vmatprep.subr.bf16.mxu0 %v7049_v8  ;;  %v7065_v24 = vld [vmem:[%s8840_s1 + $0x70] sm:$0xff]   ;;  %v7069_v28 = vld [vmem:[%s8840_s1 + $0x78] sm:$0xff]   ;;  %v430_v32 = vld [vmem:[%s7320_s18] sm:$0xf] }
  0x16   : > { %6556 = vmatprep.subr.bf16.mxu1 %v7050_v9  ;;  %v7066_v25 = vld [vmem:[%s8840_s1 + $0xf0] sm:$0xff]   ;;  %v7070_v29 = vld [vmem:[%s8840_s1 + $0xf8] sm:$0xff]   ;;  %v431_v33 = vld [vmem:[%s7320_s18 + $0x4] sm:$0xf]  ;;  %v482_v35 = vshrl.u32 %v430_v32, 16  ;;  %v485_v36 = vshll.u32 %v430_v32, 16 }
  0x17   : > { %v7067_v26 = vld [vmem:[%s8840_s1 + $0x30] sm:$0xff]   ;;  %v7071_v30 = vld [vmem:[%s8840_s1 + $0x38] sm:$0xff]   ;;  %v432_v34 = vld [vmem:[%s7320_s18 + $0x8] sm:$0x1]  ;;  %v491_v37 = vshll.u32 %v431_v33, 16  ;;  %v495_v38 = vshrl.u32 %v431_v33, 16 }
  0x18   : > { %6445 = vmatpush3.bf16.msra.mxu0 %v7051_v10  ;;  %v7068_v27 = vld [vmem:[%s8840_s1 + $0xb0] sm:$0xff]   ;;  %v7072_v31 = vld [vmem:[%s8840_s1 + $0xb8] sm:$0xff]   ;;  %v501_v39 = vshll.u32 %v432_v34, 16  ;;  %v484_v41 = vrot.slane %v482_v35, 4  ;;  %v487_v42 = vrot.slane %v485_v36, 5  ;;  %vm7334_vm4 = vmor %vm1041_vm0, %vm1042_vm1 }
  0x19   : > { %6557 = vmatpush3.bf16.msra.mxu1 %v7052_v11  ;;  %6446 = vmatprep.subr.bf16.mxu0 %v7053_v12  ;;  %v7073_v40 = vld [vmem:[%s7320_s18 + $0xc] sm:$0xff]   ;;  %v493_v43 = vrot.slane %v491_v37, 5  ;;  %v497_v44 = vrot.slane %v495_v38, 4  ;;  %v945_v48 = vld [vmem:[%s7320_s18] sm:$0xe]  ;;  %vm7343_vm5 = vmor %vm478_vm2, %vm479_vm3 }
  0x1a   : > { %6558 = vmatprep.subr.bf16.mxu1 %v7054_v13  ;;  %v503_v45 = vrot.slane %v501_v39, 5  ;;  %4039 = vmatprep.mubr.bf16.mxu1 %v7073_v40  ;;  %v488_v47 = vor.u32 %v487_v42, %v484_v41  ;;  %v946_v49 = vld [vmem:[%s7320_s18 + $0x4] sm:$0xf]  ;;  %v947_v50 = vld [vmem:[%s7320_s18 + $0x8] sm:$0x1]  ;;  %v5622_v53 = vrot.slane %v945_v48, 9 }
  0x1b   : > { %v498_v52 = vor.u32 %v497_v44, %v493_v43  ;;  %v1046_v54 = vrot.slane %v946_v49, 5  ;;  %v1049_v55 = vrot.slane %v947_v50, 5  ;;  %v7075_v56 = vld [vmem:[%s8840_s1 + $0x140] sm:$0xff]   ;;  %v433_v4 = vld [vmem:[%s7320_s18 + $0xc] sm:$0xf] }
  0x1c   : > { %6447 = vmatpush3.bf16.msra.mxu0 %v7055_v14  ;;  %v489_v57 = vrot.slane %v488_v47, 4  ;;  %v7074_v59 = vld [vmem:[%s7320_s18] sm:$0xff]   ;;  %v434_v7 = vld [vmem:[%s7320_s18 + $0x10] sm:$0xf]  ;;  %v435_v8 = vld [vmem:[%s7320_s18 + $0x14] sm:$0x1] }
  0x1d   : > { %6559 = vmatpush3.bf16.msra.mxu1 %v7056_v15  ;;  %6448 = vmatprep.subr.bf16.mxu0 %v7057_v16  ;;  %v499_v58 = vrot.slane %v498_v52, 4  ;;  %v1047_v60 = vsel %vm7334_vm4, %v5622_v53, %v1046_v54  ;;  %v1048_v61 = vrot.slane %v1046_v54, 4  ;;  %v7076_v63 = vld [vmem:[%s8840_s1 + $0x100] sm:$0xff]   ;;  %v506_v9 = vshrl.u32 %v433_v4, 16  ;;  %v7079_v14 = vld [vmem:[%s7320_s18 + $0x18] sm:$0xff]   ;;  %v7080_v34 = vld [vmem:[%s7320_s18 + $0xc] sm:$0xff]  }
  0x1e   : > { %6560 = vmatprep.subr.bf16.mxu1 %v7058_v17  ;;  %v494_v62 = vsel %vm7343_vm5, %v489_v57, %v493_v43  ;;  %v7077_v0 = vld [vmem:[%s8840_s1 + $0x1c0] sm:$0xff]   ;;  %v509_v10 = vshll.u32 %v433_v4, 16  ;;  %v515_v11 = vshll.u32 %v434_v7, 16  ;;  %v519_v12 = vshrl.u32 %v434_v7, 16  ;;  %v7083_v43 = vld [vmem:[%s8840_s1 + $0x148] sm:$0xff]   ;;  %v7082_v7 = vld [vmem:[%s7320_s18 + $0x18] sm:$0xff]  }
  0x1f   : > { %v504_v1 = vsel %vm7343_vm5, %v499_v58, %v503_v45  ;;  %v1050_v2 = vsel %vm7334_vm4, %v1048_v61, %v1049_v55  ;;  %v7078_v3 = vld [vmem:[%s8840_s1 + $0x180] sm:$0xff]   ;;  %v525_v13 = vshll.u32 %v435_v8, 16  ;;  %v508_v15 = vrot.slane %v506_v9, 4  ;;  %v951_v54 = vld [vmem:[%s7320_s18 + $0x18] sm:$0xe]  ;;  %v7084_v61 = vld [vmem:[%s8840_s1 + $0x108] sm:$0xff]  }
  0x20   : > { %6449 = vmatpush3.bf16.msra.mxu0 %v7059_v18  ;;  %v5606_v5 = vcombine.low %v494_v62, %v504_v1  ;;  %v5638_v6 = vcombine.low %v1047_v60, %v1050_v2  ;;  %v511_v16 = vrot.slane %v509_v10, 5  ;;  %v517_v17 = vrot.slane %v515_v11, 5  ;;  %v7081_v38 = vld [vmem:[%s7320_s18 + $0x24] sm:$0xff]   ;;  %v952_v55 = vld [vmem:[%s7320_s18 + $0x1c] sm:$0xf] }
  0x21   : > { %6561 = vmatpush3.bf16.msra.mxu1 %v7060_v19  ;;  %6450 = vmatprep.subr.bf16.mxu0 %v7061_v20  ;;  %v521_v18 = vrot.slane %v519_v12, 4  ;;  %v527_v19 = vrot.slane %v525_v13, 5  ;;  %v953_v58 = vld [vmem:[%s7320_s18 + $0x20] sm:$0x1]  ;;  %v1060_v60 = vrot.slane %v952_v55, 5 }
  0x22   : > { %6562 = vmatprep.subr.bf16.mxu1 %v7062_v21  ;;  %3878 = vmatprep.mubr.bf16.mxu0 %v5606_v5  ;;  %v512_v20 = vor.u32 %v511_v16, %v508_v15  ;;  %v948_v21 = vld [vmem:[%s7320_s18 + $0xc] sm:$0xe]  ;;  %v439_v9 = vld [vmem:[%s7320_s18 + $0x24] sm:$0xf]  ;;  %v440_v12 = vld [vmem:[%s7320_s18 + $0x28] sm:$0xf] }
  0x23   : > { %v7086_v5 = vld [vmem:[%s8840_s1 + $0x188] sm:$0xff]   ;;  %v557_v15 = vshll.u32 %v439_v9, 16 }
  0x24   : > { %6451 = vmatpush3.bf16.msra.mxu0 %v7063_v22  ;;  %v949_v22 = vld [vmem:[%s7320_s18 + $0x10] sm:$0xf]  ;;  %v441_v13 = vld [vmem:[%s7320_s18 + $0x2c] sm:$0x1] }
  0x25   : > { %6563 = vmatpush3.bf16.msra.mxu1 %v7064_v23  ;;  %6452 = vmatprep.subr.bf16.mxu0 %v7065_v24  ;;  %v950_v23 = vld [vmem:[%s7320_s18 + $0x14] sm:$0x1]  ;;  %v522_v24 = vor.u32 %v521_v18, %v517_v17  ;;  %v567_v18 = vshrl.u32 %v440_v12, 16 }
  0x26   : > { %6564 = vmatprep.subr.bf16.mxu1 %v7066_v25  ;;  %v5623_v25 = vrot.slane %v948_v21, 9 }
  0x27   : > { %v523_v33 = vrot.slane %v522_v24, 4  ;;  %v569_v24 = vrot.slane %v567_v18, 4  ;;  %v446_v18 = vld [vmem:[%s7320_s18 + $0x40] sm:$0xf] }
  0x28   : > { %6453 = vmatpush3.bf16.msra.mxu0 %v7067_v26  ;;  %v1053_v26 = vrot.slane %v949_v22, 5  ;;  %v559_v22 = vrot.slane %v557_v15, 5  ;;  %v445_v15 = vld [vmem:[%s7320_s18 + $0x3c] sm:$0xf] }
  0x29   : > { %6565 = vmatpush3.bf16.msra.mxu1 %v7068_v27  ;;  %6454 = vmatprep.subr.bf16.mxu0 %v7069_v28  ;;  %v1056_v27 = vrot.slane %v950_v23, 5  ;;  %v436_v28 = vld [vmem:[%s7320_s18 + $0x18] sm:$0xf]  ;;  %v528_v44 = vsel %vm7343_vm5, %v523_v33, %v527_v19  ;;  %v573_v19 = vshll.u32 %v441_v13, 16  ;;  %v7090_v13 = vld [vmem:[%s7320_s18 + $0x30] sm:$0xff]  }
  0x2a   : > { %6566 = vmatprep.subr.bf16.mxu1 %v7070_v29  ;;  %v513_v29 = vrot.slane %v512_v20, 4  ;;  %v530_v32 = vshrl.u32 %v436_v28, 16  ;;  %v1054_v35 = vsel %vm7334_vm4, %v5623_v25, %v1053_v26  ;;  %v1055_v36 = vrot.slane %v1053_v26, 4  ;;  %v7087_v20 = vld [vmem:[%s7320_s18 + $0x30] sm:$0xff]  }
  0x2b   : > { %v533_v37 = vshll.u32 %v436_v28, 16  ;;  %v575_v25 = vrot.slane %v573_v19, 5  ;;  %v955_v28 = vld [vmem:[%s7320_s18 + $0x28] sm:$0xf]  ;;  %v447_v19 = vld [vmem:[%s7320_s18 + $0x44] sm:$0x1] }
  0x2c   : > { %6455 = vmatpush3.bf16.msra.mxu0 %v7071_v30  ;;  %v437_v30 = vld [vmem:[%s7320_s18 + $0x1c] sm:$0xf]  ;;  %v518_v39 = vsel %vm7343_vm5, %v513_v29, %v517_v17  ;;  %v532_v40 = vrot.slane %v530_v32, 4  ;;  %v1057_v45 = vsel %vm7334_vm4, %v1055_v36, %v1056_v27  ;;  %v563_v17 = vshll.u32 %v440_v12, 16  ;;  %v954_v27 = vld [vmem:[%s7320_s18 + $0x24] sm:$0xe] }
  0x2d   : > { %6567 = vmatpush3.bf16.msra.mxu1 %v7072_v31  ;;  %6664 = vmatprep.subr.bf16.mxu0 %v7075_v56  ;;  %v438_v31 = vld [vmem:[%s7320_s18 + $0x20] sm:$0x1]  ;;  %v539_v41 = vshll.u32 %v437_v30, 16  ;;  %v543_v42 = vshrl.u32 %v437_v30, 16  ;;  %v535_v47 = vrot.slane %v533_v37, 5  ;;  %v5607_v49 = vcombine.low %v518_v39, %v528_v44 }
  0x2e   : > { %6776 = vmatprep.subr.bf16.mxu1 %v7077_v0  ;;  %v549_v48 = vshll.u32 %v438_v31, 16  ;;  %v5639_v50 = vcombine.low %v1054_v35, %v1057_v45  ;;  %v7085_v0 = vld [vmem:[%s8840_s1 + $0x1c8] sm:$0xff]   ;;  %v565_v23 = vrot.slane %v563_v17, 5  ;;  %v5625_v31 = vrot.slane %v954_v27, 9  ;;  %v443_v36 = vld [vmem:[%s7320_s18 + $0x34] sm:$0xf] }
  0x2f   : > { %3879 = vmatmul.mubr.bf16.vlgmr.msra.gmra.mrb[0].mxu0 %v7074_v59  ;;  %v541_v52 = vrot.slane %v539_v41, 5  ;;  %v545_v53 = vrot.slane %v543_v42, 4  ;;  %v536_v56 = vor.u32 %v535_v47, %v532_v40  ;;  %v5624_v59 = vrot.slane %v951_v54, 9  ;;  %v956_v29 = vld [vmem:[%s7320_s18 + $0x2c] sm:$0x1]  ;;  %v7088_v40 = vld [vmem:[%s7320_s18 + $0x24] sm:$0xff]  }
  0x30   : > { %4040 = vmatmul.mubr.bf16.vlgmr.msra.gmra.mrb[0].mxu1 %v5638_v6  ;;  %6665 = vmatpush3.bf16.msra.mxu0 %v7076_v63  ;;  %v551_v57 = vrot.slane %v549_v48, 5  ;;  %v1063_v63 = vrot.slane %v953_v58, 5  ;;  %v570_v30 = vor.u32 %v569_v24, %v565_v23  ;;  %v1067_v32 = vrot.slane %v955_v28, 5  ;;  %v444_v37 = vld [vmem:[%s7320_s18 + $0x38] sm:$0x1]  ;;  %v7089_v44 = vld [vmem:[%s7320_s18 + $0x3c] sm:$0xff]  }
  0x31   : > { %6777 = vmatpush3.bf16.msra.mxu1 %v7078_v3  ;;  %4047 = vmatprep.mubr.bf16.mxu1 %v7079_v14  ;;  %v546_v62 = vor.u32 %v545_v53, %v541_v52  ;;  %v537_v1 = vrot.slane %v536_v56, 4  ;;  %v1061_v2 = vsel %vm7334_vm4, %v5624_v59, %v1060_v60  ;;  %v1062_v3 = vrot.slane %v1060_v60, 4  ;;  %v957_v60 = vld [vmem:[%s7320_s18 + $0x30] sm:$0xe] }
  0x32   : > { %6666 = vmatprep.subr.bf16.mxu0 %v7083_v43  ;;  %3886 = vmatprep.mubr.bf16.mxu0 %v5607_v49  ;;  %v554_v14 = vshrl.u32 %v439_v9, 16  ;;  %v1070_v33 = vrot.slane %v956_v29, 5  ;;  %v571_v39 = vrot.slane %v570_v30, 4  ;;  %v1068_v41 = vsel %vm7334_vm4, %v5625_v31, %v1067_v32 }
  0x33   : > { %v547_v4 = vrot.slane %v546_v62, 4  ;;  %6778 = vmatprep.subr.bf16.mxu1 %v7085_v0  ;;  %v542_v6 = vsel %vm7343_vm5, %v537_v1, %v541_v52  ;;  %v1064_v8 = vsel %vm7334_vm4, %v1062_v3, %v1063_v63  ;;  %v1069_v42 = vrot.slane %v1067_v32, 4  ;;  %v959_v0 = vld [vmem:[%s7320_s18 + $0x38] sm:$0x1]  ;;  %v7092_v3 = vld [vmem:[%s8840_s1 + $0x110] sm:$0xff]  }
  0x34   : > { %6667 = vmatpush3.bf16.msra.mxu0 %v7084_v61  ;;  %v5640_v11 = vcombine.low %v1061_v2, %v1064_v8  ;;  %v556_v21 = vrot.slane %v554_v14, 4  ;;  %v587_v48 = vshll.u32 %v443_v36, 16  ;;  %v591_v49 = vshrl.u32 %v443_v36, 16  ;;  %v958_v61 = vld [vmem:[%s7320_s18 + $0x34] sm:$0xf] }
  0x35   : > { %v552_v10 = vsel %vm7343_vm5, %v547_v4, %v551_v57  ;;  %6779 = vmatpush3.bf16.msra.mxu1 %v7086_v5  ;;  %v576_v52 = vsel %vm7343_vm5, %v571_v39, %v575_v25  ;;  %v1071_v53 = vsel %vm7334_vm4, %v1069_v42, %v1070_v33  ;;  %v597_v55 = vshll.u32 %v444_v37, 16  ;;  %v960_v33 = vld [vmem:[%s7320_s18 + $0x3c] sm:$0xe]  ;;  %v449_v42 = vld [vmem:[%s7320_s18 + $0x4c] sm:$0xf] }
  0x36   : > { %v5608_v16 = vcombine.low %v542_v6, %v552_v10  ;;  %v560_v26 = vor.u32 %v559_v22, %v556_v21  ;;  %v5641_v57 = vcombine.low %v1068_v41, %v1071_v53  ;;  %v589_v58 = vrot.slane %v587_v48, 5  ;;  %v7093_v6 = vld [vmem:[%s8840_s1 + $0x1d0] sm:$0xff]  }
  0x37   : > { %3887 = vmatmul.mubr.bf16.gmra.mrb[4].mxu0 %v7080_v34  ;;  %v442_v34 = vld [vmem:[%s7320_s18 + $0x30] sm:$0xf]  ;;  %v593_v59 = vrot.slane %v591_v49, 4  ;;  %v599_v63 = vrot.slane %v597_v55, 5  ;;  %v5626_v1 = vrot.slane %v957_v60, 9  ;;  %v1074_v2 = vrot.slane %v958_v61, 5  ;;  %6780 = vmatprep.subr.bf16.mxu1 %v7093_v6 }
  0x38   : > { %4048 = vmatmul.mubr.bf16.gmra.mrb[4].mxu1 %v5639_v50  ;;  %3894 = vmatprep.mubr.bf16.mxu0 %v5608_v16  ;;  %v561_v35 = vrot.slane %v560_v26, 4  ;;  %v581_v43 = vshll.u32 %v442_v34, 16  ;;  %v7091_v50 = vld [vmem:[%s8840_s1 + $0x150] sm:$0xff]   ;;  %v1077_v5 = vrot.slane %v959_v0, 5  ;;  %v605_v21 = vshll.u32 %v445_v15, 16  ;;  %v7095_v26 = vld [vmem:[%s7320_s18 + $0x48] sm:$0xff]  }
  0x39   : > { %4055 = vmatprep.mubr.bf16.mxu1 %v7081_v38  ;;  %v578_v38 = vshrl.u32 %v442_v34, 16  ;;  %6668 = vmatprep.subr.bf16.mxu0 %v7091_v50  ;;  %v594_v4 = vor.u32 %v593_v59, %v589_v58  ;;  %v1075_v8 = vsel %vm7334_vm4, %v5626_v1, %v1074_v2  ;;  %v1076_v9 = vrot.slane %v1074_v2, 4  ;;  %v961_v34 = vld [vmem:[%s7320_s18 + $0x40] sm:$0xf]  ;;  %v963_v2 = vld [vmem:[%s7320_s18 + $0x48] sm:$0xe] }
  0x3a   : > { %v566_v45 = vsel %vm7343_vm5, %v561_v35, %v565_v23  ;;  %v583_v54 = vrot.slane %v581_v43, 5  ;;  %6669 = vmatpush3.bf16.msra.mxu0 %v7092_v3  ;;  %v611_v23 = vshll.u32 %v446_v18, 16  ;;  %v615_v24 = vshrl.u32 %v446_v18, 16  ;;  %v962_v35 = vld [vmem:[%s7320_s18 + $0x44] sm:$0x1] }
  0x3b   : > { %v580_v47 = vrot.slane %v578_v38, 4  ;;  %v5609_v56 = vcombine.low %v566_v45, %v576_v52  ;;  %v595_v10 = vrot.slane %v594_v4, 4  ;;  %v1078_v14 = vsel %vm7334_vm4, %v1076_v9, %v1077_v5  ;;  %v450_v43 = vld [vmem:[%s7320_s18 + $0x50] sm:$0x1]  ;;  %v7097_v52 = vld [vmem:[%s7320_s18 + $0x54] sm:$0xff]  }
  0x3c   : > { %v5642_v17 = vcombine.low %v1075_v8, %v1078_v14  ;;  %v621_v25 = vshll.u32 %v447_v19, 16  ;;  %v607_v28 = vrot.slane %v605_v21, 5  ;;  %v613_v29 = vrot.slane %v611_v23, 5  ;;  %v964_v3 = vld [vmem:[%s7320_s18 + $0x4c] sm:$0xf]  ;;  %v7100_v9 = vld [vmem:[%s8840_s1 + $0x118] sm:$0xff]  }
  0x3d   : > { %v584_v62 = vor.u32 %v583_v54, %v580_v47  ;;  %v600_v16 = vsel %vm7343_vm5, %v595_v10, %v599_v63  ;;  %v617_v30 = vrot.slane %v615_v24, 4  ;;  %v5627_v37 = vrot.slane %v960_v33, 9  ;;  %v7096_v47 = vld [vmem:[%s7320_s18 + $0x3c] sm:$0xff]   ;;  %v965_v6 = vld [vmem:[%s7320_s18 + $0x50] sm:$0x1]  ;;  %v7098_v19 = vld [vmem:[%s7320_s18 + $0x48] sm:$0xff]  }
  0x3e   : > { %v623_v31 = vrot.slane %v621_v25, 5  ;;  %v1081_v38 = vrot.slane %v961_v34, 5  ;;  %v1084_v39 = vrot.slane %v962_v35, 5  ;;  %v635_v55 = vshll.u32 %v449_v42, 16  ;;  %v451_v21 = vld [vmem:[%s7320_s18 + $0x54] sm:$0xf] }
  0x3f   : > { %3895 = vmatmul.mubr.bf16.gmra.mrb[8].mxu0 %v7082_v7  ;;  %v585_v7 = vrot.slane %v584_v62, 4  ;;  %v618_v36 = vor.u32 %v617_v30, %v613_v29  ;;  %v645_v61 = vshll.u32 %v450_v43, 16  ;;  %v1088_v8 = vrot.slane %v964_v3, 5  ;;  %v452_v24 = vld [vmem:[%s7320_s18 + $0x58] sm:$0xf] }
  0x40   : > { %4056 = vmatmul.mubr.bf16.gmra.mrb[8].mxu1 %v5640_v11  ;;  %3902 = vmatprep.mubr.bf16.mxu0 %v5609_v56  ;;  %v7094_v11 = vld [vmem:[%s8840_s1 + $0x190] sm:$0xff]   ;;  %v1082_v48 = vsel %vm7334_vm4, %v5627_v37, %v1081_v38  ;;  %v1083_v49 = vrot.slane %v1081_v38, 4  ;;  %v639_v56 = vshrl.u32 %v449_v42, 16  ;;  %v637_v0 = vrot.slane %v635_v55, 5  ;;  %v453_v25 = vld [vmem:[%s7320_s18 + $0x5c] sm:$0x1] }
  0x41   : > { %4063 = vmatprep.mubr.bf16.mxu1 %v7087_v20  ;;  %v590_v12 = vsel %vm7343_vm5, %v585_v7, %v589_v58  ;;  %6781 = vmatpush3.bf16.msra.mxu1 %v7094_v11  ;;  %v602_v20 = vshrl.u32 %v445_v15, 16  ;;  %v619_v45 = vrot.slane %v618_v36, 4  ;;  %v647_v5 = vrot.slane %v645_v61, 5 }
  0x42   : > { %v5610_v22 = vcombine.low %v590_v12, %v600_v16  ;;  %v1085_v59 = vsel %vm7334_vm4, %v1083_v49, %v1084_v39  ;;  %v641_v1 = vrot.slane %v639_v56, 4  ;;  %v5628_v7 = vrot.slane %v963_v2, 9  ;;  %v7101_v12 = vld [vmem:[%s8840_s1 + $0x1d8] sm:$0xff]   ;;  %v966_v39 = vld [vmem:[%s7320_s18 + $0x54] sm:$0xe] }
  0x43   : > { %v604_v27 = vrot.slane %v602_v20, 4  ;;  %v624_v58 = vsel %vm7343_vm5, %v619_v45, %v623_v31  ;;  %v5643_v63 = vcombine.low %v1082_v48, %v1085_v59  ;;  %v1091_v11 = vrot.slane %v965_v6, 5  ;;  %6782 = vmatprep.subr.bf16.mxu1 %v7101_v12  ;;  %v455_v49 = vld [vmem:[%s7320_s18 + $0x64] sm:$0xf]  ;;  %v971_v12 = vld [vmem:[%s7320_s18 + $0x68] sm:$0x1] }
  0x44   : > { %v642_v10 = vor.u32 %v641_v1, %v637_v0  ;;  %v1089_v14 = vsel %vm7334_vm4, %v5628_v7, %v1088_v8  ;;  %v1090_v15 = vrot.slane %v1088_v8, 4  ;;  %v663_v30 = vshrl.u32 %v452_v24, 16  ;;  %v969_v8 = vld [vmem:[%s7320_s18 + $0x60] sm:$0xe] }
  0x45   : > { %v608_v32 = vor.u32 %v607_v28, %v604_v27  ;;  %v653_v27 = vshll.u32 %v451_v21, 16  ;;  %v669_v31 = vshll.u32 %v453_v25, 16  ;;  %v5629_v43 = vrot.slane %v966_v39, 9  ;;  %v7106_v25 = vld [vmem:[%s7320_s18 + $0x60] sm:$0xff]  }
  0x46   : > { %v643_v16 = vrot.slane %v642_v10, 4  ;;  %v1092_v20 = vsel %vm7334_vm4, %v1090_v15, %v1091_v11  ;;  %v665_v36 = vrot.slane %v663_v30, 4  ;;  %v683_v61 = vshll.u32 %v455_v49, 16  ;;  %v7108_v15 = vld [vmem:[%s8840_s1 + $0x120] sm:$0xff]   ;;  %v458_v30 = vld [vmem:[%s7320_s18 + $0x70] sm:$0xf] }
  0x47   : > { %3903 = vmatmul.mubr.bf16.gmra.mrb[12].mxu0 %v7088_v40  ;;  %v448_v40 = vld [vmem:[%s7320_s18 + $0x48] sm:$0xf]  ;;  %v609_v41 = vrot.slane %v608_v32, 4  ;;  %v5644_v23 = vcombine.low %v1089_v14, %v1092_v20  ;;  %v7103_v32 = vld [vmem:[%s7320_s18 + $0x60] sm:$0xff]   ;;  %v655_v34 = vrot.slane %v653_v27, 5  ;;  %v671_v37 = vrot.slane %v669_v31, 5 }
  0x48   : > { %4064 = vmatmul.mubr.bf16.gmra.mrb[12].mxu1 %v5641_v57  ;;  %3910 = vmatprep.mubr.bf16.mxu0 %v5610_v22  ;;  %v629_v50 = vshll.u32 %v448_v40, 16  ;;  %v7099_v57 = vld [vmem:[%s8840_s1 + $0x158] sm:$0xff]   ;;  %v648_v22 = vsel %vm7343_vm5, %v643_v16, %v647_v5  ;;  %v685_v6 = vrot.slane %v683_v61, 5  ;;  %v457_v27 = vld [vmem:[%s7320_s18 + $0x6c] sm:$0xf] }
  0x49   : > { %4071 = vmatprep.mubr.bf16.mxu1 %v7089_v44  ;;  %v626_v44 = vshrl.u32 %v448_v40, 16  ;;  %v614_v53 = vsel %vm7343_vm5, %v609_v41, %v613_v29  ;;  %6670 = vmatprep.subr.bf16.mxu0 %v7099_v57  ;;  %v659_v29 = vshll.u32 %v452_v24, 16  ;;  %v967_v40 = vld [vmem:[%s7320_s18 + $0x58] sm:$0xf]  ;;  %v968_v41 = vld [vmem:[%s7320_s18 + $0x5c] sm:$0x1] }
  0x4a   : > { %v631_v60 = vrot.slane %v629_v50, 5  ;;  %v5611_v62 = vcombine.low %v614_v53, %v624_v58  ;;  %6671 = vmatpush3.bf16.msra.mxu0 %v7100_v9  ;;  %v1098_v45 = vrot.slane %v968_v41, 5  ;;  %v456_v50 = vld [vmem:[%s7320_s18 + $0x68] sm:$0x1]  ;;  %v7105_v58 = vld [vmem:[%s7320_s18 + $0x6c] sm:$0xff]  }
  0x4b   : > { %v628_v54 = vrot.slane %v626_v44, 4  ;;  %v661_v35 = vrot.slane %v659_v29, 5  ;;  %v1095_v44 = vrot.slane %v967_v40, 5  ;;  %v693_v3 = vshll.u32 %v456_v50, 16  ;;  %v970_v9 = vld [vmem:[%s7320_s18 + $0x64] sm:$0xf] }
  0x4c   : > { %v1102_v14 = vrot.slane %v970_v9, 5  ;;  %v459_v31 = vld [vmem:[%s7320_s18 + $0x74] sm:$0x1] }
  0x4d   : > { %v632_v4 = vor.u32 %v631_v60, %v628_v54  ;;  %v666_v42 = vor.u32 %v665_v36, %v661_v35  ;;  %v7104_v54 = vld [vmem:[%s7320_s18 + $0x54] sm:$0xff]   ;;  %v1096_v55 = vsel %vm7334_vm4, %v5629_v43, %v1095_v44  ;;  %v1097_v56 = vrot.slane %v1095_v44, 4 }
  0x4e   : > { %v695_v11 = vrot.slane %v693_v3, 5  ;;  %v711_v36 = vshrl.u32 %v458_v30, 16 }
  0x4f   : > { %3911 = vmatmul.mubr.bf16.gmra.mrb[16].mxu0 %v7090_v13  ;;  %v633_v13 = vrot.slane %v632_v4, 4  ;;  %v667_v53 = vrot.slane %v666_v42, 4  ;;  %v1099_v1 = vsel %vm7334_vm4, %v1097_v56, %v1098_v45  ;;  %v972_v45 = vld [vmem:[%s7320_s18 + $0x6c] sm:$0xe]  ;;  %v461_v56 = vld [vmem:[%s7320_s18 + $0x7c] sm:$0xf] }
  0x50   : > { %4072 = vmatmul.mubr.bf16.gmra.mrb[16].mxu1 %v5642_v17  ;;  %3918 = vmatprep.mubr.bf16.mxu0 %v5611_v62  ;;  %v7102_v17 = vld [vmem:[%s8840_s1 + $0x198] sm:$0xff]   ;;  %v687_v62 = vshrl.u32 %v455_v49, 16  ;;  %v5645_v5 = vcombine.low %v1096_v55, %v1099_v1  ;;  %v713_v42 = vrot.slane %v711_v36, 4  ;;  %v5631_v50 = vrot.slane %v972_v45, 9  ;;  %v464_v36 = vld [vmem:[%s7320_s18 + $0x88] sm:$0xf] }
  0x51   : > { %4079 = vmatprep.mubr.bf16.mxu1 %v7095_v26  ;;  %v638_v18 = vsel %vm7343_vm5, %v633_v13, %v637_v0  ;;  %6783 = vmatpush3.bf16.msra.mxu1 %v7102_v17  ;;  %v650_v26 = vshrl.u32 %v451_v21, 16  ;;  %v672_v0 = vsel %vm7343_vm5, %v667_v53, %v671_v37  ;;  %v5630_v13 = vrot.slane %v969_v8, 9 }
  0x52   : > { %v5612_v28 = vcombine.low %v638_v18, %v648_v22  ;;  %v689_v7 = vrot.slane %v687_v62, 4  ;;  %v1105_v17 = vrot.slane %v971_v12, 5  ;;  %v7109_v18 = vld [vmem:[%s8840_s1 + $0x1e0] sm:$0xff]   ;;  %v1104_v21 = vrot.slane %v1102_v14, 4 }
  0x53   : > { %v652_v33 = vrot.slane %v650_v26, 4  ;;  %v1103_v20 = vsel %vm7334_vm4, %v5630_v13, %v1102_v14  ;;  %6784 = vmatprep.subr.bf16.mxu1 %v7109_v18  ;;  %v717_v37 = vshll.u32 %v459_v31, 16  ;;  %v731_v3 = vshll.u32 %v461_v56, 16  ;;  %v975_v14 = vld [vmem:[%s7320_s18 + $0x78] sm:$0xe] }
  0x54   : > { %v690_v16 = vor.u32 %v689_v7, %v685_v6  ;;  %v1106_v26 = vsel %vm7334_vm4, %v1104_v21, %v1105_v17  ;;  %v977_v18 = vld [vmem:[%s7320_s18 + $0x80] sm:$0x1]  ;;  %v7116_v21 = vld [vmem:[%s8840_s1 + $0x128] sm:$0xff]   ;;  %v7114_v31 = vld [vmem:[%s7320_s18 + $0x78] sm:$0xff]  }
  0x55   : > { %v656_v38 = vor.u32 %v655_v34, %v652_v33  ;;  %v5646_v29 = vcombine.low %v1103_v20, %v1106_v26  ;;  %v701_v33 = vshll.u32 %v457_v27, 16  ;;  %v719_v43 = vrot.slane %v717_v37, 5  ;;  %v465_v37 = vld [vmem:[%s7320_s18 + $0x8c] sm:$0x1] }
  0x56   : > { %v691_v22 = vrot.slane %v690_v16, 4  ;;  %v733_v12 = vrot.slane %v731_v3, 5 }
  0x57   : > { %3919 = vmatmul.mubr.bf16.gmra.mrb[20].mxu0 %v7096_v47  ;;  %v454_v47 = vld [vmem:[%s7320_s18 + $0x60] sm:$0xf]  ;;  %v657_v48 = vrot.slane %v656_v38, 4  ;;  %v7111_v38 = vld [vmem:[%s7320_s18 + $0x78] sm:$0xff]   ;;  %v703_v40 = vrot.slane %v701_v33, 5 }
  0x58   : > { %4080 = vmatmul.mubr.bf16.gmra.mrb[20].mxu1 %v5643_v63  ;;  %3926 = vmatprep.mubr.bf16.mxu0 %v5612_v28  ;;  %v677_v57 = vshll.u32 %v454_v47, 16  ;;  %v7107_v63 = vld [vmem:[%s8840_s1 + $0x160] sm:$0xff]   ;;  %v696_v28 = vsel %vm7343_vm5, %v691_v22, %v695_v11 }
  0x59   : > { %4087 = vmatprep.mubr.bf16.mxu1 %v7097_v52  ;;  %v674_v52 = vshrl.u32 %v454_v47, 16  ;;  %v662_v59 = vsel %vm7343_vm5, %v657_v48, %v661_v35  ;;  %6672 = vmatprep.subr.bf16.mxu0 %v7107_v63  ;;  %v707_v35 = vshll.u32 %v458_v30, 16  ;;  %v973_v47 = vld [vmem:[%s7320_s18 + $0x70] sm:$0xf]  ;;  %v974_v48 = vld [vmem:[%s7320_s18 + $0x74] sm:$0x1] }
  0x5a   : > { %v679_v2 = vrot.slane %v677_v57, 5  ;;  %v5613_v4 = vcombine.low %v662_v59, %v672_v0  ;;  %6673 = vmatpush3.bf16.msra.mxu0 %v7108_v15  ;;  %v1112_v53 = vrot.slane %v974_v48, 5  ;;  %v462_v57 = vld [vmem:[%s7320_s18 + $0x80] sm:$0x1]  ;;  %v7113_v0 = vld [vmem:[%s7320_s18 + $0x84] sm:$0xff]  }
  0x5b   : > { %v676_v60 = vrot.slane %v674_v52, 4  ;;  %v709_v41 = vrot.slane %v707_v35, 5  ;;  %v1109_v52 = vrot.slane %v973_v47, 5  ;;  %v741_v9 = vshll.u32 %v462_v57, 16  ;;  %v976_v15 = vld [vmem:[%s7320_s18 + $0x7c] sm:$0xf] }
  0x5c   : > { %v1116_v20 = vrot.slane %v976_v15, 5  ;;  %v463_v33 = vld [vmem:[%s7320_s18 + $0x84] sm:$0xf] }
  0x5d   : > { %v680_v10 = vor.u32 %v679_v2, %v676_v60  ;;  %v714_v49 = vor.u32 %v713_v42, %v709_v41  ;;  %v7112_v60 = vld [vmem:[%s7320_s18 + $0x6c] sm:$0xff]   ;;  %v1110_v61 = vsel %vm7334_vm4, %v5631_v50, %v1109_v52  ;;  %v1111_v62 = vrot.slane %v1109_v52, 4 }
  0x5e   : > { %v743_v17 = vrot.slane %v741_v9, 5  ;;  %v759_v42 = vshrl.u32 %v464_v36, 16 }
  0x5f   : > { %3927 = vmatmul.mubr.bf16.gmra.mrb[24].mxu0 %v7098_v19  ;;  %v681_v19 = vrot.slane %v680_v10, 4  ;;  %v715_v59 = vrot.slane %v714_v49, 4  ;;  %v1113_v7 = vsel %vm7334_vm4, %v1111_v62, %v1112_v53  ;;  %v978_v53 = vld [vmem:[%s7320_s18 + $0x84] sm:$0xe]  ;;  %v467_v62 = vld [vmem:[%s7320_s18 + $0x94] sm:$0xf] }
  0x60   : > { %4088 = vmatmul.mubr.bf16.gmra.mrb[24].mxu1 %v5644_v23  ;;  %3934 = vmatprep.mubr.bf16.mxu0 %v5613_v4  ;;  %v7110_v23 = vld [vmem:[%s8840_s1 + $0x1a0] sm:$0xff]   ;;  %v735_v4 = vshrl.u32 %v461_v56, 16  ;;  %v5647_v11 = vcombine.low %v1110_v61, %v1113_v7  ;;  %v761_v49 = vrot.slane %v759_v42, 4  ;;  %v5633_v57 = vrot.slane %v978_v53, 9 }
  0x61   : > { %4095 = vmatprep.mubr.bf16.mxu1 %v7103_v32  ;;  %v686_v24 = vsel %vm7343_vm5, %v681_v19, %v685_v6  ;;  %6785 = vmatpush3.bf16.msra.mxu1 %v7110_v23  ;;  %v698_v32 = vshrl.u32 %v457_v27, 16  ;;  %v720_v6 = vsel %vm7343_vm5, %v715_v59, %v719_v43  ;;  %v5632_v19 = vrot.slane %v975_v14, 9  ;;  %v470_v42 = vld [vmem:[%s7320_s18 + $0xa0] sm:$0xf] }
  0x62   : > { %v5614_v34 = vcombine.low %v686_v24, %v696_v28  ;;  %v737_v13 = vrot.slane %v735_v4, 4  ;;  %v1119_v23 = vrot.slane %v977_v18, 5  ;;  %v7117_v24 = vld [vmem:[%s8840_s1 + $0x1e8] sm:$0xff]   ;;  %v1118_v27 = vrot.slane %v1116_v20, 4 }
  0x63   : > { %v700_v39 = vrot.slane %v698_v32, 4  ;;  %v1117_v26 = vsel %vm7334_vm4, %v5632_v19, %v1116_v20  ;;  %6786 = vmatprep.subr.bf16.mxu1 %v7117_v24  ;;  %v765_v43 = vshll.u32 %v465_v37, 16  ;;  %v779_v9 = vshll.u32 %v467_v62, 16  ;;  %v981_v20 = vld [vmem:[%s7320_s18 + $0x90] sm:$0xe] }
  0x64   : > { %v738_v22 = vor.u32 %v737_v13, %v733_v12  ;;  %v1120_v32 = vsel %vm7334_vm4, %v1118_v27, %v1119_v23  ;;  %v983_v24 = vld [vmem:[%s7320_s18 + $0x98] sm:$0x1]  ;;  %v7124_v27 = vld [vmem:[%s8840_s1 + $0x130] sm:$0xff]  }
  0x65   : > { %v704_v44 = vor.u32 %v703_v40, %v700_v39  ;;  %v5648_v35 = vcombine.low %v1117_v26, %v1120_v32  ;;  %v749_v39 = vshll.u32 %v463_v33, 16  ;;  %v767_v50 = vrot.slane %v765_v43, 5  ;;  %v7122_v37 = vld [vmem:[%s7320_s18 + $0x90] sm:$0xff]   ;;  %v471_v43 = vld [vmem:[%s7320_s18 + $0xa4] sm:$0x1] }
  0x66   : > { %v739_v28 = vrot.slane %v738_v22, 4  ;;  %v781_v18 = vrot.slane %v779_v9, 5 }
  0x67   : > { %3935 = vmatmul.mubr.bf16.gmra.mrb[28].mxu0 %v7104_v54  ;;  %v460_v54 = vld [vmem:[%s7320_s18 + $0x78] sm:$0xf]  ;;  %v705_v55 = vrot.slane %v704_v44, 4  ;;  %v7119_v44 = vld [vmem:[%s7320_s18 + $0x90] sm:$0xff]   ;;  %v751_v47 = vrot.slane %v749_v39, 5 }
  0x68   : > { %4096 = vmatmul.mubr.bf16.gmra.mrb[28].mxu1 %v5645_v5  ;;  %3942 = vmatprep.mubr.bf16.mxu0 %v5614_v34  ;;  %v725_v63 = vshll.u32 %v460_v54, 16  ;;  %v7115_v5 = vld [vmem:[%s8840_s1 + $0x168] sm:$0xff]   ;;  %v744_v34 = vsel %vm7343_vm5, %v739_v28, %v743_v17  ;;  %v469_v39 = vld [vmem:[%s7320_s18 + $0x9c] sm:$0xf] }
  0x69   : > { %4103 = vmatprep.mubr.bf16.mxu1 %v7105_v58  ;;  %v722_v58 = vshrl.u32 %v460_v54, 16  ;;  %v710_v1 = vsel %vm7343_vm5, %v705_v55, %v709_v41  ;;  %6674 = vmatprep.subr.bf16.mxu0 %v7115_v5  ;;  %v755_v41 = vshll.u32 %v464_v36, 16  ;;  %v979_v54 = vld [vmem:[%s7320_s18 + $0x88] sm:$0xf]  ;;  %v980_v55 = vld [vmem:[%s7320_s18 + $0x8c] sm:$0x1] }
  0x6a   : > { %v727_v8 = vrot.slane %v725_v63, 5  ;;  %v5615_v10 = vcombine.low %v710_v1, %v720_v6  ;;  %6675 = vmatpush3.bf16.msra.mxu0 %v7116_v21  ;;  %v1126_v59 = vrot.slane %v980_v55, 5  ;;  %v468_v63 = vld [vmem:[%s7320_s18 + $0x98] sm:$0x1]  ;;  %v7121_v6 = vld [vmem:[%s7320_s18 + $0x9c] sm:$0xff]  }
  0x6b   : > { %v724_v2 = vrot.slane %v722_v58, 4  ;;  %v757_v48 = vrot.slane %v755_v41, 5  ;;  %v1123_v58 = vrot.slane %v979_v54, 5  ;;  %v789_v15 = vshll.u32 %v468_v63, 16  ;;  %v982_v21 = vld [vmem:[%s7320_s18 + $0x94] sm:$0xf] }
  0x6c   : > { %v1130_v26 = vrot.slane %v982_v21, 5 }
  0x6d   : > { %v728_v16 = vor.u32 %v727_v8, %v724_v2  ;;  %v762_v56 = vor.u32 %v761_v49, %v757_v48  ;;  %v7120_v2 = vld [vmem:[%s7320_s18 + $0x84] sm:$0xff]   ;;  %v1124_v3 = vsel %vm7334_vm4, %v5633_v57, %v1123_v58  ;;  %v1125_v4 = vrot.slane %v1123_v58, 4 }
  0x6e   : > { %v791_v23 = vrot.slane %v789_v15, 5  ;;  %v807_v49 = vshrl.u32 %v470_v42, 16 }
  0x6f   : > { %3943 = vmatmul.mubr.bf16.gmra.mrb[32].mxu0 %v7106_v25  ;;  %v729_v25 = vrot.slane %v728_v16, 4  ;;  %v763_v1 = vrot.slane %v762_v56, 4  ;;  %v1127_v13 = vsel %vm7334_vm4, %v1125_v4, %v1126_v59  ;;  %v984_v59 = vld [vmem:[%s7320_s18 + $0x9c] sm:$0xe]  ;;  %v473_v4 = vld [vmem:[%s7320_s18 + $0xac] sm:$0xf] }
  0x70   : > { %4104 = vmatmul.mubr.bf16.gmra.mrb[32].mxu1 %v5646_v29  ;;  %3950 = vmatprep.mubr.bf16.mxu0 %v5615_v10  ;;  %v7118_v29 = vld [vmem:[%s8840_s1 + $0x1a8] sm:$0xff]   ;;  %v783_v10 = vshrl.u32 %v467_v62, 16  ;;  %v5649_v17 = vcombine.low %v1124_v3, %v1127_v13  ;;  %v809_v56 = vrot.slane %v807_v49, 4  ;;  %v5635_v63 = vrot.slane %v984_v59, 9  ;;  %v476_v49 = vld [vmem:[%s7320_s18 + $0xb8] sm:$0xf] }
  0x71   : > { %4111 = vmatprep.mubr.bf16.mxu1 %v7111_v38  ;;  %v734_v30 = vsel %vm7343_vm5, %v729_v25, %v733_v12  ;;  %6787 = vmatpush3.bf16.msra.mxu1 %v7118_v29  ;;  %v746_v38 = vshrl.u32 %v463_v33, 16  ;;  %v768_v12 = vsel %vm7343_vm5, %v763_v1, %v767_v50  ;;  %v5634_v25 = vrot.slane %v981_v20, 9 }
  0x72   : > { %v5616_v40 = vcombine.low %v734_v30, %v744_v34  ;;  %v785_v19 = vrot.slane %v783_v10, 4  ;;  %v1133_v29 = vrot.slane %v983_v24, 5  ;;  %v7125_v30 = vld [vmem:[%s8840_s1 + $0x1f0] sm:$0xff]   ;;  %v1132_v33 = vrot.slane %v1130_v26, 4 }
  0x73   : > { %v748_v45 = vrot.slane %v746_v38, 4  ;;  %v1131_v32 = vsel %vm7334_vm4, %v5634_v25, %v1130_v26  ;;  %6788 = vmatprep.subr.bf16.mxu1 %v7125_v30  ;;  %v813_v50 = vshll.u32 %v471_v43, 16  ;;  %v827_v15 = vshll.u32 %v473_v4, 16  ;;  %v987_v26 = vld [vmem:[%s7320_s18 + $0xa8] sm:$0xe] }
  0x74   : > { %v786_v28 = vor.u32 %v785_v19, %v781_v18  ;;  %v1134_v38 = vsel %vm7334_vm4, %v1132_v33, %v1133_v29  ;;  %v989_v30 = vld [vmem:[%s7320_s18 + $0xb0] sm:$0x1]  ;;  %v7132_v33 = vld [vmem:[%s8840_s1 + $0x138] sm:$0xff]   ;;  %v7130_v43 = vld [vmem:[%s7320_s18 + $0xa8] sm:$0xff]  }
  0x75   : > { %v752_v52 = vor.u32 %v751_v47, %v748_v45  ;;  %v5650_v41 = vcombine.low %v1131_v32, %v1134_v38  ;;  %v797_v45 = vshll.u32 %v469_v39, 16  ;;  %v815_v57 = vrot.slane %v813_v50, 5  ;;  %v477_v50 = vld [vmem:[%s7320_s18 + $0xbc] sm:$0x1] }
  0x76   : > { %v787_v34 = vrot.slane %v786_v28, 4  ;;  %v829_v24 = vrot.slane %v827_v15, 5 }
  0x77   : > { %3951 = vmatmul.mubr.bf16.gmra.mrb[36].mxu0 %v7112_v60  ;;  %v466_v60 = vld [vmem:[%s7320_s18 + $0x90] sm:$0xf]  ;;  %v753_v61 = vrot.slane %v752_v52, 4  ;;  %v7127_v52 = vld [vmem:[%s7320_s18 + $0xa8] sm:$0xff]   ;;  %v799_v54 = vrot.slane %v797_v45, 5 }
  0x78   : > { %4112 = vmatmul.mubr.bf16.gmra.mrb[36].mxu1 %v5647_v11  ;;  %3958 = vmatprep.mubr.bf16.mxu0 %v5616_v40  ;;  %v773_v5 = vshll.u32 %v466_v60, 16  ;;  %v7123_v11 = vld [vmem:[%s8840_s1 + $0x170] sm:$0xff]   ;;  %v792_v40 = vsel %vm7343_vm5, %v787_v34, %v791_v23 }
  0x79   : > { %4119 = vmatprep.mubr.bf16.mxu1 %v7113_v0  ;;  %v770_v0 = vshrl.u32 %v466_v60, 16  ;;  %v758_v7 = vsel %vm7343_vm5, %v753_v61, %v757_v48  ;;  %6676 = vmatprep.subr.bf16.mxu0 %v7123_v11  ;;  %v803_v48 = vshll.u32 %v470_v42, 16  ;;  %v985_v60 = vld [vmem:[%s7320_s18 + $0xa0] sm:$0xf]  ;;  %v986_v61 = vld [vmem:[%s7320_s18 + $0xa4] sm:$0x1] }
  0x7a   : > { %v775_v14 = vrot.slane %v773_v5, 5  ;;  %v5617_v16 = vcombine.low %v758_v7, %v768_v12  ;;  %6677 = vmatpush3.bf16.msra.mxu0 %v7124_v27  ;;  %v1140_v1 = vrot.slane %v986_v61, 5  ;;  %v474_v5 = vld [vmem:[%s7320_s18 + $0xb0] sm:$0x1]  ;;  %v7129_v12 = vld [vmem:[%s7320_s18 + $0xb4] sm:$0xff]  }
  0x7b   : > { %v772_v8 = vrot.slane %v770_v0, 4  ;;  %v805_v55 = vrot.slane %v803_v48, 5  ;;  %v1137_v0 = vrot.slane %v985_v60, 5  ;;  %v837_v21 = vshll.u32 %v474_v5, 16  ;;  %v988_v27 = vld [vmem:[%s7320_s18 + $0xac] sm:$0xf] }
  0x7c   : > { %v1144_v32 = vrot.slane %v988_v27, 5  ;;  %v475_v45 = vld [vmem:[%s7320_s18 + $0xb4] sm:$0xf] }
  0x7d   : > { %v776_v22 = vor.u32 %v775_v14, %v772_v8  ;;  %v810_v62 = vor.u32 %v809_v56, %v805_v55  ;;  %v7128_v8 = vld [vmem:[%s7320_s18 + $0x9c] sm:$0xff]   ;;  %v1138_v9 = vsel %vm7334_vm4, %v5635_v63, %v1137_v0  ;;  %v1139_v10 = vrot.slane %v1137_v0, 4 }
  0x7e   : > { %v839_v29 = vrot.slane %v837_v21, 5  ;;  %v855_v56 = vshrl.u32 %v476_v49, 16 }
  0x7f   : > { %3959 = vmatmul.mubr.bf16.gmra.mrb[40].mxu0 %v7114_v31  ;;  %v777_v31 = vrot.slane %v776_v22, 4  ;;  %v811_v7 = vrot.slane %v810_v62, 4  ;;  %v1141_v19 = vsel %vm7334_vm4, %v1139_v10, %v1140_v1  ;;  %v990_v1 = vld [vmem:[%s7320_s18 + $0xb4] sm:$0xe]  ;;  %v5767_v10 = vld [vmem:[%s7320_s18 + $0x10] sm:$0xf] }
  0x80   : > { %4120 = vmatmul.mubr.bf16.gmra.mrb[40].mxu1 %v5648_v35  ;;  %3966 = vmatprep.mubr.bf16.mxu0 %v5617_v16  ;;  %v7126_v35 = vld [vmem:[%s8840_s1 + $0x1b0] sm:$0xff]   ;;  %v831_v16 = vshrl.u32 %v473_v4, 16  ;;  %v5651_v23 = vcombine.low %v1138_v9, %v1141_v19  ;;  %v857_v62 = vrot.slane %v855_v56, 4  ;;  %v5637_v5 = vrot.slane %v990_v1, 9  ;;  %v7693_v19 = vld [vmem:[%s8840_s1 + $0x200] sm:$0xff]  }
  0x81   : > { %4127 = vmatprep.mubr.bf16.mxu1 %v7119_v44  ;;  %v782_v36 = vsel %vm7343_vm5, %v777_v31, %v781_v18  ;;  %6789 = vmatpush3.bf16.msra.mxu1 %v7126_v35  ;;  %v794_v44 = vshrl.u32 %v469_v39, 16  ;;  %v816_v18 = vsel %vm7343_vm5, %v811_v7, %v815_v57  ;;  %v5636_v31 = vrot.slane %v987_v26, 9 }
  0x82   : > { %v5618_v47 = vcombine.low %v782_v36, %v792_v40  ;;  %v833_v25 = vrot.slane %v831_v16, 4  ;;  %v1147_v35 = vrot.slane %v989_v30, 5  ;;  %v7133_v36 = vld [vmem:[%s8840_s1 + $0x1f8] sm:$0xff]   ;;  %v1146_v39 = vrot.slane %v1144_v32, 4  ;;  %v5703_v30 = vld [vmem:[%s7320_s18 + $0x10] sm:$0xf] }
  0x83   : > { %v796_v53 = vrot.slane %v794_v44, 4  ;;  %v1145_v38 = vsel %vm7334_vm4, %v5636_v31, %v1144_v32  ;;  %6790 = vmatprep.subr.bf16.mxu1 %v7133_v36  ;;  %v861_v57 = vshll.u32 %v477_v50, 16  ;;  %v7711_v31 = vld [vmem:[%s8841_s2] sm:$0xff]   ;;  %v5704_v36 = vld [vmem:[%s7320_s18 + $0x14] sm:$0x1] }
  0x84   : > { %v834_v34 = vor.u32 %v833_v25, %v829_v24  ;;  %v1148_v44 = vsel %vm7334_vm4, %v1146_v39, %v1147_v35 }
  0x85   : > { %v800_v58 = vor.u32 %v799_v54, %v796_v53  ;;  %v5652_v48 = vcombine.low %v1145_v38, %v1148_v44  ;;  %v845_v53 = vshll.u32 %v475_v45, 16  ;;  %v863_v63 = vrot.slane %v861_v57, 5 }
  0x86   : > { %v835_v40 = vrot.slane %v834_v34, 4  ;;  %v1449_v57 = vshll.u32 %v5704_v36, 16 }
  0x87   : > { %3967 = vmatmul.mubr.bf16.gmra.mrb[44].mxu0 %v7120_v2  ;;  %v472_v2 = vld [vmem:[%s7320_s18 + $0xa8] sm:$0xf]  ;;  %v801_v3 = vrot.slane %v800_v58, 4  ;;  %v7135_v58 = vld [vmem:[%s7320_s18 + $0xc0] sm:$0xff]   ;;  %v847_v60 = vrot.slane %v845_v53, 5 }
  0x88   : > { %4128 = vmatmul.mubr.bf16.gmra.mrb[44].mxu1 %v5649_v17  ;;  %3974 = vmatprep.mubr.bf16.mxu0 %v5618_v47  ;;  %v821_v11 = vshll.u32 %v472_v2, 16  ;;  %v7131_v17 = vld [vmem:[%s8840_s1 + $0x178] sm:$0xff]   ;;  %v840_v47 = vsel %vm7343_vm5, %v835_v40, %v839_v29  ;;  %v5702_v29 = vld [vmem:[%s7320_s18 + $0xc] sm:$0xf]  ;;  %v1451_v1 = vrot.slane %v1449_v57, 5 }
  0x89   : > { %4135 = vmatprep.mubr.bf16.mxu1 %v7121_v6  ;;  %v818_v6 = vshrl.u32 %v472_v2, 16  ;;  %v806_v13 = vsel %vm7343_vm5, %v801_v3, %v805_v55  ;;  %6678 = vmatprep.subr.bf16.mxu0 %v7131_v17  ;;  %v851_v55 = vshll.u32 %v476_v49, 16  ;;  %v991_v2 = vld [vmem:[%s7320_s18 + $0xb8] sm:$0xf]  ;;  %v992_v3 = vld [vmem:[%s7320_s18 + $0xbc] sm:$0x1] }
  0x8a   : > { %v823_v20 = vrot.slane %v821_v11, 5  ;;  %v5619_v22 = vcombine.low %v806_v13, %v816_v18  ;;  %6679 = vmatpush3.bf16.msra.mxu0 %v7132_v33  ;;  %v1154_v7 = vrot.slane %v992_v3, 5  ;;  %v5768_v11 = vld [vmem:[%s7320_s18 + $0x14] sm:$0x1]  ;;  %v1991_v17 = vrot.slane %v5767_v10, 5 }
  0x8b   : > { %v820_v14 = vrot.slane %v818_v6, 4  ;;  %v853_v61 = vrot.slane %v851_v55, 5  ;;  %v1151_v6 = vrot.slane %v991_v2, 5  ;;  %v5894_v18 = vld [vmem:[%s7320_s18 + $0x18] sm:$0xf]  ;;  %v1994_v21 = vrot.slane %v5768_v11, 5  ;;  %6936 = vmatprep.subr.bf16.mxu0 %v7693_v19 }
  0x8c   : > { %v2378_v35 = vshll.u32 %v5894_v18, 16  ;;  %v1433_v44 = vshll.u32 %v5702_v29, 16  ;;  %v1439_v49 = vshll.u32 %v5703_v30, 16  ;;  %v5898_v10 = vld [vmem:[%s7320_s18 + $0x28] sm:$0xf] }
  0x8d   : > { %v824_v28 = vor.u32 %v823_v20, %v820_v14  ;;  %v858_v4 = vor.u32 %v857_v62, %v853_v61  ;;  %v7136_v14 = vld [vmem:[%s7320_s18 + $0xb4] sm:$0xff]   ;;  %v1152_v15 = vsel %vm7334_vm4, %v5637_v5, %v1151_v6  ;;  %v1153_v16 = vrot.slane %v1151_v6, 4  ;;  %v5770_v62 = vld [vmem:[%s7320_s18 + $0x1c] sm:$0xf] }
  0x8e   : > { %v1435_v53 = vrot.slane %v1433_v44, 5  ;;  %v1441_v56 = vrot.slane %v1439_v49, 5  ;;  %v1998_v3 = vrot.slane %v5770_v62, 5  ;;  %v7146_v62 = vld [vmem:[%s8840_s1 + $0x210] sm:$0xff]  }
  0x8f   : > { %3975 = vmatmul.mubr.bf16.gmra.mrb[48].mxu0 %v7122_v37  ;;  %v825_v37 = vrot.slane %v824_v28, 4  ;;  %v859_v13 = vrot.slane %v858_v4, 4  ;;  %v1155_v26 = vsel %vm7334_vm4, %v1153_v16, %v1154_v7  ;;  %v1993_v28 = vrot.slane %v1991_v17, 4  ;;  %v5897_v4 = vld [vmem:[%s7320_s18 + $0x24] sm:$0xf] }
  0x90   : > { %4136 = vmatmul.mubr.bf16.gmra.mrb[48].mxu1 %v5650_v41  ;;  %3982 = vmatprep.mubr.bf16.mxu0 %v5619_v22  ;;  %v7134_v41 = vld [vmem:[%s8840_s1 + $0x1b8] sm:$0xff]   ;;  %v5653_v33 = vcombine.low %v1152_v15, %v1155_v26  ;;  %v2399_v15 = vshrl.u32 %v5897_v4, 16  ;;  %v2412_v26 = vshrl.u32 %v5898_v10, 16 }
  0x91   : > { %4143 = vmatprep.mubr.bf16.mxu1 %v7127_v52  ;;  %v830_v42 = vsel %vm7343_vm5, %v825_v37, %v829_v24  ;;  %6791 = vmatpush3.bf16.msra.mxu1 %v7134_v41  ;;  %v842_v52 = vshrl.u32 %v475_v45, 16  ;;  %v5895_v22 = vld [vmem:[%s7320_s18 + $0x1c] sm:$0xf]  ;;  %v2375_v24 = vshrl.u32 %v5894_v18, 16  ;;  %v864_v25 = vsel %vm7343_vm5, %v859_v13, %v863_v63  ;;  %v5771_v63 = vld [vmem:[%s7320_s18 + $0x20] sm:$0x1] }
  0x92   : > { %v5620_v54 = vcombine.low %v830_v42, %v840_v47  ;;  %v1995_v37 = vsel %vm7334_vm4, %v1993_v28, %v1994_v21  ;;  %v2384_v38 = vshll.u32 %v5895_v22, 16  ;;  %v2388_v39 = vshrl.u32 %v5895_v22, 16  ;;  %6984 = vmatprep.subr.bf16.mxu1 %v7711_v31  ;;  %v5705_v16 = vld [vmem:[%s7320_s18 + $0x18] sm:$0xf]  ;;  %v5706_v22 = vld [vmem:[%s7320_s18 + $0x1c] sm:$0xf] }
  0x93   : > { %v844_v59 = vrot.slane %v842_v52, 4  ;;  %v2377_v34 = vrot.slane %v2375_v24, 4  ;;  %v2380_v42 = vrot.slane %v2378_v35, 5  ;;  %v2000_v13 = vrot.slane %v1998_v3, 4 }
  0x94   : > { %v2386_v45 = vrot.slane %v2384_v38, 5  ;;  %v2390_v47 = vrot.slane %v2388_v39, 4  ;;  %v2402_v21 = vshll.u32 %v5897_v4, 16  ;;  %v2401_v24 = vrot.slane %v2399_v15, 4  ;;  %v5773_v39 = vld [vmem:[%s7320_s18 + $0x28] sm:$0xf] }
  0x95   : > { %v848_v0 = vor.u32 %v847_v60, %v844_v59  ;;  %v2381_v50 = vor.u32 %v2380_v42, %v2377_v34  ;;  %v5772_v34 = vld [vmem:[%s7320_s18 + $0x24] sm:$0xe]  ;;  %v1454_v38 = vshrl.u32 %v5705_v16, 16  ;;  %v1463_v44 = vshll.u32 %v5706_v22, 16 }
  0x96   : > { %v2391_v55 = vor.u32 %v2390_v47, %v2386_v45  ;;  %v1467_v49 = vshrl.u32 %v5706_v22, 16 }
  0x97   : > { %3983 = vmatmul.mubr.bf16.gmra.mrb[52].mxu0 %v7128_v8  ;;  %v5766_v8 = vld [vmem:[%s7320_s18 + $0xc] sm:$0xe]  ;;  %v849_v9 = vrot.slane %v848_v0, 4  ;;  %v2382_v59 = vrot.slane %v2381_v50, 4 }
  0x98   : > { %4144 = vmatmul.mubr.bf16.gmra.mrb[52].mxu1 %v5651_v23  ;;  %3990 = vmatprep.mubr.bf16.mxu0 %v5620_v54  ;;  %v5896_v23 = vld [vmem:[%s7320_s18 + $0x20] sm:$0x1]  ;;  %v1443_v54 = vshrl.u32 %v5703_v30, 16  ;;  %v2392_v0 = vrot.slane %v2391_v55, 4  ;;  %v2404_v30 = vrot.slane %v2402_v21, 5  ;;  %v5816_v55 = vrot.slane %v5772_v34, 9 }
  0x99   : > { %4151 = vmatprep.mubr.bf16.mxu1 %v7129_v12  ;;  %v5814_v12 = vrot.slane %v5766_v8, 9  ;;  %v854_v20 = vsel %vm7343_vm5, %v849_v9, %v853_v61  ;;  %v2394_v40 = vshll.u32 %v5896_v23, 16  ;;  %v2387_v5 = vsel %vm7343_vm5, %v2382_v59, %v2386_v45  ;;  %v7137_v8 = vld [vmem:[%s7320_s18 + $0x18] sm:$0xff]   ;;  %v5774_v45 = vld [vmem:[%s7320_s18 + $0x2c] sm:$0x1] }
  0x9a   : > { %v5621_v32 = vcombine.low %v854_v20, %v864_v25  ;;  %v1445_v61 = vrot.slane %v1443_v54, 4  ;;  %v2001_v9 = vrot.slane %v5771_v63, 5  ;;  %v2408_v25 = vshll.u32 %v5898_v10, 16 }
  0x9b   : > { %v1992_v27 = vsel %vm7334_vm4, %v5814_v12, %v1991_v17  ;;  %v1465_v54 = vrot.slane %v1463_v44, 5 }
  0x9c   : > { %v5830_v41 = vcombine.low %v1992_v27, %v1995_v37  ;;  %v1446_v7 = vor.u32 %v1445_v61, %v1441_v56  ;;  %v2002_v23 = vsel %vm7334_vm4, %v2000_v13, %v2001_v9  ;;  %v7143_v27 = vld [vmem:[%s8841_s2 + $0x8] sm:$0xff]   ;;  %v2410_v36 = vrot.slane %v2408_v25, 5 }
  0x9d   : > { %v2414_v37 = vrot.slane %v2412_v26, 4  ;;  %v2005_v61 = vrot.slane %v5773_v39, 5  ;;  %v5709_v13 = vld [vmem:[%s7320_s18 + $0x28] sm:$0xf] }
  0x9e   : > { %v1447_v20 = vrot.slane %v1446_v7, 4  ;;  %v1487_v39 = vshll.u32 %v5709_v13, 16 }
  0x9f   : > { %3991 = vmatmul.mubr.bf16.gmra.mrb[56].mxu0 %v7130_v43  ;;  %v1430_v43 = vshrl.u32 %v5702_v29, 16  ;;  %v2415_v47 = vor.u32 %v2414_v37, %v2410_v36  ;;  %v2007_v7 = vrot.slane %v2005_v61, 4 }
  0xa0   : > { %4152 = vmatmul.mubr.bf16.gmra.mrb[56].mxu1 %v5652_v48  ;;  %3998 = vmatprep.mubr.bf16.mxu0 %v5621_v32  ;;  %v2396_v48 = vrot.slane %v2394_v40, 5  ;;  %v1452_v28 = vsel %vm7343_vm5, %v1447_v20, %v1451_v1  ;;  %v7142_v40 = vld [vmem:[%s8840_s1 + $0x208] sm:$0xff]   ;;  %v5902_v1 = vld [vmem:[%s7320_s18 + $0x38] sm:$0x1] }
  0xa1   : > { %4159 = vmatprep.mubr.bf16.mxu1 %v7135_v58  ;;  %v1432_v52 = vrot.slane %v1430_v43, 4  ;;  %v5769_v58 = vld [vmem:[%s7320_s18 + $0x18] sm:$0xe]  ;;  %v1457_v43 = vshll.u32 %v5705_v16, 16  ;;  %v2416_v57 = vrot.slane %v2415_v47, 4 }
  0xa2   : > { %v5815_v2 = vrot.slane %v5769_v58, 9  ;;  %v2397_v11 = vsel %vm7343_vm5, %v2392_v0, %v2396_v48  ;;  %v1456_v48 = vrot.slane %v1454_v38, 4  ;;  %v1469_v58 = vrot.slane %v1467_v49, 4 }
  0xa3   : > { %v1436_v60 = vor.u32 %v1435_v53, %v1432_v52  ;;  %v5942_v17 = vcombine.low %v2387_v5, %v2397_v11  ;;  %v5900_v52 = vld [vmem:[%s7320_s18 + $0x30] sm:$0xf]  ;;  %v1459_v53 = vrot.slane %v1457_v43, 5  ;;  %v2008_v0 = vrot.slane %v5774_v45, 5 }
  0xa4   : > { %v1999_v12 = vsel %vm7334_vm4, %v5815_v2, %v1998_v3  ;;  %v2423_v2 = vshrl.u32 %v5900_v52, 16  ;;  %v5708_v3 = vld [vmem:[%s7320_s18 + $0x24] sm:$0xf]  ;;  %v1470_v5 = vor.u32 %v1469_v58, %v1465_v54  ;;  %v1489_v49 = vrot.slane %v1487_v39, 5 }
  0xa5   : > { %v1437_v6 = vrot.slane %v1436_v60, 4  ;;  %v5831_v29 = vcombine.low %v1999_v12, %v2002_v23  ;;  %v7140_v60 = vld [vmem:[%s7320_s18 + $0x24] sm:$0xff]   ;;  %v1460_v63 = vor.u32 %v1459_v53, %v1456_v48  ;;  %v2426_v12 = vshll.u32 %v5900_v52, 16 }
  0xa6   : > { %v2425_v11 = vrot.slane %v2423_v2, 4  ;;  %v2009_v15 = vsel %vm7334_vm4, %v2007_v7, %v2008_v0  ;;  %v2442_v23 = vshll.u32 %v5902_v1, 16  ;;  %v1481_v34 = vshll.u32 %v5708_v3, 16  ;;  %v5711_v7 = vld [vmem:[%s7320_s18 + $0x30] sm:$0xf] }
  0xa7   : > { %3999 = vmatmul.mubr.bf16.gmra.mrb[60].mxu0 %v7136_v14  ;;  %v5899_v14 = vld [vmem:[%s7320_s18 + $0x2c] sm:$0x1]  ;;  %v1442_v18 = vsel %vm7343_vm5, %v1437_v6, %v1441_v56  ;;  %v5901_v56 = vld [vmem:[%s7320_s18 + $0x34] sm:$0xf]  ;;  %v2006_v6 = vsel %vm7334_vm4, %v5816_v55, %v2005_v61  ;;  %v1461_v10 = vrot.slane %v1460_v63, 4  ;;  %v2428_v22 = vrot.slane %v2426_v12, 5 }
  0xa8   : > { %4160 = vmatmul.mubr.bf16.gmra.mrb[60].mxu1 %v5653_v33  ;;  %4200 = vmatprep.mubr.bf16.mxu0 %v5830_v41  ;;  %v2418_v32 = vshll.u32 %v5899_v14, 16  ;;  %v5707_v33 = vld [vmem:[%s7320_s18 + $0x20] sm:$0x1]  ;;  %v7743_v35 = vcombine.low %v1442_v18, %v1452_v28  ;;  %v2405_v41 = vor.u32 %v2404_v30, %v2401_v24  ;;  %v1471_v14 = vrot.slane %v1470_v5, 4  ;;  %v5710_v18 = vld [vmem:[%s7320_s18 + $0x2c] sm:$0x1] }
  0xa9   : > { %4361 = vmatprep.mubr.bf16.mxu1 %v5942_v17  ;;  %v1473_v50 = vshll.u32 %v5707_v33, 16  ;;  %v2432_v16 = vshll.u32 %v5901_v56, 16  ;;  %v2436_v17 = vshrl.u32 %v5901_v56, 16  ;;  %v1466_v20 = vsel %vm7343_vm5, %v1461_v10, %v1465_v54  ;;  %v5775_v28 = vld [vmem:[%s7320_s18 + $0x30] sm:$0xe] }
  0xaa   : > { %v2420_v42 = vrot.slane %v2418_v32, 5  ;;  %v5832_v21 = vcombine.low %v2006_v6, %v2009_v15  ;;  %v2429_v32 = vor.u32 %v2428_v22, %v2425_v11  ;;  %v2444_v33 = vrot.slane %v2442_v23, 5 }
  0xab   : > { %v1475_v59 = vrot.slane %v1473_v50, 5  ;;  %v2434_v25 = vrot.slane %v2432_v16, 5  ;;  %v2438_v26 = vrot.slane %v2436_v17, 4  ;;  %v1483_v44 = vrot.slane %v1481_v34, 5  ;;  %v5906_v34 = vld [vmem:[%s7320_s18 + $0x48] sm:$0xf] }
  0xac   : > { %v2421_v4 = vsel %vm7343_vm5, %v2416_v57, %v2420_v42  ;;  %v7151_v42 = vld [vmem:[%s8841_s2 + $0x18] sm:$0xff]   ;;  %v2430_v43 = vrot.slane %v2429_v32, 4  ;;  %v1497_v45 = vshll.u32 %v5710_v18, 16  ;;  %v5817_v47 = vrot.slane %v5775_v28, 9  ;;  %v5904_v57 = vld [vmem:[%s7320_s18 + $0x40] sm:$0xf] }
  0xad   : > { %v1476_v24 = vsel %vm7343_vm5, %v1471_v14, %v1475_v59  ;;  %v2439_v37 = vor.u32 %v2438_v26, %v2434_v25  ;;  %v2456_v5 = vshll.u32 %v5904_v57, 16  ;;  %v2460_v6 = vshrl.u32 %v5904_v57, 16  ;;  %v5713_v14 = vld [vmem:[%s7320_s18 + $0x38] sm:$0x1]  ;;  %v5779_v26 = vld [vmem:[%s7320_s18 + $0x40] sm:$0xf] }
  0xae   : > { %v7782_v30 = vcombine.low %v1466_v20, %v1476_v24  ;;  %v2435_v53 = vsel %vm7343_vm5, %v2430_v43, %v2434_v25  ;;  %v1499_v55 = vrot.slane %v1497_v45, 5  ;;  %v5778_v20 = vld [vmem:[%s7320_s18 + $0x3c] sm:$0xe]  ;;  %v1502_v24 = vshrl.u32 %v5711_v7, 16 }
  0xaf   : > { %4201 = vmatmul.mubr.bf16.vlgmr.msra.gmra.mrb[64].mxu0 %v7743_v35  ;;  %v2440_v48 = vrot.slane %v2439_v37, 4  ;;  %v2458_v16 = vrot.slane %v2456_v5, 5  ;;  %v2462_v17 = vrot.slane %v2460_v6, 4  ;;  %v1505_v25 = vshll.u32 %v5711_v7, 16 }
  0xb0   : > { %4362 = vmatmul.mubr.bf16.vlgmr.msra.gmra.mrb[64].mxu1 %v7137_v8  ;;  %6937 = vmatpush3.bf16.msra.mxu0 %v7693_v19  ;;  %v7147_v8 = vld [vmem:[%s8841_s2 + $0x10] sm:$0xff]   ;;  %v1504_v37 = vrot.slane %v1502_v24, 4  ;;  %v1521_v39 = vshll.u32 %v5713_v14, 16  ;;  %v5818_v45 = vrot.slane %v5778_v20, 9 }
  0xb1   : > { %6985 = vmatpush3.bf16.msra.mxu1 %v7711_v31  ;;  %4208 = vmatprep.mubr.bf16.mxu0 %v5831_v29  ;;  %v2406_v31 = vrot.slane %v2405_v41, 4  ;;  %v7150_v29 = vld [vmem:[%s8840_s1 + $0x218] sm:$0xff]   ;;  %v2445_v58 = vsel %vm7343_vm5, %v2440_v48, %v2444_v33  ;;  %v2463_v28 = vor.u32 %v2462_v17, %v2458_v16 }
  0xb2   : > { %6986 = vmatprep.subr.bf16.mxu1 %v7143_v27  ;;  %6938 = vmatprep.subr.bf16.mxu0 %v7142_v40  ;;  %v5777_v41 = vld [vmem:[%s7320_s18 + $0x38] sm:$0x1]  ;;  %v5944_v63 = vcombine.low %v2435_v53, %v2445_v58 }
  0xb3   : > { %v2411_v19 = vsel %vm7343_vm5, %v2406_v31, %v2410_v36  ;;  %v5776_v36 = vld [vmem:[%s7320_s18 + $0x34] sm:$0xf]  ;;  %v5903_v31 = vld [vmem:[%s7320_s18 + $0x3c] sm:$0xf]  ;;  %v2015_v56 = vrot.slane %v5777_v41, 5  ;;  %v2464_v41 = vrot.slane %v2463_v28, 4 }
  0xb4   : > { %v5943_v9 = vcombine.low %v2411_v19, %v2421_v4  ;;  %6939 = vmatpush3.bf16.msra.mxu0 %v7142_v40  ;;  %v1491_v40 = vshrl.u32 %v5709_v13, 16  ;;  %v2012_v52 = vrot.slane %v5776_v36, 5  ;;  %v5905_v19 = vld [vmem:[%s7320_s18 + $0x44] sm:$0x1]  ;;  %v2447_v1 = vshrl.u32 %v5903_v31, 16 }
  0xb5   : > { %6987 = vmatpush3.bf16.msra.mxu1 %v7143_v27  ;;  %6940 = vmatprep.subr.bf16.mxu0 %v7146_v62  ;;  %v1478_v27 = vshrl.u32 %v5708_v3, 16  ;;  %v2450_v2 = vshll.u32 %v5903_v31, 16  ;;  %v5712_v13 = vld [vmem:[%s7320_s18 + $0x34] sm:$0xf]  ;;  %v2466_v18 = vshll.u32 %v5905_v19, 16 }
  0xb6   : > { %6988 = vmatprep.subr.bf16.mxu1 %v7147_v8  ;;  %4369 = vmatprep.mubr.bf16.mxu1 %v5943_v9  ;;  %v1493_v50 = vrot.slane %v1491_v40, 4  ;;  %v2013_v61 = vsel %vm7334_vm4, %v5817_v47, %v2012_v52  ;;  %v2449_v11 = vrot.slane %v2447_v1, 4  ;;  %v1511_v32 = vshll.u32 %v5712_v13, 16  ;;  %v5907_v40 = vld [vmem:[%s7320_s18 + $0x4c] sm:$0xf] }
  0xb7   : > { %v1480_v38 = vrot.slane %v1478_v27, 4  ;;  %4209 = vmatmul.mubr.bf16.gmra.mrb[68].mxu0 %v7782_v30  ;;  %v2452_v12 = vrot.slane %v2450_v2, 5  ;;  %v5780_v27 = vld [vmem:[%s7320_s18 + $0x44] sm:$0x1]  ;;  %v1515_v33 = vshrl.u32 %v5712_v13, 16  ;;  %v2480_v19 = vshll.u32 %v5907_v40, 16 }
  0xb8   : > { %4370 = vmatmul.mubr.bf16.gmra.mrb[68].mxu1 %v7140_v60  ;;  %6941 = vmatpush3.bf16.msra.mxu0 %v7146_v62  ;;  %v1494_v59 = vor.u32 %v1493_v50, %v1489_v49  ;;  %v7141_v60 = vld [vmem:[%s7320_s18 + $0x30] sm:$0xff]   ;;  %v2014_v62 = vrot.slane %v2012_v52, 4  ;;  %v1523_v50 = vrot.slane %v1521_v39, 5  ;;  %v2019_v52 = vrot.slane %v5779_v26, 5 }
  0xb9   : > { %6989 = vmatpush3.bf16.msra.mxu1 %v7147_v8  ;;  %6942 = vmatprep.subr.bf16.mxu0 %v7150_v29  ;;  %v1484_v54 = vor.u32 %v1483_v44, %v1480_v38  ;;  %v7154_v8 = vld [vmem:[%s8840_s1 + $0x220] sm:$0xff]   ;;  %v2453_v23 = vor.u32 %v2452_v12, %v2449_v11  ;;  %v1507_v38 = vrot.slane %v1505_v25, 5  ;;  %v1517_v43 = vrot.slane %v1515_v33, 4  ;;  %v5908_v47 = vld [vmem:[%s7320_s18 + $0x50] sm:$0x1] }
  0xba   : > { %4216 = vmatprep.mubr.bf16.mxu0 %v5832_v21  ;;  %6990 = vmatprep.subr.bf16.mxu1 %v7151_v42  ;;  %v1495_v3 = vrot.slane %v1494_v59, 4  ;;  %v2016_v4 = vsel %vm7334_vm4, %v2014_v62, %v2015_v56  ;;  %v7155_v21 = vld [vmem:[%s8841_s2 + $0x20] sm:$0xff]   ;;  %v2020_v58 = vsel %vm7334_vm4, %v5818_v45, %v2019_v52  ;;  %v2021_v59 = vrot.slane %v2019_v52, 4  ;;  %v5909_v28 = vld [vmem:[%s7320_s18 + $0x54] sm:$0xf] }
  0xbb   : > { %v1485_v0 = vrot.slane %v1484_v54, 4  ;;  %4377 = vmatprep.mubr.bf16.mxu1 %v5944_v63  ;;  %v5833_v10 = vcombine.low %v2013_v61, %v2016_v4  ;;  %v2454_v36 = vrot.slane %v2453_v23, 4  ;;  %v7144_v44 = vld [vmem:[%s7320_s18 + $0x3c] sm:$0xff]   ;;  %v2022_v54 = vrot.slane %v5780_v27, 5  ;;  %v7158_v23 = vld [vmem:[%s8840_s1 + $0x228] sm:$0xff]  }
  0xbc   : > { %6943 = vmatpush3.bf16.msra.mxu0 %v7150_v29  ;;  %v1500_v15 = vsel %vm7343_vm5, %v1495_v3, %v1499_v55  ;;  %v2468_v29 = vrot.slane %v2466_v18, 5  ;;  %v2471_v55 = vshrl.u32 %v5906_v34, 16  ;;  %v2474_v62 = vshll.u32 %v5906_v34, 16  ;;  %v5714_v63 = vld [vmem:[%s7320_s18 + $0x3c] sm:$0xf] }
  0xbd   : > { %6991 = vmatpush3.bf16.msra.mxu1 %v7151_v42  ;;  %v1490_v9 = vsel %vm7343_vm5, %v1485_v0, %v1489_v49  ;;  %6944 = vmatprep.subr.bf16.mxu0 %v7154_v8  ;;  %v1513_v42 = vrot.slane %v1511_v32, 5  ;;  %v2459_v48 = vsel %vm7343_vm5, %v2454_v36, %v2458_v16  ;;  %v1508_v49 = vor.u32 %v1507_v38, %v1504_v37  ;;  %v5715_v4 = vld [vmem:[%s7320_s18 + $0x40] sm:$0xf]  ;;  %v5911_v52 = vld [vmem:[%s7320_s18 + $0x5c] sm:$0x1] }
  0xbe   : > { %v7816_v22 = vcombine.low %v1490_v9, %v1500_v15  ;;  %6992 = vmatprep.subr.bf16.mxu1 %v7155_v21  ;;  %v2469_v31 = vsel %vm7343_vm5, %v2464_v41, %v2468_v29  ;;  %v2473_v61 = vrot.slane %v2471_v55, 4  ;;  %v2023_v1 = vsel %vm7334_vm4, %v2021_v59, %v2022_v54  ;;  %v5716_v9 = vld [vmem:[%s7320_s18 + $0x44] sm:$0x1]  ;;  %v5782_v15 = vld [vmem:[%s7320_s18 + $0x4c] sm:$0xf] }
  0xbf   : > { %v1518_v53 = vor.u32 %v1517_v43, %v1513_v42  ;;  %v5945_v56 = vcombine.low %v2459_v48, %v2469_v31  ;;  %v1509_v57 = vrot.slane %v1508_v49, 4  ;;  %v2484_v2 = vshrl.u32 %v5907_v40, 16  ;;  %v7159_v29 = vld [vmem:[%s8841_s2 + $0x28] sm:$0xff]  }
  0xc0   : > { %4378 = vmatmul.mubr.bf16.gmra.mrb[72].mxu1 %v7141_v60  ;;  %6945 = vmatpush3.bf16.msra.mxu0 %v7154_v8  ;;  %v2490_v3 = vshll.u32 %v5908_v47, 16  ;;  %v5834_v6 = vcombine.low %v2020_v58, %v2023_v1  ;;  %v2476_v7 = vrot.slane %v2474_v62, 5  ;;  %v2482_v8 = vrot.slane %v2480_v19, 5  ;;  %v7145_v48 = vld [vmem:[%s7320_s18 + $0x48] sm:$0xff]   ;;  %v7162_v19 = vld [vmem:[%s8840_s1 + $0x230] sm:$0xff]  }
  0xc1   : > { %4217 = vmatmul.mubr.bf16.gmra.mrb[72].mxu0 %v7816_v22  ;;  %6993 = vmatpush3.bf16.msra.mxu1 %v7155_v21  ;;  %v1519_v60 = vrot.slane %v1518_v53, 4  ;;  %v1514_v0 = vsel %vm7343_vm5, %v1509_v57, %v1513_v42  ;;  %v2486_v12 = vrot.slane %v2484_v2, 4  ;;  %v1526_v14 = vshrl.u32 %v5714_v63, 16  ;;  %v5783_v21 = vld [vmem:[%s7320_s18 + $0x50] sm:$0x1] }
  0xc2   : > { %4224 = vmatprep.mubr.bf16.mxu0 %v5833_v10  ;;  %4385 = vmatprep.mubr.bf16.mxu1 %v5945_v56  ;;  %v5781_v10 = vld [vmem:[%s7320_s18 + $0x48] sm:$0xe]  ;;  %v2492_v13 = vrot.slane %v2490_v3, 5  ;;  %v2477_v16 = vor.u32 %v2476_v7, %v2473_v61  ;;  %v1529_v17 = vshll.u32 %v5714_v63, 16  ;;  %v1535_v18 = vshll.u32 %v5715_v4, 16 }
  0xc3   : > { %v1524_v5 = vsel %vm7343_vm5, %v1519_v60, %v1523_v50  ;;  %v1539_v20 = vshrl.u32 %v5715_v4, 16  ;;  %v2487_v24 = vor.u32 %v2486_v12, %v2482_v8  ;;  %v1528_v25 = vrot.slane %v1526_v14, 4  ;;  %6946 = vmatprep.subr.bf16.mxu0 %v7158_v23  ;;  %6994 = vmatprep.subr.bf16.mxu1 %v7159_v29  ;;  %v5717_v57 = vld [vmem:[%s7320_s18 + $0x48] sm:$0xf]  ;;  %v5718_v62 = vld [vmem:[%s7320_s18 + $0x4c] sm:$0xf] }
  0xc4   : > { %v7841_v11 = vcombine.low %v1514_v0, %v1524_v5  ;;  %v1545_v26 = vshll.u32 %v5716_v9, 16  ;;  %v5819_v27 = vrot.slane %v5781_v10, 9  ;;  %v2478_v32 = vrot.slane %v2477_v16, 4  ;;  %6947 = vmatpush3.bf16.msra.mxu0 %v7158_v23  ;;  %v5719_v3 = vld [vmem:[%s7320_s18 + $0x50] sm:$0x1] }
  0xc5   : > { %v1531_v33 = vrot.slane %v1529_v17, 5  ;;  %v1537_v34 = vrot.slane %v1535_v18, 5  ;;  %v1541_v36 = vrot.slane %v1539_v20, 4  ;;  %v2488_v37 = vrot.slane %v2487_v24, 4  ;;  %6995 = vmatpush3.bf16.msra.mxu1 %v7159_v29  ;;  %v5784_v4 = vld [vmem:[%s7320_s18 + $0x54] sm:$0xe]  ;;  %6948 = vmatprep.subr.bf16.mxu0 %v7162_v19 }
  0xc6   : > { %v1547_v38 = vrot.slane %v1545_v26, 5  ;;  %v2026_v39 = vrot.slane %v5782_v15, 5  ;;  %v2029_v40 = vrot.slane %v5783_v21, 5  ;;  %v2483_v41 = vsel %vm7343_vm5, %v2478_v32, %v2482_v8  ;;  %v7163_v5 = vld [vmem:[%s8841_s2 + $0x30] sm:$0xff]   ;;  %v5785_v10 = vld [vmem:[%s7320_s18 + $0x58] sm:$0xf] }
  0xc7   : > { %v1532_v42 = vor.u32 %v1531_v33, %v1528_v25  ;;  %v1542_v43 = vor.u32 %v1541_v36, %v1537_v34  ;;  %v2495_v45 = vshrl.u32 %v5909_v28, 16  ;;  %v2493_v47 = vsel %vm7343_vm5, %v2488_v37, %v2492_v13  ;;  %v5786_v12 = vld [vmem:[%s7320_s18 + $0x5c] sm:$0x1]  ;;  %v5912_v13 = vld [vmem:[%s7320_s18 + $0x60] sm:$0xf]  ;;  %6996 = vmatprep.subr.bf16.mxu1 %v7163_v5  ;;  %v7148_v36 = vld [vmem:[%s7320_s18 + $0x54] sm:$0xff]  }
  0xc8   : > { %4386 = vmatmul.mubr.bf16.gmra.mrb[76].mxu1 %v7144_v44  ;;  %v5910_v44 = vld [vmem:[%s7320_s18 + $0x58] sm:$0xf]  ;;  %v2027_v49 = vsel %vm7334_vm4, %v5819_v27, %v2026_v39  ;;  %v2028_v50 = vrot.slane %v2026_v39, 4  ;;  %v2498_v31 = vshll.u32 %v5909_v28, 16  ;;  %v5946_v53 = vcombine.low %v2483_v41, %v2493_v47  ;;  %v5913_v18 = vld [vmem:[%s7320_s18 + $0x64] sm:$0xf]  ;;  %6949 = vmatpush3.bf16.msra.mxu0 %v7162_v19 }
  0xc9   : > { %4225 = vmatmul.mubr.bf16.gmra.mrb[76].mxu0 %v7841_v11  ;;  %v1533_v54 = vrot.slane %v1532_v42, 4  ;;  %v1543_v55 = vrot.slane %v1542_v43, 4  ;;  %v2497_v56 = vrot.slane %v2495_v45, 4  ;;  %v2504_v60 = vshll.u32 %v5910_v44, 16  ;;  %6997 = vmatpush3.bf16.msra.mxu1 %v7163_v5  ;;  %v7166_v41 = vld [vmem:[%s8840_s1 + $0x238] sm:$0xff]  }
  0xca   : > { %4232 = vmatprep.mubr.bf16.mxu0 %v5834_v6  ;;  %v2030_v58 = vsel %vm7334_vm4, %v2028_v50, %v2029_v40  ;;  %v2500_v59 = vrot.slane %v2498_v31, 5  ;;  %v2508_v61 = vshrl.u32 %v5910_v44, 16  ;;  %4393 = vmatprep.mubr.bf16.mxu1 %v5946_v53  ;;  %v2514_v2 = vshll.u32 %v5911_v52, 16  ;;  %v5914_v44 = vld [vmem:[%s7320_s18 + $0x68] sm:$0x1]  ;;  %v7167_v5 = vld [vmem:[%s8841_s2 + $0x38] sm:$0xff]  }
  0xcb   : > { %v1538_v63 = vsel %vm7343_vm5, %v1533_v54, %v1537_v34  ;;  %v1548_v0 = vsel %vm7343_vm5, %v1543_v55, %v1547_v38  ;;  %v5835_v1 = vcombine.low %v2027_v49, %v2030_v58  ;;  %v2506_v8 = vrot.slane %v2504_v60, 5  ;;  %v5720_v31 = vld [vmem:[%s7320_s18 + $0x54] sm:$0xf]  ;;  %6950 = vmatprep.subr.bf16.mxu0 %v7166_v41  ;;  %v5787_v19 = vld [vmem:[%s7320_s18 + $0x60] sm:$0xe]  ;;  %6998 = vmatprep.subr.bf16.mxu1 %v7167_v5 }
  0xcc   : > { %v7878_v6 = vcombine.low %v1538_v63, %v1548_v0  ;;  %v2501_v7 = vor.u32 %v2500_v59, %v2497_v56  ;;  %v2510_v9 = vrot.slane %v2508_v61, 4  ;;  %v2516_v14 = vrot.slane %v2514_v2, 5  ;;  %6951 = vmatpush3.bf16.msra.mxu0 %v7166_v41 }
  0xcd   : > { %v1550_v15 = vshrl.u32 %v5717_v57, 16  ;;  %v1553_v16 = vshll.u32 %v5717_v57, 16  ;;  %v1559_v17 = vshll.u32 %v5718_v62, 16  ;;  %v1563_v23 = vshrl.u32 %v5718_v62, 16  ;;  %v5721_v57 = vld [vmem:[%s7320_s18 + $0x58] sm:$0xf]  ;;  %6999 = vmatpush3.bf16.msra.mxu1 %v7167_v5 }
  0xce   : > { %v2502_v20 = vrot.slane %v2501_v7, 4  ;;  %v2511_v21 = vor.u32 %v2510_v9, %v2506_v8  ;;  %v1569_v24 = vshll.u32 %v5719_v3, 16  ;;  %v5820_v28 = vrot.slane %v5784_v4, 9  ;;  %v5722_v62 = vld [vmem:[%s7320_s18 + $0x5c] sm:$0x1] }
  0xcf   : > { %v1552_v25 = vrot.slane %v1550_v15, 4  ;;  %v1555_v26 = vrot.slane %v1553_v16, 5  ;;  %v1561_v27 = vrot.slane %v1559_v17, 5  ;;  %v1565_v33 = vrot.slane %v1563_v23, 4  ;;  %v5788_v3 = vld [vmem:[%s7320_s18 + $0x64] sm:$0xf] }
  0xd0   : > { %4394 = vmatmul.mubr.bf16.gmra.mrb[80].mxu1 %v7145_v48  ;;  %v2507_v29 = vsel %vm7343_vm5, %v2502_v20, %v2506_v8  ;;  %v2512_v32 = vrot.slane %v2511_v21, 4  ;;  %v1571_v34 = vrot.slane %v1569_v24, 5  ;;  %v2033_v38 = vrot.slane %v5785_v10, 5  ;;  %v5789_v4 = vld [vmem:[%s7320_s18 + $0x68] sm:$0x1] }
  0xd1   : > { %4233 = vmatmul.mubr.bf16.gmra.mrb[80].mxu0 %v7878_v6  ;;  %v1556_v37 = vor.u32 %v1555_v26, %v1552_v25  ;;  %v2036_v39 = vrot.slane %v5786_v12, 5  ;;  %v2519_v40 = vshrl.u32 %v5912_v13, 16  ;;  %v1566_v43 = vor.u32 %v1565_v33, %v1561_v27  ;;  %v5915_v12 = vld [vmem:[%s7320_s18 + $0x6c] sm:$0xf] }
  0xd2   : > { %4240 = vmatprep.mubr.bf16.mxu0 %v5835_v1  ;;  %v2517_v42 = vsel %vm7343_vm5, %v2512_v32, %v2516_v14  ;;  %v2522_v45 = vshll.u32 %v5912_v13, 16  ;;  %v2528_v47 = vshll.u32 %v5913_v18, 16  ;;  %v2034_v50 = vsel %vm7334_vm4, %v5820_v28, %v2033_v38 }
  0xd3   : > { %v5947_v48 = vcombine.low %v2507_v29, %v2517_v42  ;;  %v1557_v49 = vrot.slane %v1556_v37, 4  ;;  %v2035_v52 = vrot.slane %v2033_v38, 4  ;;  %v1567_v53 = vrot.slane %v1566_v43, 4  ;;  %v5917_v38 = vld [vmem:[%s7320_s18 + $0x74] sm:$0x1]  ;;  %v7149_v42 = vld [vmem:[%s7320_s18 + $0x60] sm:$0xff]  }
  0xd4   : > { %v2521_v54 = vrot.slane %v2519_v40, 4  ;;  %v2524_v55 = vrot.slane %v2522_v45, 5  ;;  %v2530_v56 = vrot.slane %v2528_v47, 5  ;;  %v2532_v60 = vshrl.u32 %v5913_v18, 16  ;;  %v5723_v45 = vld [vmem:[%s7320_s18 + $0x60] sm:$0xf] }
  0xd5   : > { %4401 = vmatprep.mubr.bf16.mxu1 %v5947_v48  ;;  %v1562_v58 = vsel %vm7343_vm5, %v1557_v49, %v1561_v27  ;;  %v2037_v59 = vsel %vm7334_vm4, %v2035_v52, %v2036_v39  ;;  %v2538_v61 = vshll.u32 %v5914_v44, 16  ;;  %v1572_v63 = vsel %vm7343_vm5, %v1567_v53, %v1571_v34  ;;  %v5916_v27 = vld [vmem:[%s7320_s18 + $0x70] sm:$0xf]  ;;  %v5724_v52 = vld [vmem:[%s7320_s18 + $0x64] sm:$0xf] }
  0xd6   : > { %v5836_v0 = vcombine.low %v2034_v50, %v2037_v59  ;;  %v2525_v1 = vor.u32 %v2524_v55, %v2521_v54  ;;  %v1574_v2 = vshrl.u32 %v5720_v31, 16  ;;  %v7911_v7 = vcombine.low %v1562_v58, %v1572_v63  ;;  %v5791_v58 = vld [vmem:[%s7320_s18 + $0x70] sm:$0xf] }
  0xd7   : > { %v2534_v8 = vrot.slane %v2532_v60, 4  ;;  %v2540_v9 = vrot.slane %v2538_v61, 5  ;;  %v1577_v10 = vshll.u32 %v5720_v31, 16  ;;  %v1583_v15 = vshll.u32 %v5721_v57, 16  ;;  %v5725_v31 = vld [vmem:[%s7320_s18 + $0x68] sm:$0x1] }
  0xd8   : > { %4402 = vmatmul.mubr.bf16.gmra.mrb[84].mxu1 %v7148_v36  ;;  %8860 = vst [vmem:[#allocation3_spill] sm:$0xff] %v7911_v7  ;;  %v2526_v13 = vrot.slane %v2525_v1, 4  ;;  %v1576_v14 = vrot.slane %v1574_v2, 4  ;;  %v1587_v16 = vshrl.u32 %v5721_v57, 16  ;;  %v1593_v20 = vshll.u32 %v5722_v62, 16 }
  0xd9   : > { %4241 = vmatmul.mubr.bf16.gmra.mrb[84].mxu0 %v7911_v7  ;;  %v2535_v17 = vor.u32 %v2534_v8, %v2530_v56  ;;  %v1579_v18 = vrot.slane %v1577_v10, 5  ;;  %v5821_v21 = vrot.slane %v5787_v19, 9  ;;  %v1585_v24 = vrot.slane %v1583_v15, 5  ;;  %v5790_v57 = vld [vmem:[%s7320_s18 + $0x6c] sm:$0xe] }
  0xda   : > { %4248 = vmatprep.mubr.bf16.mxu0 %v5836_v0  ;;  %v2531_v23 = vsel %vm7343_vm5, %v2526_v13, %v2530_v56  ;;  %v1589_v25 = vrot.slane %v1587_v16, 4  ;;  %v2040_v26 = vrot.slane %v5788_v3, 5  ;;  %v1595_v32 = vrot.slane %v1593_v20, 5  ;;  %v5792_v19 = vld [vmem:[%s7320_s18 + $0x74] sm:$0x1] }
  0xdb   : > { %v2536_v28 = vrot.slane %v2535_v17, 4  ;;  %v1580_v29 = vor.u32 %v1579_v18, %v1576_v14  ;;  %v2043_v33 = vrot.slane %v5789_v4, 5  ;;  %v2543_v39 = vshrl.u32 %v5915_v12, 16  ;;  %v5919_v10 = vld [vmem:[%s7320_s18 + $0x7c] sm:$0xf] }
  0xdc   : > { %v1590_v34 = vor.u32 %v1589_v25, %v1585_v24  ;;  %v2041_v36 = vsel %vm7334_vm4, %v5821_v21, %v2040_v26  ;;  %v2042_v37 = vrot.slane %v2040_v26, 4  ;;  %v2546_v43 = vshll.u32 %v5915_v12, 16 }
  0xdd   : > { %v2541_v40 = vsel %vm7343_vm5, %v2536_v28, %v2540_v9  ;;  %v1581_v41 = vrot.slane %v1580_v29, 4  ;;  %v2552_v44 = vshll.u32 %v5916_v27, 16  ;;  %v2545_v50 = vrot.slane %v2543_v39, 4  ;;  %v5918_v9 = vld [vmem:[%s7320_s18 + $0x78] sm:$0xf] }
  0xde   : > { %v5948_v47 = vcombine.low %v2531_v23, %v2541_v40  ;;  %v1591_v48 = vrot.slane %v1590_v34, 4  ;;  %v2044_v49 = vsel %vm7334_vm4, %v2042_v37, %v2043_v33  ;;  %v2548_v55 = vrot.slane %v2546_v43, 5  ;;  %v7152_v33 = vld [vmem:[%s7320_s18 + $0x6c] sm:$0xff]  }
  0xdf   : > { %v1586_v53 = vsel %vm7343_vm5, %v1581_v41, %v1585_v24  ;;  %v5837_v54 = vcombine.low %v2041_v36, %v2044_v49  ;;  %v2554_v56 = vrot.slane %v2552_v44, 5  ;;  %v2556_v60 = vshrl.u32 %v5916_v27, 16  ;;  %v5920_v41 = vld [vmem:[%s7320_s18 + $0x80] sm:$0x1]  ;;  %v5726_v43 = vld [vmem:[%s7320_s18 + $0x6c] sm:$0xf] }
  0xe0   : > { %4409 = vmatprep.mubr.bf16.mxu1 %v5948_v47  ;;  %v1596_v59 = vsel %vm7343_vm5, %v1591_v48, %v1595_v32  ;;  %v2562_v61 = vshll.u32 %v5917_v38, 16  ;;  %v1598_v62 = vshrl.u32 %v5723_v45, 16  ;;  %v2549_v0 = vor.u32 %v2548_v55, %v2545_v50  ;;  %v5727_v49 = vld [vmem:[%s7320_s18 + $0x70] sm:$0xf]  ;;  %v5728_v50 = vld [vmem:[%s7320_s18 + $0x74] sm:$0x1] }
  0xe1   : > { %v7936_v63 = vcombine.low %v1586_v53, %v1596_v59  ;;  %4410 = vmatmul.mubr.bf16.gmra.mrb[88].mxu1 %v7149_v42  ;;  %v1601_v1 = vshll.u32 %v5723_v45, 16  ;;  %v1607_v2 = vshll.u32 %v5724_v52, 16  ;;  %v2558_v3 = vrot.slane %v2556_v60, 4 }
  0xe2   : > { %v2564_v4 = vrot.slane %v2562_v61, 5  ;;  %v1600_v5 = vrot.slane %v1598_v62, 4  ;;  %v1611_v8 = vshrl.u32 %v5724_v52, 16  ;;  %v2550_v12 = vrot.slane %v2549_v0, 4  ;;  %v5794_v0 = vld [vmem:[%s7320_s18 + $0x7c] sm:$0xf] }
  0xe3   : > { %8861 = vst [vmem:[#allocation4_spill] sm:$0xff] %v7936_v63  ;;  %4249 = vmatmul.mubr.bf16.gmra.mrb[88].mxu0 %v7936_v63  ;;  %v1603_v13 = vrot.slane %v1601_v1, 5  ;;  %v1609_v14 = vrot.slane %v1607_v2, 5  ;;  %v1617_v15 = vshll.u32 %v5725_v31, 16  ;;  %v2559_v16 = vor.u32 %v2558_v3, %v2554_v56  ;;  %v5963_v63 = vld [vmem:[%s7320_s18 + $0x2c] sm:$0x1] }
  0xe4   : > { %4256 = vmatprep.mubr.bf16.mxu0 %v5837_v54  ;;  %v1613_v17 = vrot.slane %v1611_v8, 4  ;;  %v5822_v18 = vrot.slane %v5790_v57, 9  ;;  %v2047_v20 = vrot.slane %v5791_v58, 5  ;;  %v2555_v21 = vsel %vm7343_vm5, %v2550_v12, %v2554_v56 }
  0xe5   : > { %v1604_v23 = vor.u32 %v1603_v13, %v1600_v5  ;;  %v1619_v24 = vrot.slane %v1617_v15, 5  ;;  %v2050_v25 = vrot.slane %v5792_v19, 5  ;;  %v2560_v26 = vrot.slane %v2559_v16, 4  ;;  %v5793_v19 = vld [vmem:[%s7320_s18 + $0x78] sm:$0xe] }
  0xe6   : > { %v1614_v27 = vor.u32 %v1613_v17, %v1609_v14  ;;  %v2048_v28 = vsel %vm7334_vm4, %v5822_v18, %v2047_v20  ;;  %v2049_v29 = vrot.slane %v2047_v20, 4  ;;  %v2567_v34 = vshrl.u32 %v5918_v9, 16  ;;  %v5795_v5 = vld [vmem:[%s7320_s18 + $0x80] sm:$0x1]  ;;  %v5921_v13 = vld [vmem:[%s7320_s18 + $0x84] sm:$0xf] }
  0xe7   : > { %v1605_v32 = vrot.slane %v1604_v23, 4  ;;  %v2570_v36 = vshll.u32 %v5918_v9, 16  ;;  %v2576_v37 = vshll.u32 %v5919_v10, 16  ;;  %v2565_v38 = vsel %vm7343_vm5, %v2560_v26, %v2564_v4  ;;  %v5922_v18 = vld [vmem:[%s7320_s18 + $0x88] sm:$0xf] }
  0xe8   : > { %v1615_v39 = vrot.slane %v1614_v27, 4  ;;  %v2051_v40 = vsel %vm7334_vm4, %v2049_v29, %v2050_v25  ;;  %v2580_v42 = vshrl.u32 %v5919_v10, 16  ;;  %v5949_v44 = vcombine.low %v2555_v21, %v2565_v38  ;;  %v5923_v26 = vld [vmem:[%s7320_s18 + $0x8c] sm:$0x1] }
  0xe9   : > { %v1610_v45 = vsel %vm7343_vm5, %v1605_v32, %v1609_v14  ;;  %v5838_v47 = vcombine.low %v2048_v28, %v2051_v40  ;;  %v2569_v48 = vrot.slane %v2567_v34, 4  ;;  %v2572_v31 = vrot.slane %v2570_v36, 5  ;;  %v5730_v34 = vld [vmem:[%s7320_s18 + $0x7c] sm:$0xf]  ;;  %v5731_v40 = vld [vmem:[%s7320_s18 + $0x80] sm:$0x1] }
  0xea   : > { %v1620_v52 = vsel %vm7343_vm5, %v1615_v39, %v1619_v24  ;;  %v2578_v53 = vrot.slane %v2576_v37, 5  ;;  %v2582_v54 = vrot.slane %v2580_v42, 4  ;;  %4417 = vmatprep.mubr.bf16.mxu1 %v5949_v44  ;;  %v2586_v56 = vshll.u32 %v5920_v41, 16  ;;  %v7153_v24 = vld [vmem:[%s7320_s18 + $0x78] sm:$0xff]   ;;  %v5796_v41 = vld [vmem:[%s7320_s18 + $0x84] sm:$0xe] }
  0xeb   : > { %v7958_v55 = vcombine.low %v1610_v45, %v1620_v52  ;;  %v1622_v57 = vshrl.u32 %v5726_v43, 16  ;;  %v1625_v58 = vshll.u32 %v5726_v43, 16  ;;  %4418 = vmatmul.mubr.bf16.gmra.mrb[92].mxu1 %v7152_v33  ;;  %v2573_v59 = vor.u32 %v2572_v31, %v2569_v48  ;;  %v5729_v33 = vld [vmem:[%s7320_s18 + $0x78] sm:$0xf]  ;;  %v5797_v52 = vld [vmem:[%s7320_s18 + $0x88] sm:$0xf] }
  0xec   : > { %v2583_v60 = vor.u32 %v2582_v54, %v2578_v53  ;;  %v1631_v61 = vshll.u32 %v5727_v49, 16  ;;  %v1635_v62 = vshrl.u32 %v5727_v49, 16  ;;  %v2588_v1 = vrot.slane %v2586_v56, 5 }
  0xed   : > { %8862 = vst [vmem:[#allocation5_spill] sm:$0xff] %v7958_v55  ;;  %4257 = vmatmul.mubr.bf16.gmra.mrb[92].mxu0 %v7958_v55  ;;  %v1624_v2 = vrot.slane %v1622_v57, 4  ;;  %v1627_v3 = vrot.slane %v1625_v58, 5  ;;  %v1641_v4 = vshll.u32 %v5728_v50, 16  ;;  %v2574_v8 = vrot.slane %v2573_v59, 4 }
  0xee   : > { %4264 = vmatprep.mubr.bf16.mxu0 %v5838_v47  ;;  %v2584_v9 = vrot.slane %v2583_v60, 4  ;;  %v1633_v10 = vrot.slane %v1631_v61, 5  ;;  %v1637_v12 = vrot.slane %v1635_v62, 4  ;;  %v5823_v16 = vrot.slane %v5793_v19, 9  ;;  %v5798_v57 = vld [vmem:[%s7320_s18 + $0x8c] sm:$0x1] }
  0xef   : > { %v1628_v14 = vor.u32 %v1627_v3, %v1624_v2  ;;  %v1643_v15 = vrot.slane %v1641_v4, 5  ;;  %v2054_v17 = vrot.slane %v5794_v0, 5  ;;  %v2579_v20 = vsel %vm7343_vm5, %v2574_v8, %v2578_v53  ;;  %v5924_v58 = vld [vmem:[%s7320_s18 + $0x90] sm:$0xf] }
  0xf0   : > { %v2589_v21 = vsel %vm7343_vm5, %v2584_v9, %v2588_v1  ;;  %v1638_v23 = vor.u32 %v1637_v12, %v1633_v10  ;;  %v2057_v25 = vrot.slane %v5795_v5, 5  ;;  %v2591_v37 = vshrl.u32 %v5921_v13, 16 }
  0xf1   : > { %v5950_v27 = vcombine.low %v2579_v20, %v2589_v21  ;;  %v1629_v28 = vrot.slane %v1628_v14, 4  ;;  %v2055_v29 = vsel %vm7334_vm4, %v5823_v16, %v2054_v17  ;;  %v2056_v32 = vrot.slane %v2054_v17, 4 }
  0xf2   : > { %v1639_v36 = vrot.slane %v1638_v23, 4  ;;  %v2594_v38 = vshll.u32 %v5921_v13, 16  ;;  %v2600_v39 = vshll.u32 %v5922_v18, 16  ;;  %v2604_v44 = vshrl.u32 %v5922_v18, 16 }
  0xf3   : > { %4425 = vmatprep.mubr.bf16.mxu1 %v5950_v27  ;;  %v1634_v42 = vsel %vm7343_vm5, %v1629_v28, %v1633_v10  ;;  %v2058_v43 = vsel %vm7334_vm4, %v2056_v32, %v2057_v25  ;;  %v2610_v45 = vshll.u32 %v5923_v26, 16  ;;  %v2593_v49 = vrot.slane %v2591_v37, 4  ;;  %v5925_v27 = vld [vmem:[%s7320_s18 + $0x94] sm:$0xf]  ;;  %v5926_v37 = vld [vmem:[%s7320_s18 + $0x98] sm:$0x1] }
  0xf4   : > { %v1644_v47 = vsel %vm7343_vm5, %v1639_v36, %v1643_v15  ;;  %4426 = vmatmul.mubr.bf16.gmra.mrb[96].mxu1 %v7153_v24  ;;  %v5839_v48 = vcombine.low %v2055_v29, %v2058_v43  ;;  %v2596_v50 = vrot.slane %v2594_v38, 5  ;;  %v2602_v53 = vrot.slane %v2600_v39, 5  ;;  %v5732_v43 = vld [vmem:[%s7320_s18 + $0x84] sm:$0xf] }
  0xf5   : > { %v7985_v31 = vcombine.low %v1634_v42, %v1644_v47  ;;  %v2606_v54 = vrot.slane %v2604_v44, 4  ;;  %v2612_v56 = vrot.slane %v2610_v45, 5  ;;  %v1646_v61 = vshrl.u32 %v5729_v33, 16 }
  0xf6   : > { %v2597_v60 = vor.u32 %v2596_v50, %v2593_v49  ;;  %v1649_v62 = vshll.u32 %v5729_v33, 16  ;;  %v1655_v19 = vshll.u32 %v5730_v34, 16  ;;  %v1659_v3 = vshrl.u32 %v5730_v34, 16  ;;  %v7156_v33 = vld [vmem:[%s7320_s18 + $0x84] sm:$0xff]  }
  0xf7   : > { %8863 = vst [vmem:[#allocation6_spill] sm:$0xff] %v7985_v31  ;;  %4265 = vmatmul.mubr.bf16.gmra.mrb[96].mxu0 %v7985_v31  ;;  %v2607_v2 = vor.u32 %v2606_v54, %v2602_v53  ;;  %v1665_v4 = vshll.u32 %v5731_v40, 16  ;;  %v5824_v5 = vrot.slane %v5796_v41, 9  ;;  %v1648_v12 = vrot.slane %v1646_v61, 4 }
  0xf8   : > { %4272 = vmatprep.mubr.bf16.mxu0 %v5839_v48  ;;  %v2598_v10 = vrot.slane %v2597_v60, 4  ;;  %v1651_v13 = vrot.slane %v1649_v62, 5  ;;  %v1657_v14 = vrot.slane %v1655_v19, 5  ;;  %v1661_v18 = vrot.slane %v1659_v3, 4  ;;  %v5734_v62 = vld [vmem:[%s7320_s18 + $0x8c] sm:$0x1] }
  0xf9   : > { %v2608_v17 = vrot.slane %v2607_v2, 4  ;;  %v1667_v20 = vrot.slane %v1665_v4, 5  ;;  %v2061_v21 = vrot.slane %v5797_v52, 5  ;;  %v2064_v26 = vrot.slane %v5798_v57, 5  ;;  %v5733_v57 = vld [vmem:[%s7320_s18 + $0x88] sm:$0xf] }
  0xfa   : > { %v2603_v24 = vsel %vm7343_vm5, %v2598_v10, %v2602_v53  ;;  %v1652_v25 = vor.u32 %v1651_v13, %v1648_v12  ;;  %v2615_v28 = vshrl.u32 %v5924_v58, 16  ;;  %v1662_v32 = vor.u32 %v1661_v18, %v1657_v14  ;;  %v5799_v18 = vld [vmem:[%s7320_s18 + $0x90] sm:$0xe] }
  0xfb   : > { %v2613_v29 = vsel %vm7343_vm5, %v2608_v17, %v2612_v56  ;;  %v2062_v34 = vsel %vm7334_vm4, %v5824_v5, %v2061_v21  ;;  %v2063_v36 = vrot.slane %v2061_v21, 4  ;;  %v2618_v42 = vshll.u32 %v5924_v58, 16 }
  0xfc   : > { %v5951_v39 = vcombine.low %v2603_v24, %v2613_v29  ;;  %v1653_v40 = vrot.slane %v1652_v25, 4  ;;  %v2617_v41 = vrot.slane %v2615_v28, 4  ;;  %v1663_v45 = vrot.slane %v1662_v32, 4 }
  0xfd   : > { %v2065_v47 = vsel %vm7334_vm4, %v2063_v36, %v2064_v26  ;;  %v2624_v48 = vshll.u32 %v5925_v27, 16  ;;  %v2628_v49 = vshrl.u32 %v5925_v27, 16  ;;  %v2620_v54 = vrot.slane %v2618_v42, 5  ;;  %v5801_v42 = vld [vmem:[%s7320_s18 + $0x98] sm:$0x1] }
  0xfe   : > { %4433 = vmatprep.mubr.bf16.mxu1 %v5951_v39  ;;  %v1658_v52 = vsel %vm7343_vm5, %v1653_v40, %v1657_v14  ;;  %v5840_v53 = vcombine.low %v2062_v34, %v2065_v47  ;;  %v2634_v56 = vshll.u32 %v5926_v37, 16  ;;  %v1668_v58 = vsel %vm7343_vm5, %v1663_v45, %v1667_v20  ;;  %v5800_v37 = vld [vmem:[%s7320_s18 + $0x94] sm:$0xf] }
  0xff   : > { %4434 = vmatmul.mubr.bf16.gmra.mrb[100].mxu1 %v7156_v33  ;;  %v2626_v60 = vrot.slane %v2624_v48, 5  ;;  %v2630_v61 = vrot.slane %v2628_v49, 4  ;;  %v1670_v19 = vshrl.u32 %v5732_v43, 16  ;;  %v8032_v3 = vcombine.low %v1658_v52, %v1668_v58  ;;  %v7157_v47 = vld [vmem:[%s7320_s18 + $0x90] sm:$0xff]   ;;  %v5928_v52 = vld [vmem:[%s7320_s18 + $0xa0] sm:$0xf] }
 0x100   : > { %v2621_v4 = vor.u32 %v2620_v54, %v2617_v41  ;;  %v2636_v5 = vrot.slane %v2634_v56, 5  ;;  %v1673_v10 = vshll.u32 %v5732_v43, 16  ;;  %v1679_v14 = vshll.u32 %v5733_v57, 16  ;;  %v5927_v43 = vld [vmem:[%s7320_s18 + $0x9c] sm:$0xf] }
 0x101   : > { %8864 = vst [vmem:[#allocation7_spill] sm:$0xff] %v8032_v3  ;;  %v2631_v12 = vor.u32 %v2630_v61, %v2626_v60  ;;  %v1672_v13 = vrot.slane %v1670_v19, 4  ;;  %v1683_v17 = vshrl.u32 %v5733_v57, 16  ;;  %4273 = vmatmul.mubr.bf16.gmra.mrb[100].mxu0 %v8032_v3  ;;  %v1689_v26 = vshll.u32 %v5734_v62, 16  ;;  %v5735_v57 = vld [vmem:[%s7320_s18 + $0x90] sm:$0xf] }
 0x102   : > { %v7989_v59 = vpop.f32.mrb[0].mxu0  ;;  %v2622_v24 = vrot.slane %v2621_v4, 4  ;;  %v1675_v25 = vrot.slane %v1673_v10, 5  ;;  %4280 = vmatprep.mubr.bf16.mxu0 %v5840_v53  ;;  %v1681_v33 = vrot.slane %v1679_v14, 5  ;;  %v5929_v53 = vld [vmem:[%s7320_s18 + $0xa4] sm:$0x1] }
 0x103   : > { %v7991_v0 = vpop.f32.mrb[0].mxu1  ;;  %v7993_v1 = vpop.f32.mrb[1].mxu0  ;;  %v2632_v32 = vrot.slane %v2631_v12, 4  ;;  %v1685_v34 = vrot.slane %v1683_v17, 4  ;;  %v1691_v40 = vrot.slane %v1689_v26, 5  ;;  %v2071_v62 = vrot.slane %v5801_v42, 5 }
 0x104   : > { %v7996_v8 = vpop.f32.mrb[1].mxu1  ;;  %v7998_v9 = vpop.f32.mrb[2].mxu0  ;;  %v6458_v27 = vadd.f32 %v7993_v1, %v7989_v59  ;;  %v2627_v59 = vsel %vm7343_vm5, %v2622_v24, %v2626_v60  ;;  %v1676_v1 = vor.u32 %v1675_v25, %v1672_v13  ;;  %v2639_v19 = vshrl.u32 %v5927_v43, 16  ;;  %v5736_v4 = vld [vmem:[%s7320_s18 + $0x94] sm:$0xf] }
 0x105   : > { %v8000_v15 = vpop.f32.mrb[2].mxu1  ;;  %v8002_v16 = vpop.f32.mrb[3].mxu0  ;;  %v6570_v36 = vadd.f32 %v7996_v8, %v7991_v0  ;;  %v2637_v0 = vsel %vm7343_vm5, %v2632_v32, %v2636_v5  ;;  %v1686_v8 = vor.u32 %v1685_v34, %v1681_v33  ;;  %v2642_v12 = vshll.u32 %v5927_v43, 16  ;;  %v5737_v13 = vld [vmem:[%s7320_s18 + $0x98] sm:$0x1] }
 0x106   : > { %v8004_v23 = vpop.f32.mrb[3].mxu1  ;;  %v6461_v41 = vadd.f32 %v8002_v16, %v7998_v9  ;;  %v5952_v54 = vcombine.low %v2627_v59, %v2637_v0  ;;  %v1677_v56 = vrot.slane %v1676_v1, 4  ;;  %v5825_v9 = vrot.slane %v5799_v18, 9  ;;  %v5958_v3 = vld [vmem:[%s7320_s18 + $0x18] sm:$0xe] }
 0x107   : > { %v8062_v48 = vadd.f32 %v6570_v36, %v6458_v27  ;;  %v6573_v49 = vadd.f32 %v8004_v23, %v8000_v15  ;;  %v2068_v16 = vrot.slane %v5800_v37, 5  ;;  %v1687_v60 = vrot.slane %v1686_v8, 4 }
 0x108   : > { %4441 = vmatprep.mubr.bf16.mxu1 %v5952_v54  ;;  %v1682_v15 = vsel %vm7343_vm5, %v1677_v56, %v1681_v33  ;;  %v2641_v17 = vrot.slane %v2639_v19, 4  ;;  %v2648_v18 = vshll.u32 %v5928_v52, 16  ;;  %v2652_v24 = vshrl.u32 %v5928_v52, 16 }
 0x109   : > { %8865 = vst [vmem:[#allocation8_spill] sm:$0xff] %v8062_v48  ;;  %v8071_v61 = vadd.f32 %v6573_v49, %v6461_v41  ;;  %v2069_v23 = vsel %vm7334_vm4, %v5825_v9, %v2068_v16  ;;  %v2070_v10 = vrot.slane %v2068_v16, 4  ;;  %v1692_v14 = vsel %vm7343_vm5, %v1687_v60, %v1691_v40  ;;  %4442 = vmatmul.mubr.bf16.gmra.mrb[104].mxu1 %v7157_v47 }
 0x10a   : > { %v8018_v44 = vpop.f32.mrb[4].mxu0  ;;  %v8085_v26 = vcombine.low %v1682_v15, %v1692_v14  ;;  %v2644_v32 = vrot.slane %v2642_v12, 5  ;;  %v2658_v33 = vshll.u32 %v5929_v53, 16  ;;  %v2650_v36 = vrot.slane %v2648_v18, 5  ;;  %v7160_v14 = vld [vmem:[%s7320_s18 + $0x9c] sm:$0xff]  }
 0x10b   : > { %v8015_v38 = vpop.f32.mrb[4].mxu1  ;;  %v8022_v50 = vpop.f32.mrb[5].mxu0  ;;  %8866 = vst [vmem:[#allocation9_spill] sm:$0xff] %v8071_v61  ;;  %v2072_v27 = vsel %vm7334_vm4, %v2070_v10, %v2071_v62  ;;  %v2654_v37 = vrot.slane %v2652_v24, 4  ;;  %v1694_v59 = vshrl.u32 %v5735_v57, 16  ;;  %v1697_v42 = vshll.u32 %v5735_v57, 16 }
 0x10c   : > { %v8030_v2 = vpop.f32.mrb[5].mxu1  ;;  %v8035_v21 = vpop.f32.mrb[6].mxu0  ;;  %8867 = vst [vmem:[#allocation10_spill] sm:$0xff] %v8085_v26  ;;  %v5841_v34 = vcombine.low %v2069_v23, %v2072_v27  ;;  %4281 = vmatmul.mubr.bf16.gmra.mrb[104].mxu0 %v8085_v26  ;;  %v2645_v40 = vor.u32 %v2644_v32, %v2641_v17  ;;  %v2660_v41 = vrot.slane %v2658_v33, 5  ;;  %v1703_v43 = vshll.u32 %v5736_v4, 16 }
 0x10d   : > { %v8037_v20 = vpop.f32.mrb[6].mxu1  ;;  %v8042_v28 = vpop.f32.mrb[7].mxu0  ;;  %v2655_v8 = vor.u32 %v2654_v37, %v2650_v36  ;;  %v1696_v47 = vrot.slane %v1694_v59, 4  ;;  %v1707_v49 = vshrl.u32 %v5736_v4, 16  ;;  %v1713_v52 = vshll.u32 %v5737_v13, 16 }
 0x10e   : > { %v8044_v29 = vpop.f32.mrb[7].mxu1  ;;  %4288 = vmatprep.mubr.bf16.mxu0 %v5841_v34  ;;  %v2646_v54 = vrot.slane %v2645_v40, 4  ;;  %v1699_v56 = vrot.slane %v1697_v42, 5  ;;  %v1705_v9 = vrot.slane %v1703_v43, 5  ;;  %v6464_v16 = vadd.f32 %v8022_v50, %v8018_v44  ;;  %v5802_v57 = vld [vmem:[%s7320_s18 + $0x9c] sm:$0xe] }
 0x10f   : > { %v2656_v62 = vrot.slane %v2655_v8, 4  ;;  %v1709_v19 = vrot.slane %v1707_v49, 4  ;;  %v1715_v15 = vrot.slane %v1713_v52, 5  ;;  %v6576_v4 = vadd.f32 %v8030_v2, %v8015_v38  ;;  %v5803_v23 = vld [vmem:[%s7320_s18 + $0xa0] sm:$0xf] }
 0x110   : > { %v2651_v12 = vsel %vm7343_vm5, %v2646_v54, %v2650_v36  ;;  %v1700_v13 = vor.u32 %v1699_v56, %v1696_v47  ;;  %v6467_v44 = vadd.f32 %v8042_v28, %v8035_v21  ;;  %v6579_v50 = vadd.f32 %v8044_v29, %v8037_v20  ;;  %v5804_v17 = vld [vmem:[%s7320_s18 + $0xa4] sm:$0x1]  ;;  %v5930_v18 = vld [vmem:[%s7320_s18 + $0xa8] sm:$0xf]  ;;  %v5931_v32 = vld [vmem:[%s7320_s18 + $0xac] sm:$0xf] }
 0x111   : > { %v2661_v38 = vsel %vm7343_vm5, %v2656_v62, %v2660_v41  ;;  %v1710_v2 = vor.u32 %v1709_v19, %v1705_v9  ;;  %v8117_v24 = vadd.f32 %v6576_v4, %v6464_v16  ;;  %v5826_v27 = vrot.slane %v5802_v57, 9  ;;  %v5932_v33 = vld [vmem:[%s7320_s18 + $0xb0] sm:$0x1]  ;;  %v5738_v20 = vld [vmem:[%s7320_s18 + $0x9c] sm:$0xf] }
 0x112   : > { %v8057_v45 = vpop.f32.mrb[8].mxu0  ;;  %v5953_v36 = vcombine.low %v2651_v12, %v2661_v38  ;;  %v1701_v37 = vrot.slane %v1700_v13, 4  ;;  %v8123_v21 = vadd.f32 %v6579_v50, %v6467_v44  ;;  %v2075_v28 = vrot.slane %v5803_v23, 5  ;;  %v5739_v49 = vld [vmem:[%s7320_s18 + $0xa0] sm:$0xf] }
 0x113   : > { %v8049_v39 = vpop.f32.mrb[8].mxu1  ;;  %v8069_v58 = vpop.f32.mrb[9].mxu0  ;;  %8868 = vst [vmem:[#allocation11_spill] sm:$0xff] %v8117_v24  ;;  %v1711_v29 = vrot.slane %v1710_v2, 4  ;;  %v2078_v59 = vrot.slane %v5804_v17, 5  ;;  %v2663_v40 = vshrl.u32 %v5930_v18, 16 }
 0x114   : > { %v8074_v5 = vpop.f32.mrb[9].mxu1  ;;  %v8083_v25 = vpop.f32.mrb[10].mxu0  ;;  %8869 = vst [vmem:[#allocation12_spill] sm:$0xff] %v8123_v21  ;;  %v2666_v42 = vshll.u32 %v5930_v18, 16  ;;  %4449 = vmatprep.mubr.bf16.mxu1 %v5953_v36  ;;  %v1706_v41 = vsel %vm7343_vm5, %v1701_v37, %v1705_v9  ;;  %v2076_v43 = vsel %vm7334_vm4, %v5826_v27, %v2075_v28  ;;  %v2077_v8 = vrot.slane %v2075_v28, 4 }
 0x115   : > { %v8089_v1 = vpop.f32.mrb[10].mxu1  ;;  %v8092_v0 = vpop.f32.mrb[11].mxu0  ;;  %v2672_v47 = vshll.u32 %v5931_v32, 16  ;;  %v1716_v56 = vsel %vm7343_vm5, %v1711_v29, %v1715_v15  ;;  %4450 = vmatmul.mubr.bf16.gmra.mrb[108].mxu1 %v7160_v14  ;;  %v2665_v16 = vrot.slane %v2663_v40, 4  ;;  %v2676_v62 = vshrl.u32 %v5931_v32, 16 }
 0x116   : > { %v8094_v53 = vpop.f32.mrb[11].mxu1  ;;  %v2668_v57 = vrot.slane %v2666_v42, 5  ;;  %v8141_v4 = vcombine.low %v1706_v41, %v1716_v56  ;;  %v2079_v23 = vsel %vm7334_vm4, %v2077_v8, %v2078_v59  ;;  %v2682_v13 = vshll.u32 %v5932_v33, 16  ;;  %v5740_v44 = vld [vmem:[%s7320_s18 + $0xa4] sm:$0x1] }
 0x117   : > { %v2674_v12 = vrot.slane %v2672_v47, 5  ;;  %v5842_v14 = vcombine.low %v2076_v43, %v2079_v23  ;;  %v2678_v18 = vrot.slane %v2676_v62, 4  ;;  %v1718_v38 = vshrl.u32 %v5738_v20, 16  ;;  %v5805_v37 = vld [vmem:[%s7320_s18 + $0xa8] sm:$0xe] }
 0x118   : > { %8870 = vst [vmem:[#allocation13_spill] sm:$0xff] %v8141_v4  ;;  %v2669_v17 = vor.u32 %v2668_v57, %v2665_v16  ;;  %4289 = vmatmul.mubr.bf16.gmra.mrb[108].mxu0 %v8141_v4  ;;  %v2684_v2 = vrot.slane %v2682_v13, 5  ;;  %v1721_v27 = vshll.u32 %v5738_v20, 16  ;;  %v1727_v32 = vshll.u32 %v5739_v49, 16  ;;  %v5806_v40 = vld [vmem:[%s7320_s18 + $0xac] sm:$0xf] }
 0x119   : > { %v1731_v36 = vshrl.u32 %v5739_v49, 16  ;;  %4296 = vmatprep.mubr.bf16.mxu0 %v5842_v14  ;;  %v2679_v28 = vor.u32 %v2678_v18, %v2674_v12  ;;  %v1720_v29 = vrot.slane %v1718_v38, 4  ;;  %v1737_v59 = vshll.u32 %v5740_v44, 16  ;;  %v5807_v47 = vld [vmem:[%s7320_s18 + $0xb0] sm:$0x1]  ;;  %v7161_v62 = vld [vmem:[%s7320_s18 + $0xa8] sm:$0xff]  }
 0x11a   : > { %v8099_v60 = vpop.f32.mrb[12].mxu0  ;;  %v2670_v33 = vrot.slane %v2669_v17, 4  ;;  %v1723_v41 = vrot.slane %v1721_v27, 5  ;;  %v1729_v43 = vrot.slane %v1727_v32, 5  ;;  %v6470_v20 = vadd.f32 %v8069_v58, %v8057_v45  ;;  %v5933_v13 = vld [vmem:[%s7320_s18 + $0xb4] sm:$0xf] }
 0x11b   : > { %v8104_v10 = vpop.f32.mrb[12].mxu1  ;;  %v8121_v34 = vpop.f32.mrb[13].mxu0  ;;  %v1733_v8 = vrot.slane %v1731_v36, 4  ;;  %v2680_v16 = vrot.slane %v2679_v28, 4  ;;  %v1739_v57 = vrot.slane %v1737_v59, 5  ;;  %v6582_v23 = vadd.f32 %v8074_v5, %v8049_v39 }
 0x11c   : > { %v8131_v52 = vpop.f32.mrb[13].mxu1  ;;  %v8133_v54 = vpop.f32.mrb[14].mxu0  ;;  %v2675_v56 = vsel %vm7343_vm5, %v2670_v33, %v2674_v12  ;;  %v5934_v44 = vld [vmem:[%s7320_s18 + $0xb8] sm:$0xf]  ;;  %v1724_v14 = vor.u32 %v1723_v41, %v1720_v29  ;;  %v6473_v45 = vadd.f32 %v8092_v0, %v8083_v25  ;;  %v6585_v58 = vadd.f32 %v8094_v53, %v8089_v1  ;;  %v5935_v32 = vld [vmem:[%s7320_s18 + $0xbc] sm:$0x1] }
 0x11d   : > { %v8137_v19 = vpop.f32.mrb[14].mxu1  ;;  %v8139_v9 = vpop.f32.mrb[15].mxu0  ;;  %v1734_v17 = vor.u32 %v1733_v8, %v1729_v43  ;;  %v2685_v12 = vsel %vm7343_vm5, %v2680_v16, %v2684_v2  ;;  %v8173_v18 = vadd.f32 %v6582_v23, %v6470_v20  ;;  %v5827_v38 = vrot.slane %v5805_v37, 9  ;;  %v5741_v28 = vld [vmem:[%s7320_s18 + $0xa8] sm:$0xf] }
 0x11e   : > { %v8146_v50 = vpop.f32.mrb[15].mxu1  ;;  %v2082_v27 = vrot.slane %v5806_v40, 5  ;;  %v5954_v39 = vcombine.low %v2675_v56, %v2685_v12  ;;  %v1725_v5 = vrot.slane %v1724_v14, 4  ;;  %v8176_v33 = vadd.f32 %v6585_v58, %v6473_v45  ;;  %v5742_v56 = vld [vmem:[%s7320_s18 + $0xac] sm:$0xf] }
 0x11f   : > { %8871 = vst [vmem:[#allocation14_spill] sm:$0xff] %v8173_v18  ;;  %v1735_v36 = vrot.slane %v1734_v17, 4  ;;  %v2085_v53 = vrot.slane %v5807_v47, 5  ;;  %v2687_v2 = vshrl.u32 %v5933_v13, 16  ;;  %v2690_v8 = vshll.u32 %v5933_v13, 16 }
 0x120   : > { %8872 = vst [vmem:[#allocation15_spill] sm:$0xff] %v8176_v33  ;;  %v2083_v1 = vsel %vm7334_vm4, %v5827_v38, %v2082_v27  ;;  %v2084_v0 = vrot.slane %v2082_v27, 4  ;;  %4457 = vmatprep.mubr.bf16.mxu1 %v5954_v39  ;;  %v1730_v40 = vsel %vm7343_vm5, %v1725_v5, %v1729_v43  ;;  %v2696_v20 = vshll.u32 %v5934_v44, 16  ;;  %v5743_v58 = vld [vmem:[%s7320_s18 + $0xb0] sm:$0x1] }
 0x121   : > { %v1740_v41 = vsel %vm7343_vm5, %v1735_v36, %v1739_v57  ;;  %4458 = vmatmul.mubr.bf16.gmra.mrb[112].mxu1 %v7161_v62  ;;  %v2689_v17 = vrot.slane %v2687_v2, 4  ;;  %v2700_v45 = vshrl.u32 %v5934_v44, 16  ;;  %v2692_v12 = vrot.slane %v2690_v8, 5  ;;  %v5808_v2 = vld [vmem:[%s7320_s18 + $0xb4] sm:$0xe] }
 0x122   : > { %v8148_v15 = vpop.f32.mrb[16].mxu0  ;;  %v8198_v47 = vcombine.low %v1730_v40, %v1740_v41  ;;  %v2086_v14 = vsel %vm7334_vm4, %v2084_v0, %v2085_v53  ;;  %v2698_v57 = vrot.slane %v2696_v20, 5  ;;  %v2706_v13 = vshll.u32 %v5935_v32, 16  ;;  %v5809_v20 = vld [vmem:[%s7320_s18 + $0xb8] sm:$0xf] }
 0x123   : > { %v8153_v42 = vpop.f32.mrb[16].mxu1  ;;  %v8158_v49 = vpop.f32.mrb[17].mxu0  ;;  %v5843_v43 = vcombine.low %v2083_v1, %v2086_v14  ;;  %v2702_v27 = vrot.slane %v2700_v45, 4  ;;  %v1742_v39 = vshrl.u32 %v5741_v28, 16  ;;  %v1745_v5 = vshll.u32 %v5741_v28, 16 }
 0x124   : > { %v8179_v29 = vpop.f32.mrb[17].mxu1  ;;  %v8181_v25 = vpop.f32.mrb[18].mxu0  ;;  %8873 = vst [vmem:[#allocation16_spill] sm:$0xff] %v8198_v47  ;;  %4297 = vmatmul.mubr.bf16.gmra.mrb[112].mxu0 %v8198_v47  ;;  %v1751_v62 = vshll.u32 %v5742_v56, 16  ;;  %v2693_v36 = vor.u32 %v2692_v12, %v2689_v17  ;;  %v2708_v0 = vrot.slane %v2706_v13, 5  ;;  %v1755_v44 = vshrl.u32 %v5742_v56, 16 }
 0x125   : > { %v8185_v37 = vpop.f32.mrb[18].mxu1  ;;  %v8187_v59 = vpop.f32.mrb[19].mxu0  ;;  %4304 = vmatprep.mubr.bf16.mxu0 %v5843_v43  ;;  %v1761_v53 = vshll.u32 %v5743_v58, 16  ;;  %v2703_v40 = vor.u32 %v2702_v27, %v2698_v57  ;;  %v1744_v32 = vrot.slane %v1742_v39, 4  ;;  %v1747_v41 = vrot.slane %v1745_v5, 5 }
 0x126   : > { %v8194_v16 = vpop.f32.mrb[19].mxu1  ;;  %v1753_v8 = vrot.slane %v1751_v62, 5  ;;  %v2694_v45 = vrot.slane %v2693_v36, 4  ;;  %v1757_v28 = vrot.slane %v1755_v44, 4  ;;  %v6476_v17 = vadd.f32 %v8121_v34, %v8099_v60  ;;  %v5810_v43 = vld [vmem:[%s7320_s18 + $0xbc] sm:$0x1] }
 0x127   : > { %v1763_v33 = vrot.slane %v1761_v53, 5  ;;  %v2704_v58 = vrot.slane %v2703_v40, 4  ;;  %v1748_v12 = vor.u32 %v1747_v41, %v1744_v32  ;;  %v6588_v13 = vadd.f32 %v8131_v52, %v8104_v10  ;;  %v5936_v39 = vld [vmem:[%s7320_s18 + $0xc0] sm:$0xf]  ;;  %v5937_v40 = vld [vmem:[%s7320_s18 + $0xc4] sm:$0xf] }
 0x128   : > { %v6479_v27 = vadd.f32 %v8139_v9, %v8133_v54  ;;  %v2699_v62 = vsel %vm7343_vm5, %v2694_v45, %v2698_v57  ;;  %v1758_v60 = vor.u32 %v1757_v28, %v1753_v8  ;;  %v6591_v34 = vadd.f32 %v8146_v50, %v8137_v19  ;;  %v7164_v54 = vld [vmem:[%s7320_s18 + $0xb4] sm:$0xff]   ;;  %v5938_v50 = vld [vmem:[%s7320_s18 + $0xc8] sm:$0x1] }
 0x129   : > { %v5828_v36 = vrot.slane %v5808_v2, 9  ;;  %v2709_v10 = vsel %vm7343_vm5, %v2704_v58, %v2708_v0  ;;  %v1749_v52 = vrot.slane %v1748_v12, 4  ;;  %v8235_v9 = vadd.f32 %v6588_v13, %v6476_v17  ;;  %v5744_v12 = vld [vmem:[%s7320_s18 + $0xb4] sm:$0xf]  ;;  %v5745_v17 = vld [vmem:[%s7320_s18 + $0xb8] sm:$0xf] }
 0x12a   : > { %v8196_v23 = vpop.f32.mrb[20].mxu0  ;;  %v2089_v57 = vrot.slane %v5809_v20, 5  ;;  %v5955_v32 = vcombine.low %v2699_v62, %v2709_v10  ;;  %v1759_v41 = vrot.slane %v1758_v60, 4  ;;  %v8238_v45 = vadd.f32 %v6591_v34, %v6479_v27 }
 0x12b   : > { %v8203_v38 = vpop.f32.mrb[20].mxu1  ;;  %v8207_v1 = vpop.f32.mrb[21].mxu0  ;;  %8874 = vst [vmem:[#allocation17_spill] sm:$0xff] %v8235_v9  ;;  %v2092_v19 = vrot.slane %v5810_v43, 5  ;;  %v1754_v2 = vsel %vm7343_vm5, %v1749_v52, %v1753_v8  ;;  %v2711_v58 = vshrl.u32 %v5936_v39, 16  ;;  %v2714_v13 = vshll.u32 %v5936_v39, 16 }
 0x12c   : > { %v8210_v14 = vpop.f32.mrb[21].mxu1  ;;  %v8215_v56 = vpop.f32.mrb[22].mxu0  ;;  %8875 = vst [vmem:[#allocation18_spill] sm:$0xff] %v8238_v45  ;;  %v2090_v28 = vsel %vm7334_vm4, %v5828_v36, %v2089_v57  ;;  %v2091_v0 = vrot.slane %v2089_v57, 4  ;;  %4465 = vmatprep.mubr.bf16.mxu1 %v5955_v32  ;;  %v1764_v20 = vsel %vm7343_vm5, %v1759_v41, %v1763_v33  ;;  %v2720_v27 = vshll.u32 %v5937_v40, 16 }
 0x12d   : > { %v8222_v5 = vpop.f32.mrb[22].mxu1  ;;  %v8228_v44 = vpop.f32.mrb[23].mxu0  ;;  %v2724_v62 = vshrl.u32 %v5937_v40, 16  ;;  %v8253_v8 = vcombine.low %v1754_v2, %v1764_v20  ;;  %4466 = vmatmul.mubr.bf16.gmra.mrb[116].mxu1 %v7164_v54  ;;  %v2713_v36 = vrot.slane %v2711_v58, 4  ;;  %v2730_v10 = vshll.u32 %v5938_v50, 16 }
 0x12e   : > { %v8230_v53 = vpop.f32.mrb[23].mxu1  ;;  %v2093_v34 = vsel %vm7334_vm4, %v2091_v0, %v2092_v19  ;;  %v5746_v52 = vld [vmem:[%s7320_s18 + $0xbc] sm:$0x1]  ;;  %v2716_v39 = vrot.slane %v2714_v13, 5  ;;  %v2722_v40 = vrot.slane %v2720_v27, 5  ;;  %v1766_v19 = vshrl.u32 %v5744_v12, 16 }
 0x12f   : > { %8876 = vst [vmem:[#allocation19_spill] sm:$0xff] %v8253_v8  ;;  %v5844_v33 = vcombine.low %v2090_v28, %v2093_v34  ;;  %v2726_v41 = vrot.slane %v2724_v62, 4  ;;  %4305 = vmatmul.mubr.bf16.gmra.mrb[116].mxu0 %v8253_v8  ;;  %v2732_v54 = vrot.slane %v2730_v10, 5  ;;  %v1769_v2 = vshll.u32 %v5744_v12, 16  ;;  %v5811_v12 = vld [vmem:[%s7320_s18 + $0xc0] sm:$0xe] }
 0x130   : > { %v1775_v50 = vshll.u32 %v5745_v17, 16  ;;  %v2717_v28 = vor.u32 %v2716_v39, %v2713_v36  ;;  %v1779_v13 = vshrl.u32 %v5745_v17, 16  ;;  %v1785_v27 = vshll.u32 %v5746_v52, 16 }
 0x131   : > { %4312 = vmatprep.mubr.bf16.mxu0 %v5844_v33  ;;  %v2727_v20 = vor.u32 %v2726_v41, %v2722_v40  ;;  %v1768_v62 = vrot.slane %v1766_v19, 4  ;;  %v1771_v34 = vrot.slane %v1769_v2, 5  ;;  %v6482_v10 = vadd.f32 %v8158_v49, %v8148_v15  ;;  %v5812_v33 = vld [vmem:[%s7320_s18 + $0xc4] sm:$0xf]  ;;  %v5813_v49 = vld [vmem:[%s7320_s18 + $0xc8] sm:$0x1] }
 0x132   : > { %v8249_v43 = vpop.f32.mrb[24].mxu0  ;;  %v1777_v18 = vrot.slane %v1775_v50, 5  ;;  %v2718_v24 = vrot.slane %v2717_v28, 4  ;;  %v1781_v48 = vrot.slane %v1779_v13, 4  ;;  %v1787_v36 = vrot.slane %v1785_v27, 5 }
 0x133   : > { %v8251_v60 = vpop.f32.mrb[24].mxu1  ;;  %v8258_v57 = vpop.f32.mrb[25].mxu0  ;;  %v2728_v61 = vrot.slane %v2727_v20, 4  ;;  %v1772_v17 = vor.u32 %v1771_v34, %v1768_v62  ;;  %v6594_v52 = vadd.f32 %v8179_v29, %v8153_v42  ;;  %v6485_v39 = vadd.f32 %v8187_v59, %v8181_v25  ;;  %v5939_v41 = vld [vmem:[%s7320_s18 + $0xcc] sm:$0xf]  ;;  %v7165_v29 = vld [vmem:[%s7320_s18 + $0xc0] sm:$0xff]  }
 0x134   : > { %v8260_v32 = vpop.f32.mrb[25].mxu1  ;;  %v8262_v45 = vpop.f32.mrb[26].mxu0  ;;  %v6597_v15 = vadd.f32 %v8194_v16, %v8185_v37  ;;  %v2723_v50 = vsel %vm7343_vm5, %v2718_v24, %v2722_v40  ;;  %v1782_v42 = vor.u32 %v1781_v48, %v1777_v18  ;;  %v5829_v20 = vrot.slane %v5811_v12, 9  ;;  %v5940_v25 = vld [vmem:[%s7320_s18 + $0xd0] sm:$0xf] }
 0x135   : > { %v8264_v9 = vpop.f32.mrb[26].mxu1  ;;  %v8267_v0 = vpop.f32.mrb[27].mxu0  ;;  %v2733_v28 = vsel %vm7343_vm5, %v2728_v61, %v2732_v54  ;;  %v1773_v13 = vrot.slane %v1772_v17, 4  ;;  %v8299_v27 = vadd.f32 %v6594_v52, %v6482_v10  ;;  %v5941_v34 = vld [vmem:[%s7320_s18 + $0xd4] sm:$0x1]  ;;  %v2096_v61 = vrot.slane %v5812_v33, 5 }
 0x136   : > { %v8269_v58 = vpop.f32.mrb[27].mxu1  ;;  %v5956_v16 = vcombine.low %v2723_v50, %v2733_v28  ;;  %v8301_v62 = vadd.f32 %v6597_v15, %v6485_v39  ;;  %v1783_v48 = vrot.slane %v1782_v42, 4  ;;  %v2099_v54 = vrot.slane %v5813_v49, 5  ;;  %v5747_v15 = vld [vmem:[%s7320_s18 + $0xc0] sm:$0xf] }
 0x137   : > { %8877 = vst [vmem:[#allocation20_spill] sm:$0xff] %v8299_v27  ;;  %v2735_v12 = vshrl.u32 %v5939_v41, 16  ;;  %v1778_v10 = vsel %vm7343_vm5, %v1773_v13, %v1777_v18  ;;  %v2738_v17 = vshll.u32 %v5939_v41, 16  ;;  %v2744_v52 = vshll.u32 %v5940_v25, 16  ;;  %v5748_v27 = vld [vmem:[%s7320_s18 + $0xc4] sm:$0xf] }
 0x138   : > { %8878 = vst [vmem:[#allocation21_spill] sm:$0xff] %v8301_v62  ;;  %4473 = vmatprep.mubr.bf16.mxu1 %v5956_v16  ;;  %v2748_v39 = vshrl.u32 %v5940_v25, 16  ;;  %v1788_v33 = vsel %vm7343_vm5, %v1783_v48, %v1787_v36  ;;  %v2097_v49 = vsel %vm7334_vm4, %v5829_v20, %v2096_v61  ;;  %v2098_v42 = vrot.slane %v2096_v61, 4  ;;  %v5749_v16 = vld [vmem:[%s7320_s18 + $0xc8] sm:$0x1] }
 0x139   : > { %4474 = vmatmul.mubr.bf16.gmra.mrb[120].mxu1 %v7165_v29  ;;  %v2737_v62 = vrot.slane %v2735_v12, 4  ;;  %v8323_v47 = vcombine.low %v1778_v10, %v1788_v33  ;;  %v2740_v18 = vrot.slane %v2738_v17, 5  ;;  %v2746_v41 = vrot.slane %v2744_v52, 5 }
 0x13a   : > { %v8274_v21 = vpop.f32.mrb[28].mxu0  ;;  %v2750_v13 = vrot.slane %v2748_v39, 4  ;;  %v2100_v36 = vsel %vm7334_vm4, %v2098_v42, %v2099_v54  ;;  %v2754_v29 = vshll.u32 %v5941_v34, 16  ;;  %v1790_v48 = vshrl.u32 %v5747_v15, 16 }
 0x13b   : > { %v8285_v19 = vpop.f32.mrb[28].mxu1  ;;  %v8287_v2 = vpop.f32.mrb[29].mxu0  ;;  %8879 = vst [vmem:[#allocation22_spill] sm:$0xff] %v8323_v47  ;;  %v1793_v20 = vshll.u32 %v5747_v15, 16  ;;  %4313 = vmatmul.mubr.bf16.gmra.mrb[120].mxu0 %v8323_v47  ;;  %v5845_v10 = vcombine.low %v2097_v49, %v2100_v36  ;;  %v2741_v17 = vor.u32 %v2740_v18, %v2737_v62  ;;  %v1799_v39 = vshll.u32 %v5748_v27, 16 }
 0x13c   : > { %v8295_v59 = vpop.f32.mrb[29].mxu1  ;;  %v8297_v37 = vpop.f32.mrb[30].mxu0  ;;  %v2751_v52 = vor.u32 %v2750_v13, %v2746_v41  ;;  %v2756_v34 = vrot.slane %v2754_v29, 5  ;;  %v1792_v54 = vrot.slane %v1790_v48, 4  ;;  %v1803_v42 = vshrl.u32 %v5748_v27, 16 }
 0x13d   : > { %v8304_v24 = vpop.f32.mrb[30].mxu1  ;;  %v8306_v40 = vpop.f32.mrb[31].mxu0  ;;  %v1795_v15 = vrot.slane %v1793_v20, 5  ;;  %4320 = vmatprep.mubr.bf16.mxu0 %v5845_v10  ;;  %v2742_v31 = vrot.slane %v2741_v17, 4  ;;  %v1801_v49 = vrot.slane %v1799_v39, 5  ;;  %v1809_v62 = vshll.u32 %v5749_v16, 16 }
 0x13e   : > { %v8308_v8 = vpop.f32.mrb[31].mxu1  ;;  %v2752_v47 = vrot.slane %v2751_v52, 4  ;;  %v5959_v18 = vld [vmem:[%s7320_s18 + $0x1c] sm:$0xf]  ;;  %v1805_v36 = vrot.slane %v1803_v42, 4  ;;  %v6488_v55 = vadd.f32 %v8207_v1, %v8196_v23  ;;  %v6600_v29 = vadd.f32 %v8210_v14, %v8203_v38  ;;  %v7168_v52 = vld [vmem:[%s7320_s18 + $0xcc] sm:$0xff]  }
 0x13f   : > { %v1796_v13 = vor.u32 %v1795_v15, %v1792_v54  ;;  %v5960_v48 = vld [vmem:[%s7320_s18 + $0x20] sm:$0x1]  ;;  %v5961_v27 = vld [vmem:[%s7320_s18 + $0x24] sm:$0xe]  ;;  %v2747_v10 = vsel %vm7343_vm5, %v2742_v31, %v2746_v41  ;;  %v1811_v17 = vrot.slane %v1809_v62, 5  ;;  %v6491_v39 = vadd.f32 %v8228_v44, %v8215_v56 }
 0x140   : > { %v2757_v16 = vsel %vm7343_vm5, %v2752_v47, %v2756_v34  ;;  %v5962_v23 = vld [vmem:[%s7320_s18 + $0x28] sm:$0xf]  ;;  %v1806_v15 = vor.u32 %v1805_v36, %v1801_v49  ;;  %v8362_v42 = vadd.f32 %v6600_v29, %v6488_v55  ;;  %v6603_v47 = vadd.f32 %v8230_v53, %v8222_v5 }
 0x141   : > { %v5957_v14 = vcombine.low %v2747_v10, %v2757_v16  ;;  %v1797_v54 = vrot.slane %v1796_v13, 4  ;;  %v6006_v34 = vrot.slane %v5958_v3, 9  ;;  %v2936_v56 = vrot.slane %v5959_v18, 5 }
 0x142   : > { %v8310_v50 = vpop.f32.mrb[32].mxu0  ;;  %v2939_v44 = vrot.slane %v5960_v48, 5  ;;  %v1807_v13 = vrot.slane %v1806_v15, 4  ;;  %v6007_v36 = vrot.slane %v5961_v27, 9  ;;  %v2943_v29 = vrot.slane %v5962_v23, 5 }
 0x143   : > { %v8315_v28 = vpop.f32.mrb[32].mxu1  ;;  %v8325_v25 = vpop.f32.mrb[33].mxu0  ;;  %4481 = vmatprep.mubr.bf16.mxu1 %v5957_v14  ;;  %v1802_v55 = vsel %vm7343_vm5, %v1797_v54, %v1801_v49  ;;  %v8379_v3 = vadd.f32 %v6603_v47, %v6491_v39  ;;  %v2937_v5 = vsel %vm7334_vm4, %v6006_v34, %v2936_v56  ;;  %v2938_v53 = vrot.slane %v2936_v56, 4  ;;  %v5964_v48 = vld [vmem:[%s7320_s18 + $0x30] sm:$0xe] }
 0x144   : > { %v8327_v4 = vpop.f32.mrb[33].mxu1  ;;  %v8331_v61 = vpop.f32.mrb[34].mxu0  ;;  %4482 = vmatmul.mubr.bf16.gmra.mrb[124].mxu1 %v7168_v52  ;;  %v2946_v18 = vrot.slane %v5963_v63, 5  ;;  %v1812_v49 = vsel %vm7343_vm5, %v1807_v13, %v1811_v17  ;;  %v8389_v27 = vsel %vm7334_vm4, %v6007_v36, %v2943_v29  ;;  %v2945_v16 = vrot.slane %v2943_v29, 4  ;;  %v5965_v39 = vld [vmem:[%s7320_s18 + $0x34] sm:$0xf] }
 0x145   : > { %v8333_v12 = vpop.f32.mrb[34].mxu1  ;;  %v8336_v33 = vpop.f32.mrb[35].mxu0  ;;  %7000 = vmatprep.mubr.bf16.mxu1 %v7743_v35  ;;  %v6494_v52 = vadd.f32 %v8258_v57, %v8249_v43  ;;  %v5966_v23 = vld [vmem:[%s7320_s18 + $0x38] sm:$0x1]  ;;  %v8397_v63 = vcombine.low %v1802_v55, %v1812_v49  ;;  %v2940_v51 = vsel %vm7334_vm4, %v2938_v53, %v2939_v44  ;;  %v6606_v35 = vadd.f32 %v8260_v32, %v8251_v60  ;;  %v5968_v54 = vld [vmem:[%s7320_s18 + $0x40] sm:$0xf] }
 0x146   : > { %v8338_v26 = vpop.f32.mrb[35].mxu1  ;;  %v6497_v17 = vadd.f32 %v8267_v0, %v8262_v45  ;;  %v6022_v57 = vcombine.low %v2937_v5, %v2940_v51  ;;  %v2947_v47 = vsel %vm7334_vm4, %v2945_v16, %v2946_v18  ;;  %v6609_v34 = vadd.f32 %v8269_v58, %v8264_v9  ;;  %v5967_v44 = vld [vmem:[%s7320_s18 + $0x3c] sm:$0xe]  ;;  %v5969_v13 = vld [vmem:[%s7320_s18 + $0x44] sm:$0x1] }
 0x147   : > { %v6008_v56 = vrot.slane %v5964_v48, 9  ;;  %4321 = vmatmul.mubr.bf16.gmra.mrb[124].mxu0 %v8397_v63  ;;  %v8420_v45 = vadd.f32 %v6606_v35, %v6494_v52  ;;  %v2950_v0 = vrot.slane %v5965_v39, 5  ;;  %v2953_v55 = vrot.slane %v5966_v23, 5  ;;  %v5971_v53 = vld [vmem:[%s7320_s18 + $0x4c] sm:$0xf] }
 0x148   : > { %6952 = vmatprep.mubr.bf16.mxu0 %v6022_v57  ;;  %v6023_v9 = vcombine.low %v8389_v27, %v2947_v47  ;;  %v8428_v58 = vadd.f32 %v6609_v34, %v6497_v17  ;;  %v2957_v5 = vrot.slane %v5968_v54, 5  ;;  %v6500_v16 = vadd.f32 %v8287_v2, %v8274_v21  ;;  %v5970_v35 = vld [vmem:[%s7320_s18 + $0x48] sm:$0xe]  ;;  %v5972_v17 = vld [vmem:[%s7320_s18 + $0x50] sm:$0x1] }
 0x149   : > { %v2951_v48 = vsel %vm7334_vm4, %v6008_v56, %v2950_v0  ;;  %v2952_v49 = vrot.slane %v2950_v0, 4  ;;  %v6612_v52 = vadd.f32 %v8295_v59, %v8285_v19  ;;  %v6009_v39 = vrot.slane %v5967_v44, 9 }
 0x14a   : > { %v8348_v20 = vpop.f32.mrb[36].mxu0  ;;  %v2960_v23 = vrot.slane %v5969_v13, 5  ;;  %v6503_v27 = vadd.f32 %v8306_v40, %v8297_v37  ;;  %v6615_v51 = vadd.f32 %v8308_v8, %v8304_v24  ;;  %v2959_v21 = vrot.slane %v2957_v5, 4  ;;  %v5974_v8 = vld [vmem:[%s7320_s18 + $0x58] sm:$0xf] }
 0x14b   : > { %v8358_v1 = vpop.f32.mrb[36].mxu1  ;;  %v8360_v38 = vpop.f32.mrb[37].mxu0  ;;  %v2954_v54 = vsel %vm7334_vm4, %v2952_v49, %v2953_v55  ;;  %v8448_v2 = vadd.f32 %v6612_v52, %v6500_v16  ;;  %v2964_v19 = vrot.slane %v5971_v53, 5  ;;  %v6010_v40 = vrot.slane %v5970_v35, 9  ;;  %v5977_v55 = vld [vmem:[%s7320_s18 + $0x64] sm:$0xf] }
 0x14c   : > { %v8365_v31 = vpop.f32.mrb[37].mxu1  ;;  %v8367_v41 = vpop.f32.mrb[38].mxu0  ;;  %7001 = vmatmul.mubr.bf16.vlgmr.msra.gmra.mrb[128].mxu1 %v7782_v30  ;;  %v6024_v57 = vcombine.low %v2951_v48, %v2954_v54  ;;  %v8453_v37 = vadd.f32 %v6615_v51, %v6503_v27  ;;  %v2967_v34 = vrot.slane %v5972_v17, 5  ;;  %v6506_v0 = vadd.f32 %v8325_v25, %v8310_v50  ;;  %v5973_v16 = vld [vmem:[%s7320_s18 + $0x54] sm:$0xe] }
 0x14d   : > { %v8371_v62 = vpop.f32.mrb[38].mxu1  ;;  %v8373_v7 = vpop.f32.mrb[39].mxu0  ;;  %7004 = vmatprep.mubr.bf16.mxu1 %v7816_v22  ;;  %v2966_v47 = vrot.slane %v2964_v19, 4  ;;  %v6618_v22 = vadd.f32 %v8327_v4, %v8315_v28  ;;  %v2958_v48 = vsel %vm7334_vm4, %v6009_v39, %v2957_v5  ;;  %v2961_v49 = vsel %vm7334_vm4, %v2959_v21, %v2960_v23  ;;  %v5975_v25 = vld [vmem:[%s7320_s18 + $0x5c] sm:$0x1] }
 0x14e   : > { %v8377_v10 = vpop.f32.mrb[39].mxu1  ;;  %v6509_v50 = vadd.f32 %v8336_v33, %v8331_v61  ;;  %v6621_v4 = vadd.f32 %v8338_v26, %v8333_v12  ;;  %v5976_v5 = vld [vmem:[%s7320_s18 + $0x60] sm:$0xe]  ;;  %v2965_v39 = vsel %vm7334_vm4, %v6010_v40, %v2964_v19  ;;  %v2978_v61 = vrot.slane %v5977_v55, 5  ;;  %v5978_v26 = vld [vmem:[%s7320_s18 + $0x68] sm:$0x1] }
 0x14f   : > { %6953 = vmatmul.mubr.bf16.vlgmr.msra.gmra.mrb[128].mxu0 %v6023_v9  ;;  %v2971_v9 = vrot.slane %v5974_v8, 5  ;;  %v8485_v52 = vadd.f32 %v6618_v22, %v6506_v0  ;;  %v2968_v23 = vsel %vm7334_vm4, %v2966_v47, %v2967_v34  ;;  %v6025_v33 = vcombine.low %v2958_v48, %v2961_v49  ;;  %v5980_v54 = vld [vmem:[%s7320_s18 + $0x70] sm:$0xf]  ;;  %v5979_v55 = vld [vmem:[%s7320_s18 + $0x6c] sm:$0xe] }
 0x150   : > { %6956 = vmatprep.mubr.bf16.mxu0 %v6024_v57  ;;  %v8492_v27 = vadd.f32 %v6621_v4, %v6509_v50  ;;  %v6512_v12 = vadd.f32 %v8360_v38, %v8348_v20  ;;  %v6011_v51 = vrot.slane %v5973_v16, 9  ;;  %v2974_v35 = vrot.slane %v5975_v25, 5  ;;  %v5981_v48 = vld [vmem:[%s7320_s18 + $0x74] sm:$0x1] }
 0x151   : > { %v6012_v17 = vrot.slane %v5976_v5, 9  ;;  %v6624_v21 = vadd.f32 %v8365_v31, %v8358_v1  ;;  %v6026_v57 = vcombine.low %v2965_v39, %v2968_v23  ;;  %v2973_v8 = vrot.slane %v2971_v9, 4  ;;  %v5982_v5 = vld [vmem:[%s7320_s18 + $0x78] sm:$0xe] }
 0x152   : > { %v8395_v14 = vpop.f32.mrb[40].mxu0  ;;  %v6515_v40 = vadd.f32 %v8373_v7, %v8367_v41  ;;  %v2980_v1 = vrot.slane %v2978_v61, 4  ;;  %v2981_v31 = vrot.slane %v5978_v26, 5  ;;  %v2985_v0 = vrot.slane %v5980_v54, 5  ;;  %v5983_v41 = vld [vmem:[%s7320_s18 + $0x7c] sm:$0xf] }
 0x153   : > { %v8406_v15 = vpop.f32.mrb[40].mxu1  ;;  %v8408_v43 = vpop.f32.mrb[41].mxu0  ;;  %v8512_v47 = vadd.f32 %v6624_v21, %v6512_v12  ;;  %v2975_v16 = vsel %vm7334_vm4, %v2973_v8, %v2974_v35  ;;  %v2979_v50 = vsel %vm7334_vm4, %v6012_v17, %v2978_v61  ;;  %v2992_v39 = vrot.slane %v5983_v41, 5  ;;  %v8881_v54 = vld [vmem:[#allocation4_spill] sm:$0xff] }
 0x154   : > { %v8415_v60 = vpop.f32.mrb[41].mxu1  ;;  %v8417_v32 = vpop.f32.mrb[42].mxu0  ;;  %7005 = vmatmul.mubr.bf16.gmra.mrb[132].mxu1 %v7841_v11  ;;  %v6627_v11 = vadd.f32 %v8377_v10, %v8371_v62  ;;  %v2972_v10 = vsel %vm7334_vm4, %v6011_v51, %v2971_v9  ;;  %v6518_v4 = vadd.f32 %v8408_v43, %v8395_v14  ;;  %v2982_v9 = vsel %vm7334_vm4, %v2980_v1, %v2981_v31  ;;  %v5984_v14 = vld [vmem:[%s7320_s18 + $0x80] sm:$0x1] }
 0x155   : > { %v8423_v36 = vpop.f32.mrb[42].mxu1  ;;  %v8425_v29 = vpop.f32.mrb[43].mxu0  ;;  %7008 = vmatprep.mubr.bf16.mxu1 %v7878_v6  ;;  %v6630_v25 = vadd.f32 %v8415_v60, %v8406_v15  ;;  %v6013_v61 = vrot.slane %v5979_v55, 9  ;;  %v2987_v26 = vrot.slane %v2985_v0, 4  ;;  %v2988_v12 = vrot.slane %v5981_v48, 5  ;;  %v8880_v60 = vld [vmem:[#allocation3_spill] sm:$0xff] }
 0x156   : > { %v8431_v18 = vpop.f32.mrb[43].mxu1  ;;  %v8518_v7 = vadd.f32 %v6627_v11, %v6515_v40  ;;  %v6521_v23 = vadd.f32 %v8425_v29, %v8417_v32  ;;  %v6027_v15 = vcombine.low %v2972_v10, %v2975_v16  ;;  %v6028_v17 = vcombine.low %v2979_v50, %v2982_v9  ;;  %v5986_v32 = vld [vmem:[%s7320_s18 + $0x88] sm:$0xf]  ;;  %v8555_v29 = vld [vmem:[%s7320_s18 + $0x94] sm:$0xf] }
 0x157   : > { %6957 = vmatmul.mubr.bf16.gmra.mrb[132].mxu0 %v6025_v33  ;;  %v6633_v33 = vadd.f32 %v8431_v18, %v8423_v36  ;;  %v8545_v43 = vadd.f32 %v6630_v25, %v6518_v4  ;;  %v2994_v8 = vrot.slane %v2992_v39, 4  ;;  %v2995_v40 = vrot.slane %v5984_v14, 5 }
 0x158   : > { %6960 = vmatprep.mubr.bf16.mxu0 %v6026_v57  ;;  %v6014_v57 = vrot.slane %v5982_v5, 9  ;;  %v2986_v41 = vsel %vm7334_vm4, %v6013_v61, %v2985_v0  ;;  %v2989_v10 = vsel %vm7334_vm4, %v2987_v26, %v2988_v12  ;;  %v2999_v16 = vrot.slane %v5986_v32, 5  ;;  %v5988_v0 = vld [vmem:[%s7320_s18 + $0x90] sm:$0xe] }
 0x159   : > { %v8548_v51 = vadd.f32 %v6633_v33, %v6521_v23  ;;  %v3006_v25 = vrot.slane %v8555_v29, 5  ;;  %v8882_v26 = vld [vmem:[#allocation5_spill] sm:$0xff]  ;;  %v6016_v14 = vrot.slane %v5988_v0, 9  ;;  %v5993_v0 = vld [vmem:[%s7320_s18 + $0xa4] sm:$0x1] }
 0x15a   : > { %v8456_v24 = vpop.f32.mrb[44].mxu0  ;;  %v3001_v12 = vrot.slane %v2999_v16, 4 }
 0x15b   : > { %v8450_v59 = vpop.f32.mrb[44].mxu1  ;;  %v8460_v56 = vpop.f32.mrb[45].mxu0  ;;  %v3008_v32 = vrot.slane %v3006_v25, 4 }
 0x15c   : > { %v8458_v30 = vpop.f32.mrb[45].mxu1  ;;  %v8469_v13 = vpop.f32.mrb[46].mxu0  ;;  %7009 = vmatmul.mubr.bf16.gmra.mrb[136].mxu1 %v8880_v60  ;;  %v6524_v36 = vadd.f32 %v8460_v56, %v8456_v24 }
 0x15d   : > { %v8462_v44 = vpop.f32.mrb[46].mxu1  ;;  %v8482_v28 = vpop.f32.mrb[47].mxu0  ;;  %7012 = vmatprep.mubr.bf16.mxu1 %v8881_v54  ;;  %v6636_v11 = vadd.f32 %v8458_v30, %v8450_v59  ;;  %v5985_v59 = vld [vmem:[%s7320_s18 + $0x84] sm:$0xe]  ;;  %v5987_v30 = vld [vmem:[%s7320_s18 + $0x8c] sm:$0x1] }
 0x15e   : > { %v8471_v53 = vpop.f32.mrb[47].mxu1  ;;  %v6527_v24 = vadd.f32 %v8482_v28, %v8469_v13  ;;  %v6029_v13 = vcombine.low %v2986_v41, %v2989_v10  ;;  %v5990_v28 = vld [vmem:[%s7320_s18 + $0x98] sm:$0x1]  ;;  %v6015_v5 = vrot.slane %v5985_v59, 9  ;;  %v3002_v23 = vrot.slane %v5987_v30, 5 }
 0x15f   : > { %v6639_v56 = vadd.f32 %v8471_v53, %v8462_v44  ;;  %6961 = vmatmul.mubr.bf16.gmra.mrb[136].mxu0 %v6027_v15  ;;  %v8571_v50 = vadd.f32 %v6636_v11, %v6524_v36  ;;  %v2993_v44 = vsel %vm7334_vm4, %v6014_v57, %v2992_v39  ;;  %v2996_v53 = vsel %vm7334_vm4, %v2994_v8, %v2995_v40  ;;  %v8883_v54 = vld [vmem:[#allocation6_spill] sm:$0xff] }
 0x160   : > { %6964 = vmatprep.mubr.bf16.mxu0 %v6028_v17  ;;  %v6030_v17 = vcombine.low %v2993_v44, %v2996_v53  ;;  %v3009_v29 = vrot.slane %v5990_v28, 5  ;;  %v3000_v40 = vsel %vm7334_vm4, %v6015_v5, %v2999_v16  ;;  %v3003_v11 = vsel %vm7334_vm4, %v3001_v12, %v3002_v23  ;;  %v5994_v16 = vld [vmem:[%s7320_s18 + $0xa8] sm:$0xe]  ;;  %v5996_v5 = vld [vmem:[%s7320_s18 + $0xb0] sm:$0x1] }
 0x161   : > { %v8575_v9 = vadd.f32 %v6639_v56, %v6527_v24  ;;  %v3007_v56 = vsel %vm7334_vm4, %v6016_v14, %v3006_v25  ;;  %v6031_v23 = vcombine.low %v3000_v40, %v3003_v11  ;;  %v8884_v25 = vld [vmem:[#allocation7_spill] sm:$0xff]  ;;  %v3016_v12 = vrot.slane %v5993_v0, 5  ;;  %v6002_v0 = vld [vmem:[%s7320_s18 + $0xc8] sm:$0x1] }
 0x162   : > { %v8508_v20 = vpop.f32.mrb[48].mxu0  ;;  %v6018_v14 = vrot.slane %v5994_v16, 9 }
 0x163   : > { %v8501_v19 = vpop.f32.mrb[48].mxu1  ;;  %v8514_v34 = vpop.f32.mrb[49].mxu0 }
 0x164   : > { %v8510_v38 = vpop.f32.mrb[49].mxu1  ;;  %v8521_v22 = vpop.f32.mrb[50].mxu0  ;;  %v6530_v33 = vadd.f32 %v8514_v34, %v8508_v20  ;;  %7013 = vmatmul.mubr.bf16.gmra.mrb[140].mxu1 %v8882_v26  ;;  %v5992_v20 = vld [vmem:[%s7320_s18 + $0xa0] sm:$0xf] }
 0x165   : > { %v8516_v6 = vpop.f32.mrb[50].mxu1  ;;  %v6532_v49 = vpop.f32.mrb[51].mxu0  ;;  %v6642_v61 = vadd.f32 %v8510_v38, %v8501_v19  ;;  %7016 = vmatprep.mubr.bf16.mxu1 %v8883_v54  ;;  %v3013_v41 = vrot.slane %v5992_v20, 5  ;;  %v5998_v54 = vld [vmem:[%s7320_s18 + $0xb8] sm:$0xf] }
 0x166   : > { %v8523_v62 = vpop.f32.mrb[51].mxu1  ;;  %v6533_v39 = vadd.f32 %v6532_v49, %v8521_v22  ;;  %v5995_v22 = vld [vmem:[%s7320_s18 + $0xac] sm:$0xf]  ;;  %v3027_v11 = vrot.slane %v5998_v54, 5 }
 0x167   : > { %v6645_v15 = vadd.f32 %v8523_v62, %v8516_v6  ;;  %v8592_v34 = vadd.f32 %v6642_v61, %v6530_v33  ;;  %6965 = vmatmul.mubr.bf16.gmra.mrb[140].mxu0 %v6029_v13  ;;  %v3020_v13 = vrot.slane %v5995_v22, 5  ;;  %v3015_v26 = vrot.slane %v3013_v41, 4 }
 0x168   : > { %6968 = vmatprep.mubr.bf16.mxu0 %v6030_v17  ;;  %v3023_v17 = vrot.slane %v5996_v5, 5 }
 0x169   : > { %v8594_v36 = vadd.f32 %v6645_v15, %v6533_v39  ;;  %v3017_v40 = vsel %vm7334_vm4, %v3015_v26, %v3016_v12  ;;  %v6003_v26 = vld [vmem:[%s7320_s18 + $0xcc] sm:$0xe] }
 0x16a   : > { %v6534_v18 = vpop.f32.mrb[52].mxu0 }
 0x16b   : > { %v8550_v35 = vpop.f32.mrb[52].mxu1  ;;  %v6535_v1 = vpop.f32.mrb[53].mxu0 }
 0x16c   : > { %v6647_v21 = vpop.f32.mrb[53].mxu1  ;;  %v6537_v55 = vpop.f32.mrb[54].mxu0  ;;  %v6536_v49 = vadd.f32 %v6535_v1, %v6534_v18  ;;  %v3010_v18 = vsel %vm7334_vm4, %v3008_v32, %v3009_v29  ;;  %v5991_v1 = vld [vmem:[%s7320_s18 + $0x9c] sm:$0xe]  ;;  %7017 = vmatmul.mubr.bf16.gmra.mrb[144].mxu1 %v8884_v25 }
 0x16d   : > { %v6649_v31 = vpop.f32.mrb[54].mxu1  ;;  %v6538_v4 = vpop.f32.mrb[55].mxu0  ;;  %v6648_v10 = vadd.f32 %v6647_v21, %v8550_v35  ;;  %v6017_v33 = vrot.slane %v5991_v1, 9  ;;  %v5997_v1 = vld [vmem:[%s7320_s18 + $0xb4] sm:$0xe] }
 0x16e   : > { %v6650_v48 = vpop.f32.mrb[55].mxu1  ;;  %v6539_v59 = vadd.f32 %v6538_v4, %v6537_v55  ;;  %v8885_v4 = vld [vmem:[#allocation10_spill] sm:$0xff] }
 0x16f   : > { %v6651_v30 = vadd.f32 %v6650_v48, %v6649_v31  ;;  %v8609_v44 = vadd.f32 %v6648_v10, %v6536_v49  ;;  %v6032_v48 = vcombine.low %v3007_v56, %v3010_v18  ;;  %7020 = vmatprep.mubr.bf16.mxu1 %v8885_v4  ;;  %6969 = vmatmul.mubr.bf16.gmra.mrb[144].mxu0 %v6031_v23  ;;  %v3029_v23 = vrot.slane %v3027_v11, 4 }
 0x170   : > { %v3014_v49 = vsel %vm7334_vm4, %v6017_v33, %v3013_v41  ;;  %v3021_v56 = vsel %vm7334_vm4, %v6018_v14, %v3020_v13 }
 0x171   : > { %v8612_v35 = vadd.f32 %v6651_v30, %v6539_v59  ;;  %6972 = vmatprep.mubr.bf16.mxu0 %v6032_v48  ;;  %v5999_v59 = vld [vmem:[%s7320_s18 + $0xbc] sm:$0x1]  ;;  %v6000_v30 = vld [vmem:[%s7320_s18 + $0xc0] sm:$0xe]  ;;  %v6004_v48 = vld [vmem:[%s7320_s18 + $0xd0] sm:$0xf] }
 0x172   : > { %v6540_v19 = vpop.f32.mrb[56].mxu0  ;;  %v3030_v25 = vrot.slane %v5999_v59, 5  ;;  %v6020_v33 = vrot.slane %v6000_v30, 9  ;;  %v8890_v59 = vld [vmem:[#allocation8_spill] sm:$0xff] }
 0x173   : > { %v6652_v60 = vpop.f32.mrb[56].mxu1  ;;  %v6541_v57 = vpop.f32.mrb[57].mxu0 }
 0x174   : > { %v6653_v38 = vpop.f32.mrb[57].mxu1  ;;  %v6543_v6 = vpop.f32.mrb[58].mxu0  ;;  %v6542_v53 = vadd.f32 %v6541_v57, %v6540_v19 }
 0x175   : > { %v6655_v8 = vpop.f32.mrb[58].mxu1  ;;  %v6544_v24 = vpop.f32.mrb[59].mxu0  ;;  %v6654_v28 = vadd.f32 %v6653_v38, %v6652_v60  ;;  %v3022_v60 = vrot.slane %v3020_v13, 4  ;;  %v6001_v38 = vld [vmem:[%s7320_s18 + $0xc4] sm:$0xf]  ;;  %v6019_v13 = vrot.slane %v5997_v1, 9 }
 0x176   : > { %v6656_v62 = vpop.f32.mrb[59].mxu1  ;;  %v6545_v21 = vadd.f32 %v6544_v24, %v6543_v6  ;;  %v3034_v41 = vrot.slane %v6001_v38, 5 }
 0x177   : > { %v8615_v61 = vadd.f32 %v6654_v28, %v6542_v53  ;;  %v6657_v55 = vadd.f32 %v6656_v62, %v6655_v8  ;;  %v3024_v18 = vsel %vm7334_vm4, %v3022_v60, %v3023_v17  ;;  %v6033_v53 = vcombine.low %v3014_v49, %v3017_v40  ;;  %v8886_v28 = vld [vmem:[#allocation13_spill] sm:$0xff] }
 0x178   : > { %7021 = vmatmul.mubr.bf16.gmra.mrb[148].mxu1 %v8886_v28  ;;  %v6034_v5 = vcombine.low %v3021_v56, %v3024_v18  ;;  %v3028_v14 = vsel %vm7334_vm4, %v6019_v13, %v3027_v11  ;;  %v3041_v60 = vrot.slane %v6004_v48, 5  ;;  %v6021_v40 = vrot.slane %v6003_v26, 9  ;;  %v8889_v18 = vld [vmem:[#allocation22_spill] sm:$0xff] }
 0x179   : > { %v8619_v32 = vadd.f32 %v6657_v55, %v6545_v21  ;;  %v8887_v21 = vld [vmem:[#allocation16_spill] sm:$0xff]  ;;  %v3036_v55 = vrot.slane %v3034_v41, 4  ;;  %6973 = vmatmul.mubr.bf16.gmra.mrb[148].mxu0 %v6033_v53 }
 0x17a   : > { %v6546_v39 = vpop.f32.mrb[60].mxu0  ;;  %7024 = vmatprep.mubr.bf16.mxu1 %v8887_v21  ;;  %6976 = vmatprep.mubr.bf16.mxu0 %v6034_v5  ;;  %v3043_v1 = vrot.slane %v3041_v60, 4  ;;  %v3042_v5 = vsel %vm7334_vm4, %v6021_v40, %v3041_v60  ;;  %v8892_v60 = vld [vmem:[#allocation11_spill] sm:$0xff] }
 0x17b   : > { %v6658_v31 = vpop.f32.mrb[60].mxu1  ;;  %v6547_v29 = vpop.f32.mrb[61].mxu0 }
 0x17c   : > { %v6659_v15 = vpop.f32.mrb[61].mxu1  ;;  %v6548_v57 = vadd.f32 %v6547_v29, %v6546_v39  ;;  %v6549_v8 = vpop.f32.mrb[62].mxu0  ;;  %v3031_v39 = vsel %vm7334_vm4, %v3029_v23, %v3030_v25 }
 0x17d   : > { %v6660_v20 = vadd.f32 %v6659_v15, %v6658_v31  ;;  %v6661_v19 = vpop.f32.mrb[62].mxu1  ;;  %v6550_v6 = vpop.f32.mrb[63].mxu0  ;;  %v3037_v31 = vrot.slane %v6002_v0, 5  ;;  %v6005_v15 = vld [vmem:[%s7320_s18 + $0xd4] sm:$0x1]  ;;  %s6184_s18 = sshll.u32 %s8901_s22, 7  ;;  %s275_s22 = scalar_lea.vmem %s8843_s4, %s5586_s20 }
 0x17e   : > { %v6662_v22 = vpop.f32.mrb[63].mxu1  ;;  %v6551_v24 = vadd.f32 %v6550_v6, %v6549_v8  ;;  %v6035_v6 = vcombine.low %v3028_v14, %v3031_v39  ;;  %v3044_v11 = vrot.slane %v6005_v15, 5  ;;  %v8891_v0 = vld [vmem:[#allocation9_spill] sm:$0xff]  ;;  %s8754_s15 = scalar_lea.vmem %s8844_s5, %s6184_s18  ;;  %s8768_s19 = scalar_lea.vmem %s8842_s3, %s6184_s18 }
 0x17f   : > { %v6663_v62 = vadd.f32 %v6662_v22, %v6661_v19  ;;  %v8626_v10 = vadd.f32 %v6660_v20, %v6548_v57  ;;  %v3035_v20 = vsel %vm7334_vm4, %v6020_v33, %v3034_v41  ;;  %v3038_v19 = vsel %vm7334_vm4, %v3036_v55, %v3037_v31 }
 0x180   : > { %v6036_v56 = vcombine.low %v3035_v20, %v3038_v19  ;;  %v3045_v21 = vsel %vm7334_vm4, %v3043_v1, %v3044_v11 }
 0x181   : > { %v8636_v16 = vadd.f32 %v6663_v62, %v6551_v24  ;;  %v8888_v62 = vld [vmem:[#allocation19_spill] sm:$0xff]  ;;  %6977 = vmatmul.mubr.bf16.gmra.mrb[152].mxu0 %v6035_v6  ;;  %v6037_v31 = vcombine.low %v3042_v5, %v3045_v21 }
 0x182   : > { %v6680_v17 = vpop.f32.mrb[64].mxu0  ;;  %7025 = vmatmul.mubr.bf16.gmra.mrb[152].mxu1 %v8888_v62  ;;  %6980 = vmatprep.mubr.bf16.mxu0 %v6036_v56  ;;  %v8894_v56 = vld [vmem:[#allocation14_spill] sm:$0xff] }
 0x183   : > { %v6792_v4 = vpop.f32.mrb[64].mxu1  ;;  %v6681_v38 = vpop.f32.mrb[65].mxu0  ;;  %7028 = vmatprep.mubr.bf16.mxu1 %v8889_v18 }
 0x184   : > { %v6793_v12 = vpop.f32.mrb[65].mxu1  ;;  %v6682_v8 = vadd.f32 %v6681_v38, %v6680_v17  ;;  %v6683_v22 = vpop.f32.mrb[66].mxu0 }
 0x185   : > { %v6794_v54 = vadd.f32 %v6793_v12, %v6792_v4  ;;  %v6795_v29 = vpop.f32.mrb[66].mxu1  ;;  %v6684_v24 = vpop.f32.mrb[67].mxu0 }
 0x186   : > { %v6796_v57 = vpop.f32.mrb[67].mxu1  ;;  %v4203_v41 = vadd.f32 %v6682_v8, %v8890_v59  ;;  %v6685_v30 = vadd.f32 %v6684_v24, %v6683_v22  ;;  %v8895_v59 = vld [vmem:[#allocation15_spill] sm:$0xff] }
 0x187   : > { %v6797_v49 = vadd.f32 %v6796_v57, %v6795_v29 }
 0x188   : > { %v4206_v53 = vadd.f32 %v6685_v30, %v8891_v0  ;;  %v8655_v28 = vadd.f32 %v6794_v54, %v4203_v41  ;;  %v8893_v54 = vld [vmem:[#allocation12_spill] sm:$0xff] }
 0x189   : > { %6981 = vmatmul.mubr.bf16.gmra.mrb[156].mxu0 %v6037_v31 }
 0x18a   : > { %v8661_v23 = vadd.f32 %v6797_v49, %v4206_v53  ;;  %7029 = vmatmul.mubr.bf16.gmra.mrb[156].mxu1 %v8397_v63  ;;  %v6686_v48 = vpop.f32.mrb[68].mxu0 }
 0x18b   : > { %v6798_v13 = vpop.f32.mrb[68].mxu1  ;;  %v6687_v26 = vpop.f32.mrb[69].mxu0 }
 0x18c   : > { %v6799_v25 = vpop.f32.mrb[69].mxu1  ;;  %v6688_v14 = vadd.f32 %v6687_v26, %v6686_v48  ;;  %v6689_v39 = vpop.f32.mrb[70].mxu0 }
 0x18d   : > { %v6800_v33 = vadd.f32 %v6799_v25, %v6798_v13  ;;  %v6801_v55 = vpop.f32.mrb[70].mxu1  ;;  %v6690_v15 = vpop.f32.mrb[71].mxu0 }
 0x18e   : > { %v6802_v4 = vpop.f32.mrb[71].mxu1  ;;  %v4211_v46 = vadd.f32 %v6688_v14, %v8892_v60  ;;  %v6691_v17 = vadd.f32 %v6690_v15, %v6689_v39  ;;  %v8897_v15 = vld [vmem:[#allocation18_spill] sm:$0xff] }
 0x18f   : > { %v6803_v12 = vadd.f32 %v6802_v4, %v6801_v55 }
 0x190   : > { %v4214_v29 = vadd.f32 %v6691_v17, %v8893_v54  ;;  %v8666_v20 = vadd.f32 %v6800_v33, %v4211_v46 }
 0x192   : > { %v8668_v57 = vadd.f32 %v6803_v12, %v4214_v29  ;;  %v8896_v12 = vld [vmem:[#allocation17_spill] sm:$0xff] }
 0x193   : > { %v6804_v19 = vpop.f32.mrb[72].mxu1 }
 0x194   : > { %v6805_v38 = vpop.f32.mrb[73].mxu1  ;;  %v6692_v22 = vpop.f32.mrb[72].mxu0 }
 0x195   : > { %v6806_v63 = vadd.f32 %v6805_v38, %v6804_v19  ;;  %v6807_v8 = vpop.f32.mrb[74].mxu1  ;;  %v6693_v6 = vpop.f32.mrb[73].mxu0 }
 0x196   : > { %v6808_v49 = vpop.f32.mrb[75].mxu1  ;;  %v6694_v40 = vadd.f32 %v6693_v6, %v6692_v22  ;;  %v6695_v11 = vpop.f32.mrb[74].mxu0 }
 0x197   : > { %v6809_v62 = vadd.f32 %v6808_v49, %v6807_v8  ;;  %v6696_v24 = vpop.f32.mrb[75].mxu0 }
 0x198   : > { %v4219_v18 = vadd.f32 %v6694_v40, %v8894_v56  ;;  %v6697_v1 = vadd.f32 %v6696_v24, %v6695_v11  ;;  %v8898_v11 = vld [vmem:[#allocation20_spill] sm:$0xff] }
 0x19a   : > { %v4222_v41 = vadd.f32 %v6697_v1, %v8895_v59  ;;  %v8672_v30 = vadd.f32 %v6806_v63, %v4219_v18  ;;  %v8899_v18 = vld [vmem:[#allocation21_spill] sm:$0xff] }
 0x19b   : > { %v6810_v0 = vpop.f32.mrb[76].mxu1 }
 0x19c   : > { %v6811_v53 = vpop.f32.mrb[77].mxu1  ;;  %v8674_v5 = vadd.f32 %v6809_v62, %v4222_v41  ;;  %v6698_v25 = vpop.f32.mrb[76].mxu0 }
 0x19d   : > { %v6812_v21 = vadd.f32 %v6811_v53, %v6810_v0  ;;  %v6813_v13 = vpop.f32.mrb[78].mxu1  ;;  %v6699_v55 = vpop.f32.mrb[77].mxu0 }
 0x19e   : > { %v6814_v33 = vpop.f32.mrb[79].mxu1  ;;  %v6700_v48 = vadd.f32 %v6699_v55, %v6698_v25  ;;  %v6701_v4 = vpop.f32.mrb[78].mxu0 }
 0x19f   : > { %v6815_v31 = vadd.f32 %v6814_v33, %v6813_v13  ;;  %v6702_v26 = vpop.f32.mrb[79].mxu0 }
 0x1a0   : > { %v4227_v14 = vadd.f32 %v6700_v48, %v8896_v12  ;;  %v6703_v39 = vadd.f32 %v6702_v26, %v6701_v4 }
 0x1a2   : > { %v4230_v60 = vadd.f32 %v6703_v39, %v8897_v15  ;;  %v8678_v46 = vadd.f32 %v6812_v21, %v4227_v14 }
 0x1a3   : > { %v6816_v17 = vpop.f32.mrb[80].mxu1 }
 0x1a4   : > { %v8680_v54 = vadd.f32 %v6815_v31, %v4230_v60  ;;  %v6817_v29 = vpop.f32.mrb[81].mxu1  ;;  %v6704_v19 = vpop.f32.mrb[80].mxu0 }
 0x1a5   : > { %v6818_v38 = vadd.f32 %v6817_v29, %v6816_v17  ;;  %v6819_v63 = vpop.f32.mrb[82].mxu1  ;;  %v6705_v8 = vpop.f32.mrb[81].mxu0 }
 0x1a6   : > { %v6820_v22 = vpop.f32.mrb[83].mxu1  ;;  %v6706_v49 = vadd.f32 %v6705_v8, %v6704_v19  ;;  %v6707_v6 = vpop.f32.mrb[82].mxu0 }
 0x1a7   : > { %v6821_v62 = vadd.f32 %v6820_v22, %v6819_v63  ;;  %v6708_v40 = vpop.f32.mrb[83].mxu0 }
 0x1a8   : > { %v4235_v24 = vadd.f32 %v6706_v49, %v8898_v11  ;;  %v6709_v56 = vadd.f32 %v6708_v40, %v6707_v6 }
 0x1aa   : > { %v4238_v1 = vadd.f32 %v6709_v56, %v8899_v18  ;;  %v8684_v59 = vadd.f32 %v6818_v38, %v4235_v24 }
 0x1ab   : > { %v6822_v41 = vpop.f32.mrb[84].mxu1 }
 0x1ac   : > { %v8686_v0 = vadd.f32 %v6821_v62, %v4238_v1  ;;  %v6823_v53 = vpop.f32.mrb[85].mxu1  ;;  %v6710_v25 = vpop.f32.mrb[84].mxu0 }
 0x1ad   : > { %v6824_v21 = vadd.f32 %v6823_v53, %v6822_v41  ;;  %v6825_v13 = vpop.f32.mrb[86].mxu1  ;;  %v6711_v55 = vpop.f32.mrb[85].mxu0 }
 0x1ae   : > { %v6826_v33 = vpop.f32.mrb[87].mxu1  ;;  %v6712_v48 = vadd.f32 %v6711_v55, %v6710_v25  ;;  %v6713_v4 = vpop.f32.mrb[86].mxu0 }
 0x1af   : > { %v6827_v31 = vadd.f32 %v6826_v33, %v6825_v13  ;;  %v6714_v26 = vpop.f32.mrb[87].mxu0 }
 0x1b0   : > { %v4243_v12 = vadd.f32 %v6712_v48, %v8362_v42  ;;  %v6715_v14 = vadd.f32 %v6714_v26, %v6713_v4 }
 0x1b2   : > { %v4246_v39 = vadd.f32 %v6715_v14, %v8379_v3  ;;  %v8690_v15 = vadd.f32 %v6824_v21, %v4243_v12 }
 0x1b4   : > { %v6828_v60 = vpop.f32.mrb[88].mxu1  ;;  %v8692_v17 = vadd.f32 %v6827_v31, %v4246_v39 }
 0x1b5   : > { %v6829_v29 = vpop.f32.mrb[89].mxu1 }
 0x1b6   : > { %v6716_v19 = vpop.f32.mrb[88].mxu0  ;;  %v6830_v38 = vadd.f32 %v6829_v29, %v6828_v60  ;;  %v6831_v63 = vpop.f32.mrb[90].mxu1 }
 0x1b7   : > { %v6717_v8 = vpop.f32.mrb[89].mxu0  ;;  %v6832_v22 = vpop.f32.mrb[91].mxu1 }
 0x1b8   : > { %v6718_v49 = vadd.f32 %v6717_v8, %v6716_v19  ;;  %v6719_v6 = vpop.f32.mrb[90].mxu0  ;;  %v6833_v62 = vadd.f32 %v6832_v22, %v6831_v63 }
 0x1b9   : > { %v6720_v40 = vpop.f32.mrb[91].mxu0 }
 0x1ba   : > { %v4251_v42 = vadd.f32 %v6718_v49, %v8420_v45  ;;  %v6721_v11 = vadd.f32 %v6720_v40, %v6719_v6 }
 0x1bc   : > { %v4254_v3 = vadd.f32 %v6721_v11, %v8428_v58  ;;  %v8696_v24 = vadd.f32 %v6830_v38, %v4251_v42 }
 0x1be   : > { %v8698_v56 = vadd.f32 %v6833_v62, %v4254_v3  ;;  %v6834_v18 = vpop.f32.mrb[92].mxu1 }
 0x1bf   : > { %v6835_v41 = vpop.f32.mrb[93].mxu1 }
 0x1c0   : > { %v6722_v1 = vpop.f32.mrb[92].mxu0  ;;  %v6836_v21 = vadd.f32 %v6835_v41, %v6834_v18  ;;  %v6837_v13 = vpop.f32.mrb[94].mxu1 }
 0x1c1   : > { %v6723_v53 = vpop.f32.mrb[93].mxu0  ;;  %v6838_v55 = vpop.f32.mrb[95].mxu1 }
 0x1c2   : > { %v6724_v25 = vadd.f32 %v6723_v53, %v6722_v1  ;;  %v6725_v33 = vpop.f32.mrb[94].mxu0  ;;  %v6839_v48 = vadd.f32 %v6838_v55, %v6837_v13 }
 0x1c3   : > { %v6726_v31 = vpop.f32.mrb[95].mxu0 }
 0x1c4   : > { %v4259_v45 = vadd.f32 %v6724_v25, %v8448_v2  ;;  %v6727_v4 = vadd.f32 %v6726_v31, %v6725_v33 }
 0x1c6   : > { %v4262_v58 = vadd.f32 %v6727_v4, %v8453_v37  ;;  %v8702_v26 = vadd.f32 %v6836_v21, %v4259_v45 }
 0x1c7   : > { %v6840_v12 = vpop.f32.mrb[96].mxu1 }
 0x1c8   : > { %v6841_v14 = vpop.f32.mrb[97].mxu1  ;;  %v8704_v39 = vadd.f32 %v6839_v48, %v4262_v58 }
 0x1c9   : > { %v6842_v60 = vadd.f32 %v6841_v14, %v6840_v12  ;;  %v6843_v29 = vpop.f32.mrb[98].mxu1 }
 0x1ca   : > { %v6728_v19 = vpop.f32.mrb[96].mxu0  ;;  %v6844_v38 = vpop.f32.mrb[99].mxu1 }
 0x1cb   : > { %v6729_v63 = vpop.f32.mrb[97].mxu0  ;;  %v6845_v8 = vadd.f32 %v6844_v38, %v6843_v29 }
 0x1cc   : > { %v6730_v22 = vadd.f32 %v6729_v63, %v6728_v19  ;;  %v6731_v49 = vpop.f32.mrb[98].mxu0 }
 0x1cd   : > { %v6732_v6 = vpop.f32.mrb[99].mxu0 }
 0x1ce   : > { %v4267_v2 = vadd.f32 %v6730_v22, %v8485_v52  ;;  %v6733_v62 = vadd.f32 %v6732_v6, %v6731_v49 }
 0x1d0   : > { %v4270_v37 = vadd.f32 %v6733_v62, %v8492_v27  ;;  %v8708_v40 = vadd.f32 %v6842_v60, %v4267_v2 }
 0x1d2   : > { %v6846_v42 = vpop.f32.mrb[100].mxu1  ;;  %v8710_v11 = vadd.f32 %v6845_v8, %v4270_v37 }
 0x1d3   : > { %v6847_v3 = vpop.f32.mrb[101].mxu1 }
 0x1d4   : > { %v6848_v18 = vadd.f32 %v6847_v3, %v6846_v42  ;;  %v6849_v1 = vpop.f32.mrb[102].mxu1  ;;  %v6734_v41 = vpop.f32.mrb[100].mxu0 }
 0x1d5   : > { %v6850_v53 = vpop.f32.mrb[103].mxu1  ;;  %v6735_v21 = vpop.f32.mrb[101].mxu0 }
 0x1d6   : > { %v6851_v13 = vadd.f32 %v6850_v53, %v6849_v1  ;;  %v6736_v25 = vadd.f32 %v6735_v21, %v6734_v41  ;;  %v6737_v33 = vpop.f32.mrb[102].mxu0 }
 0x1d7   : > { %v6738_v55 = vpop.f32.mrb[103].mxu0 }
 0x1d8   : > { %v4275_v52 = vadd.f32 %v6736_v25, %v8512_v47  ;;  %v6739_v31 = vadd.f32 %v6738_v55, %v6737_v33 }
 0x1da   : > { %v4278_v27 = vadd.f32 %v6739_v31, %v8518_v7  ;;  %v8714_v48 = vadd.f32 %v6848_v18, %v4275_v52 }
 0x1dc   : > { %v6852_v45 = vpop.f32.mrb[104].mxu1  ;;  %v8716_v58 = vadd.f32 %v6851_v13, %v4278_v27 }
 0x1dd   : > { %v6853_v4 = vpop.f32.mrb[105].mxu1 }
 0x1de   : > { %v6854_v12 = vadd.f32 %v6853_v4, %v6852_v45  ;;  %v6855_v14 = vpop.f32.mrb[106].mxu1 }
 0x1df   : > { %v6740_v60 = vpop.f32.mrb[104].mxu0  ;;  %v6856_v29 = vpop.f32.mrb[107].mxu1 }
 0x1e0   : > { %v6741_v19 = vpop.f32.mrb[105].mxu0  ;;  %v6857_v38 = vadd.f32 %v6856_v29, %v6855_v14 }
 0x1e1   : > { %v6742_v63 = vadd.f32 %v6741_v19, %v6740_v60  ;;  %v6743_v8 = vpop.f32.mrb[106].mxu0 }
 0x1e2   : > { %v6744_v22 = vpop.f32.mrb[107].mxu0 }
 0x1e3   : > { %v4283_v47 = vadd.f32 %v6742_v63, %v8545_v43  ;;  %v6745_v49 = vadd.f32 %v6744_v22, %v6743_v8 }
 0x1e5   : > { %v4286_v7 = vadd.f32 %v6745_v49, %v8548_v51  ;;  %v8720_v6 = vadd.f32 %v6854_v12, %v4283_v47 }
 0x1e7   : > { %v8722_v2 = vadd.f32 %v6857_v38, %v4286_v7 }
 0x1e8   : > { %v6858_v62 = vpop.f32.mrb[108].mxu1 }
 0x1e9   : > { %v6859_v37 = vpop.f32.mrb[109].mxu1 }
 0x1ea   : > { %v6860_v42 = vadd.f32 %v6859_v37, %v6858_v62  ;;  %v6861_v3 = vpop.f32.mrb[110].mxu1 }
 0x1eb   : > { %v6746_v18 = vpop.f32.mrb[108].mxu0  ;;  %v6862_v1 = vpop.f32.mrb[111].mxu1 }
 0x1ec   : > { %v6747_v41 = vpop.f32.mrb[109].mxu0  ;;  %v6863_v53 = vadd.f32 %v6862_v1, %v6861_v3 }
 0x1ed   : > { %v6748_v21 = vadd.f32 %v6747_v41, %v6746_v18  ;;  %v6749_v13 = vpop.f32.mrb[110].mxu0 }
 0x1ee   : > { %v6750_v25 = vpop.f32.mrb[111].mxu0 }
 0x1ef   : > { %v4291_v43 = vadd.f32 %v6748_v21, %v8571_v50  ;;  %v6751_v33 = vadd.f32 %v6750_v25, %v6749_v13 }
 0x1f1   : > { %v4294_v51 = vadd.f32 %v6751_v33, %v8575_v9  ;;  %v8726_v55 = vadd.f32 %v6860_v42, %v4291_v43 }
 0x1f3   : > { %v8728_v52 = vadd.f32 %v6863_v53, %v4294_v51 }
 0x1f4   : > { %v6864_v31 = vpop.f32.mrb[112].mxu1 }
 0x1f5   : > { %v6865_v27 = vpop.f32.mrb[113].mxu1 }
 0x1f6   : > { %v6866_v4 = vadd.f32 %v6865_v27, %v6864_v31  ;;  %v6867_v12 = vpop.f32.mrb[114].mxu1 }
 0x1f7   : > { %v6752_v45 = vpop.f32.mrb[112].mxu0  ;;  %v6868_v60 = vpop.f32.mrb[115].mxu1 }
 0x1f8   : > { %v6753_v14 = vpop.f32.mrb[113].mxu0  ;;  %v6869_v38 = vadd.f32 %v6868_v60, %v6867_v12 }
 0x1f9   : > { %v6754_v29 = vadd.f32 %v6753_v14, %v6752_v45  ;;  %v6755_v19 = vpop.f32.mrb[114].mxu0 }
 0x1fa   : > { %v6756_v63 = vpop.f32.mrb[115].mxu0 }
 0x1fb   : > { %v4299_v50 = vadd.f32 %v6754_v29, %v8592_v34  ;;  %v6757_v8 = vadd.f32 %v6756_v63, %v6755_v19 }
 0x1fd   : > { %v4302_v9 = vadd.f32 %v6757_v8, %v8594_v36  ;;  %v8732_v22 = vadd.f32 %v6866_v4, %v4299_v50 }
 0x1ff   : > { %v8734_v47 = vadd.f32 %v6869_v38, %v4302_v9 }
 0x200   : > { %v6870_v49 = vpop.f32.mrb[116].mxu1 }
 0x201   : > { %v6871_v7 = vpop.f32.mrb[117].mxu1 }
 0x202   : > { %v6758_v62 = vpop.f32.mrb[116].mxu0  ;;  %v6872_v37 = vadd.f32 %v6871_v7, %v6870_v49  ;;  %v6873_v42 = vpop.f32.mrb[118].mxu1 }
 0x203   : > { %v6759_v3 = vpop.f32.mrb[117].mxu0  ;;  %v6874_v18 = vpop.f32.mrb[119].mxu1 }
 0x204   : > { %v6760_v1 = vadd.f32 %v6759_v3, %v6758_v62  ;;  %v6761_v41 = vpop.f32.mrb[118].mxu0  ;;  %v6875_v53 = vadd.f32 %v6874_v18, %v6873_v42 }
 0x205   : > { %v6762_v21 = vpop.f32.mrb[119].mxu0 }
 0x206   : > { %v4307_v34 = vadd.f32 %v6760_v1, %v8609_v44  ;;  %v6763_v13 = vadd.f32 %v6762_v21, %v6761_v41 }
 0x208   : > { %v4310_v36 = vadd.f32 %v6763_v13, %v8612_v35  ;;  %v8738_v25 = vadd.f32 %v6872_v37, %v4307_v34 }
 0x20a   : > { %v8740_v43 = vadd.f32 %v6875_v53, %v4310_v36 }
 0x20c   : > { %v6876_v33 = vpop.f32.mrb[120].mxu1 }
 0x20d   : > { %v6877_v51 = vpop.f32.mrb[121].mxu1 }
 0x20e   : > { %v6878_v31 = vadd.f32 %v6877_v51, %v6876_v33  ;;  %v6879_v27 = vpop.f32.mrb[122].mxu1  ;;  %v6764_v45 = vpop.f32.mrb[120].mxu0 }
 0x20f   : > { %v6880_v4 = vpop.f32.mrb[123].mxu1  ;;  %v6765_v12 = vpop.f32.mrb[121].mxu0 }
 0x210   : > { %v6881_v14 = vadd.f32 %v6880_v4, %v6879_v27  ;;  %v6766_v60 = vadd.f32 %v6765_v12, %v6764_v45  ;;  %v6767_v29 = vpop.f32.mrb[122].mxu0 }
 0x211   : > { %v6768_v19 = vpop.f32.mrb[123].mxu0 }
 0x212   : > { %v4315_v44 = vadd.f32 %v6766_v60, %v8615_v61  ;;  %v6769_v38 = vadd.f32 %v6768_v19, %v6767_v29 }
 0x214   : > { %v4318_v35 = vadd.f32 %v6769_v38, %v8619_v32  ;;  %v8744_v63 = vadd.f32 %v6878_v31, %v4315_v44 }
 0x216   : > { %v8746_v8 = vadd.f32 %v6881_v14, %v4318_v35 }
 0x217   : > { %v6882_v50 = vpop.f32.mrb[124].mxu1 }
 0x218   : > { %v6883_v9 = vpop.f32.mrb[125].mxu1 }
 0x219   : > { %v6884_v49 = vadd.f32 %v6883_v9, %v6882_v50  ;;  %v6885_v7 = vpop.f32.mrb[126].mxu1 }
 0x21a   : > { %v6886_v62 = vpop.f32.mrb[127].mxu1  ;;  %v6770_v37 = vpop.f32.mrb[124].mxu0 }
 0x21b   : > { %v6887_v42 = vadd.f32 %v6886_v62, %v6885_v7  ;;  %v6771_v3 = vpop.f32.mrb[125].mxu0 }
 0x21c   : > { %v6772_v18 = vadd.f32 %v6771_v3, %v6770_v37  ;;  %v6773_v1 = vpop.f32.mrb[126].mxu0 }
 0x21d   : > { %v6774_v41 = vpop.f32.mrb[127].mxu0 }
 0x21e   : > { %v4323_v61 = vadd.f32 %v6772_v18, %v8626_v10  ;;  %v6775_v53 = vadd.f32 %v6774_v41, %v6773_v1 }
 0x21f   : > { %v7002_v32 = vpop.f32.mrb[128].mxu1 }
 0x220   : > { %v5033_v21 = vpop.f32.mrb[129].mxu1  ;;  %v4326_v34 = vadd.f32 %v6775_v53, %v8636_v16  ;;  %v8756_v33 = vadd.f32 %v6884_v49, %v4323_v61  ;;  %v5360_v60 = vmul.f32 %v7002_v32, %v7002_v32 }
 0x221   : > { %v5358_v13 = vmul.f32 %v5033_v21, %v5033_v21  ;;  %v7003_v36 = vpop.f32.mrb[130].mxu1 }
 0x222   : > { %v6338_v51 = vpack.c.bf16 %v7003_v36, %v7002_v32  ;;  %v5036_v31 = vpop.f32.mrb[131].mxu1  ;;  %v6954_v27 = vpop.f32.mrb[128].mxu0  ;;  %v8758_v12 = vadd.f32 %v6887_v42, %v4326_v34  ;;  %v5361_v37 = vmul.f32 %v7003_v36, %v7003_v36 }
 0x223   : > { %v6333_v10 = vpack.c.bf16 %v5036_v31, %v5033_v21  ;;  %v5320_v45 = vadd.f32 %v5036_v31, %v5033_v21  ;;  %v5359_v4 = vmul.f32 %v5036_v31, %v5036_v31  ;;  %v4533_v16 = vadd.f32 %v6954_v27, %v8666_v20  ;;  %v4524_v14 = vpop.f32.mrb[129].mxu0 }
 0x224   : > { %6425 = vst [vmem:[%s8754_s15 + $0x8] sm:$0xff] %v6338_v51   ;;  %v4525_v29 = vadd.f32 %v4524_v14, %v8655_v28  ;;  %v6955_v19 = vpop.f32.mrb[130].mxu0 }
 0x225   : > { %6334 = vst [vmem:[%s8754_s15] sm:$0xff] %v6333_v10   ;;  %v5321_v44 = vadd.f32 %v7002_v32, %v5320_v45  ;;  %v5390_v38 = vadd.f32 %v5359_v4, %v5358_v13  ;;  %v4536_v35 = vadd.f32 %v6955_v19, %v8668_v57  ;;  %v4527_v50 = vpop.f32.mrb[131].mxu0  ;;  %v4851_v61 = vmul.f32 %v4533_v16, %v4533_v16 }
 0x226   : > { %v4528_v20 = vadd.f32 %v4527_v50, %v8661_v23  ;;  %v4849_v28 = vmul.f32 %v4525_v29, %v4525_v29 }
 0x227   : > { %v5391_v9 = vadd.f32 %v5390_v38, %v5360_v60  ;;  %v7006_v49 = vpop.f32.mrb[132].mxu1  ;;  %v5322_v7 = vadd.f32 %v7003_v36, %v5321_v44  ;;  %v6258_v62 = vpack.c.bf16 %v4536_v35, %v4533_v16  ;;  %v4852_v27 = vmul.f32 %v4536_v35, %v4536_v35 }
 0x228   : > { %v5049_v42 = vpop.f32.mrb[133].mxu1  ;;  %v6253_v3 = vpack.c.bf16 %v4528_v20, %v4525_v29  ;;  %v4811_v18 = vadd.f32 %v4528_v20, %v4525_v29  ;;  %v4850_v57 = vmul.f32 %v4528_v20, %v4528_v20  ;;  %v5364_v50 = vmul.f32 %v7006_v49, %v7006_v49 }
 0x229   : > { %v5323_v1 = vadd.f32 %v5322_v7, %v5049_v42  ;;  %v7007_v41 = vpop.f32.mrb[134].mxu1  ;;  %6410 = vst [vmem:[%s8768_s19 + $0x8] sm:$0xff] %v6258_v62   ;;  %v5362_v53 = vmul.f32 %v5049_v42, %v5049_v42  ;;  %v5392_v32 = vadd.f32 %v5391_v9, %v5361_v37 }
 0x22a   : > { %v6348_v21 = vpack.c.bf16 %v7007_v41, %v7006_v49  ;;  %v5052_v23 = vpop.f32.mrb[135].mxu1  ;;  %6254 = vst [vmem:[%s8768_s19] sm:$0xff] %v6253_v3   ;;  %v4812_v34 = vadd.f32 %v4811_v18, %v4533_v16  ;;  %v4881_v13 = vadd.f32 %v4850_v57, %v4849_v28  ;;  %v6958_v51 = vpop.f32.mrb[132].mxu0  ;;  %v5365_v3 = vmul.f32 %v7007_v41, %v7007_v41 }
 0x22b   : > { %v6343_v31 = vpack.c.bf16 %v5052_v23, %v5049_v42  ;;  %v5324_v36 = vadd.f32 %v5323_v1, %v5052_v23  ;;  %v4549_v10 = vadd.f32 %v6958_v51, %v8678_v46  ;;  %v4540_v45 = vpop.f32.mrb[133].mxu0  ;;  %v5393_v4 = vadd.f32 %v5392_v32, %v5362_v53 }
 0x22c   : > { %6427 = vst [vmem:[%s8754_s15 + $0x18] sm:$0xff] %v6348_v21   ;;  %v5363_v14 = vmul.f32 %v5052_v23, %v5052_v23  ;;  %v4882_v60 = vadd.f32 %v4881_v13, %v4851_v61  ;;  %v4541_v29 = vadd.f32 %v4540_v45, %v8672_v30  ;;  %v4813_v19 = vadd.f32 %v4812_v34, %v4536_v35  ;;  %v6959_v44 = vpop.f32.mrb[134].mxu0 }
 0x22d   : > { %6426 = vst [vmem:[%s8754_s15 + $0x10] sm:$0xff] %v6343_v31   ;;  %v5325_v38 = vadd.f32 %v7006_v49, %v5324_v36  ;;  %v4552_v16 = vadd.f32 %v6959_v44, %v8680_v54  ;;  %v4543_v20 = vpop.f32.mrb[135].mxu0  ;;  %v4855_v34 = vmul.f32 %v4549_v10, %v4549_v10 }
 0x22e   : > { %v5394_v9 = vadd.f32 %v5393_v4, %v5363_v14  ;;  %v4814_v7 = vadd.f32 %v4813_v19, %v4541_v29  ;;  %v4853_v28 = vmul.f32 %v4541_v29, %v4541_v29  ;;  %v4883_v46 = vadd.f32 %v4882_v60, %v4852_v27 }
 0x22f   : > { %v4544_v62 = vadd.f32 %v4543_v20, %v8674_v5  ;;  %v7010_v37 = vpop.f32.mrb[136].mxu1  ;;  %v6268_v42 = vpack.c.bf16 %v4552_v16, %v4549_v10  ;;  %v5326_v54 = vadd.f32 %v7007_v41, %v5325_v38  ;;  %v4856_v60 = vmul.f32 %v4552_v16, %v4552_v16 }
 0x230   : > { %v5395_v30 = vadd.f32 %v5394_v9, %v5364_v50  ;;  %v5065_v35 = vpop.f32.mrb[137].mxu1  ;;  %v4884_v18 = vadd.f32 %v4883_v46, %v4853_v28  ;;  %v5368_v38 = vmul.f32 %v7010_v37, %v7010_v37 }
 0x231   : > { %v6263_v57 = vpack.c.bf16 %v4544_v62, %v4541_v29  ;;  %v4815_v1 = vadd.f32 %v4814_v7, %v4544_v62  ;;  %v4854_v49 = vmul.f32 %v4544_v62, %v4544_v62  ;;  %v7011_v61 = vpop.f32.mrb[138].mxu1  ;;  %6412 = vst [vmem:[%s8768_s19 + $0x18] sm:$0xff] %v6268_v42   ;;  %v5366_v53 = vmul.f32 %v5065_v35, %v5065_v35 }
 0x232   : > { %v5396_v32 = vadd.f32 %v5395_v30, %v5365_v3  ;;  %v6358_v21 = vpack.c.bf16 %v7011_v61, %v7010_v37  ;;  %v5068_v23 = vpop.f32.mrb[139].mxu1  ;;  %v6962_v51 = vpop.f32.mrb[136].mxu0  ;;  %v5327_v45 = vadd.f32 %v5326_v54, %v5065_v35  ;;  %v5369_v3 = vmul.f32 %v7011_v61, %v7011_v61 }
 0x233   : > { %6411 = vst [vmem:[%s8768_s19 + $0x10] sm:$0xff] %v6263_v57   ;;  %v4816_v5 = vadd.f32 %v4815_v1, %v4549_v10  ;;  %v4885_v13 = vadd.f32 %v4884_v18, %v4854_v49  ;;  %v6353_v31 = vpack.c.bf16 %v5068_v23, %v5065_v35  ;;  %v4565_v36 = vadd.f32 %v6962_v51, %v8690_v15  ;;  %v4556_v27 = vpop.f32.mrb[137].mxu0 }
 0x234   : > { %v5397_v4 = vadd.f32 %v5396_v32, %v5366_v53  ;;  %6429 = vst [vmem:[%s8754_s15 + $0x28] sm:$0xff] %v6358_v21   ;;  %v5367_v14 = vmul.f32 %v5068_v23, %v5068_v23  ;;  %v4557_v29 = vadd.f32 %v4556_v27, %v8684_v59  ;;  %v6963_v44 = vpop.f32.mrb[138].mxu0  ;;  %v5328_v20 = vadd.f32 %v5327_v45, %v5068_v23 }
 0x235   : > { %v4886_v41 = vadd.f32 %v4885_v13, %v4855_v34  ;;  %v4817_v19 = vadd.f32 %v4816_v5, %v4552_v16  ;;  %6428 = vst [vmem:[%s8754_s15 + $0x20] sm:$0xff] %v6353_v31   ;;  %v4568_v10 = vadd.f32 %v6963_v44, %v8692_v17  ;;  %v4559_v50 = vpop.f32.mrb[139].mxu0  ;;  %v4859_v49 = vmul.f32 %v4565_v36, %v4565_v36 }
 0x236   : > { %v5398_v9 = vadd.f32 %v5397_v4, %v5367_v14  ;;  %v4857_v15 = vmul.f32 %v4557_v29, %v4557_v29  ;;  %v4560_v46 = vadd.f32 %v4559_v50, %v8686_v0  ;;  %v5329_v59 = vadd.f32 %v7010_v37, %v5328_v20 }
 0x237   : > { %v4818_v7 = vadd.f32 %v4817_v19, %v4557_v29  ;;  %v4887_v28 = vadd.f32 %v4886_v41, %v4856_v60  ;;  %v7014_v62 = vpop.f32.mrb[140].mxu1  ;;  %v6278_v42 = vpack.c.bf16 %v4568_v10, %v4565_v36  ;;  %v4860_v0 = vmul.f32 %v4568_v10, %v4568_v10 }
 0x238   : > { %v5399_v16 = vadd.f32 %v5398_v9, %v5368_v38  ;;  %v5081_v30 = vpop.f32.mrb[141].mxu1  ;;  %v6273_v18 = vpack.c.bf16 %v4560_v46, %v4557_v29  ;;  %v4858_v17 = vmul.f32 %v4560_v46, %v4560_v46  ;;  %v5330_v54 = vadd.f32 %v7011_v61, %v5329_v59 }
 0x239   : > { %v4888_v35 = vadd.f32 %v4887_v28, %v4857_v15  ;;  %v4819_v57 = vadd.f32 %v4818_v7, %v4560_v46  ;;  %v7015_v1 = vpop.f32.mrb[142].mxu1  ;;  %6414 = vst [vmem:[%s8768_s19 + $0x28] sm:$0xff] %v6278_v42   ;;  %v5370_v53 = vmul.f32 %v5081_v30, %v5081_v30  ;;  %v5372_v29 = vmul.f32 %v7014_v62, %v7014_v62 }
 0x23a   : > { %v5400_v32 = vadd.f32 %v5399_v16, %v5369_v3  ;;  %v5084_v21 = vpop.f32.mrb[143].mxu1  ;;  %6413 = vst [vmem:[%s8768_s19 + $0x20] sm:$0xff] %v6273_v18   ;;  %v6966_v5 = vpop.f32.mrb[140].mxu0  ;;  %v6368_v37 = vpack.c.bf16 %v7015_v1, %v7014_v62  ;;  %v5331_v31 = vadd.f32 %v5330_v54, %v5081_v30  ;;  %v5373_v15 = vmul.f32 %v7015_v1, %v7015_v1 }
 0x23b   : > { %v4820_v23 = vadd.f32 %v4819_v57, %v4565_v36  ;;  %v4889_v34 = vadd.f32 %v4888_v35, %v4858_v17  ;;  %v4581_v13 = vadd.f32 %v6966_v5, %v8702_v26  ;;  %v4572_v51 = vpop.f32.mrb[141].mxu0  ;;  %v6363_v45 = vpack.c.bf16 %v5084_v21, %v5081_v30 }
 0x23c   : > { %v5401_v27 = vadd.f32 %v5400_v32, %v5370_v53  ;;  %v4573_v61 = vadd.f32 %v4572_v51, %v8696_v24  ;;  %v6967_v60 = vpop.f32.mrb[142].mxu0  ;;  %6431 = vst [vmem:[%s8754_s15 + $0x38] sm:$0xff] %v6368_v37   ;;  %v5371_v41 = vmul.f32 %v5084_v21, %v5084_v21  ;;  %v5332_v44 = vadd.f32 %v5331_v31, %v5084_v21 }
 0x23d   : > { %v4890_v4 = vadd.f32 %v4889_v34, %v4859_v49  ;;  %v4821_v14 = vadd.f32 %v4820_v23, %v4568_v10  ;;  %v4584_v36 = vadd.f32 %v6967_v60, %v8704_v39  ;;  %v4575_v19 = vpop.f32.mrb[143].mxu0  ;;  %6430 = vst [vmem:[%s8754_s15 + $0x30] sm:$0xff] %v6363_v45   ;;  %v4863_v16 = vmul.f32 %v4581_v13, %v4581_v13 }
 0x23e   : > { %v4861_v26 = vmul.f32 %v4573_v61, %v4573_v61  ;;  %v4576_v20 = vadd.f32 %v4575_v19, %v8698_v56  ;;  %v5333_v24 = vadd.f32 %v7014_v62, %v5332_v44  ;;  %v5402_v10 = vadd.f32 %v5401_v27, %v5371_v41 }
 0x23f   : > { %v4822_v38 = vadd.f32 %v4821_v14, %v4573_v61  ;;  %v4891_v50 = vadd.f32 %v4890_v4, %v4860_v0  ;;  %v7018_v9 = vpop.f32.mrb[144].mxu1  ;;  %v6288_v7 = vpack.c.bf16 %v4584_v36, %v4581_v13  ;;  %v4864_v56 = vmul.f32 %v4584_v36, %v4584_v36 }
 0x240   : > { %v5097_v28 = vpop.f32.mrb[145].mxu1  ;;  %v6283_v42 = vpack.c.bf16 %v4576_v20, %v4573_v61  ;;  %v4862_v39 = vmul.f32 %v4576_v20, %v4576_v20  ;;  %v5403_v30 = vadd.f32 %v5402_v10, %v5372_v29  ;;  %v5334_v35 = vadd.f32 %v7015_v1, %v5333_v24 }
 0x241   : > { %v4892_v46 = vadd.f32 %v4891_v50, %v4861_v26  ;;  %v4823_v3 = vadd.f32 %v4822_v38, %v4576_v20  ;;  %v7019_v59 = vpop.f32.mrb[146].mxu1  ;;  %6416 = vst [vmem:[%s8768_s19 + $0x38] sm:$0xff] %v6288_v7   ;;  %v5374_v18 = vmul.f32 %v5097_v28, %v5097_v28  ;;  %v5376_v31 = vmul.f32 %v7018_v9, %v7018_v9 }
 0x242   : > { %v5100_v57 = vpop.f32.mrb[147].mxu1  ;;  %6415 = vst [vmem:[%s8768_s19 + $0x30] sm:$0xff] %v6283_v42   ;;  %v6970_v54 = vpop.f32.mrb[144].mxu0  ;;  %v6378_v62 = vpack.c.bf16 %v7019_v59, %v7018_v9  ;;  %v5335_v21 = vadd.f32 %v5334_v35, %v5097_v28  ;;  %v5404_v0 = vadd.f32 %v5403_v30, %v5373_v15 }
 0x243   : > { %v4824_v17 = vadd.f32 %v4823_v3, %v4581_v13  ;;  %v4893_v49 = vadd.f32 %v4892_v46, %v4862_v39  ;;  %v4597_v53 = vadd.f32 %v6970_v54, %v8714_v48  ;;  %v4588_v32 = vpop.f32.mrb[145].mxu0  ;;  %v6373_v23 = vpack.c.bf16 %v5100_v57, %v5097_v28 }
 0x244   : > { %v4589_v5 = vadd.f32 %v4588_v32, %v8708_v40  ;;  %v6971_v37 = vpop.f32.mrb[146].mxu0  ;;  %6433 = vst [vmem:[%s8754_s15 + $0x48] sm:$0xff] %v6378_v62   ;;  %v5375_v51 = vmul.f32 %v5100_v57, %v5100_v57  ;;  %v5405_v27 = vadd.f32 %v5404_v0, %v5374_v18  ;;  %v5336_v4 = vadd.f32 %v5335_v21, %v5100_v57 }
 0x245   : > { %v4894_v34 = vadd.f32 %v4893_v49, %v4863_v16  ;;  %v4825_v1 = vadd.f32 %v4824_v17, %v4584_v36  ;;  %v4600_v13 = vadd.f32 %v6971_v37, %v8716_v58  ;;  %v4591_v45 = vpop.f32.mrb[147].mxu0  ;;  %6432 = vst [vmem:[%s8754_s15 + $0x40] sm:$0xff] %v6373_v23   ;;  %v5377_v40 = vmul.f32 %v7019_v59, %v7019_v59 }
 0x246   : > { %v4865_v48 = vmul.f32 %v4589_v5, %v4589_v5  ;;  %v4592_v60 = vadd.f32 %v4591_v45, %v8710_v11  ;;  %v5337_v36 = vadd.f32 %v7018_v9, %v5336_v4  ;;  %v5406_v19 = vadd.f32 %v5405_v27, %v5375_v51 }
 0x247   : > { %v4826_v61 = vadd.f32 %v4825_v1, %v4589_v5  ;;  %v4895_v14 = vadd.f32 %v4894_v34, %v4864_v56  ;;  %v6298_v29 = vpack.c.bf16 %v4600_v13, %v4597_v53  ;;  %v4867_v7 = vmul.f32 %v4597_v53, %v4597_v53 }
 0x248   : > { %v6293_v26 = vpack.c.bf16 %v4592_v60, %v4589_v5  ;;  %v4866_v58 = vmul.f32 %v4592_v60, %v4592_v60  ;;  %v5407_v15 = vadd.f32 %v5406_v19, %v5376_v31  ;;  %v5338_v24 = vadd.f32 %v7019_v59, %v5337_v36 }
 0x249   : > { %v4896_v38 = vadd.f32 %v4895_v14, %v4865_v48  ;;  %v4827_v50 = vadd.f32 %v4826_v61, %v4592_v60  ;;  %6418 = vst [vmem:[%s8768_s19 + $0x48] sm:$0xff] %v6298_v29   ;;  %v4868_v11 = vmul.f32 %v4600_v13, %v4600_v13 }
 0x24a   : > { %6417 = vst [vmem:[%s8768_s19 + $0x40] sm:$0xff] %v6293_v26   ;;  %v5408_v35 = vadd.f32 %v5407_v15, %v5377_v40 }
 0x24b   : > { %v7022_v41 = vpop.f32.mrb[148].mxu1  ;;  %v4828_v46 = vadd.f32 %v4827_v50, %v4597_v53  ;;  %v4897_v42 = vadd.f32 %v4896_v38, %v4866_v58 }
 0x24c   : > { %v5113_v44 = vpop.f32.mrb[149].mxu1  ;;  %v6974_v3 = vpop.f32.mrb[148].mxu0  ;;  %v5380_v54 = vmul.f32 %v7022_v41, %v7022_v41 }
 0x24d   : > { %v7023_v20 = vpop.f32.mrb[150].mxu1  ;;  %v5378_v10 = vmul.f32 %v5113_v44, %v5113_v44  ;;  %v4613_v39 = vadd.f32 %v6974_v3, %v8726_v55  ;;  %v4604_v16 = vpop.f32.mrb[149].mxu0  ;;  %v5339_v30 = vadd.f32 %v5338_v24, %v5113_v44  ;;  %v4898_v57 = vadd.f32 %v4897_v42, %v4867_v7 }
 0x24e   : > { %v5116_v28 = vpop.f32.mrb[151].mxu1  ;;  %v6388_v9 = vpack.c.bf16 %v7023_v20, %v7022_v41  ;;  %v4605_v56 = vadd.f32 %v4604_v16, %v8720_v6  ;;  %v4829_v59 = vadd.f32 %v4828_v46, %v4600_v13  ;;  %v6975_v17 = vpop.f32.mrb[150].mxu0  ;;  %v5381_v6 = vmul.f32 %v7023_v20, %v7023_v20 }
 0x24f   : > { %v6383_v18 = vpack.c.bf16 %v5116_v28, %v5113_v44  ;;  %v5379_v49 = vmul.f32 %v5116_v28, %v5116_v28  ;;  %v5409_v62 = vadd.f32 %v5408_v35, %v5378_v10  ;;  %v4616_v53 = vadd.f32 %v6975_v17, %v8728_v52  ;;  %v4607_v32 = vpop.f32.mrb[151].mxu0 }
 0x250   : > { %6435 = vst [vmem:[%s8754_s15 + $0x58] sm:$0xff] %v6388_v9   ;;  %v5340_v21 = vadd.f32 %v5339_v30, %v5116_v28  ;;  %v4830_v0 = vadd.f32 %v4829_v59, %v4605_v56  ;;  %v4869_v55 = vmul.f32 %v4605_v56, %v4605_v56  ;;  %v4899_v23 = vadd.f32 %v4898_v57, %v4868_v11 }
 0x251   : > { %6434 = vst [vmem:[%s8754_s15 + $0x50] sm:$0xff] %v6383_v18   ;;  %v4608_v34 = vadd.f32 %v4607_v32, %v8722_v2  ;;  %v6308_v1 = vpack.c.bf16 %v4616_v53, %v4613_v39  ;;  %v5410_v51 = vadd.f32 %v5409_v62, %v5379_v49  ;;  %v4871_v61 = vmul.f32 %v4613_v39, %v4613_v39 }
 0x252   : > { %v5341_v37 = vadd.f32 %v7022_v41, %v5340_v21  ;;  %v4900_v27 = vadd.f32 %v4899_v23, %v4869_v55  ;;  %v4872_v2 = vmul.f32 %v4616_v53, %v4616_v53 }
 0x253   : > { %v6303_v13 = vpack.c.bf16 %v4608_v34, %v4605_v56  ;;  %v4831_v45 = vadd.f32 %v4830_v0, %v4608_v34  ;;  %v4870_v52 = vmul.f32 %v4608_v34, %v4608_v34  ;;  %6420 = vst [vmem:[%s8768_s19 + $0x58] sm:$0xff] %v6308_v1   ;;  %v5411_v48 = vadd.f32 %v5410_v51, %v5380_v54 }
 0x254   : > { %v5342_v14 = vadd.f32 %v7023_v20, %v5341_v37  ;;  %v6978_v19 = vpop.f32.mrb[152].mxu0 }
 0x255   : > { %v7026_v5 = vpop.f32.mrb[152].mxu1  ;;  %6419 = vst [vmem:[%s8768_s19 + $0x50] sm:$0xff] %v6303_v13   ;;  %v4832_v40 = vadd.f32 %v4831_v45, %v4613_v39  ;;  %v4901_v36 = vadd.f32 %v4900_v27, %v4870_v52  ;;  %v4629_v44 = vadd.f32 %v6978_v19, %v8738_v25  ;;  %v4620_v38 = vpop.f32.mrb[153].mxu0  ;;  %v5412_v50 = vadd.f32 %v5411_v48, %v5381_v6 }
 0x256   : > { %v5129_v31 = vpop.f32.mrb[153].mxu1  ;;  %v4621_v15 = vadd.f32 %v4620_v38, %v8732_v22  ;;  %v6979_v24 = vpop.f32.mrb[154].mxu0  ;;  %v5384_v28 = vmul.f32 %v7026_v5, %v7026_v5 }
 0x257   : > { %v7027_v4 = vpop.f32.mrb[154].mxu1  ;;  %v5382_v60 = vmul.f32 %v5129_v31, %v5129_v31  ;;  %v5343_v26 = vadd.f32 %v5342_v14, %v5129_v31  ;;  %v4902_v7 = vadd.f32 %v4901_v36, %v4871_v61  ;;  %v4833_v20 = vadd.f32 %v4832_v40, %v4616_v53  ;;  %v4623_v42 = vpop.f32.mrb[155].mxu0 }
 0x258   : > { %v5132_v29 = vpop.f32.mrb[155].mxu1  ;;  %v6398_v41 = vpack.c.bf16 %v7027_v4, %v7026_v5  ;;  %v4632_v46 = vadd.f32 %v6979_v24, %v8740_v43  ;;  %v4873_v25 = vmul.f32 %v4621_v15, %v4621_v15  ;;  %v4624_v16 = vadd.f32 %v4623_v42, %v8734_v47 }
 0x259   : > { %v6393_v58 = vpack.c.bf16 %v5132_v29, %v5129_v31  ;;  %v5383_v10 = vmul.f32 %v5132_v29, %v5132_v29  ;;  %v5413_v11 = vadd.f32 %v5412_v50, %v5382_v60  ;;  %v5344_v3 = vadd.f32 %v5343_v26, %v5132_v29 }
 0x25a   : > { %6437 = vst [vmem:[%s8754_s15 + $0x68] sm:$0xff] %v6398_v41   ;;  %v4834_v9 = vadd.f32 %v4833_v20, %v4621_v15  ;;  %v4903_v39 = vadd.f32 %v4902_v7, %v4872_v2  ;;  %v6318_v35 = vpack.c.bf16 %v4632_v46, %v4629_v44  ;;  %v5385_v22 = vmul.f32 %v7027_v4, %v7027_v4 }
 0x25b   : > { %6436 = vst [vmem:[%s8754_s15 + $0x60] sm:$0xff] %v6393_v58   ;;  %v5345_v18 = vadd.f32 %v7026_v5, %v5344_v3  ;;  %v5414_v57 = vadd.f32 %v5413_v11, %v5383_v10  ;;  %v6313_v17 = vpack.c.bf16 %v4624_v16, %v4621_v15  ;;  %v4874_v43 = vmul.f32 %v4624_v16, %v4624_v16 }
 0x25c   : > { %v4904_v59 = vadd.f32 %v4903_v39, %v4873_v25  ;;  %v4835_v49 = vadd.f32 %v4834_v9, %v4624_v16  ;;  %v4875_v62 = vmul.f32 %v4629_v44, %v4629_v44  ;;  %6422 = vst [vmem:[%s8768_s19 + $0x68] sm:$0xff] %v6318_v35   ;;  %v4876_v47 = vmul.f32 %v4632_v46, %v4632_v46  ;;  %v6982_v34 = vpop.f32.mrb[156].mxu0 }
 0x25d   : > { %v7030_v30 = vpop.f32.mrb[156].mxu1  ;;  %v5415_v53 = vadd.f32 %v5414_v57, %v5384_v28  ;;  %v5346_v32 = vadd.f32 %v7027_v4, %v5345_v18  ;;  %6421 = vst [vmem:[%s8768_s19 + $0x60] sm:$0xff] %v6313_v17   ;;  %v4645_v1 = vadd.f32 %v6982_v34, %v8756_v33  ;;  %v4636_v6 = vpop.f32.mrb[157].mxu0 }
 0x25e   : > { %v5145_v56 = vpop.f32.mrb[157].mxu1  ;;  %v4836_v55 = vadd.f32 %v4835_v49, %v4629_v44  ;;  %v4905_v23 = vadd.f32 %v4904_v59, %v4874_v43  ;;  %v4637_v13 = vadd.f32 %v4636_v6, %v8744_v63  ;;  %v6983_v52 = vpop.f32.mrb[158].mxu0  ;;  %v5388_v36 = vmul.f32 %v7030_v30, %v7030_v30 }
 0x25f   : > { %v7031_v54 = vpop.f32.mrb[158].mxu1  ;;  %v5386_v21 = vmul.f32 %v5145_v56, %v5145_v56  ;;  %v5347_v37 = vadd.f32 %v5346_v32, %v5145_v56  ;;  %v5416_v51 = vadd.f32 %v5415_v53, %v5385_v22  ;;  %v4648_v48 = vadd.f32 %v6983_v52, %v8758_v12  ;;  %v4639_v14 = vpop.f32.mrb[159].mxu0 }
 0x260   : > { %v5148_v0 = vpop.f32.mrb[159].mxu1  ;;  %v6408_v5 = vpack.c.bf16 %v7031_v54, %v7030_v30  ;;  %v4906_v27 = vadd.f32 %v4905_v23, %v4875_v62  ;;  %v4837_v45 = vadd.f32 %v4836_v55, %v4632_v46  ;;  %v4877_v33 = vmul.f32 %v4637_v13, %v4637_v13 }
 0x261   : > { %v6403_v31 = vpack.c.bf16 %v5148_v0, %v5145_v56  ;;  %v5387_v4 = vmul.f32 %v5148_v0, %v5148_v0  ;;  %v5417_v61 = vadd.f32 %v5416_v51, %v5386_v21  ;;  %v5348_v60 = vadd.f32 %v5347_v37, %v5148_v0 }
 0x262   : > { %6439 = vst [vmem:[%s8754_s15 + $0x78] sm:$0xff] %v6408_v5   ;;  %v4838_v29 = vadd.f32 %v4837_v45, %v4637_v13  ;;  %v4907_v2 = vadd.f32 %v4906_v27, %v4876_v47  ;;  %v4640_v40 = vadd.f32 %v4639_v14, %v8746_v8  ;;  %v6328_v19 = vpack.c.bf16 %v4648_v48, %v4645_v1 }
 0x263   : > { %6438 = vst [vmem:[%s8754_s15 + $0x70] sm:$0xff] %v6403_v31   ;;  %v5349_v63 = vadd.f32 %v7030_v30, %v5348_v60  ;;  %v5418_v41 = vadd.f32 %v5417_v61, %v5387_v4  ;;  %v5389_v12 = vmul.f32 %v7031_v54, %v7031_v54  ;;  %v4879_v15 = vmul.f32 %v4645_v1, %v4645_v1 }
 0x264   : > { %v4908_v44 = vadd.f32 %v4907_v2, %v4877_v33  ;;  %v6323_v38 = vpack.c.bf16 %v4640_v40, %v4637_v13  ;;  %v4839_v26 = vadd.f32 %v4838_v29, %v4640_v40  ;;  %v4878_v50 = vmul.f32 %v4640_v40, %v4640_v40  ;;  %6424 = vst [vmem:[%s8768_s19 + $0x78] sm:$0xff] %v6328_v19  }
 0x265   : > { %v5350_v58 = vadd.f32 %v7031_v54, %v5349_v63  ;;  %v5419_v7 = vadd.f32 %v5418_v41, %v5388_v36  ;;  %v4880_v8 = vmul.f32 %v4648_v48, %v4648_v48 }
 0x266   : > { %6423 = vst [vmem:[%s8768_s19 + $0x70] sm:$0xff] %v6323_v38   ;;  %v4840_v20 = vadd.f32 %v4839_v26, %v4645_v1  ;;  %v4909_v24 = vadd.f32 %v4908_v44, %v4878_v50 }
 0x267   : > { %v5351_v10 = vrot.slane %v5350_v58, 4  ;;  %v5420_v28 = vadd.f32 %v5419_v7, %v5389_v12 }
 0x268   : > { %v4841_v11 = vadd.f32 %v4840_v20, %v4648_v48  ;;  %v4910_v46 = vadd.f32 %v4909_v24, %v4879_v15 }
 0x269   : > { %v5352_v42 = vadd.f32 %v5351_v10, %v5350_v58  ;;  %v5421_v3 = vrot.slane %v5420_v28, 4 }
 0x26a   : > { %v4842_v9 = vrot.slane %v4841_v11, 4  ;;  %v4911_v25 = vadd.f32 %v4910_v46, %v4880_v8 }
 0x26b   : > { %v5353_v39 = vrot.slane %v5352_v42, 2  ;;  %v5422_v16 = vadd.f32 %v5421_v3, %v5420_v28 }
 0x26c   : > { %v4843_v30 = vadd.f32 %v4842_v9, %v4841_v11  ;;  %v4912_v35 = vrot.slane %v4911_v25, 4 }
 0x26d   : > { %v5354_v22 = vadd.f32 %v5353_v39, %v5352_v42  ;;  %v5423_v18 = vrot.slane %v5422_v16, 2 }
 0x26e   : > { %v4844_v57 = vrot.slane %v4843_v30, 2  ;;  %v4913_v56 = vadd.f32 %v4912_v35, %v4911_v25 }
 0x26f   : > { %v5355_v59 = vrot.slane %v5354_v22, 1  ;;  %v5424_v17 = vadd.f32 %v5423_v18, %v5422_v16 }
 0x270   : > { %v4845_v49 = vadd.f32 %v4844_v57, %v4843_v30  ;;  %v4914_v43 = vrot.slane %v4913_v56, 2 }
 0x271   : > { %v5356_v54 = vadd.f32 %v5355_v59, %v5354_v22  ;;  %v5425_v62 = vrot.slane %v5424_v17, 1 }
 0x272   : > { %v4846_v53 = vrot.slane %v4845_v49, 1  ;;  %v4915_v32 = vadd.f32 %v4914_v43, %v4913_v56 }
 0x273   : > { %5357 = vst [vmem:[%s284_s25] sm:$0x1] %v5356_v54  ;;  %v5426_v21 = vadd.f32 %v5425_v62, %v5424_v17 }
 0x274   : > { %v4847_v0 = vadd.f32 %v4846_v53, %v4845_v49  ;;  %v4916_v47 = vrot.slane %v4915_v32, 1 }
 0x275   : > { %5427 = vst [vmem:[%s284_s25 + $0x1] sm:$0x1] %v5426_v21 }
 0x276   : > { %v4917_v55 = vadd.f32 %v4916_v47, %v4915_v32  ;;  %4848 = vst [vmem:[%s275_s22] sm:$0x1] %v4847_v0 }
 0x278   : > { %4918 = vst [vmem:[%s275_s22 + $0x1] sm:$0x1] %v4917_v55 }
 0x279 PF: > { %s17_s21 = sadd.s32 1, %s7175_s21  }
 0x27a   : > { %p14_p4 = scmp.ge.s32.totalorder %s17_s21, 4  }
 0x27c   :  { %16 = sbr.rel (!%p14_p4) target bundleno = 1 (0x1), region = 100 }

// kernel: basic_block.3
= control target key start
LH: loop header
LB: loop body
LE: loop exit
PB: predicated region body
PF: predicated region fallthrough
CT: control target
= control target key end

     0   :  { %s7011_s18 = smov 0   ;;  %s8750_s0 = inlined_call_operand.vmem [shape: bf16[2,16,16,128], index: 0, kind: input, shape index: {}]   ;;  %s8751_s1 = inlined_call_operand.vmem [shape: f32[1,128], index: 1, kind: input, shape index: {}]   ;;  %s8752_s2 = inlined_call_operand.vmem [shape: f32[1,128], index: 2, kind: input, shape index: {}]   ;;  %s8753_s3 = inlined_call_operand.vmem [shape: bf16[1152,128], index: 3, kind: input, shape index: {}]   ;;  %s8754_s4 = inlined_call_operand.vmem [shape: bf16[2,16,16,128], index: 4, kind: output, shape index: {0}]   ;;  %s8755_s5 = inlined_call_operand.vmem [shape: f32[2,2,128], index: 5, kind: output, shape index: {1}]  }
   0x1 LB: > { %s5720_s19 = sadd.s32 4294967295, %s6978_s18   ;;  %p5724_p0 = scmp.ge.s32.totalorder %s6978_s18, 1  ;;  %s6978_s18 = sphi %s7011_s18, %s16_s18  }
   0x2   : > { %p190_p1 = scmp.lt.s32.totalorder %s6978_s18, 3 }
   0x4   : > { %p191_p2 = pnand %p5724_p0, %p190_p1 }
   0x6   : > { %194 = sbr.rel (%p191_p2) target bundleno = 672 (0x2a0), region = 36 }
   0xd   : > { %v6847_v0 = vld [vmem:[%s8753_s3 + $0x40] sm:$0xff]   ;;  %v6980_v2 = vmov 0   ;;  %v6849_v3 = vld [vmem:[%s8753_s3 + $0x48] sm:$0xff]   ;;  %v6851_v5 = vld [vmem:[%s8753_s3 + $0x50] sm:$0xff]   ;;  %p222_p3 = scmp.lt.s32.totalorder %s5720_s19, 1  ;;  %vm885_vm3 = vcmask 1043456  }
   0xe   : > { %v6848_v1 = vld [vmem:[%s8753_s3] sm:$0xff]   ;;  %411 = vst [vmem:[#allocation2] sm:$0xf] %v6980_v2  ;;  %412 = vst [vmem:[#allocation2 + $0x4] sm:$0xf] %v6980_v2  ;;  %6302 = vmatprep.subr.bf16.mxu0 %v6847_v0  ;;  %6822 = vmatprep.subr.bf16.mxu1 %v6847_v0  ;;  %v6850_v4 = vld [vmem:[%s8753_s3 + $0x8] sm:$0xff]  }
   0xf   : > { %413 = vst [vmem:[#allocation2 + $0x8] sm:$0x1] %v6980_v2  ;;  %414 = vst [vmem:[#allocation2 + $0xc] sm:$0xf] %v6980_v2  ;;  %6303 = vmatpush3.bf16.msra.mxu0 %v6848_v1  ;;  %6830 = vmatpush3.bf16.msra.mxu1 %v6848_v1  ;;  %v6852_v6 = vld [vmem:[%s8753_s3 + $0x10] sm:$0xff]   ;;  %v6853_v7 = vld [vmem:[%s8753_s3 + $0x58] sm:$0xff]  }
  0x10   : > { %415 = vst [vmem:[#allocation2 + $0x10] sm:$0xf] %v6980_v2  ;;  %416 = vst [vmem:[#allocation2 + $0x14] sm:$0x1] %v6980_v2  ;;  %6304 = vmatprep.subr.bf16.mxu0 %v6849_v3  ;;  %6823 = vmatprep.subr.bf16.mxu1 %v6849_v3  ;;  %s8791_s19 = smov (!%p222_p3, %s5720_s19), 1  ;;  %v6854_v8 = vld [vmem:[%s8753_s3 + $0x18] sm:$0xff]  }
  0x11   : > { %417 = vst [vmem:[#allocation2 + $0x18] sm:$0xf] %v6980_v2  ;;  %418 = vst [vmem:[#allocation2 + $0x1c] sm:$0xf] %v6980_v2  ;;  %v6855_v9 = vld [vmem:[%s8753_s3 + $0x60] sm:$0xff]   ;;  %s6062_s13 = sshll.u32 %s8791_s19, 7 }
  0x12   : > { %419 = vst [vmem:[#allocation2 + $0x20] sm:$0x1] %v6980_v2  ;;  %420 = vst [vmem:[#allocation2 + $0x24] sm:$0xf] %v6980_v2  ;;  %v6856_v10 = vld [vmem:[%s8753_s3 + $0x20] sm:$0xff]   ;;  %v6857_v11 = vld [vmem:[%s8753_s3 + $0x68] sm:$0xff]   ;;  %s7064_s22 = scalar_lea.vmem %s8750_s0, %s6062_s13  ;;  %s8684_s9 = scalar_lea.vmem %s8754_s4, %s6062_s13 }
  0x13   : > { %421 = vst [vmem:[#allocation2 + $0x28] sm:$0xf] %v6980_v2  ;;  %422 = vst [vmem:[#allocation2 + $0x2c] sm:$0x1] %v6980_v2  ;;  %6305 = vmatpush3.bf16.msra.mxu0 %v6850_v4  ;;  %6831 = vmatpush3.bf16.msra.mxu1 %v6850_v4  ;;  %vm1194_vm0 = vsmask.f32 3328 }
  0x14   : > { %423 = vst [vmem:[#allocation2 + $0x30] sm:$0xf] %v6980_v2  ;;  %424 = vst [vmem:[#allocation2 + $0x34] sm:$0xf] %v6980_v2  ;;  %6306 = vmatprep.subr.bf16.mxu0 %v6851_v5  ;;  %6824 = vmatprep.subr.bf16.mxu1 %v6851_v5  ;;  %vm1195_vm1 = vsmask.f32 7440 }
  0x15   : > { %425 = vst [vmem:[#allocation2 + $0x38] sm:$0x1] %v6980_v2  ;;  %426 = vst [vmem:[#allocation2 + $0x3c] sm:$0xf] %v6980_v2  ;;  %v1146_v12 = vld [vmem:[#allocation2] sm:$0xf] }
  0x16   : > { %427 = vst [vmem:[#allocation2 + $0x40] sm:$0xf] %v6980_v2  ;;  %428 = vst [vmem:[#allocation2 + $0x44] sm:$0x1] %v6980_v2  ;;  %v1147_v13 = vld [vmem:[#allocation2 + $0x4] sm:$0xf] }
  0x17   : > { %429 = vst [vmem:[#allocation2 + $0x48] sm:$0xf] %v6980_v2  ;;  %430 = vst [vmem:[#allocation2 + $0x4c] sm:$0xf] %v6980_v2  ;;  %6307 = vmatpush3.bf16.msra.mxu0 %v6852_v6  ;;  %6832 = vmatpush3.bf16.msra.mxu1 %v6852_v6  ;;  %v1148_v14 = vld [vmem:[#allocation2 + $0x8] sm:$0x1] }
  0x18   : > { %431 = vst [vmem:[#allocation2 + $0x50] sm:$0x1] %v6980_v2  ;;  %432 = vst [vmem:[#allocation2 + $0x54] sm:$0xf] %v6980_v2  ;;  %6308 = vmatprep.subr.bf16.mxu0 %v6853_v7  ;;  %6825 = vmatprep.subr.bf16.mxu1 %v6853_v7  ;;  %v1198_v15 = vshrl.u32 %v1146_v12, 16  ;;  %v1201_v16 = vshll.u32 %v1146_v12, 16 }
  0x19   : > { %433 = vst [vmem:[#allocation2 + $0x58] sm:$0xf] %v6980_v2  ;;  %434 = vst [vmem:[#allocation2 + $0x5c] sm:$0x1] %v6980_v2  ;;  %v6858_v17 = vld [vmem:[%s8753_s3 + $0x28] sm:$0xff]   ;;  %v1207_v18 = vshll.u32 %v1147_v13, 16 }
  0x1a   : > { %435 = vst [vmem:[#allocation2 + $0x60] sm:$0xf] %v6980_v2  ;;  %436 = vst [vmem:[#allocation2 + $0x64] sm:$0xf] %v6980_v2  ;;  %v1211_v19 = vshrl.u32 %v1147_v13, 16  ;;  %v1217_v20 = vshll.u32 %v1148_v14, 16 }
  0x1b   : > { %437 = vst [vmem:[#allocation2 + $0x68] sm:$0x1] %v6980_v2  ;;  %438 = vst [vmem:[#allocation2 + $0x6c] sm:$0xf] %v6980_v2  ;;  %6309 = vmatpush3.bf16.msra.mxu0 %v6854_v8  ;;  %6833 = vmatpush3.bf16.msra.mxu1 %v6854_v8  ;;  %v1200_v21 = vrot.slane %v1198_v15, 4  ;;  %v1203_v22 = vrot.slane %v1201_v16, 5 }
  0x1c   : > { %439 = vst [vmem:[#allocation2 + $0x70] sm:$0xf] %v6980_v2  ;;  %440 = vst [vmem:[#allocation2 + $0x74] sm:$0x1] %v6980_v2  ;;  %6310 = vmatprep.subr.bf16.mxu0 %v6855_v9  ;;  %6826 = vmatprep.subr.bf16.mxu1 %v6855_v9  ;;  %v6129_v23 = vld [vmem:[%s7064_s22] sm:$0xff]   ;;  %v6282_v24 = vld [vmem:[%s7064_s22 + $0x58] sm:$0xff]  }
  0x1d   : > { %441 = vst [vmem:[#allocation2 + $0x78] sm:$0xf] %v6980_v2  ;;  %442 = vst [vmem:[#allocation2 + $0x7c] sm:$0xf] %v6980_v2  ;;  %v6859_v25 = vld [vmem:[%s8753_s3 + $0x70] sm:$0xff]   ;;  %v1209_v26 = vrot.slane %v1207_v18, 5  ;;  %v6130_v28 = vunpack.c.l.bf16 %v6129_v23  ;;  %v1204_v30 = vor.u32 %v1203_v22, %v1200_v21  ;;  %v6131_v31 = vunpack.c.h.bf16 %v6129_v23 }
  0x1e   : > { %443 = vst [vmem:[#allocation2 + $0x80] sm:$0x1] %v6980_v2  ;;  %444 = vst [vmem:[#allocation2 + $0x84] sm:$0xf] %v6980_v2  ;;  %v1213_v27 = vrot.slane %v1211_v19, 4  ;;  %v1219_v35 = vrot.slane %v1217_v20, 5  ;;  %v6174_v37 = vunpack.c.l.bf16 %v6282_v24  ;;  %v6175_v41 = vunpack.c.h.bf16 %v6282_v24 }
  0x1f   : > { %445 = vst [vmem:[#allocation2 + $0x88] sm:$0xf] %v6980_v2  ;;  %446 = vst [vmem:[#allocation2 + $0x8c] sm:$0x1] %v6980_v2  ;;  %6311 = vmatpush3.bf16.msra.mxu0 %v6856_v10  ;;  %6834 = vmatpush3.bf16.msra.mxu1 %v6856_v10  ;;  %v7077_v29 = vld [vmem:[%s8751_s1] ss:$0 sm:$0xff] }
  0x20   : > { %447 = vst [vmem:[#allocation2 + $0x90] sm:$0xf] %v6980_v2  ;;  %448 = vst [vmem:[#allocation2 + $0x94] sm:$0xf] %v6980_v2  ;;  %6312 = vmatprep.subr.bf16.mxu0 %v6857_v11  ;;  %6827 = vmatprep.subr.bf16.mxu1 %v6857_v11  ;;  %v7082_v32 = vld [vmem:[%s8752_s2] ss:$0 sm:$0xff]  ;;  %v1214_v34 = vor.u32 %v1213_v27, %v1209_v26  ;;  %v308_v36 = vmul.f32 %v6130_v28, %v7077_v29 }
  0x21   : > { %449 = vst [vmem:[#allocation2 + $0x98] sm:$0x1] %v6980_v2  ;;  %450 = vst [vmem:[#allocation2 + $0x9c] sm:$0xf] %v6980_v2  ;;  %v6860_v38 = vld [vmem:[%s8753_s3 + $0x30] sm:$0xff]   ;;  %v1205_v39 = vrot.slane %v1204_v30, 4  ;;  %v309_v40 = vmul.f32 %v6131_v31, %v7077_v29  ;;  %v330_v45 = vmul.f32 %v6174_v37, %v7077_v29  ;;  %v331_v48 = vmul.f32 %v6175_v41, %v7077_v29 }
  0x22   : > { %451 = vst [vmem:[#allocation2 + $0xa0] sm:$0xf] %v6980_v2  ;;  %452 = vst [vmem:[#allocation2 + $0xa4] sm:$0x1] %v6980_v2  ;;  %vm561_vm4 = vsmask.f32 256  ;;  %v347_v44 = vadd.f32 %v7082_v32, %v308_v36 }
  0x23   : > { %453 = vst [vmem:[#allocation2 + $0xa8] sm:$0xf] %v6980_v2  ;;  %454 = vst [vmem:[#allocation2 + $0xac] sm:$0xf] %v6980_v2  ;;  %6313 = vmatpush3.bf16.msra.mxu0 %v6858_v17  ;;  %6835 = vmatpush3.bf16.msra.mxu1 %v6858_v17  ;;  %v6861_v42 = vld [vmem:[%s8753_s3 + $0x78] sm:$0xff]   ;;  %v1215_v43 = vrot.slane %v1214_v34, 4  ;;  %v348_v47 = vadd.f32 %v7082_v32, %v309_v40  ;;  %v369_v52 = vadd.f32 %v7082_v32, %v330_v45 }
  0x24   : > { %455 = vst [vmem:[#allocation2 + $0xb0] sm:$0x1] %v6980_v2  ;;  %456 = vst [vmem:[#allocation2 + $0xb4] sm:$0xf] %v6980_v2  ;;  %6314 = vmatprep.subr.bf16.mxu0 %v6859_v25  ;;  %6828 = vmatprep.subr.bf16.mxu1 %v6859_v25  ;;  %vm562_vm5 = vsmask.f32 4368  ;;  %v370_v55 = vadd.f32 %v7082_v32, %v331_v48 }
  0x25   : > { %457 = vst [vmem:[#allocation2 + $0xb8] sm:$0xf] %v6980_v2  ;;  %458 = vst [vmem:[#allocation2 + $0xbc] sm:$0x1] %v6980_v2  ;;  %v6862_v49 = vld [vmem:[%s8753_s3 + $0x38] sm:$0xff]   ;;  %v379_v51 = vmax.f32 %v347_v44, 0.0 }
  0x26   : > { %459 = vst [vmem:[#allocation2 + $0xc0] sm:$0xf] %v6980_v2  ;;  %460 = vst [vmem:[#allocation2 + $0xc4] sm:$0xf] %v6980_v2  ;;  %v380_v54 = vmax.f32 %v348_v47, 0.0  ;;  %v6864_v56 = vld [vmem:[%s8753_s3 + $0xc0] sm:$0xff]  }
  0x27   : > { %461 = vst [vmem:[#allocation2 + $0xc8] sm:$0x1] %v6980_v2  ;;  %462 = vst [vmem:[#allocation2 + $0xcc] sm:$0xf] %v6980_v2  ;;  %6315 = vmatpush3.bf16.msra.mxu0 %v6860_v38  ;;  %6836 = vmatpush3.bf16.msra.mxu1 %v6860_v38  ;;  %v6064_v57 = vpack.c.bf16 %v379_v51, %v379_v51  ;;  %v401_v58 = vmax.f32 %v369_v52, 0.0  ;;  %v6865_v59 = vld [vmem:[%s8753_s3 + $0x140] sm:$0xff]  }
  0x28   : > { %463 = vst [vmem:[#allocation2 + $0xd0] sm:$0xf] %v6980_v2  ;;  %464 = vst [vmem:[#allocation2 + $0xd4] sm:$0x1] %v6980_v2  ;;  %6316 = vmatprep.subr.bf16.mxu0 %v6861_v42  ;;  %6829 = vmatprep.subr.bf16.mxu1 %v6861_v42  ;;  %v6065_v60 = vpack.c.bf16 %v380_v54, %v380_v54  ;;  %vm892_vm6 = vcmask 1040384   ;;  %v402_v61 = vmax.f32 %v370_v55, 0.0 }
  0x29   : > { %vm7086_vm2 = vmor %vm1194_vm0, %vm1195_vm1  ;;  %v6863_v62 = vld [vmem:[#allocation2] sm:$0xff]   ;;  %v565_v63 = vshrl.u32 %v6064_v57, 16  ;;  %v568_v0 = vshll.u32 %v6064_v57, 16  ;;  %vm886_vm7 = vsmask.f32 7938  ;;  %v6086_v1 = vpack.c.bf16 %v401_v58, %v401_v58  ;;  %v6272_v2 = vld [vmem:[%s7064_s22 + $0x8] sm:$0xff]  }
  0x2a   : > { %v1210_v46 = vsel %vm7086_vm2, %v1205_v39, %v1209_v26  ;;  %v1220_v50 = vsel %vm7086_vm2, %v1215_v43, %v1219_v35  ;;  %v573_v3 = vshrl.u32 %v6065_v60, 16  ;;  %v576_v4 = vshll.u32 %v6065_v60, 16  ;;  %v888_v5 = vld [vmem:[#allocation2 + $0xc] sm:$0xf]  ;;  %v6869_v7 = vld [vmem:[%s8753_s3 + $0x100] sm:$0xff]   ;;  %vm7123_vm8 = vmor %vm561_vm4, %vm562_vm5  ;;  %s5729_s13 = sshll.u32 %s8791_s19, 1 }
  0x2b   : > { %v5780_v53 = vcombine.low %v1210_v46, %v1220_v50  ;;  %6317 = vmatpush3.bf16.msra.mxu0 %v6862_v49  ;;  %6837 = vmatpush3.bf16.msra.mxu1 %v6862_v49  ;;  %v6087_v6 = vpack.c.bf16 %v402_v61, %v402_v61  ;;  %v6134_v8 = vunpack.c.l.bf16 %v6272_v2  ;;  %v567_v10 = vrot.slane %v565_v63, 7  ;;  %v894_v11 = vld [vmem:[#allocation2 + $0x14] sm:$0x1]  ;;  %vm7129_vm9 = vmand %vm885_vm3, %vm886_vm7  ;;  %v967_v19 = vld [vmem:[#allocation2 + $0x90] sm:$0xf]  ;;  %s235_s11 = scalar_lea.vmem %s8755_s5, %s5729_s13 }
  0x2c   : > { %v752_v12 = vshrl.u32 %v6086_v1, 16  ;;  %v755_v13 = vshll.u32 %v6086_v1, 16  ;;  %6414 = vmatprep.subr.bf16.mxu1 %v6864_v56  ;;  %6526 = vmatprep.subr.bf16.mxu0 %v6865_v59  ;;  %v6135_v14 = vunpack.c.h.bf16 %v6272_v2  ;;  %v575_v15 = vrot.slane %v573_v3, 7  ;;  %v6283_v21 = vld [vmem:[%s7064_s22 + $0x60] sm:$0xff]   ;;  %vm7137_vm10 = vmand %vm892_vm6, %vm561_vm4  ;;  %v971_v26 = vld [vmem:[#allocation2 + $0x98] sm:$0x1] }
  0x2d   : > { %4593 = vmatprep.mubr.bf16.mxu0 %v5780_v53  ;;  %v760_v17 = vshrl.u32 %v6087_v6, 16  ;;  %v763_v18 = vshll.u32 %v6087_v6, 16  ;;  %v310_v20 = vmul.f32 %v6134_v8, %v7077_v29  ;;  %v570_v22 = vor.u32 %v568_v0, %v567_v10  ;;  %v6877_v43 = vld [vmem:[%s8753_s3 + $0x148] sm:$0xff]   ;;  %v6273_v52 = vld [vmem:[%s7064_s22 + $0x10] sm:$0xff]  }
  0x2e   : > { %4594 = vmatmul.mubr.bf16.vlgmr.msra.gmra.mrb[0].mxu0 %v6863_v62  ;;  %v571_v23 = vrot.slane %v567_v10, 4  ;;  %v754_v25 = vrot.slane %v752_v12, 7  ;;  %v311_v27 = vmul.f32 %v6135_v14, %v7077_v29  ;;  %v578_v28 = vor.u32 %v576_v4, %v575_v15  ;;  %v6879_v48 = vld [vmem:[%s8753_s3 + $0x108] sm:$0xff]  }
  0x2f   : > { %v580_v30 = vrot.slane %v575_v15, 4  ;;  %v762_v31 = vrot.slane %v760_v17, 7  ;;  %6527 = vmatpush3.bf16.msra.mxu0 %v6869_v7  ;;  %v349_v34 = vadd.f32 %v7082_v32, %v310_v20  ;;  %v889_v35 = vsel %vm7129_vm9, %v570_v22, %v888_v5  ;;  %v6284_v57 = vld [vmem:[%s7064_s22 + $0x68] sm:$0xff]  }
  0x30   : > { %v757_v36 = vor.u32 %v755_v13, %v754_v25  ;;  %v758_v37 = vrot.slane %v754_v25, 4  ;;  %v350_v38 = vadd.f32 %v7082_v32, %v311_v27  ;;  %v579_v39 = vsel %vm7123_vm8, %v571_v23, %v578_v28  ;;  %890 = vst [vmem:[#allocation2 + $0xc] sm:$0xf] %v889_v35  ;;  %6528 = vmatprep.subr.bf16.mxu0 %v6877_v43  ;;  %v901_v43 = vld [vmem:[#allocation2 + $0x20] sm:$0x1] }
  0x31   : > { %v895_v40 = vsel %vm7137_vm10, %v580_v30, %v894_v11  ;;  %v765_v41 = vor.u32 %v763_v18, %v762_v31  ;;  %v767_v42 = vrot.slane %v762_v31, 4  ;;  %891 = vst [vmem:[#allocation2 + $0x10] sm:$0xf] %v579_v39  ;;  %v381_v45 = vmax.f32 %v349_v34, 0.0 }
  0x32   : > { %896 = vst [vmem:[#allocation2 + $0x14] sm:$0x1] %v895_v40  ;;  %v968_v44 = vsel %vm7129_vm9, %v757_v36, %v967_v19  ;;  %v382_v46 = vmax.f32 %v350_v38, 0.0  ;;  %v6178_v47 = vunpack.c.l.bf16 %v6283_v21  ;;  %v6179_v51 = vunpack.c.h.bf16 %v6283_v21  ;;  %v897_v38 = vld [vmem:[#allocation2 + $0x18] sm:$0xf] }
  0x33   : > { %v766_v49 = vsel %vm7123_vm8, %v758_v37, %v765_v41  ;;  %969 = vst [vmem:[#allocation2 + $0x90] sm:$0xf] %v968_v44  ;;  %v972_v50 = vsel %vm7137_vm10, %v767_v42, %v971_v26  ;;  %v6066_v53 = vpack.c.bf16 %v381_v45, %v381_v45  ;;  %6529 = vmatpush3.bf16.msra.mxu0 %v6879_v48  ;;  %v6138_v56 = vunpack.c.l.bf16 %v6273_v52 }
  0x34   : > { %970 = vst [vmem:[#allocation2 + $0x94] sm:$0xf] %v766_v49  ;;  %973 = vst [vmem:[#allocation2 + $0x98] sm:$0x1] %v972_v50  ;;  %v6067_v54 = vpack.c.bf16 %v382_v46, %v382_v46  ;;  %v332_v55 = vmul.f32 %v6178_v47, %v7077_v29  ;;  %v333_v58 = vmul.f32 %v6179_v51, %v7077_v29  ;;  %v6139_v59 = vunpack.c.h.bf16 %v6273_v52 }
  0x35   : > { %v6182_v60 = vunpack.c.l.bf16 %v6284_v57  ;;  %v6183_v61 = vunpack.c.h.bf16 %v6284_v57  ;;  %v582_v62 = vshrl.u32 %v6066_v53, 16  ;;  %v585_v63 = vshll.u32 %v6066_v53, 16 }
  0x36   : > { %v590_v0 = vshrl.u32 %v6067_v54, 16  ;;  %v593_v1 = vshll.u32 %v6067_v54, 16  ;;  %v7167_v2 = vadd.f32 %v7082_v32, %v332_v55  ;;  %v7170_v3 = vadd.f32 %v7082_v32, %v333_v58 }
  0x37   : > { %v312_v4 = vmul.f32 %v6138_v56, %v7077_v29  ;;  %v313_v5 = vmul.f32 %v6139_v59, %v7077_v29  ;;  %v1149_v6 = vld [vmem:[#allocation2 + $0xc] sm:$0xf]  ;;  %v584_v7 = vrot.slane %v582_v62, 7  ;;  %v334_v10 = vmul.f32 %v6182_v60, %v7077_v29 }
  0x38   : > { %v592_v8 = vrot.slane %v590_v0, 7  ;;  %v335_v11 = vmul.f32 %v6183_v61, %v7077_v29  ;;  %v1150_v12 = vld [vmem:[#allocation2 + $0x10] sm:$0xf]  ;;  %v1222_v14 = vshrl.u32 %v1149_v6, 16  ;;  %v1225_v15 = vshll.u32 %v1149_v6, 16 }
  0x39   : > { %v1151_v13 = vld [vmem:[#allocation2 + $0x14] sm:$0x1]  ;;  %v7177_v17 = vadd.f32 %v7082_v32, %v312_v4  ;;  %v7180_v18 = vadd.f32 %v7082_v32, %v313_v5  ;;  %v1231_v19 = vshll.u32 %v1150_v12, 16  ;;  %v1235_v20 = vshrl.u32 %v1150_v12, 16  ;;  %v6866_v61 = vld [vmem:[#allocation2 + $0xc] sm:$0xff]  }
  0x3a   : > { %v1241_v21 = vshll.u32 %v1151_v13, 16  ;;  %v1182_v22 = vld [vmem:[#allocation2 + $0x90] sm:$0xf]  ;;  %v587_v23 = vor.u32 %v585_v63, %v584_v7  ;;  %v1224_v25 = vrot.slane %v1222_v14, 4  ;;  %v1227_v26 = vrot.slane %v1225_v15, 5 }
  0x3b   : > { %v1183_v27 = vld [vmem:[#allocation2 + $0x94] sm:$0xf]  ;;  %v1184_v28 = vld [vmem:[#allocation2 + $0x98] sm:$0x1]  ;;  %v595_v30 = vor.u32 %v593_v1, %v592_v8  ;;  %v7183_v31 = vadd.f32 %v7082_v32, %v334_v10  ;;  %v1233_v34 = vrot.slane %v1231_v19, 5  ;;  %v1237_v35 = vrot.slane %v1235_v20, 4 }
  0x3c   : > { %v1243_v36 = vrot.slane %v1241_v21, 5  ;;  %v1486_v37 = vshrl.u32 %v1182_v22, 16  ;;  %v1228_v39 = vor.u32 %v1227_v26, %v1224_v25  ;;  %v1489_v40 = vshll.u32 %v1182_v22, 16  ;;  %v6887_v14 = vld [vmem:[%s8753_s3 + $0x150] sm:$0xff]   ;;  %v6870_v26 = vld [vmem:[%s8753_s3 + $0xc8] sm:$0xff]  }
  0x3d   : > { %v1495_v41 = vshll.u32 %v1183_v27, 16  ;;  %v1499_v42 = vshrl.u32 %v1183_v27, 16  ;;  %v1238_v44 = vor.u32 %v1237_v35, %v1233_v34  ;;  %v1505_v46 = vshll.u32 %v1184_v28, 16  ;;  %v7219_v20 = vld [vmem:[%s7064_s22 + $0x70] sm:$0xff]   ;;  %6530 = vmatprep.subr.bf16.mxu0 %v6887_v14  ;;  %v974_v28 = vld [vmem:[#allocation2 + $0x9c] sm:$0xf] }
  0x3e   : > { %v1488_v45 = vrot.slane %v1486_v37, 4  ;;  %v588_v47 = vrot.slane %v584_v7, 4  ;;  %v1229_v48 = vrot.slane %v1228_v39, 4  ;;  %v1491_v49 = vrot.slane %v1489_v40, 5  ;;  %v6867_v7 = vld [vmem:[#allocation2 + $0x90] sm:$0xff]  }
  0x3f   : > { %v1497_v50 = vrot.slane %v1495_v41, 5  ;;  %v1501_v51 = vrot.slane %v1499_v42, 4  ;;  %v1239_v52 = vrot.slane %v1238_v44, 4  ;;  %v1507_v53 = vrot.slane %v1505_v46, 5  ;;  %v6891_v25 = vld [vmem:[%s8753_s3 + $0x110] sm:$0xff]   ;;  %v6871_v46 = vld [vmem:[%s8753_s3 + $0x88] sm:$0xff]  }
  0x40   : > { %v596_v54 = vsel %vm7123_vm8, %v588_v47, %v595_v30  ;;  %v597_v55 = vrot.slane %v592_v8, 4  ;;  %v1234_v56 = vsel %vm7086_vm2, %v1229_v48, %v1233_v34  ;;  %v1492_v57 = vor.u32 %v1491_v49, %v1488_v45  ;;  %v6868_v8 = vld [vmem:[%s8753_s3 + $0x80] sm:$0xff]   ;;  %6531 = vmatpush3.bf16.msra.mxu0 %v6891_v25  ;;  %v908_v14 = vld [vmem:[#allocation2 + $0x2c] sm:$0x1] }
  0x41   : > { %v1502_v58 = vor.u32 %v1501_v51, %v1497_v50  ;;  %v898_v59 = vsel %vm7129_vm9, %v587_v23, %v897_v38  ;;  %900 = vst [vmem:[#allocation2 + $0x1c] sm:$0xf] %v596_v54  ;;  %v1244_v60 = vsel %vm7086_vm2, %v1239_v52, %v1243_v36  ;;  %v403_v63 = vmax.f32 %v7167_v2, 0.0 }
  0x42   : > { %899 = vst [vmem:[#allocation2 + $0x18] sm:$0xf] %v898_v59  ;;  %v902_v62 = vsel %vm7137_vm10, %v597_v55, %v901_v43  ;;  %v404_v0 = vmax.f32 %v7170_v3, 0.0  ;;  %v5781_v1 = vcombine.low %v1234_v56, %v1244_v60  ;;  %v1493_v4 = vrot.slane %v1492_v57, 4  ;;  %v7206_v3 = vld [vmem:[%s7064_s22 + $0x18] sm:$0xff]   ;;  %v6872_v56 = vld [vmem:[%s8753_s3 + $0xd0] sm:$0xff]  }
  0x43   : > { %v1503_v5 = vrot.slane %v1502_v58, 4  ;;  %903 = vst [vmem:[#allocation2 + $0x20] sm:$0x1] %v902_v62  ;;  %v383_v6 = vmax.f32 %v7177_v17, 0.0  ;;  %v6088_v10 = vpack.c.bf16 %v403_v63, %v403_v63  ;;  %v384_v13 = vmax.f32 %v7180_v18, 0.0 }
  0x44   : > { %v6089_v12 = vpack.c.bf16 %v404_v0, %v404_v0  ;;  %v7203_v2 = vadd.f32 %v7082_v32, %v335_v11  ;;  %4601 = vmatprep.mubr.bf16.mxu0 %v5781_v1  ;;  %v1498_v15 = vsel %vm7086_vm2, %v1493_v4, %v1497_v50  ;;  %v405_v18 = vmax.f32 %v7183_v31, 0.0  ;;  %v978_v43 = vld [vmem:[#allocation2 + $0xa4] sm:$0x1] }
  0x45   : > { %v1508_v17 = vsel %vm7086_vm2, %v1503_v5, %v1507_v53  ;;  %v7215_v19 = vpack.c.bf16 %v383_v6, %v383_v6  ;;  %4602 = vmatmul.mubr.bf16.gmra.mrb[4].mxu0 %v6866_v61  ;;  %v769_v21 = vshrl.u32 %v6088_v10, 16  ;;  %v772_v22 = vshll.u32 %v6088_v10, 16  ;;  %v6875_v61 = vld [vmem:[%s8753_s3 + $0x90] sm:$0xff]   ;;  %v904_v62 = vld [vmem:[#allocation2 + $0x24] sm:$0xf] }
  0x46   : > { %v5792_v11 = vcombine.low %v1498_v15, %v1508_v17  ;;  %v777_v23 = vshrl.u32 %v6089_v12, 16  ;;  %v780_v27 = vshll.u32 %v6089_v12, 16  ;;  %v7227_v30 = vpack.c.bf16 %v384_v13, %v384_v13  ;;  %v6876_v12 = vld [vmem:[%s8753_s3 + $0xd8] sm:$0xff]  }
  0x47   : > { %v599_v31 = vshrl.u32 %v7215_v19, 16  ;;  %v602_v34 = vshll.u32 %v7215_v19, 16  ;;  %v771_v36 = vrot.slane %v769_v21, 7  ;;  %v7231_v38 = vpack.c.bf16 %v405_v18, %v405_v18  ;;  %v6878_v19 = vld [vmem:[%s8753_s3 + $0x98] sm:$0xff]  }
  0x48   : > { %4689 = vmatprep.mubr.bf16.mxu1 %v5792_v11  ;;  %v1153_v35 = vld [vmem:[#allocation2 + $0x1c] sm:$0xf]  ;;  %v779_v37 = vrot.slane %v777_v23, 7  ;;  %v6142_v39 = vunpack.c.l.bf16 %v7206_v3  ;;  %v6143_v44 = vunpack.c.h.bf16 %v7206_v3  ;;  %v6186_v45 = vunpack.c.l.bf16 %v7219_v20 }
  0x49   : > { %4690 = vmatmul.mubr.bf16.vlgmr.msra.gmra.mrb[0].mxu1 %v6867_v7  ;;  %v1152_v40 = vld [vmem:[#allocation2 + $0x18] sm:$0xf]  ;;  %v1255_v41 = vshll.u32 %v1153_v35, 16  ;;  %v1259_v42 = vshrl.u32 %v1153_v35, 16  ;;  %v774_v50 = vor.u32 %v772_v22, %v771_v36  ;;  %v775_v51 = vrot.slane %v771_v36, 4 }
  0x4a   : > { %6415 = vmatpush3.bf16.msra.mxu1 %v6868_v8  ;;  %v1154_v47 = vld [vmem:[#allocation2 + $0x20] sm:$0x1]  ;;  %v1246_v48 = vshrl.u32 %v1152_v40, 16  ;;  %v1249_v49 = vshll.u32 %v1152_v40, 16  ;;  %v782_v55 = vor.u32 %v780_v27, %v779_v37  ;;  %v784_v59 = vrot.slane %v779_v37, 4  ;;  %v6873_v23 = vld [vmem:[#allocation2 + $0x18] sm:$0xff]  }
  0x4b   : > { %6416 = vmatprep.subr.bf16.mxu1 %v6870_v26  ;;  %v1257_v52 = vrot.slane %v1255_v41, 5  ;;  %v1261_v53 = vrot.slane %v1259_v42, 4  ;;  %v1265_v54 = vshll.u32 %v1154_v47, 16  ;;  %v975_v60 = vsel %vm7129_vm9, %v774_v50, %v974_v28  ;;  %v981_v27 = vld [vmem:[#allocation2 + $0xa8] sm:$0xf]  ;;  %v6898_v47 = vld [vmem:[%s8753_s3 + $0x158] sm:$0xff]  }
  0x4c   : > { %v1248_v57 = vrot.slane %v1246_v48, 4  ;;  %v1251_v58 = vrot.slane %v1249_v49, 5  ;;  %v783_v1 = vsel %vm7123_vm8, %v775_v51, %v782_v55  ;;  %976 = vst [vmem:[#allocation2 + $0x9c] sm:$0xf] %v975_v60  ;;  %v601_v4 = vrot.slane %v599_v31, 7  ;;  %6532 = vmatprep.subr.bf16.mxu0 %v6898_v47 }
  0x4d   : > { %v1262_v63 = vor.u32 %v1261_v53, %v1257_v52  ;;  %v1267_v0 = vrot.slane %v1265_v54, 5  ;;  %977 = vst [vmem:[#allocation2 + $0xa0] sm:$0xf] %v783_v1  ;;  %v979_v6 = vsel %vm7137_vm10, %v784_v59, %v978_v43  ;;  %v607_v7 = vshrl.u32 %v7227_v30, 16 }
  0x4e   : > { %6417 = vmatpush3.bf16.msra.mxu1 %v6871_v46  ;;  %v1252_v5 = vor.u32 %v1251_v58, %v1248_v57  ;;  %v610_v8 = vshll.u32 %v7227_v30, 16  ;;  %980 = vst [vmem:[#allocation2 + $0xa4] sm:$0x1] %v979_v6  ;;  %v604_v13 = vor.u32 %v602_v34, %v601_v4  ;;  %v605_v3 = vrot.slane %v601_v4, 4  ;;  %v6883_v57 = vld [vmem:[%s8753_s3 + $0xa0] sm:$0xff]   ;;  %v6899_v6 = vld [vmem:[%s8753_s3 + $0x118] sm:$0xff]  }
  0x4f   : > { %v1263_v10 = vrot.slane %v1262_v63, 4  ;;  %6418 = vmatprep.subr.bf16.mxu1 %v6872_v56  ;;  %v406_v15 = vmax.f32 %v7203_v2, 0.0  ;;  %v609_v18 = vrot.slane %v607_v7, 7  ;;  %v786_v11 = vshrl.u32 %v7231_v38, 16  ;;  %6533 = vmatpush3.bf16.msra.mxu0 %v6899_v6 }
  0x50   : > { %v1253_v17 = vrot.slane %v1252_v5, 4  ;;  %v789_v21 = vshll.u32 %v7231_v38, 16  ;;  %v905_v25 = vsel %vm7129_vm9, %v604_v13, %v904_v62  ;;  %v314_v2 = vmul.f32 %v6142_v39, %v7077_v29  ;;  %v6880_v38 = vld [vmem:[%s8753_s3 + $0xe0] sm:$0xff]   ;;  %v985_v5 = vld [vmem:[#allocation2 + $0xb0] sm:$0x1] }
  0x51   : > { %v1268_v22 = vsel %vm7086_vm2, %v1263_v10, %v1267_v0  ;;  %v6091_v26 = vpack.c.bf16 %v406_v15, %v406_v15  ;;  %v612_v30 = vor.u32 %v610_v8, %v609_v18  ;;  %v614_v31 = vrot.slane %v609_v18, 4  ;;  %906 = vst [vmem:[#allocation2 + $0x24] sm:$0xf] %v905_v25  ;;  %v6886_v18 = vld [vmem:[%s8753_s3 + $0xf0] sm:$0xff]  }
  0x52   : > { %v1258_v28 = vsel %vm7086_vm2, %v1253_v17, %v1257_v52  ;;  %6419 = vmatpush3.bf16.msra.mxu1 %v6875_v61  ;;  %v788_v34 = vrot.slane %v786_v11, 7  ;;  %v315_v40 = vmul.f32 %v6143_v44, %v7077_v29  ;;  %v353_v44 = vadd.f32 %v7082_v32, %v314_v2  ;;  %v6884_v61 = vld [vmem:[%s8753_s3 + $0xe8] sm:$0xff]  }
  0x53   : > { %v5782_v35 = vcombine.low %v1258_v28, %v1268_v22  ;;  %6420 = vmatprep.subr.bf16.mxu1 %v6876_v12  ;;  %v794_v36 = vshrl.u32 %v6091_v26, 16  ;;  %v797_v37 = vshll.u32 %v6091_v26, 16  ;;  %v1185_v41 = vld [vmem:[#allocation2 + $0x9c] sm:$0xf]  ;;  %v613_v39 = vsel %vm7123_vm8, %v605_v3, %v612_v30 }
  0x54   : > { %v909_v42 = vsel %vm7137_vm10, %v614_v31, %v908_v14  ;;  %v791_v43 = vor.u32 %v789_v21, %v788_v34  ;;  %v792_v46 = vrot.slane %v788_v34, 4  ;;  %v1186_v48 = vld [vmem:[#allocation2 + $0xa0] sm:$0xf]  ;;  %v1510_v49 = vshrl.u32 %v1185_v41, 16  ;;  %907 = vst [vmem:[#allocation2 + $0x28] sm:$0xf] %v613_v39 }
  0x55   : > { %4609 = vmatprep.mubr.bf16.mxu0 %v5782_v35  ;;  %v1513_v50 = vshll.u32 %v1185_v41, 16  ;;  %910 = vst [vmem:[#allocation2 + $0x2c] sm:$0x1] %v909_v42  ;;  %v354_v51 = vadd.f32 %v7082_v32, %v315_v40  ;;  %v1187_v52 = vld [vmem:[#allocation2 + $0xa4] sm:$0x1]  ;;  %v1519_v53 = vshll.u32 %v1186_v48, 16  ;;  %v6187_v28 = vunpack.c.h.bf16 %v7219_v20 }
  0x56   : > { %v1523_v54 = vshrl.u32 %v1186_v48, 16  ;;  %4610 = vmatmul.mubr.bf16.gmra.mrb[8].mxu0 %v6873_v23  ;;  %6421 = vmatpush3.bf16.msra.mxu1 %v6878_v19  ;;  %v796_v55 = vrot.slane %v794_v36, 7  ;;  %v982_v56 = vsel %vm7129_vm9, %v791_v43, %v981_v27  ;;  %v1512_v58 = vrot.slane %v1510_v49, 4  ;;  %v6885_v19 = vld [vmem:[%s8753_s3 + $0xa8] sm:$0xff]   ;;  %v6874_v34 = vld [vmem:[#allocation2 + $0x9c] sm:$0xff]  }
  0x57   : > { %v1515_v59 = vrot.slane %v1513_v50, 5  ;;  %v1529_v60 = vshll.u32 %v1187_v52, 16  ;;  %983 = vst [vmem:[#allocation2 + $0xa8] sm:$0xf] %v982_v56  ;;  %6422 = vmatprep.subr.bf16.mxu1 %v6880_v38  ;;  %v385_v62 = vmax.f32 %v353_v44, 0.0  ;;  %v1521_v63 = vrot.slane %v1519_v53, 5 }
  0x58   : > { %v1525_v0 = vrot.slane %v1523_v54, 4  ;;  %v799_v1 = vor.u32 %v797_v37, %v796_v55  ;;  %v801_v4 = vrot.slane %v796_v55, 4  ;;  %v1155_v10 = vld [vmem:[#allocation2 + $0x24] sm:$0xf]  ;;  %v386_v12 = vmax.f32 %v354_v51, 0.0  ;;  %v6890_v38 = vld [vmem:[%s8753_s3 + $0xb0] sm:$0xff]  }
  0x59   : > { %v1516_v7 = vor.u32 %v1515_v59, %v1512_v58  ;;  %v1531_v8 = vrot.slane %v1529_v60, 5  ;;  %v6070_v13 = vpack.c.bf16 %v385_v62, %v385_v62  ;;  %v1270_v14 = vshrl.u32 %v1155_v10, 16  ;;  %v911_v56 = vld [vmem:[#allocation2 + $0x30] sm:$0xf] }
  0x5a   : > { %v1526_v3 = vor.u32 %v1525_v0, %v1521_v63  ;;  %v1273_v15 = vshll.u32 %v1155_v10, 16  ;;  %v800_v17 = vsel %vm7123_vm8, %v792_v46, %v799_v1  ;;  %6423 = vmatpush3.bf16.msra.mxu1 %v6883_v57  ;;  %v986_v21 = vsel %vm7137_vm10, %v801_v4, %v985_v5  ;;  %v6893_v5 = vld [vmem:[%s8753_s3 + $0xb8] sm:$0xff]  }
  0x5b   : > { %v1517_v11 = vrot.slane %v1516_v7, 4  ;;  %984 = vst [vmem:[#allocation2 + $0xac] sm:$0xf] %v800_v17  ;;  %6424 = vmatprep.subr.bf16.mxu1 %v6884_v61  ;;  %v7303_v22 = vpack.c.bf16 %v386_v12, %v386_v12  ;;  %v616_v23 = vshrl.u32 %v6070_v13, 16  ;;  %v1156_v26 = vld [vmem:[#allocation2 + $0x28] sm:$0xf]  ;;  %v336_v30 = vmul.f32 %v6186_v45, %v7077_v29 }
  0x5c   : > { %v1527_v25 = vrot.slane %v1526_v3, 4  ;;  %v1157_v27 = vld [vmem:[#allocation2 + $0x2c] sm:$0x1]  ;;  %v1272_v2 = vrot.slane %v1270_v14, 4  ;;  %987 = vst [vmem:[#allocation2 + $0xb0] sm:$0x1] %v986_v21  ;;  %v337_v20 = vmul.f32 %v6187_v28, %v7077_v29 }
  0x5d   : > { %v1522_v31 = vsel %vm7086_vm2, %v1517_v11, %v1521_v63  ;;  %v1275_v35 = vrot.slane %v1273_v15, 5  ;;  %v1279_v36 = vshll.u32 %v1156_v26, 16  ;;  %v1283_v37 = vshrl.u32 %v1156_v26, 16  ;;  %v6892_v45 = vld [vmem:[%s8753_s3 + $0xf8] sm:$0xff]   ;;  %v6895_v3 = vld [vmem:[%s8753_s3 + $0x1c0] sm:$0xff]  }
  0x5e   : > { %v1532_v40 = vsel %vm7086_vm2, %v1527_v25, %v1531_v8  ;;  %v1289_v41 = vshll.u32 %v1157_v27, 16  ;;  %v1188_v39 = vld [vmem:[#allocation2 + $0xa8] sm:$0xf]  ;;  %6425 = vmatpush3.bf16.msra.mxu1 %v6885_v19  ;;  %v618_v42 = vrot.slane %v616_v23, 7  ;;  %vm1757_vm11 = vcmask 1042432  }
  0x5f   : > { %vm1758_vm12 = vcmask 1046532   ;;  %v5793_v43 = vcombine.low %v1522_v31, %v1532_v40  ;;  %v1276_v46 = vor.u32 %v1275_v35, %v1272_v2  ;;  %v1281_v47 = vrot.slane %v1279_v36, 5  ;;  %6426 = vmatprep.subr.bf16.mxu1 %v6886_v18  ;;  %v6881_v8 = vld [vmem:[#allocation2 + $0x24] sm:$0xff]   ;;  %v1661_v28 = vld [vmem:[#allocation2] sm:$0xe] }
  0x60   : > { %v1285_v48 = vrot.slane %v1283_v37, 4  ;;  %v1291_v49 = vrot.slane %v1289_v41, 5  ;;  %v1534_v50 = vshrl.u32 %v1188_v39, 16  ;;  %v1537_v44 = vshll.u32 %v1188_v39, 16  ;;  %vm7345_vm13 = vmor %vm1757_vm11, %vm1758_vm12 }
  0x61   : > { %v619_v51 = vshll.u32 %v6070_v13, 16  ;;  %4697 = vmatprep.mubr.bf16.mxu1 %v5793_v43  ;;  %v1277_v52 = vrot.slane %v1276_v46, 4  ;;  %v622_v54 = vrot.slane %v618_v42, 4  ;;  %v624_v55 = vshrl.u32 %v7303_v22, 16  ;;  %v6275_v13 = vld [vmem:[%s7064_s22 + $0x20] sm:$0xff]  }
  0x62   : > { %v1286_v53 = vor.u32 %v1285_v48, %v1281_v47  ;;  %4698 = vmatmul.mubr.bf16.gmra.mrb[4].mxu1 %v6874_v34  ;;  %v1189_v57 = vld [vmem:[#allocation2 + $0xac] sm:$0xf]  ;;  %v1536_v58 = vrot.slane %v1534_v50, 4  ;;  %v1539_v59 = vrot.slane %v1537_v44, 5  ;;  %v375_v61 = vadd.f32 %v7082_v32, %v336_v30  ;;  %v1662_v30 = vld [vmem:[#allocation2 + $0x4] sm:$0xf] }
  0x63   : > { %v621_v60 = vor.u32 %v619_v51, %v618_v42  ;;  %v1282_v62 = vsel %vm7086_vm2, %v1277_v52, %v1281_v47  ;;  %v1190_v0 = vld [vmem:[#allocation2 + $0xb0] sm:$0x1]  ;;  %v1543_v1 = vshll.u32 %v1189_v57, 16  ;;  %v1547_v4 = vshrl.u32 %v1189_v57, 16  ;;  %6427 = vmatpush3.bf16.msra.mxu1 %v6890_v38  ;;  %v6882_v39 = vld [vmem:[#allocation2 + $0xa8] sm:$0xff]   ;;  %v6903_v46 = vld [vmem:[%s8753_s3 + $0x160] sm:$0xff]  }
  0x64   : > { %v1287_v63 = vrot.slane %v1286_v53, 4  ;;  %v1540_v6 = vor.u32 %v1539_v59, %v1536_v58  ;;  %v1553_v7 = vshll.u32 %v1190_v0, 16  ;;  %v626_v10 = vrot.slane %v624_v55, 7  ;;  %6428 = vmatprep.subr.bf16.mxu1 %v6892_v45  ;;  %v7359_v51 = vld [vmem:[%s8752_s2] ss:$0 sm:$0xff]  ;;  %6534 = vmatprep.subr.bf16.mxu0 %v6903_v46 }
  0x65   : > { %v627_v12 = vshll.u32 %v7303_v22, 16  ;;  %v1545_v15 = vrot.slane %v1543_v1, 5  ;;  %v1549_v17 = vrot.slane %v1547_v4, 4  ;;  %v912_v19 = vsel %vm7129_vm9, %v621_v60, %v911_v56  ;;  %v915_v22 = vld [vmem:[#allocation2 + $0x38] sm:$0x1] }
  0x66   : > { %v1292_v14 = vsel %vm7086_vm2, %v1287_v63, %v1291_v49  ;;  %v1541_v11 = vrot.slane %v1540_v6, 4  ;;  %v1555_v21 = vrot.slane %v1553_v7, 5  ;;  %913 = vst [vmem:[#allocation2 + $0x30] sm:$0xf] %v912_v19  ;;  %v631_v26 = vrot.slane %v626_v10, 4 }
  0x67   : > { %v5783_v18 = vcombine.low %v1282_v62, %v1292_v14  ;;  %v629_v23 = vor.u32 %v627_v12, %v626_v10  ;;  %v1550_v25 = vor.u32 %v1549_v17, %v1545_v15  ;;  %v376_v27 = vadd.f32 %v7082_v32, %v337_v20  ;;  %6429 = vmatpush3.bf16.msra.mxu1 %v6893_v5  ;;  %v1663_v53 = vld [vmem:[#allocation2 + $0x8] sm:$0x1]  ;;  %v988_v59 = vld [vmem:[#allocation2 + $0xb4] sm:$0xf]  ;;  %v992_v63 = vld [vmem:[#allocation2 + $0xbc] sm:$0x1] }
  0x68   : > { %v407_v2 = vmax.f32 %v375_v61, 0.0  ;;  %v1546_v31 = vsel %vm7086_vm2, %v1541_v11, %v1545_v15  ;;  %v6146_v35 = vunpack.c.l.bf16 %v6275_v13  ;;  %v6147_v36 = vunpack.c.h.bf16 %v6275_v13  ;;  %6638 = vmatprep.subr.bf16.mxu1 %v6895_v3 }
  0x69   : > { %4617 = vmatprep.mubr.bf16.mxu0 %v5783_v18  ;;  %v630_v34 = vsel %vm7123_vm8, %v622_v54, %v629_v23  ;;  %v1551_v37 = vrot.slane %v1550_v25, 4  ;;  %v916_v32 = vsel %vm7137_vm10, %v631_v26, %v915_v22  ;;  %v408_v38 = vmax.f32 %v376_v27, 0.0  ;;  %v6276_v26 = vld [vmem:[%s7064_s22 + $0x28] sm:$0xff]  }
  0x6a   : > { %4618 = vmatmul.mubr.bf16.gmra.mrb[12].mxu0 %v6881_v8  ;;  %914 = vst [vmem:[#allocation2 + $0x34] sm:$0xf] %v630_v34  ;;  %v6092_v40 = vpack.c.bf16 %v407_v2, %v407_v2  ;;  %917 = vst [vmem:[#allocation2 + $0x38] sm:$0x1] %v916_v32  ;;  %v316_v42 = vmul.f32 %v6146_v35, %v7077_v29  ;;  %v317_v20 = vmul.f32 %v6147_v36, %v7077_v29  ;;  %v6906_v8 = vld [vmem:[%s8753_s3 + $0x120] sm:$0xff]  }
  0x6b   : > { %v5796_v45 = vrot.slane %v1661_v28, 9  ;;  %v1762_v43 = vrot.slane %v1662_v30, 5  ;;  %v1556_v47 = vsel %vm7086_vm2, %v1551_v37, %v1555_v21  ;;  %v6093_v48 = vpack.c.bf16 %v408_v38, %v408_v38  ;;  %6535 = vmatpush3.bf16.msra.mxu0 %v6906_v8  ;;  %v1664_v34 = vld [vmem:[#allocation2 + $0xc] sm:$0xe]  ;;  %v1665_v38 = vld [vmem:[#allocation2 + $0x10] sm:$0xf] }
  0x6c   : > { %v803_v49 = vshrl.u32 %v6092_v40, 16  ;;  %v806_v50 = vshll.u32 %v6092_v40, 16  ;;  %v5794_v44 = vcombine.low %v1546_v31, %v1556_v47  ;;  %v355_v29 = vadd.f32 %v7359_v51, %v316_v42  ;;  %v918_v31 = vld [vmem:[#allocation2 + $0x3c] sm:$0xf] }
  0x6d   : > { %v356_v52 = vadd.f32 %v7359_v51, %v317_v20  ;;  %v7365_v54 = vsel %vm7345_vm13, %v5796_v45, %v1762_v43  ;;  %v1158_v55 = vld [vmem:[#allocation2 + $0x30] sm:$0xf]  ;;  %v811_v57 = vshrl.u32 %v6093_v48, 16  ;;  %v814_v58 = vshll.u32 %v6093_v48, 16  ;;  %v1666_v45 = vld [vmem:[#allocation2 + $0x14] sm:$0x1] }
  0x6e   : > { %v805_v56 = vrot.slane %v803_v49, 7  ;;  %v1764_v60 = vrot.slane %v1762_v43, 4  ;;  %4705 = vmatprep.mubr.bf16.mxu1 %v5794_v44  ;;  %v1294_v61 = vshrl.u32 %v1158_v55, 16  ;;  %v1297_v62 = vshll.u32 %v1158_v55, 16 }
  0x6f   : > { %v387_v0 = vmax.f32 %v355_v29, 0.0  ;;  %v388_v1 = vmax.f32 %v356_v52, 0.0  ;;  %4706 = vmatmul.mubr.bf16.gmra.mrb[8].mxu1 %v6882_v39  ;;  %v813_v6 = vrot.slane %v811_v57, 7  ;;  %v1765_v7 = vrot.slane %v1663_v53, 5  ;;  %v922_v29 = vld [vmem:[#allocation2 + $0x44] sm:$0x1] }
  0x70   : > { %v808_v4 = vor.u32 %v806_v50, %v805_v56  ;;  %v809_v5 = vrot.slane %v805_v56, 4  ;;  %v1296_v12 = vrot.slane %v1294_v61, 4  ;;  %v1299_v13 = vrot.slane %v1297_v62, 5 }
  0x71   : > { %v1159_v10 = vld [vmem:[#allocation2 + $0x34] sm:$0xf]  ;;  %v6072_v3 = vpack.c.bf16 %v387_v0, %v387_v0  ;;  %v6073_v14 = vpack.c.bf16 %v388_v1, %v388_v1  ;;  %v1160_v15 = vld [vmem:[#allocation2 + $0x38] sm:$0x1]  ;;  %v816_v18 = vor.u32 %v814_v58, %v813_v6  ;;  %v818_v11 = vrot.slane %v813_v6, 4  ;;  %v6911_v1 = vld [vmem:[%s8753_s3 + $0x128] sm:$0xff]  }
  0x72   : > { %v1303_v17 = vshll.u32 %v1159_v10, 16  ;;  %v1307_v19 = vshrl.u32 %v1159_v10, 16  ;;  %v1300_v21 = vor.u32 %v1299_v13, %v1296_v12  ;;  %v1313_v23 = vshll.u32 %v1160_v15, 16  ;;  %v6888_v50 = vld [vmem:[#allocation2 + $0x30] sm:$0xff]  }
  0x73   : > { %v989_v22 = vsel %vm7129_vm9, %v808_v4, %v988_v59  ;;  %v633_v25 = vshrl.u32 %v6072_v3, 16  ;;  %v817_v28 = vsel %vm7123_vm8, %v809_v5, %v816_v18  ;;  %v993_v30 = vsel %vm7137_vm10, %v818_v11, %v992_v63  ;;  %v6910_v59 = vld [vmem:[%s8753_s3 + $0x168] sm:$0xff]   ;;  %v7395_v63 = vld [vmem:[%s8751_s1] ss:$0 sm:$0xff] }
  0x74   : > { %v1305_v27 = vrot.slane %v1303_v17, 5  ;;  %v1309_v2 = vrot.slane %v1307_v19, 4  ;;  %990 = vst [vmem:[#allocation2 + $0xb4] sm:$0xf] %v989_v22  ;;  %v1301_v35 = vrot.slane %v1300_v21, 4  ;;  %v1315_v36 = vrot.slane %v1313_v23, 5  ;;  %6536 = vmatprep.subr.bf16.mxu0 %v6910_v59 }
  0x75   : > { %991 = vst [vmem:[#allocation2 + $0xb8] sm:$0xf] %v817_v28  ;;  %994 = vst [vmem:[#allocation2 + $0xbc] sm:$0x1] %v993_v30  ;;  %v635_v37 = vrot.slane %v633_v25, 7  ;;  %v636_v32 = vshll.u32 %v6072_v3, 16  ;;  %v7379_v20 = vsel %vm7345_vm13, %v1764_v60, %v1765_v7  ;;  %v6150_v52 = vunpack.c.l.bf16 %v6276_v26  ;;  %6537 = vmatpush3.bf16.msra.mxu0 %v6911_v1 }
  0x76   : > { %v1310_v40 = vor.u32 %v1309_v2, %v1305_v27  ;;  %v641_v39 = vshrl.u32 %v6073_v14, 16  ;;  %v644_v42 = vshll.u32 %v6073_v14, 16  ;;  %v1306_v43 = vsel %vm7086_vm2, %v1301_v35, %v1305_v27  ;;  %v6277_v21 = vld [vmem:[%s7064_s22 + $0x30] sm:$0xff]   ;;  %v7417_v27 = vld [vmem:[#allocation2 + $0x18] sm:$0xe] }
  0x77   : > { %v638_v46 = vor.u32 %v636_v32, %v635_v37  ;;  %v639_v47 = vrot.slane %v635_v37, 4  ;;  %v5812_v48 = vcombine.low %v7365_v54, %v7379_v20  ;;  %v6151_v53 = vunpack.c.h.bf16 %v6276_v26 }
  0x78   : > { %v1311_v49 = vrot.slane %v1310_v40, 4  ;;  %v643_v44 = vrot.slane %v641_v39, 7  ;;  %v5797_v56 = vrot.slane %v1664_v34, 9  ;;  %v1769_v57 = vrot.slane %v1665_v38, 5 }
  0x79   : > { %v919_v55 = vsel %vm7129_vm9, %v638_v46, %v918_v31  ;;  %v1772_v58 = vrot.slane %v1666_v45, 5  ;;  %v318_v0 = vmul.f32 %v7395_v63, %v6150_v52  ;;  %v319_v6 = vmul.f32 %v7395_v63, %v6151_v53  ;;  %v6917_v52 = vld [vmem:[%s8753_s3 + $0x170] sm:$0xff]  }
  0x7a   : > { %v1316_v60 = vsel %vm7086_vm2, %v1311_v49, %v1315_v36  ;;  %v646_v61 = vor.u32 %v644_v42, %v643_v44  ;;  %v648_v62 = vrot.slane %v643_v44, 4  ;;  %920 = vst [vmem:[#allocation2 + $0x3c] sm:$0xf] %v919_v55  ;;  %v7404_v7 = vsel %vm7345_vm13, %v5797_v56, %v1769_v57  ;;  %6538 = vmatprep.subr.bf16.mxu0 %v6917_v52 }
  0x7b   : > { %v5784_v4 = vcombine.low %v1306_v43, %v1316_v60  ;;  %v1191_v5 = vld [vmem:[#allocation2 + $0xb4] sm:$0xf]  ;;  %v1771_v8 = vrot.slane %v1769_v57, 4  ;;  %v357_v11 = vadd.f32 %v7359_v51, %v318_v0  ;;  %v358_v25 = vadd.f32 %v7359_v51, %v319_v6  ;;  %v1668_v60 = vld [vmem:[#allocation2 + $0x1c] sm:$0xf] }
  0x7c   : > { %v1192_v10 = vld [vmem:[#allocation2 + $0xb8] sm:$0xf]  ;;  %v1193_v12 = vld [vmem:[#allocation2 + $0xbc] sm:$0x1]  ;;  %v1558_v13 = vshrl.u32 %v1191_v5, 16  ;;  %v1561_v3 = vshll.u32 %v1191_v5, 16  ;;  %v647_v14 = vsel %vm7123_vm8, %v639_v47, %v646_v61  ;;  %v923_v15 = vsel %vm7137_vm10, %v648_v62, %v922_v29 }
  0x7d   : > { %4625 = vmatprep.mubr.bf16.mxu0 %v5784_v4  ;;  %v1567_v17 = vshll.u32 %v1192_v10, 16  ;;  %v1571_v19 = vshrl.u32 %v1192_v10, 16  ;;  %v1577_v18 = vshll.u32 %v1193_v12, 16  ;;  %921 = vst [vmem:[#allocation2 + $0x40] sm:$0xf] %v647_v14  ;;  %v7415_v26 = vsel %vm7345_vm13, %v1771_v8, %v1772_v58  ;;  %v6889_v62 = vld [vmem:[#allocation2 + $0xb4] sm:$0xff]  }
  0x7e   : > { %924 = vst [vmem:[#allocation2 + $0x44] sm:$0x1] %v923_v15  ;;  %v1560_v23 = vrot.slane %v1558_v13, 4  ;;  %v1563_v22 = vrot.slane %v1561_v3, 5  ;;  %4626 = vmatmul.mubr.bf16.gmra.mrb[16].mxu0 %v6888_v50  ;;  %v389_v31 = vmax.f32 %v357_v11, 0.0  ;;  %v390_v35 = vmax.f32 %v358_v25, 0.0 }
  0x7f   : > { %v1569_v2 = vrot.slane %v1567_v17, 5  ;;  %v1573_v28 = vrot.slane %v1571_v19, 4  ;;  %v1579_v30 = vrot.slane %v1577_v18, 5  ;;  %v5813_v36 = vcombine.low %v7404_v7, %v7415_v26  ;;  %v925_v5 = vld [vmem:[#allocation2 + $0x48] sm:$0xf]  ;;  %v6894_v10 = vld [vmem:[#allocation2 + $0xc] sm:$0xff]  }
  0x80   : > { %v1564_v34 = vor.u32 %v1563_v22, %v1560_v23  ;;  %v6154_v37 = vunpack.c.l.bf16 %v6277_v21  ;;  %v6074_v40 = vpack.c.bf16 %v389_v31, %v389_v31  ;;  %v6155_v39 = vunpack.c.h.bf16 %v6277_v21  ;;  %v6919_v3 = vld [vmem:[%s8753_s3 + $0x130] sm:$0xff]   ;;  %v1669_v25 = vld [vmem:[#allocation2 + $0x20] sm:$0x1] }
  0x81   : > { %v1574_v32 = vor.u32 %v1573_v28, %v1569_v2  ;;  %v1161_v38 = vld [vmem:[#allocation2 + $0x3c] sm:$0xf]  ;;  %v5798_v42 = vrot.slane %v7417_v27, 9  ;;  %v6075_v47 = vpack.c.bf16 %v390_v35, %v390_v35  ;;  %v929_v18 = vld [vmem:[#allocation2 + $0x50] sm:$0x1]  ;;  %6539 = vmatpush3.bf16.msra.mxu0 %v6919_v3  ;;  %v1779_v52 = vrot.slane %v1669_v25, 5 }
  0x82   : > { %v1565_v45 = vrot.slane %v1564_v34, 4  ;;  %v1318_v43 = vshrl.u32 %v1161_v38, 16  ;;  %v1321_v46 = vshll.u32 %v1161_v38, 16  ;;  %v650_v50 = vshrl.u32 %v6074_v40, 16  ;;  %v1670_v38 = vld [vmem:[#allocation2 + $0x24] sm:$0xe] }
  0x83   : > { %v1575_v49 = vrot.slane %v1574_v32, 4  ;;  %v653_v44 = vshll.u32 %v6074_v40, 16  ;;  %v320_v29 = vmul.f32 %v7395_v63, %v6154_v37  ;;  %v321_v59 = vmul.f32 %v7395_v63, %v6155_v39  ;;  %v6278_v32 = vld [vmem:[%s7064_s22 + $0x38] sm:$0xff]   ;;  %v6907_v25 = vld [vmem:[%s8753_s3 + $0x188] sm:$0xff]  }
  0x84   : > { %v1570_v53 = vsel %vm7086_vm2, %v1565_v45, %v1569_v2  ;;  %v1162_v55 = vld [vmem:[#allocation2 + $0x40] sm:$0xf]  ;;  %v1320_v57 = vrot.slane %v1318_v43, 4  ;;  %v1323_v58 = vrot.slane %v1321_v46, 5  ;;  %v652_v12 = vrot.slane %v650_v50, 7  ;;  %v6924_v46 = vld [vmem:[%s8753_s3 + $0x178] sm:$0xff]  }
  0x85   : > { %v1163_v56 = vld [vmem:[#allocation2 + $0x44] sm:$0x1]  ;;  %v1580_v61 = vsel %vm7086_vm2, %v1575_v49, %v1579_v30  ;;  %v1327_v0 = vshll.u32 %v1162_v55, 16  ;;  %v1331_v1 = vshrl.u32 %v1162_v55, 16  ;;  %v658_v13 = vshrl.u32 %v6075_v47, 16  ;;  %v6896_v55 = vld [vmem:[#allocation2 + $0x3c] sm:$0xff]   ;;  %6540 = vmatprep.subr.bf16.mxu0 %v6924_v46 }
  0x86   : > { %v1337_v4 = vshll.u32 %v1163_v56, 16  ;;  %v5795_v6 = vcombine.low %v1570_v53, %v1580_v61  ;;  %v1324_v8 = vor.u32 %v1323_v58, %v1320_v57  ;;  %v661_v19 = vshll.u32 %v6075_v47, 16  ;;  %v6897_v47 = vld [vmem:[%s8753_s3 + $0x180] sm:$0xff]  }
  0x87   : > { %v1329_v14 = vrot.slane %v1327_v0, 5  ;;  %v1333_v15 = vrot.slane %v1331_v1, 4  ;;  %v655_v21 = vor.u32 %v653_v44, %v652_v12  ;;  %v656_v23 = vrot.slane %v652_v12, 4  ;;  %v6900_v44 = vld [vmem:[#allocation2 + $0x18] sm:$0xff]   ;;  %v7462_v1 = vld [vmem:[%s7064_s22 + $0x40] sm:$0xff]   ;;  %v6904_v12 = vld [vmem:[%s8753_s3 + $0x1c8] sm:$0xff]  }
  0x88   : > { %v1339_v17 = vrot.slane %v1337_v4, 5  ;;  %4713 = vmatprep.mubr.bf16.mxu1 %v5795_v6  ;;  %v1325_v11 = vrot.slane %v1324_v8, 4  ;;  %v660_v22 = vrot.slane %v658_v13, 7  ;;  %v359_v2 = vadd.f32 %v7359_v51, %v320_v29  ;;  %v6925_v4 = vld [vmem:[%s8753_s3 + $0x138] sm:$0xff]  }
  0x89   : > { %4714 = vmatmul.mubr.bf16.gmra.mrb[12].mxu1 %v6889_v62  ;;  %v1334_v27 = vor.u32 %v1333_v15, %v1329_v14  ;;  %v360_v28 = vadd.f32 %v7359_v51, %v321_v59  ;;  %v1776_v30 = vrot.slane %v1668_v60, 5  ;;  %v926_v37 = vsel %vm7129_vm9, %v655_v21, %v925_v5  ;;  %v1672_v59 = vld [vmem:[#allocation2 + $0x2c] sm:$0x1]  ;;  %6541 = vmatpush3.bf16.msra.mxu0 %v6925_v4 }
  0x8a   : > { %v1330_v31 = vsel %vm7086_vm2, %v1325_v11, %v1329_v14  ;;  %4754 = vmatprep.mubr.bf16.mxu1 %v6894_v10  ;;  %v663_v34 = vor.u32 %v661_v19, %v660_v22  ;;  %v665_v35 = vrot.slane %v660_v22, 4  ;;  %927 = vst [vmem:[#allocation2 + $0x48] sm:$0xf] %v926_v37  ;;  %v391_v39 = vmax.f32 %v359_v2, 0.0 }
  0x8b   : > { %v1335_v40 = vrot.slane %v1334_v27, 4  ;;  %v392_v45 = vmax.f32 %v360_v28, 0.0  ;;  %v7443_v43 = vsel %vm7345_vm13, %v5798_v42, %v1776_v30  ;;  %v1778_v29 = vrot.slane %v1776_v30, 4  ;;  %v1671_v42 = vld [vmem:[#allocation2 + $0x28] sm:$0xf] }
  0x8c   : > { %v664_v49 = vsel %vm7123_vm8, %v656_v23, %v663_v34  ;;  %v930_v50 = vsel %vm7137_vm10, %v665_v35, %v929_v18  ;;  %v6076_v56 = vpack.c.bf16 %v391_v39, %v391_v39  ;;  %v6158_v58 = vunpack.c.l.bf16 %v6278_v32  ;;  %v932_v18 = vld [vmem:[#allocation2 + $0x54] sm:$0xf]  ;;  %v6929_v23 = vld [vmem:[%s8753_s3 + $0x200] sm:$0xff]   ;;  %v936_v34 = vld [vmem:[#allocation2 + $0x5c] sm:$0x1] }
  0x8d   : > { %v1340_v53 = vsel %vm7086_vm2, %v1335_v40, %v1339_v17  ;;  %928 = vst [vmem:[#allocation2 + $0x4c] sm:$0xf] %v664_v49  ;;  %931 = vst [vmem:[#allocation2 + $0x50] sm:$0x1] %v930_v50  ;;  %v6077_v57 = vpack.c.bf16 %v392_v45, %v392_v45  ;;  %v7459_v61 = vsel %vm7345_vm13, %v1778_v29, %v1779_v52  ;;  %v6159_v62 = vunpack.c.h.bf16 %v6278_v32  ;;  %v6913_v35 = vld [vmem:[%s8753_s3 + $0x1d0] sm:$0xff]  }
  0x8e   : > { %v5785_v60 = vcombine.low %v1330_v31, %v1340_v53  ;;  %v5799_v0 = vrot.slane %v1670_v38, 9  ;;  %v667_v5 = vshrl.u32 %v6076_v56, 16  ;;  %v670_v6 = vshll.u32 %v6076_v56, 16  ;;  %6774 = vmatprep.subr.bf16.mxu0 %v6929_v23  ;;  %v6915_v29 = vld [vmem:[%s8753_s3 + $0x190] sm:$0xff]   ;;  %v6928_v23 = vld [vmem:[%s8753_s3 + $0x1e0] sm:$0xff]  }
  0x8f   : > { %v675_v8 = vshrl.u32 %v6077_v57, 16  ;;  %v678_v10 = vshll.u32 %v6077_v57, 16  ;;  %v5814_v13 = vcombine.low %v7443_v43, %v7459_v61  ;;  %v322_v3 = vmul.f32 %v7395_v63, %v6158_v58  ;;  %v1673_v56 = vld [vmem:[#allocation2 + $0x30] sm:$0xe]  ;;  %v1675_v43 = vld [vmem:[#allocation2 + $0x38] sm:$0x1] }
  0x90   : > { %4633 = vmatprep.mubr.bf16.mxu0 %v5785_v60  ;;  %v323_v14 = vmul.f32 %v7395_v63, %v6159_v62  ;;  %v1783_v15 = vrot.slane %v1671_v42, 5  ;;  %v669_v17 = vrot.slane %v667_v5, 7  ;;  %v1786_v11 = vrot.slane %v1672_v59, 5  ;;  %v1674_v62 = vld [vmem:[#allocation2 + $0x34] sm:$0xf] }
  0x91   : > { %4634 = vmatmul.mubr.bf16.gmra.mrb[20].mxu0 %v6896_v55  ;;  %4755 = vmatmul.mubr.bf16.vlgmr.msra.gmra.mrb[16].mxu1 %v5812_v48  ;;  %v677_v19 = vrot.slane %v675_v8, 7  ;;  %v6162_v21 = vunpack.c.l.bf16 %v7462_v1  ;;  %v1164_v22 = vld [vmem:[#allocation2 + $0x48] sm:$0xf]  ;;  %v361_v54 = vadd.f32 %v7359_v51, %v322_v3  ;;  %v6163_v39 = vunpack.c.h.bf16 %v7462_v1  ;;  %v6938_v61 = vld [vmem:[%s8753_s3 + $0x1f0] sm:$0xff]  }
  0x92   : > { %6639 = vmatpush3.bf16.msra.mxu1 %v6897_v47  ;;  %4762 = vmatprep.mubr.bf16.mxu1 %v6900_v44  ;;  %v362_v20 = vadd.f32 %v7359_v51, %v323_v14  ;;  %v7488_v48 = vsel %vm7345_vm13, %v5799_v0, %v1783_v15  ;;  %v1785_v27 = vrot.slane %v1783_v15, 4  ;;  %v1342_v2 = vshrl.u32 %v1164_v22, 16  ;;  %v6902_v44 = vld [vmem:[#allocation2 + $0x24] sm:$0xff]   ;;  %v6921_v0 = vld [vmem:[%s8753_s3 + $0x1d8] sm:$0xff]  }
  0x93   : > { %v1345_v28 = vshll.u32 %v1164_v22, 16  ;;  %v672_v30 = vor.u32 %v670_v6, %v669_v17  ;;  %v673_v31 = vrot.slane %v669_v17, 4  ;;  %6640 = vmatprep.subr.bf16.mxu1 %v6904_v12  ;;  %v680_v38 = vor.u32 %v678_v10, %v677_v19  ;;  %v6923_v14 = vld [vmem:[%s8753_s3 + $0x198] sm:$0xff]  }
  0x94   : > { %v1165_v37 = vld [vmem:[#allocation2 + $0x4c] sm:$0xf]  ;;  %v1166_v32 = vld [vmem:[#allocation2 + $0x50] sm:$0x1]  ;;  %v7495_v40 = vsel %vm7345_vm13, %v1785_v27, %v1786_v11  ;;  %v324_v45 = vmul.f32 %v7395_v63, %v6162_v21  ;;  %v1344_v46 = vrot.slane %v1342_v2, 4  ;;  %v682_v53 = vrot.slane %v677_v19, 4 }
  0x95   : > { %v1347_v47 = vrot.slane %v1345_v28, 5  ;;  %v1351_v49 = vshll.u32 %v1165_v37, 16  ;;  %v1355_v50 = vshrl.u32 %v1165_v37, 16  ;;  %v1361_v52 = vshll.u32 %v1166_v32, 16  ;;  %v7524_v21 = vld [vmem:[%s7064_s22 + $0x48] sm:$0xff]   ;;  %v6930_v37 = vld [vmem:[%s8753_s3 + $0x1a0] sm:$0xff]  }
  0x96   : > { %v681_v42 = vsel %vm7123_vm8, %v673_v31, %v680_v38  ;;  %v933_v55 = vsel %vm7129_vm9, %v672_v30, %v932_v18  ;;  %6641 = vmatpush3.bf16.msra.mxu1 %v6907_v25  ;;  %v393_v60 = vmax.f32 %v361_v54, 0.0  ;;  %v937_v4 = vsel %vm7137_vm10, %v682_v53, %v936_v34  ;;  %v6908_v54 = vld [vmem:[#allocation2 + $0x30] sm:$0xff]   ;;  %v6901_v28 = vld [vmem:[#allocation2 + $0x48] sm:$0xff]   ;;  %v939_v31 = vld [vmem:[#allocation2 + $0x60] sm:$0xf] }
  0x97   : > { %v1348_v57 = vor.u32 %v1347_v47, %v1344_v46  ;;  %v1353_v58 = vrot.slane %v1351_v49, 5  ;;  %v1357_v59 = vrot.slane %v1355_v50, 4  ;;  %934 = vst [vmem:[#allocation2 + $0x54] sm:$0xf] %v933_v55  ;;  %935 = vst [vmem:[#allocation2 + $0x58] sm:$0xf] %v681_v42  ;;  %6642 = vmatprep.subr.bf16.mxu1 %v6913_v35  ;;  %v5815_v6 = vcombine.low %v7488_v48, %v7495_v40 }
  0x98   : > { %v1363_v1 = vrot.slane %v1361_v52, 5  ;;  %v394_v5 = vmax.f32 %v362_v20, 0.0  ;;  %938 = vst [vmem:[#allocation2 + $0x5c] sm:$0x1] %v937_v4  ;;  %v6078_v12 = vpack.c.bf16 %v393_v60, %v393_v60  ;;  %v325_v3 = vmul.f32 %v7395_v63, %v6163_v39  ;;  %v6933_v32 = vld [vmem:[%s8753_s3 + $0x1e8] sm:$0xff]  }
  0x99   : > { %v1349_v8 = vrot.slane %v1348_v57, 4  ;;  %v1358_v10 = vor.u32 %v1357_v59, %v1353_v58  ;;  %4763 = vmatmul.mubr.bf16.gmra.mrb[20].mxu1 %v5813_v36  ;;  %v363_v17 = vadd.f32 %v7359_v51, %v324_v45  ;;  %v5800_v19 = vrot.slane %v1673_v56, 9  ;;  %v943_v42 = vld [vmem:[#allocation2 + $0x68] sm:$0x1] }
  0x9a   : > { %4770 = vmatprep.mubr.bf16.mxu1 %v6902_v44  ;;  %v6079_v15 = vpack.c.bf16 %v394_v5, %v394_v5  ;;  %v1790_v18 = vrot.slane %v1674_v62, 5  ;;  %6643 = vmatpush3.bf16.msra.mxu1 %v6915_v29  ;;  %v684_v36 = vshrl.u32 %v6078_v12, 16  ;;  %v687_v11 = vshll.u32 %v6078_v12, 16 }
  0x9b   : > { %v1354_v7 = vsel %vm7086_vm2, %v1349_v8, %v1353_v58  ;;  %v1359_v26 = vrot.slane %v1358_v10, 4  ;;  %6644 = vmatprep.subr.bf16.mxu1 %v6921_v0  ;;  %v364_v20 = vadd.f32 %v7359_v51, %v325_v3  ;;  %v395_v27 = vmax.f32 %v363_v17, 0.0  ;;  %v6935_v10 = vld [vmem:[%s8753_s3 + $0x1a8] sm:$0xff]  }
  0x9c   : > { %v692_v22 = vshrl.u32 %v6079_v15, 16  ;;  %v695_v25 = vshll.u32 %v6079_v15, 16  ;;  %v686_v30 = vrot.slane %v684_v36, 7  ;;  %v7534_v34 = vsel %vm7345_vm13, %v5800_v19, %v1790_v18 }
  0x9d   : > { %v1364_v2 = vsel %vm7086_vm2, %v1359_v26, %v1363_v1  ;;  %v7536_v35 = vrot.slane %v1790_v18, 4  ;;  %v6080_v46 = vpack.c.bf16 %v395_v27, %v395_v27  ;;  %v6166_v47 = vunpack.c.l.bf16 %v7524_v21 }
  0x9e   : > { %v5786_v38 = vcombine.low %v1354_v7, %v1364_v2  ;;  %v1167_v39 = vld [vmem:[#allocation2 + $0x54] sm:$0xf]  ;;  %v1168_v45 = vld [vmem:[#allocation2 + $0x58] sm:$0xf]  ;;  %v6167_v49 = vunpack.c.h.bf16 %v7524_v21  ;;  %6645 = vmatpush3.bf16.msra.mxu1 %v6923_v14  ;;  %v689_v55 = vor.u32 %v687_v11, %v686_v30  ;;  %v690_v56 = vrot.slane %v686_v30, 4 }
  0x9f   : > { %v1366_v50 = vshrl.u32 %v1167_v39, 16  ;;  %v1369_v44 = vshll.u32 %v1167_v39, 16  ;;  %v1375_v29 = vshll.u32 %v1168_v45, 16  ;;  %v1379_v52 = vshrl.u32 %v1168_v45, 16  ;;  %6646 = vmatprep.subr.bf16.mxu1 %v6928_v23  ;;  %v1169_v53 = vld [vmem:[#allocation2 + $0x5c] sm:$0x1] }
  0xa0   : > { %4641 = vmatprep.mubr.bf16.mxu0 %v5786_v38  ;;  %v694_v57 = vrot.slane %v692_v22, 7  ;;  %v396_v58 = vmax.f32 %v364_v20, 0.0  ;;  %v1385_v1 = vshll.u32 %v1169_v53, 16  ;;  %v940_v8 = vsel %vm7129_vm9, %v689_v55, %v939_v31  ;;  %v946_v7 = vld [vmem:[#allocation2 + $0x6c] sm:$0xf]  ;;  %v6912_v23 = vld [vmem:[#allocation2 + $0x3c] sm:$0xff]  }
  0xa1   : > { %4642 = vmatmul.mubr.bf16.gmra.mrb[24].mxu0 %v6901_v28  ;;  %v1368_v59 = vrot.slane %v1366_v50, 4  ;;  %v1371_v60 = vrot.slane %v1369_v44, 5  ;;  %v1377_v62 = vrot.slane %v1375_v29, 5  ;;  %v1381_v0 = vrot.slane %v1379_v52, 4  ;;  %4771 = vmatmul.mubr.bf16.gmra.mrb[24].mxu1 %v5814_v13  ;;  %941 = vst [vmem:[#allocation2 + $0x60] sm:$0xf] %v940_v8 }
  0xa2   : > { %v697_v4 = vor.u32 %v695_v25, %v694_v57  ;;  %v699_v5 = vrot.slane %v694_v57, 4  ;;  %4778 = vmatprep.mubr.bf16.mxu1 %v6908_v54  ;;  %6647 = vmatpush3.bf16.msra.mxu1 %v6930_v37  ;;  %v6081_v14 = vpack.c.bf16 %v396_v58, %v396_v58  ;;  %v701_v15 = vshrl.u32 %v6080_v46, 16  ;;  %v7562_v22 = vld [vmem:[%s7064_s22 + $0x50] sm:$0xff]   ;;  %v1676_v2 = vld [vmem:[#allocation2 + $0x3c] sm:$0xe] }
  0xa3   : > { %v1372_v12 = vor.u32 %v1371_v60, %v1368_v59  ;;  %v1382_v3 = vor.u32 %v1381_v0, %v1377_v62  ;;  %6648 = vmatprep.subr.bf16.mxu1 %v6933_v32  ;;  %v1387_v13 = vrot.slane %v1385_v1, 5  ;;  %v704_v18 = vshll.u32 %v6080_v46, 16  ;;  %v7566_v28 = vld [vmem:[#allocation2 + $0x40] sm:$0xf]  ;;  %v6905_v37 = vld [vmem:[#allocation2 + $0x54] sm:$0xff]  }
  0xa4   : > { %v698_v17 = vsel %vm7123_vm8, %v690_v56, %v697_v4  ;;  %v944_v19 = vsel %vm7137_vm10, %v699_v5, %v943_v42  ;;  %v703_v11 = vrot.slane %v701_v15, 7  ;;  %v709_v21 = vshrl.u32 %v6081_v14, 16  ;;  %v6940_v39 = vld [vmem:[%s8753_s3 + $0x1b0] sm:$0xff]  }
  0xa5   : > { %v1373_v26 = vrot.slane %v1372_v12, 4  ;;  %v1383_v36 = vrot.slane %v1382_v3, 4  ;;  %942 = vst [vmem:[#allocation2 + $0x64] sm:$0xf] %v698_v17  ;;  %945 = vst [vmem:[#allocation2 + $0x68] sm:$0x1] %v944_v19  ;;  %v326_v20 = vmul.f32 %v7395_v63, %v6166_v47  ;;  %v327_v27 = vmul.f32 %v7395_v63, %v6167_v49 }
  0xa6   : > { %v712_v25 = vshll.u32 %v6081_v14, 16  ;;  %v1793_v54 = vrot.slane %v1675_v43, 5  ;;  %6649 = vmatpush3.bf16.msra.mxu1 %v6935_v10  ;;  %v706_v32 = vor.u32 %v704_v18, %v703_v11  ;;  %v707_v38 = vrot.slane %v703_v11, 4  ;;  %v950_v44 = vld [vmem:[#allocation2 + $0x74] sm:$0x1]  ;;  %v6916_v10 = vld [vmem:[#allocation2 + $0x48] sm:$0xff]  }
  0xa7   : > { %v1378_v30 = vsel %vm7086_vm2, %v1373_v26, %v1377_v62  ;;  %v1388_v31 = vsel %vm7086_vm2, %v1383_v36, %v1387_v13  ;;  %6650 = vmatprep.subr.bf16.mxu1 %v6938_v61  ;;  %v711_v46 = vrot.slane %v709_v21, 7  ;;  %v365_v49 = vadd.f32 %v7359_v51, %v326_v20  ;;  %v6943_v43 = vld [vmem:[%s8753_s3 + $0x1f8] sm:$0xff]   ;;  %v1678_v21 = vld [vmem:[#allocation2 + $0x44] sm:$0x1] }
  0xa8   : > { %v5787_v45 = vcombine.low %v1378_v30, %v1388_v31  ;;  %v1794_v47 = vsel %vm7345_vm13, %v7536_v35, %v1793_v54  ;;  %v947_v50 = vsel %vm7129_vm9, %v706_v32, %v946_v7  ;;  %v366_v52 = vadd.f32 %v7359_v51, %v327_v27  ;;  %v1170_v53 = vld [vmem:[#allocation2 + $0x60] sm:$0xf]  ;;  %v953_v19 = vld [vmem:[#allocation2 + $0x78] sm:$0xf] }
  0xa9   : > { %4779 = vmatmul.mubr.bf16.gmra.mrb[28].mxu1 %v5815_v6  ;;  %v5816_v29 = vcombine.low %v7534_v34, %v1794_v47  ;;  %v5801_v42 = vrot.slane %v1676_v2, 9  ;;  %v714_v55 = vor.u32 %v712_v25, %v711_v46  ;;  %v716_v56 = vrot.slane %v711_v46, 4  ;;  %948 = vst [vmem:[#allocation2 + $0x6c] sm:$0xf] %v947_v50 }
  0xaa   : > { %4649 = vmatprep.mubr.bf16.mxu0 %v5787_v45  ;;  %4786 = vmatprep.mubr.bf16.mxu1 %v6912_v23  ;;  %v397_v35 = vmax.f32 %v365_v49, 0.0  ;;  %v6170_v57 = vunpack.c.l.bf16 %v7562_v22  ;;  %v1390_v48 = vshrl.u32 %v1170_v53, 16  ;;  %v1393_v40 = vshll.u32 %v1170_v53, 16  ;;  %v6945_v45 = vld [vmem:[%s8753_s3 + $0x1b8] sm:$0xff]  }
  0xab   : > { %4650 = vmatmul.mubr.bf16.gmra.mrb[28].mxu0 %v6905_v37  ;;  %v398_v6 = vmax.f32 %v366_v52, 0.0  ;;  %v1797_v58 = vrot.slane %v7566_v28, 5  ;;  %6651 = vmatpush3.bf16.msra.mxu1 %v6940_v39  ;;  %v715_v51 = vsel %vm7123_vm8, %v707_v38, %v714_v55  ;;  %v951_v60 = vsel %vm7137_vm10, %v716_v56, %v950_v44  ;;  %v957_v38 = vld [vmem:[#allocation2 + $0x80] sm:$0x1]  ;;  %v1679_v52 = vld [vmem:[#allocation2 + $0x48] sm:$0xe] }
  0xac   : > { %v1171_v34 = vld [vmem:[#allocation2 + $0x64] sm:$0xf]  ;;  %v1172_v59 = vld [vmem:[#allocation2 + $0x68] sm:$0x1]  ;;  %v6082_v62 = vpack.c.bf16 %v397_v35, %v397_v35  ;;  %v6171_v0 = vunpack.c.h.bf16 %v7562_v22  ;;  %v1392_v1 = vrot.slane %v1390_v48, 4  ;;  %v1395_v4 = vrot.slane %v1393_v40, 5  ;;  %6652 = vmatprep.subr.bf16.mxu1 %v6943_v43 }
  0xad   : > { %v1399_v5 = vshll.u32 %v1171_v34, 16  ;;  %v1403_v8 = vshrl.u32 %v1171_v34, 16  ;;  %949 = vst [vmem:[#allocation2 + $0x70] sm:$0xf] %v715_v51  ;;  %952 = vst [vmem:[#allocation2 + $0x74] sm:$0x1] %v951_v60  ;;  %v6083_v3 = vpack.c.bf16 %v398_v6, %v398_v6  ;;  %v7598_v18 = vsel %vm7345_vm13, %v5801_v42, %v1797_v58 }
  0xae   : > { %v1409_v12 = vshll.u32 %v1172_v59, 16  ;;  %v718_v14 = vshrl.u32 %v6082_v62, 16  ;;  %v721_v15 = vshll.u32 %v6082_v62, 16  ;;  %v1396_v61 = vor.u32 %v1395_v4, %v1392_v1  ;;  %v6909_v53 = vld [vmem:[#allocation2 + $0x60] sm:$0xff]   ;;  %v1681_v48 = vld [vmem:[#allocation2 + $0x50] sm:$0x1] }
  0xaf   : > { %v1401_v13 = vrot.slane %v1399_v5, 5  ;;  %v1405_v17 = vrot.slane %v1403_v8, 4  ;;  %v726_v36 = vshrl.u32 %v6083_v3, 16  ;;  %v729_v11 = vshll.u32 %v6083_v3, 16  ;;  %6653 = vmatpush3.bf16.msra.mxu1 %v6945_v45  ;;  %v2608_v59 = vld [vmem:[#allocation2 + $0xc] sm:$0xe] }
  0xb0   : > { %v1411_v7 = vrot.slane %v1409_v12, 5  ;;  %v720_v26 = vrot.slane %v718_v14, 7  ;;  %v1397_v23 = vrot.slane %v1396_v61, 4  ;;  %v1173_v25 = vld [vmem:[#allocation2 + $0x6c] sm:$0xf]  ;;  %v1799_v54 = vrot.slane %v1797_v58, 4 }
  0xb1   : > { %v1406_v22 = vor.u32 %v1405_v17, %v1401_v13  ;;  %4787 = vmatmul.mubr.bf16.gmra.mrb[32].mxu1 %v5816_v29  ;;  %v328_v20 = vmul.f32 %v7395_v63, %v6170_v57  ;;  %v1414_v27 = vshrl.u32 %v1173_v25, 16  ;;  %v1417_v2 = vshll.u32 %v1173_v25, 16  ;;  %v1680_v57 = vld [vmem:[#allocation2 + $0x4c] sm:$0xf]  ;;  %v6920_v1 = vld [vmem:[#allocation2 + $0x54] sm:$0xff]  }
  0xb2   : > { %v723_v28 = vor.u32 %v721_v15, %v720_v26  ;;  %v724_v30 = vrot.slane %v720_v26, 4  ;;  %4794 = vmatprep.mubr.bf16.mxu1 %v6916_v10  ;;  %v1402_v31 = vsel %vm7086_vm2, %v1397_v23, %v1401_v13  ;;  %v728_v32 = vrot.slane %v726_v36, 7  ;;  %v2609_v12 = vld [vmem:[#allocation2 + $0x10] sm:$0xf]  ;;  %v7621_v14 = vld [vmem:[%s8752_s2] ss:$0 sm:$0xff] }
  0xb3   : > { %v1407_v37 = vrot.slane %v1406_v22, 4  ;;  %v1800_v39 = vrot.slane %v1678_v21, 5  ;;  %v1416_v49 = vrot.slane %v1414_v27, 4  ;;  %v1419_v50 = vrot.slane %v1417_v2, 5  ;;  %v7625_v13 = vld [vmem:[#allocation2 + $0x14] sm:$0x1] }
  0xb4   : > { %v1174_v46 = vld [vmem:[#allocation2 + $0x70] sm:$0xf]  ;;  %v1175_v47 = vld [vmem:[#allocation2 + $0x74] sm:$0x1]  ;;  %v954_v44 = vsel %vm7129_vm9, %v723_v28, %v953_v19  ;;  %v329_v29 = vmul.f32 %v7395_v63, %v6171_v0  ;;  %v731_v58 = vor.u32 %v729_v11, %v728_v32  ;;  %v733_v34 = vrot.slane %v728_v32, 4  ;;  %v7630_v23 = vld [vmem:[%s7064_s22 + $0x78] sm:$0xff]  }
  0xb5   : > { %v1412_v42 = vsel %vm7086_vm2, %v1407_v37, %v1411_v7  ;;  %v1423_v55 = vshll.u32 %v1174_v46, 16  ;;  %v1427_v56 = vshrl.u32 %v1174_v46, 16  ;;  %v1433_v35 = vshll.u32 %v1175_v47, 16  ;;  %955 = vst [vmem:[#allocation2 + $0x78] sm:$0xf] %v954_v44  ;;  %v6914_v2 = vld [vmem:[#allocation2 + $0x6c] sm:$0xff]  }
  0xb6   : > { %v5788_v40 = vcombine.low %v1402_v31, %v1412_v42  ;;  %v1420_v6 = vor.u32 %v1419_v50, %v1416_v49  ;;  %v1801_v0 = vsel %vm7345_vm13, %v1799_v54, %v1800_v39  ;;  %v732_v5 = vsel %vm7123_vm8, %v724_v30, %v731_v58  ;;  %v6926_v50 = vld [vmem:[#allocation2 + $0x60] sm:$0xff]  }
  0xb7   : > { %v1425_v51 = vrot.slane %v1423_v55, 5  ;;  %v1429_v60 = vrot.slane %v1427_v56, 4  ;;  %v1435_v62 = vrot.slane %v1433_v35, 5  ;;  %v958_v8 = vsel %vm7137_vm10, %v733_v34, %v957_v38  ;;  %956 = vst [vmem:[#allocation2 + $0x7c] sm:$0xf] %v732_v5 }
  0xb8   : > { %4657 = vmatprep.mubr.bf16.mxu0 %v5788_v40  ;;  %v1421_v4 = vrot.slane %v1420_v6, 4  ;;  %v5817_v10 = vcombine.low %v7598_v18, %v1801_v0  ;;  %959 = vst [vmem:[#allocation2 + $0x80] sm:$0x1] %v958_v8  ;;  %v367_v15 = vadd.f32 %v7621_v14, %v328_v20  ;;  %v368_v43 = vadd.f32 %v7621_v14, %v329_v29  ;;  %v960_v40 = vld [vmem:[#allocation2 + $0x84] sm:$0xf] }
  0xb9   : > { %4658 = vmatmul.mubr.bf16.gmra.mrb[32].mxu0 %v6909_v53  ;;  %v1430_v3 = vor.u32 %v1429_v60, %v1425_v51  ;;  %v5802_v61 = vrot.slane %v1679_v52, 9  ;;  %v1804_v19 = vrot.slane %v1680_v57, 5  ;;  %v1807_v18 = vrot.slane %v1681_v48, 5  ;;  %v1682_v53 = vld [vmem:[#allocation2 + $0x54] sm:$0xe] }
  0xba   : > { %v1426_v17 = vsel %vm7086_vm2, %v1421_v4, %v1425_v51  ;;  %4795 = vmatmul.mubr.bf16.gmra.mrb[36].mxu1 %v5817_v10  ;;  %v5860_v7 = vrot.slane %v2608_v59, 9  ;;  %v399_v36 = vmax.f32 %v367_v15, 0.0  ;;  %v400_v11 = vmax.f32 %v368_v43, 0.0  ;;  %v1683_v51 = vld [vmem:[#allocation2 + $0x58] sm:$0xf] }
  0xbb   : > { %v1431_v26 = vrot.slane %v1430_v3, 4  ;;  %4802 = vmatprep.mubr.bf16.mxu1 %v6920_v1  ;;  %v2706_v21 = vrot.slane %v2609_v12, 5  ;;  %v1805_v25 = vsel %vm7345_vm13, %v5802_v61, %v1804_v19  ;;  %v1806_v54 = vrot.slane %v1804_v19, 4  ;;  %v2096_v60 = vld [vmem:[#allocation2 + $0xc] sm:$0xf] }
  0xbc   : > { %v1176_v22 = vld [vmem:[#allocation2 + $0x78] sm:$0xf]  ;;  %v2709_v20 = vrot.slane %v7625_v13, 5  ;;  %v6084_v31 = vpack.c.bf16 %v399_v36, %v399_v36  ;;  %v6085_v32 = vpack.c.bf16 %v400_v11, %v400_v11  ;;  %v6190_v39 = vunpack.c.l.bf16 %v7630_v23  ;;  %v964_v4 = vld [vmem:[#allocation2 + $0x8c] sm:$0x1] }
  0xbd   : > { %v1436_v27 = vsel %vm7086_vm2, %v1431_v26, %v1435_v62  ;;  %v1438_v28 = vshrl.u32 %v1176_v22, 16  ;;  %v1441_v30 = vshll.u32 %v1176_v22, 16  ;;  %v1808_v38 = vsel %vm7345_vm13, %v1806_v54, %v1807_v18  ;;  %v1684_v5 = vld [vmem:[#allocation2 + $0x5c] sm:$0x1]  ;;  %v2097_v43 = vld [vmem:[#allocation2 + $0x10] sm:$0xf] }
  0xbe   : > { %v5789_v37 = vcombine.low %v1426_v17, %v1436_v27  ;;  %v735_v47 = vshrl.u32 %v6084_v31, 16  ;;  %v738_v49 = vshll.u32 %v6084_v31, 16  ;;  %v1177_v44 = vld [vmem:[#allocation2 + $0x7c] sm:$0xf]  ;;  %v5818_v52 = vcombine.low %v1805_v25, %v1808_v38  ;;  %v2098_v18 = vld [vmem:[#allocation2 + $0x14] sm:$0x1] }
  0xbf   : > { %v1440_v45 = vrot.slane %v1438_v28, 4  ;;  %v1443_v46 = vrot.slane %v1441_v30, 5  ;;  %v1178_v29 = vld [vmem:[#allocation2 + $0x80] sm:$0x1]  ;;  %v7642_v42 = vsel %vm7345_vm13, %v5860_v7, %v2706_v21  ;;  %v6191_v55 = vunpack.c.h.bf16 %v7630_v23  ;;  %v2611_v11 = vld [vmem:[#allocation2 + $0x18] sm:$0xe] }
  0xc0   : > { %4665 = vmatprep.mubr.bf16.mxu0 %v5789_v37  ;;  %v1447_v35 = vshll.u32 %v1177_v44, 16  ;;  %v1451_v57 = vshrl.u32 %v1177_v44, 16  ;;  %v1457_v48 = vshll.u32 %v1178_v29, 16  ;;  %v737_v6 = vrot.slane %v735_v47, 7  ;;  %v2612_v27 = vld [vmem:[#allocation2 + $0x1c] sm:$0xf] }
  0xc1   : > { %4666 = vmatmul.mubr.bf16.gmra.mrb[36].mxu0 %v6914_v2  ;;  %v1444_v56 = vor.u32 %v1443_v46, %v1440_v45  ;;  %v743_v58 = vshrl.u32 %v6085_v32, 16  ;;  %v746_v34 = vshll.u32 %v6085_v32, 16  ;;  %v2708_v59 = vrot.slane %v2706_v21, 4  ;;  %v2613_v2 = vld [vmem:[#allocation2 + $0x20] sm:$0x1] }
  0xc2   : > { %4803 = vmatmul.mubr.bf16.gmra.mrb[40].mxu1 %v5818_v52  ;;  %v1449_v0 = vrot.slane %v1447_v35, 5  ;;  %v1453_v1 = vrot.slane %v1451_v57, 4  ;;  %v7646_v8 = vmul.f32 %v7395_v63, %v6190_v39  ;;  %v1459_v10 = vrot.slane %v1457_v48, 5  ;;  %v1685_v37 = vld [vmem:[#allocation2 + $0x60] sm:$0xe]  ;;  %v6918_v39 = vld [vmem:[#allocation2 + $0x78] sm:$0xff]  }
  0xc3   : > { %v1445_v62 = vrot.slane %v1444_v56, 4  ;;  %4810 = vmatprep.mubr.bf16.mxu1 %v6926_v50  ;;  %v740_v12 = vor.u32 %v738_v49, %v737_v6  ;;  %v741_v3 = vrot.slane %v737_v6, 4  ;;  %v745_v15 = vrot.slane %v743_v58, 7  ;;  %v1686_v32 = vld [vmem:[#allocation2 + $0x64] sm:$0xf] }
  0xc4   : > { %v1454_v13 = vor.u32 %v1453_v1, %v1449_v0  ;;  %v7652_v17 = vsel %vm7345_vm13, %v2708_v59, %v2709_v20  ;;  %v5803_v19 = vrot.slane %v1682_v53, 9  ;;  %v1811_v36 = vrot.slane %v1683_v51, 5  ;;  %v1687_v49 = vld [vmem:[#allocation2 + $0x68] sm:$0x1]  ;;  %v6927_v53 = vld [vmem:[#allocation2 + $0x6c] sm:$0xff]  }
  0xc5   : > { %v1450_v61 = vsel %vm7086_vm2, %v1445_v62, %v1449_v0  ;;  %v748_v7 = vor.u32 %v746_v34, %v745_v15  ;;  %v750_v26 = vrot.slane %v745_v15, 4  ;;  %v961_v63 = vsel %vm7129_vm9, %v740_v12, %v960_v40  ;;  %v2099_v56 = vld [vmem:[#allocation2 + $0x18] sm:$0xf] }
  0xc6   : > { %v1455_v21 = vrot.slane %v1454_v13, 4  ;;  %962 = vst [vmem:[#allocation2 + $0x84] sm:$0xf] %v961_v63  ;;  %v1814_v22 = vrot.slane %v1684_v5, 5  ;;  %v2145_v25 = vshrl.u32 %v2096_v60, 16  ;;  %v2148_v54 = vshll.u32 %v2096_v60, 16 }
  0xc7   : > { %v749_v20 = vsel %vm7123_vm8, %v741_v3, %v748_v7  ;;  %v965_v28 = vsel %vm7137_vm10, %v750_v26, %v964_v4  ;;  %v1812_v30 = vsel %vm7345_vm13, %v5803_v19, %v1811_v36  ;;  %v1813_v31 = vrot.slane %v1811_v36, 4  ;;  %v6970_v26 = vld [vmem:[%s8751_s1] ss:$0 sm:$0xff]  ;;  %v2123_v9 = vld [vmem:[#allocation2 + $0x78] sm:$0xf] }
  0xc8   : > { %v1460_v38 = vsel %vm7086_vm2, %v1455_v21, %v1459_v10  ;;  %963 = vst [vmem:[#allocation2 + $0x88] sm:$0xf] %v749_v20  ;;  %966 = vst [vmem:[#allocation2 + $0x8c] sm:$0x1] %v965_v28  ;;  %v2147_v45 = vrot.slane %v2145_v25, 4  ;;  %v2150_v46 = vrot.slane %v2148_v54, 5  ;;  %v5876_v6 = vcombine.low %v7642_v42, %v7652_v17 }
  0xc9   : > { %v2154_v47 = vshll.u32 %v2097_v43, 16  ;;  %v5790_v50 = vcombine.low %v1450_v61, %v1460_v38  ;;  %v1815_v44 = vsel %vm7345_vm13, %v1813_v31, %v1814_v22  ;;  %v2158_v29 = vshrl.u32 %v2097_v43, 16  ;;  %v2100_v54 = vld [vmem:[#allocation2 + $0x1c] sm:$0xf] }
  0xca   : > { %v2164_v52 = vshll.u32 %v2098_v18, 16  ;;  %v5819_v35 = vcombine.low %v1812_v30, %v1815_v44  ;;  %v2151_v57 = vor.u32 %v2150_v46, %v2147_v45  ;;  %v5861_v40 = vrot.slane %v2611_v11, 9  ;;  %v6931_v46 = vld [vmem:[#allocation2 + $0x78] sm:$0xff]  }
  0xcb   : > { %v2156_v48 = vrot.slane %v2154_v47, 5  ;;  %4673 = vmatprep.mubr.bf16.mxu0 %v5790_v50  ;;  %v2160_v58 = vrot.slane %v2158_v29, 4  ;;  %v2713_v34 = vrot.slane %v2612_v27, 5  ;;  %v2716_v59 = vrot.slane %v2613_v2, 5  ;;  %v2101_v27 = vld [vmem:[#allocation2 + $0x20] sm:$0x1] }
  0xcc   : > { %4674 = vmatmul.mubr.bf16.gmra.mrb[40].mxu0 %v6918_v39  ;;  %4811 = vmatmul.mubr.bf16.gmra.mrb[44].mxu1 %v5819_v35  ;;  %v2152_v51 = vrot.slane %v2151_v57, 4  ;;  %v2166_v60 = vrot.slane %v2164_v52, 5  ;;  %v5804_v62 = vrot.slane %v1685_v37, 9  ;;  %v1818_v0 = vrot.slane %v1686_v32, 5  ;;  %v2614_v32 = vld [vmem:[#allocation2 + $0x24] sm:$0xe] }
  0xcd   : > { %v1179_v1 = vld [vmem:[#allocation2 + $0x84] sm:$0xf]  ;;  %v2161_v4 = vor.u32 %v2160_v58, %v2156_v48  ;;  %4818 = vmatprep.mubr.bf16.mxu1 %v6927_v53  ;;  %v7670_v5 = vsel %vm7345_vm13, %v5861_v40, %v2713_v34  ;;  %v2715_v10 = vrot.slane %v2713_v34, 4  ;;  %v1821_v12 = vrot.slane %v1687_v49, 5  ;;  %v2615_v47 = vld [vmem:[#allocation2 + $0x28] sm:$0xf] }
  0xce   : > { %v1462_v3 = vshrl.u32 %v1179_v1, 16  ;;  %v1465_v15 = vshll.u32 %v1179_v1, 16  ;;  %v2157_v43 = vsel %vm7086_vm2, %v2152_v51, %v2156_v48  ;;  %v2169_v61 = vshrl.u32 %v2099_v56, 16  ;;  %v2616_v52 = vld [vmem:[#allocation2 + $0x2c] sm:$0x1] }
  0xcf   : > { %v1180_v13 = vld [vmem:[#allocation2 + $0x88] sm:$0xf]  ;;  %v1181_v19 = vld [vmem:[#allocation2 + $0x8c] sm:$0x1]  ;;  %v7676_v18 = vsel %vm7345_vm13, %v2715_v10, %v2716_v59  ;;  %v1819_v7 = vsel %vm7345_vm13, %v5804_v62, %v1818_v0  ;;  %v7685_v63 = vmul.f32 %v6970_v26, %v6191_v55  ;;  %v7689_v36 = vadd.f32 %v7621_v14, %v7646_v8  ;;  %v1688_v53 = vld [vmem:[#allocation2 + $0x6c] sm:$0xe] }
  0xd0   : > { %v1464_v11 = vrot.slane %v1462_v3, 4  ;;  %v1467_v21 = vrot.slane %v1465_v15, 5  ;;  %v1471_v22 = vshll.u32 %v1180_v13, 16  ;;  %v1475_v25 = vshrl.u32 %v1180_v13, 16  ;;  %v1689_v58 = vld [vmem:[#allocation2 + $0x70] sm:$0xf] }
  0xd1   : > { %v1481_v2 = vshll.u32 %v1181_v19, 16  ;;  %v2162_v20 = vrot.slane %v2161_v4, 4  ;;  %v5877_v28 = vcombine.low %v7670_v5, %v7676_v18  ;;  %v1820_v30 = vrot.slane %v1818_v0, 4  ;;  %v1690_v34 = vld [vmem:[#allocation2 + $0x74] sm:$0x1]  ;;  %v6922_v15 = vld [vmem:[#allocation2 + $0x84] sm:$0xff]  }
  0xd2   : > { %v1468_v31 = vor.u32 %v1467_v21, %v1464_v11  ;;  %v1473_v23 = vrot.slane %v1471_v22, 5  ;;  %v1477_v55 = vrot.slane %v1475_v25, 4  ;;  %v2171_v37 = vrot.slane %v2169_v61, 4  ;;  %v2102_v62 = vld [vmem:[#allocation2 + $0x24] sm:$0xf] }
  0xd3   : > { %v1483_v38 = vrot.slane %v1481_v2, 5  ;;  %v2167_v8 = vsel %vm7086_vm2, %v2162_v20, %v2166_v60  ;;  %v1822_v39 = vsel %vm7345_vm13, %v1820_v30, %v1821_v12  ;;  %v2172_v45 = vshll.u32 %v2099_v56, 16  ;;  %v2103_v12 = vld [vmem:[#allocation2 + $0x28] sm:$0xf]  ;;  %v2104_v21 = vld [vmem:[#allocation2 + $0x2c] sm:$0x1] }
  0xd4   : > { %v1469_v49 = vrot.slane %v1468_v31, 4  ;;  %v1478_v50 = vor.u32 %v1477_v55, %v1473_v23  ;;  %v7697_v44 = vcombine.low %v2157_v43, %v2167_v8  ;;  %v5820_v29 = vcombine.low %v1819_v7, %v1822_v39  ;;  %v2617_v22 = vld [vmem:[#allocation2 + $0x30] sm:$0xe]  ;;  %v2618_v55 = vld [vmem:[#allocation2 + $0x34] sm:$0xf] }
  0xd5   : > { %v2174_v35 = vrot.slane %v2172_v45, 5  ;;  %v2178_v57 = vshll.u32 %v2100_v54, 16  ;;  %v2182_v48 = vshrl.u32 %v2100_v54, 16  ;;  %v2188_v40 = vshll.u32 %v2101_v27, 16 }
  0xd6   : > { %v1474_v59 = vsel %vm7086_vm2, %v1469_v49, %v1473_v23  ;;  %v1479_v51 = vrot.slane %v1478_v50, 4  ;;  %4819 = vmatmul.mubr.bf16.gmra.mrb[48].mxu1 %v5820_v29  ;;  %v5862_v56 = vrot.slane %v2614_v32, 9  ;;  %v2720_v60 = vrot.slane %v2615_v47, 5  ;;  %v1691_v32 = vld [vmem:[#allocation2 + $0x78] sm:$0xe] }
  0xd7   : > { %v2175_v0 = vor.u32 %v2174_v35, %v2171_v37  ;;  %v2180_v1 = vrot.slane %v2178_v57, 5  ;;  %v2184_v4 = vrot.slane %v2182_v48, 4  ;;  %v2190_v10 = vrot.slane %v2188_v40, 5  ;;  %4826 = vmatprep.mubr.bf16.mxu1 %v6931_v46  ;;  %v2619_v37 = vld [vmem:[#allocation2 + $0x38] sm:$0x1]  ;;  %v6932_v48 = vld [vmem:[#allocation2 + $0x84] sm:$0xff]  }
  0xd8   : > { %v1484_v3 = vsel %vm7086_vm2, %v1479_v51, %v1483_v38  ;;  %v7705_v43 = vsel %vm7345_vm13, %v5862_v56, %v2720_v60  ;;  %v2722_v61 = vrot.slane %v2720_v60, 4  ;;  %v2723_v13 = vrot.slane %v2616_v52, 5  ;;  %v1692_v38 = vld [vmem:[#allocation2 + $0x7c] sm:$0xf]  ;;  %v1693_v52 = vld [vmem:[#allocation2 + $0x80] sm:$0x1] }
  0xd9   : > { %v5791_v19 = vcombine.low %v1474_v59, %v1484_v3  ;;  %v2176_v7 = vrot.slane %v2175_v0, 4  ;;  %v2185_v26 = vor.u32 %v2184_v4, %v2180_v1  ;;  %v5805_v11 = vrot.slane %v1688_v53, 9  ;;  %v6934_v4 = vld [vmem:[%s8753_s3 + $0x208] sm:$0xff]  }
  0xda   : > { %v7709_v25 = vsel %vm7345_vm13, %v2722_v61, %v2723_v13  ;;  %v1825_v54 = vrot.slane %v1689_v58, 5  ;;  %v1828_v27 = vrot.slane %v1690_v34, 5  ;;  %v2193_v2 = vshrl.u32 %v2102_v62, 16  ;;  %v2105_v58 = vld [vmem:[#allocation2 + $0x30] sm:$0xf] }
  0xdb   : > { %4681 = vmatprep.mubr.bf16.mxu0 %v5791_v19  ;;  %v2181_v20 = vsel %vm7086_vm2, %v2176_v7, %v2180_v1  ;;  %v2186_v30 = vrot.slane %v2185_v26, 4  ;;  %v5878_v31 = vcombine.low %v7705_v43, %v7709_v25  ;;  %v2196_v23 = vshll.u32 %v2102_v62, 16  ;;  %v2106_v62 = vld [vmem:[#allocation2 + $0x34] sm:$0xf]  ;;  %v2620_v7 = vld [vmem:[#allocation2 + $0x3c] sm:$0xe] }
  0xdc   : > { %4682 = vmatmul.mubr.bf16.gmra.mrb[44].mxu0 %v6922_v15  ;;  %v1826_v8 = vsel %vm7345_vm13, %v5805_v11, %v1825_v54  ;;  %v1827_v39 = vrot.slane %v1825_v54, 4  ;;  %v2195_v45 = vrot.slane %v2193_v2, 4  ;;  %v2202_v46 = vshll.u32 %v2103_v12, 16 }
  0xdd   : > { %4915 = vmatprep.mubr.bf16.mxu0 %v5876_v6  ;;  %v2191_v47 = vsel %vm7086_vm2, %v2186_v30, %v2190_v10  ;;  %v2198_v49 = vrot.slane %v2196_v23, 5  ;;  %v2206_v50 = vshrl.u32 %v2103_v12, 16  ;;  %v2212_v29 = vshll.u32 %v2104_v21, 16  ;;  %v2107_v12 = vld [vmem:[#allocation2 + $0x38] sm:$0x1] }
  0xde   : > { %v7722_v53 = vcombine.low %v2181_v20, %v2191_v47  ;;  %v1829_v35 = vsel %vm7345_vm13, %v1827_v39, %v1828_v27  ;;  %v2204_v57 = vrot.slane %v2202_v46, 5  ;;  %v5863_v40 = vrot.slane %v2617_v22, 9  ;;  %v2621_v30 = vld [vmem:[#allocation2 + $0x40] sm:$0xf]  ;;  %v2622_v23 = vld [vmem:[#allocation2 + $0x44] sm:$0x1] }
  0xdf   : > { %v5821_v34 = vcombine.low %v1826_v8, %v1829_v35  ;;  %v2199_v59 = vor.u32 %v2198_v49, %v2195_v45  ;;  %v2208_v42 = vrot.slane %v2206_v50, 4  ;;  %v2214_v17 = vrot.slane %v2212_v29, 5  ;;  %v6936_v8 = vld [vmem:[#allocation2 + $0x90] sm:$0xff]   ;;  %v1694_v39 = vld [vmem:[#allocation2 + $0x84] sm:$0xe] }
  0xe0   : > { %v2727_v6 = vrot.slane %v2618_v55, 5  ;;  %v2730_v51 = vrot.slane %v2619_v37, 5  ;;  %v5806_v56 = vrot.slane %v1691_v32, 9  ;;  %v1832_v60 = vrot.slane %v1692_v38, 5  ;;  %v6971_v55 = vld [vmem:[%s8753_s3 + $0x200] sm:$0xff]   ;;  %v6939_v49 = vld [vmem:[%s8753_s3 + $0x210] sm:$0xff]  }
  0xe1   : > { %4827 = vmatmul.mubr.bf16.gmra.mrb[52].mxu1 %v5821_v34  ;;  %v2200_v0 = vrot.slane %v2199_v59, 4  ;;  %v2209_v1 = vor.u32 %v2208_v42, %v2204_v57  ;;  %v1835_v10 = vrot.slane %v1693_v52, 5  ;;  %v2217_v3 = vshrl.u32 %v2105_v58, 16  ;;  %v1695_v45 = vld [vmem:[#allocation2 + $0x88] sm:$0xf] }
  0xe2   : > { %4834 = vmatprep.mubr.bf16.mxu1 %v6932_v48  ;;  %v7731_v15 = vsel %vm7345_vm13, %v5863_v40, %v2727_v6  ;;  %v2729_v61 = vrot.slane %v2727_v6, 4  ;;  %v1833_v13 = vsel %vm7345_vm13, %v5806_v56, %v1832_v60  ;;  %v1834_v19 = vrot.slane %v1832_v60, 4  ;;  %v1696_v47 = vld [vmem:[#allocation2 + $0x8c] sm:$0x1]  ;;  %v2109_v59 = vld [vmem:[#allocation2 + $0x40] sm:$0xf] }
  0xe3   : > { %v2205_v26 = vsel %vm7086_vm2, %v2200_v0, %v2204_v57  ;;  %v2210_v11 = vrot.slane %v2209_v1, 4  ;;  %v2219_v21 = vrot.slane %v2217_v3, 4  ;;  %v2220_v22 = vshll.u32 %v2105_v58, 16  ;;  %v2108_v57 = vld [vmem:[#allocation2 + $0x3c] sm:$0xf] }
  0xe4   : > { %4916 = vmatmul.mubr.bf16.vlgmr.msra.gmra.mrb[48].mxu0 %v7697_v44  ;;  %v7740_v54 = vsel %vm7345_vm13, %v2729_v61, %v2730_v51  ;;  %v1836_v27 = vsel %vm7345_vm13, %v1834_v19, %v1835_v10  ;;  %v2226_v2 = vshll.u32 %v2106_v62, 16  ;;  %v2230_v20 = vshrl.u32 %v2106_v62, 16  ;;  %v2110_v56 = vld [vmem:[#allocation2 + $0x44] sm:$0x1]  ;;  %v2623_v60 = vld [vmem:[#allocation2 + $0x48] sm:$0xe] }
  0xe5   : > { %4923 = vmatprep.mubr.bf16.mxu0 %v5877_v28  ;;  %6775 = vmatpush3.bf16.msra.mxu0 %v6971_v55  ;;  %v2215_v44 = vsel %vm7086_vm2, %v2210_v11, %v2214_v17  ;;  %v5879_v37 = vcombine.low %v7731_v15, %v7740_v54  ;;  %v5822_v32 = vcombine.low %v1833_v13, %v1836_v27  ;;  %v2222_v38 = vrot.slane %v2220_v22, 5  ;;  %v2624_v62 = vld [vmem:[#allocation2 + $0x4c] sm:$0xf]  ;;  %v2625_v3 = vld [vmem:[#allocation2 + $0x50] sm:$0x1] }
  0xe6   : > { %v7754_v46 = vcombine.low %v2205_v26, %v2215_v44  ;;  %6776 = vmatprep.subr.bf16.mxu0 %v6934_v4  ;;  %v2228_v5 = vrot.slane %v2226_v2, 5  ;;  %v2232_v18 = vrot.slane %v2230_v20, 4  ;;  %v2236_v28 = vshll.u32 %v2107_v12, 16  ;;  %v1697_v61 = vld [vmem:[#allocation2 + $0x90] sm:$0xe]  ;;  %v6937_v2 = vld [vmem:[#allocation2 + $0x9c] sm:$0xff]  }
  0xe7   : > { %v2223_v50 = vor.u32 %v2222_v38, %v2219_v21  ;;  %v5864_v29 = vrot.slane %v2620_v7, 9  ;;  %v2734_v52 = vrot.slane %v2621_v30, 5  ;;  %v2737_v35 = vrot.slane %v2622_v23, 5  ;;  %v1698_v20 = vld [vmem:[#allocation2 + $0x94] sm:$0xf]  ;;  %v6947_v23 = vld [vmem:[%s8753_s3 + $0x220] sm:$0xff]  }
  0xe8   : > { %v2233_v48 = vor.u32 %v2232_v18, %v2228_v5  ;;  %v2238_v40 = vrot.slane %v2236_v28, 5  ;;  %v5807_v58 = vrot.slane %v1694_v39, 9  ;;  %v1839_v34 = vrot.slane %v1695_v45, 5  ;;  %v1699_v30 = vld [vmem:[#allocation2 + $0x98] sm:$0x1] }
  0xe9   : > { %4835 = vmatmul.mubr.bf16.gmra.mrb[56].mxu1 %v5822_v32  ;;  %v2224_v42 = vrot.slane %v2223_v50, 4  ;;  %6777 = vmatpush3.bf16.msra.mxu0 %v6934_v4  ;;  %v7761_v17 = vsel %vm7345_vm13, %v5864_v29, %v2734_v52  ;;  %v2736_v6 = vrot.slane %v2734_v52, 4  ;;  %v1842_v51 = vrot.slane %v1696_v47, 5  ;;  %v6944_v4 = vld [vmem:[%s8753_s3 + $0x218] sm:$0xff]   ;;  %v2111_v38 = vld [vmem:[#allocation2 + $0x48] sm:$0xf] }
  0xea   : > { %v2234_v0 = vrot.slane %v2233_v48, 4  ;;  %4842 = vmatprep.mubr.bf16.mxu1 %v6936_v8  ;;  %v1840_v1 = vsel %vm7345_vm13, %v5807_v58, %v1839_v34  ;;  %v1841_v10 = vrot.slane %v1839_v34, 4  ;;  %v2241_v12 = vshrl.u32 %v2108_v57, 16  ;;  %6778 = vmatprep.subr.bf16.mxu0 %v6939_v49  ;;  %v2112_v18 = vld [vmem:[#allocation2 + $0x4c] sm:$0xf] }
  0xeb   : > { %v2229_v13 = vsel %vm7086_vm2, %v2224_v42, %v2228_v5  ;;  %v7772_v19 = vsel %vm7345_vm13, %v2736_v6, %v2737_v35  ;;  %v2244_v7 = vshll.u32 %v2108_v57, 16  ;;  %v2250_v26 = vshll.u32 %v2109_v59, 16  ;;  %v2113_v35 = vld [vmem:[#allocation2 + $0x50] sm:$0x1]  ;;  %v2626_v58 = vld [vmem:[#allocation2 + $0x54] sm:$0xe] }
  0xec   : > { %4924 = vmatmul.mubr.bf16.gmra.mrb[52].mxu0 %v7722_v53  ;;  %v2239_v11 = vsel %vm7086_vm2, %v2234_v0, %v2238_v40  ;;  %v5880_v21 = vcombine.low %v7761_v17, %v7772_v19  ;;  %v1843_v22 = vsel %vm7345_vm13, %v1841_v10, %v1842_v51  ;;  %v2243_v27 = vrot.slane %v2241_v12, 4  ;;  %v6950_v34 = vld [vmem:[%s8753_s3 + $0x228] sm:$0xff]   ;;  %v1700_v12 = vld [vmem:[#allocation2 + $0x9c] sm:$0xe]  ;;  %v2115_v15 = vld [vmem:[#allocation2 + $0x58] sm:$0xf] }
  0xed   : > { %4931 = vmatprep.mubr.bf16.mxu0 %v5878_v31  ;;  %v7787_v53 = vcombine.low %v2229_v13, %v2239_v11  ;;  %v5823_v55 = vcombine.low %v1840_v1, %v1843_v22  ;;  %v2246_v44 = vrot.slane %v2244_v7, 5  ;;  %v2252_v32 = vrot.slane %v2250_v26, 5  ;;  %6779 = vmatpush3.bf16.msra.mxu0 %v6939_v49  ;;  %v6941_v26 = vld [vmem:[#allocation2 + $0xa8] sm:$0xff]   ;;  %v1702_v11 = vld [vmem:[#allocation2 + $0xa4] sm:$0x1]  ;;  %v6953_v22 = vld [vmem:[%s8753_s3 + $0x230] sm:$0xff]  }
  0xee   : > { %v2254_v8 = vshrl.u32 %v2109_v59, 16  ;;  %v2260_v39 = vshll.u32 %v2110_v56, 16  ;;  %v5865_v45 = vrot.slane %v2623_v60, 9  ;;  %v2741_v5 = vrot.slane %v2624_v62, 5  ;;  %6780 = vmatprep.subr.bf16.mxu0 %v6944_v4  ;;  %v2627_v56 = vld [vmem:[#allocation2 + $0x58] sm:$0xf] }
  0xef   : > { %v2247_v28 = vor.u32 %v2246_v44, %v2243_v27  ;;  %v2744_v47 = vrot.slane %v2625_v3, 5  ;;  %v5808_v50 = vrot.slane %v1697_v61, 9  ;;  %v1846_v29 = vrot.slane %v1698_v20, 5  ;;  %v2628_v60 = vld [vmem:[#allocation2 + $0x5c] sm:$0x1] }
  0xf0   : > { %v2256_v52 = vrot.slane %v2254_v8, 4  ;;  %v2262_v43 = vrot.slane %v2260_v39, 5  ;;  %v7791_v25 = vsel %vm7345_vm13, %v5865_v45, %v2741_v5  ;;  %v2743_v31 = vrot.slane %v2741_v5, 4  ;;  %v1701_v3 = vld [vmem:[#allocation2 + $0xa0] sm:$0xf] }
  0xf1   : > { %4843 = vmatmul.mubr.bf16.gmra.mrb[60].mxu1 %v5823_v55  ;;  %v2248_v49 = vrot.slane %v2247_v28, 4  ;;  %v1847_v57 = vsel %vm7345_vm13, %v5808_v50, %v1846_v29  ;;  %v1848_v48 = vrot.slane %v1846_v29, 4  ;;  %v1849_v40 = vrot.slane %v1699_v30, 5  ;;  %6781 = vmatpush3.bf16.msra.mxu0 %v6944_v4  ;;  %v2116_v28 = vld [vmem:[#allocation2 + $0x5c] sm:$0x1] }
  0xf2   : > { %v2257_v59 = vor.u32 %v2256_v52, %v2252_v32  ;;  %4850 = vmatprep.mubr.bf16.mxu1 %v6937_v2  ;;  %v7800_v42 = vsel %vm7345_vm13, %v2743_v31, %v2744_v47  ;;  %v2265_v6 = vshrl.u32 %v2111_v38, 16  ;;  %v2268_v51 = vshll.u32 %v2111_v38, 16  ;;  %6782 = vmatprep.subr.bf16.mxu0 %v6947_v23  ;;  %v2114_v38 = vld [vmem:[#allocation2 + $0x54] sm:$0xf] }
  0xf3   : > { %v2253_v62 = vsel %vm7086_vm2, %v2248_v49, %v2252_v32  ;;  %v5881_v0 = vcombine.low %v7791_v25, %v7800_v42  ;;  %v1850_v1 = vsel %vm7345_vm13, %v1848_v48, %v1849_v40  ;;  %v2274_v10 = vshll.u32 %v2112_v18, 16  ;;  %v2630_v48 = vld [vmem:[#allocation2 + $0x64] sm:$0xf]  ;;  %v2631_v40 = vld [vmem:[#allocation2 + $0x68] sm:$0x1] }
  0xf4   : > { %4932 = vmatmul.mubr.bf16.gmra.mrb[56].mxu0 %v7754_v46  ;;  %v2258_v61 = vrot.slane %v2257_v59, 4  ;;  %v5824_v4 = vcombine.low %v1847_v57, %v1850_v1  ;;  %v2267_v13 = vrot.slane %v2265_v6, 4  ;;  %v2270_v7 = vrot.slane %v2268_v51, 5 }
  0xf5   : > { %4939 = vmatprep.mubr.bf16.mxu0 %v5879_v37  ;;  %v2276_v27 = vrot.slane %v2274_v10, 5  ;;  %v2278_v2 = vshrl.u32 %v2112_v18, 16  ;;  %v2284_v20 = vshll.u32 %v2113_v35, 16  ;;  %v5866_v30 = vrot.slane %v2626_v58, 9  ;;  %6783 = vmatpush3.bf16.msra.mxu0 %v6947_v23  ;;  %v6956_v58 = vld [vmem:[%s8753_s3 + $0x238] sm:$0xff]  }
  0xf6   : > { %v2263_v46 = vsel %vm7086_vm2, %v2258_v61, %v2262_v43  ;;  %v2271_v55 = vor.u32 %v2270_v7, %v2267_v13  ;;  %v2748_v44 = vrot.slane %v2627_v56, 5  ;;  %v2751_v32 = vrot.slane %v2628_v60, 5  ;;  %6784 = vmatprep.subr.bf16.mxu0 %v6950_v34  ;;  %v2629_v43 = vld [vmem:[#allocation2 + $0x60] sm:$0xe]  ;;  %v1703_v56 = vld [vmem:[#allocation2 + $0xa8] sm:$0xe] }
  0xf7   : > { %v7817_v8 = vcombine.low %v2253_v62, %v2263_v46  ;;  %v2280_v39 = vrot.slane %v2278_v2, 4  ;;  %v2286_v45 = vrot.slane %v2284_v20, 5  ;;  %v5809_v5 = vrot.slane %v1700_v12, 9  ;;  %v1704_v12 = vld [vmem:[#allocation2 + $0xac] sm:$0xf]  ;;  %v6942_v20 = vld [vmem:[#allocation2 + $0xb4] sm:$0xff]  }
  0xf8   : > { %v2272_v54 = vrot.slane %v2271_v55, 4  ;;  %v7821_v37 = vsel %vm7345_vm13, %v5866_v30, %v2748_v44  ;;  %v2750_v23 = vrot.slane %v2748_v44, 4  ;;  %v1853_v18 = vrot.slane %v1701_v3, 5  ;;  %v1705_v7 = vld [vmem:[#allocation2 + $0xb0] sm:$0x1] }
  0xf9   : > { %4851 = vmatmul.mubr.bf16.gmra.mrb[64].mxu1 %v5824_v4  ;;  %v2281_v47 = vor.u32 %v2280_v39, %v2276_v27  ;;  %v1856_v50 = vrot.slane %v1702_v11, 5  ;;  %v2289_v29 = vshrl.u32 %v2114_v38, 16  ;;  %v2292_v52 = vshll.u32 %v2114_v38, 16  ;;  %6785 = vmatpush3.bf16.msra.mxu0 %v6950_v34 }
  0xfa   : > { %v2277_v31 = vsel %vm7086_vm2, %v2272_v54, %v2276_v27  ;;  %4858 = vmatprep.mubr.bf16.mxu1 %v6941_v26  ;;  %v7827_v35 = vsel %vm7345_vm13, %v2750_v23, %v2751_v32  ;;  %v1854_v49 = vsel %vm7345_vm13, %v5809_v5, %v1853_v18  ;;  %v1855_v57 = vrot.slane %v1853_v18, 4  ;;  %6786 = vmatprep.subr.bf16.mxu0 %v6953_v22  ;;  %v2117_v26 = vld [vmem:[#allocation2 + $0x60] sm:$0xf]  ;;  %v2118_v32 = vld [vmem:[#allocation2 + $0x64] sm:$0xf] }
  0xfb   : > { %v2282_v34 = vrot.slane %v2281_v47, 4  ;;  %v5882_v59 = vcombine.low %v7821_v37, %v7827_v35  ;;  %v2291_v6 = vrot.slane %v2289_v29, 4  ;;  %v2294_v51 = vrot.slane %v2292_v52, 5  ;;  %v2119_v5 = vld [vmem:[#allocation2 + $0x68] sm:$0x1] }
  0xfc   : > { %4940 = vmatmul.mubr.bf16.gmra.mrb[60].mxu0 %v7787_v53  ;;  %v1857_v60 = vsel %vm7345_vm13, %v1855_v57, %v1856_v50  ;;  %v2298_v62 = vshll.u32 %v2115_v15, 16  ;;  %v2302_v1 = vshrl.u32 %v2115_v15, 16  ;;  %v2308_v10 = vshll.u32 %v2116_v28, 16  ;;  %v2632_v47 = vld [vmem:[#allocation2 + $0x6c] sm:$0xe] }
  0xfd   : > { %4947 = vmatprep.mubr.bf16.mxu0 %v5880_v21  ;;  %v2287_v3 = vsel %vm7086_vm2, %v2282_v34, %v2286_v45  ;;  %v5825_v61 = vcombine.low %v1854_v49, %v1857_v60  ;;  %v2295_v4 = vor.u32 %v2294_v51, %v2291_v6  ;;  %v5867_v13 = vrot.slane %v2629_v43, 9  ;;  %6787 = vmatpush3.bf16.msra.mxu0 %v6953_v22  ;;  %v2633_v50 = vld [vmem:[#allocation2 + $0x70] sm:$0xf]  ;;  %v2634_v6 = vld [vmem:[#allocation2 + $0x74] sm:$0x1] }
  0xfe   : > { %v7844_v53 = vcombine.low %v2277_v31, %v2287_v3  ;;  %v2300_v11 = vrot.slane %v2298_v62, 5  ;;  %v2304_v27 = vrot.slane %v2302_v1, 4  ;;  %v2310_v2 = vrot.slane %v2308_v10, 5  ;;  %6788 = vmatprep.subr.bf16.mxu0 %v6956_v58  ;;  %v1706_v1 = vld [vmem:[#allocation2 + $0xb4] sm:$0xe] }
  0xff   : > { %v2296_v30 = vrot.slane %v2295_v4, 4  ;;  %v2755_v46 = vrot.slane %v2630_v48, 5  ;;  %v2758_v17 = vrot.slane %v2631_v40, 5  ;;  %v5810_v19 = vrot.slane %v1703_v56, 9  ;;  %v1707_v10 = vld [vmem:[#allocation2 + $0xb8] sm:$0xf] }
 0x100   : > { %v2305_v21 = vor.u32 %v2304_v27, %v2300_v11  ;;  %v1860_v55 = vrot.slane %v1704_v12, 5  ;;  %v1863_v44 = vrot.slane %v1705_v7, 5  ;;  %v2313_v38 = vshrl.u32 %v2117_v26, 16  ;;  %v2636_v37 = vld [vmem:[#allocation2 + $0x7c] sm:$0xf] }
 0x101   : > { %4859 = vmatmul.mubr.bf16.gmra.mrb[68].mxu1 %v5825_v61  ;;  %v2301_v22 = vsel %vm7086_vm2, %v2296_v30, %v2300_v11  ;;  %v7850_v39 = vsel %vm7345_vm13, %v5867_v13, %v2755_v46  ;;  %v2757_v45 = vrot.slane %v2755_v46, 4  ;;  %v2316_v15 = vshll.u32 %v2117_v26, 16  ;;  %6789 = vmatpush3.bf16.msra.mxu0 %v6956_v58  ;;  %v7854_v29 = vpop.f32.mrb[0].mxu0 }
 0x102   : > { %v2306_v54 = vrot.slane %v2305_v21, 4  ;;  %4866 = vmatprep.mubr.bf16.mxu1 %v6942_v20  ;;  %v1861_v23 = vsel %vm7345_vm13, %v5810_v19, %v1860_v55  ;;  %v1862_v18 = vrot.slane %v1860_v55, 4  ;;  %v2315_v28 = vrot.slane %v2313_v38, 4  ;;  %v7860_v57 = vpop.f32.mrb[1].mxu0  ;;  %v2120_v55 = vld [vmem:[#allocation2 + $0x6c] sm:$0xf] }
 0x103   : > { %v7858_v52 = vsel %vm7345_vm13, %v2757_v45, %v2758_v17  ;;  %v2318_v43 = vrot.slane %v2316_v15, 5  ;;  %v2322_v31 = vshll.u32 %v2118_v32, 16  ;;  %v2326_v49 = vshrl.u32 %v2118_v32, 16  ;;  %v7869_v51 = vpop.f32.mrb[2].mxu0 }
 0x104   : > { %4948 = vmatmul.mubr.bf16.gmra.mrb[64].mxu0 %v7817_v8  ;;  %v2311_v48 = vsel %vm7086_vm2, %v2306_v54, %v2310_v2  ;;  %v5883_v40 = vcombine.low %v7850_v39, %v7858_v52  ;;  %v1864_v58 = vsel %vm7345_vm13, %v1862_v18, %v1863_v44  ;;  %v2332_v34 = vshll.u32 %v2119_v5, 16  ;;  %v7876_v12 = vpop.f32.mrb[3].mxu0  ;;  %v1708_v2 = vld [vmem:[#allocation2 + $0xbc] sm:$0x1]  ;;  %v995_v44 = vld [vmem:[#allocation2 + $0xc0] sm:$0xf] }
 0x105   : > { %4955 = vmatprep.mubr.bf16.mxu0 %v5881_v0  ;;  %v7874_v56 = vcombine.low %v2301_v22, %v2311_v48  ;;  %v5826_v8 = vcombine.low %v1861_v23, %v1864_v58  ;;  %v2319_v60 = vor.u32 %v2318_v43, %v2315_v28  ;;  %v2324_v62 = vrot.slane %v2322_v31, 5  ;;  %v2121_v5 = vld [vmem:[#allocation2 + $0x70] sm:$0xf]  ;;  %v2122_v28 = vld [vmem:[#allocation2 + $0x74] sm:$0x1] }
 0x106   : > { %v2328_v3 = vrot.slane %v2326_v49, 4  ;;  %v2334_v61 = vrot.slane %v2332_v34, 5  ;;  %v378_v4 = vadd.f32 %v7621_v14, %v7685_v63  ;;  %v409_v13 = vmax.f32 %v7689_v36, 0.0  ;;  %v2635_v31 = vld [vmem:[#allocation2 + $0x78] sm:$0xe] }
 0x107   : > { %v2320_v7 = vrot.slane %v2319_v60, 4  ;;  %v5868_v26 = vrot.slane %v2632_v47, 9  ;;  %v2762_v25 = vrot.slane %v2633_v50, 5  ;;  %v2765_v42 = vrot.slane %v2634_v6, 5  ;;  %v2637_v60 = vld [vmem:[#allocation2 + $0x80] sm:$0x1] }
 0x108   : > { %v2329_v0 = vor.u32 %v2328_v3, %v2324_v62  ;;  %v410_v11 = vmax.f32 %v378_v4, 0.0  ;;  %v6094_v27 = vpack.c.bf16 %v409_v13, %v409_v13  ;;  %v5811_v20 = vrot.slane %v1706_v1, 9 }
 0x109   : > { %4867 = vmatmul.mubr.bf16.gmra.mrb[72].mxu1 %v5826_v8  ;;  %v2325_v30 = vsel %vm7086_vm2, %v2320_v7, %v2324_v62  ;;  %v7885_v46 = vsel %vm7345_vm13, %v5868_v26, %v2762_v25  ;;  %v2764_v14 = vrot.slane %v2762_v25, 4  ;;  %v1867_v63 = vrot.slane %v1707_v10, 5  ;;  %v3042_v25 = vld [vmem:[#allocation2 + $0x1c] sm:$0xf] }
 0x10a   : > { %v2330_v36 = vrot.slane %v2329_v0, 4  ;;  %v6095_v17 = vpack.c.bf16 %v410_v11, %v410_v11  ;;  %v820_v19 = vshrl.u32 %v6094_v27, 16  ;;  %v823_v21 = vshll.u32 %v6094_v27, 16 }
 0x10b   : > { %v7889_v32 = vsel %vm7345_vm13, %v2764_v14, %v2765_v42  ;;  %v7893_v38 = vsel %vm7345_vm13, %v5811_v20, %v1867_v63  ;;  %v1869_v22 = vrot.slane %v1867_v63, 4  ;;  %v1870_v45 = vrot.slane %v1708_v2, 5  ;;  %v3043_v2 = vld [vmem:[#allocation2 + $0x20] sm:$0x1] }
 0x10c   : > { %4956 = vmatmul.mubr.bf16.gmra.mrb[68].mxu0 %v7844_v53  ;;  %v2335_v15 = vsel %vm7086_vm2, %v2330_v36, %v2334_v61  ;;  %v822_v54 = vrot.slane %v820_v19, 7  ;;  %v828_v23 = vshrl.u32 %v6095_v17, 16  ;;  %v831_v18 = vshll.u32 %v6095_v17, 16  ;;  %v3041_v61 = vld [vmem:[#allocation2 + $0x18] sm:$0xf] }
 0x10d   : > { %4963 = vmatprep.mubr.bf16.mxu0 %v5882_v59  ;;  %v7901_v47 = vcombine.low %v2325_v30, %v2335_v15  ;;  %v5884_v50 = vcombine.low %v7885_v46, %v7889_v32  ;;  %v7907_v43 = vsel %vm7345_vm13, %v1869_v22, %v1870_v45  ;;  %v2337_v53 = vshrl.u32 %v2120_v55, 16  ;;  %v2124_v45 = vld [vmem:[#allocation2 + $0x7c] sm:$0xf]  ;;  %v2126_v46 = vld [vmem:[#allocation2 + $0x84] sm:$0xf] }
 0x10e   : > { %v825_v49 = vor.u32 %v823_v21, %v822_v54  ;;  %v826_v48 = vrot.slane %v822_v54, 4  ;;  %v7909_v58 = vrot.slane %v828_v23, 7  ;;  %v5827_v34 = vcombine.low %v7893_v38, %v7907_v43  ;;  %v2125_v23 = vld [vmem:[#allocation2 + $0x80] sm:$0x1]  ;;  %v2127_v32 = vld [vmem:[#allocation2 + $0x88] sm:$0xf] }
 0x10f   : > { %v2339_v35 = vrot.slane %v2337_v53, 4  ;;  %v2340_v59 = vshll.u32 %v2120_v55, 16  ;;  %v2346_v6 = vshll.u32 %v2121_v5, 16  ;;  %v2350_v8 = vshrl.u32 %v2121_v5, 16 }
 0x110   : > { %v833_v62 = vor.u32 %v831_v18, %v7909_v58  ;;  %v835_v1 = vrot.slane %v7909_v58, 4  ;;  %v996_v10 = vsel %vm7129_vm9, %v825_v49, %v995_v44  ;;  %v2356_v3 = vshll.u32 %v2122_v28, 16  ;;  %v2638_v28 = vld [vmem:[#allocation2 + $0x84] sm:$0xe] }
 0x111   : > { %997 = vst [vmem:[#allocation2 + $0xc0] sm:$0xf] %v996_v10  ;;  %v2342_v4 = vrot.slane %v2340_v59, 5  ;;  %v2348_v13 = vrot.slane %v2346_v6, 5  ;;  %v2352_v7 = vrot.slane %v2350_v8, 4  ;;  %v5869_v26 = vrot.slane %v2635_v31, 9 }
 0x112   : > { %v834_v42 = vsel %vm7123_vm8, %v826_v48, %v833_v62  ;;  %v2358_v0 = vrot.slane %v2356_v3, 5  ;;  %v2769_v11 = vrot.slane %v2636_v37, 5  ;;  %v2772_v27 = vrot.slane %v2637_v60, 5  ;;  %v2639_v37 = vld [vmem:[#allocation2 + $0x88] sm:$0xf] }
 0x113   : > { %998 = vst [vmem:[#allocation2 + $0xc4] sm:$0xf] %v834_v42  ;;  %v2343_v20 = vor.u32 %v2342_v4, %v2339_v35  ;;  %v2353_v30 = vor.u32 %v2352_v7, %v2348_v13  ;;  %v3090_v16 = vshrl.u32 %v3041_v61, 16  ;;  %v3093_v14 = vshll.u32 %v3041_v61, 16  ;;  %v2640_v60 = vld [vmem:[#allocation2 + $0x8c] sm:$0x1] }
 0x114   : > { %4964 = vmatmul.mubr.bf16.gmra.mrb[72].mxu0 %v7874_v56  ;;  %v7922_v63 = vsel %vm7345_vm13, %v5869_v26, %v2769_v11  ;;  %v2771_v36 = vrot.slane %v2769_v11, 4  ;;  %v3099_v17 = vshll.u32 %v3042_v25, 16  ;;  %v3103_v19 = vshrl.u32 %v3042_v25, 16  ;;  %v3044_v42 = vld [vmem:[#allocation2 + $0x24] sm:$0xf] }
 0x115   : > { %4971 = vmatprep.mubr.bf16.mxu0 %v5883_v40  ;;  %v2344_v21 = vrot.slane %v2343_v20, 4  ;;  %v2354_v55 = vrot.slane %v2353_v30, 4  ;;  %v3092_v44 = vrot.slane %v3090_v16, 4  ;;  %v3095_v22 = vrot.slane %v3093_v14, 5 }
 0x116   : > { %v7929_v56 = vsel %vm7345_vm13, %v2771_v36, %v2772_v27  ;;  %v3101_v5 = vrot.slane %v3099_v17, 5  ;;  %v3105_v15 = vrot.slane %v3103_v19, 4  ;;  %v3109_v54 = vshll.u32 %v3043_v2, 16  ;;  %v3046_v36 = vld [vmem:[#allocation2 + $0x2c] sm:$0x1] }
 0x117   : > { %v2349_v18 = vsel %vm7086_vm2, %v2344_v21, %v2348_v13  ;;  %v2359_v39 = vsel %vm7086_vm2, %v2354_v55, %v2358_v0  ;;  %v5885_v52 = vcombine.low %v7922_v63, %v7929_v56  ;;  %v3096_v40 = vor.u32 %v3095_v22, %v3092_v44  ;;  %v3049_v63 = vld [vmem:[#allocation2 + $0x38] sm:$0x1] }
 0x118   : > { %v7937_v53 = vcombine.low %v2349_v18, %v2359_v39  ;;  %v3106_v31 = vor.u32 %v3105_v15, %v3101_v5  ;;  %v3111_v49 = vrot.slane %v3109_v54, 5  ;;  %v2361_v48 = vshrl.u32 %v2123_v9, 16  ;;  %v7945_v0 = vpop.f32.mrb[4].mxu0  ;;  %v2141_v24 = vld [vmem:[#allocation2 + $0xc0] sm:$0xf] }
 0x119   : > { %v3097_v35 = vrot.slane %v3096_v40, 4  ;;  %v2364_v59 = vshll.u32 %v2123_v9, 16  ;;  %v2370_v6 = vshll.u32 %v2124_v45, 16  ;;  %v2374_v8 = vshrl.u32 %v2124_v45, 16  ;;  %v2128_v45 = vld [vmem:[#allocation2 + $0x8c] sm:$0x1] }
 0x11a   : > { %v6946_v62 = vld [vmem:[#allocation2 + $0xc0] sm:$0xff]   ;;  %v3107_v10 = vrot.slane %v3106_v31, 4  ;;  %v2363_v3 = vrot.slane %v2361_v48, 4  ;;  %v2380_v61 = vshll.u32 %v2125_v23, 16  ;;  %v7941_v4 = vadd.f32 %v7860_v57, %v7854_v29  ;;  %v3045_v29 = vld [vmem:[#allocation2 + $0x28] sm:$0xf] }
 0x11b   : > { %v3102_v13 = vsel %vm7086_vm2, %v3097_v35, %v3101_v5  ;;  %v2366_v7 = vrot.slane %v2364_v59, 5  ;;  %v2372_v26 = vrot.slane %v2370_v6, 5  ;;  %v2376_v25 = vrot.slane %v2374_v8, 4  ;;  %4874 = vmatprep.mubr.bf16.mxu1 %v6946_v62  ;;  %v7978_v48 = vpop.f32.mrb[5].mxu0  ;;  %v2642_v8 = vld [vmem:[#allocation2 + $0x94] sm:$0xf] }
 0x11c   : > { %4972 = vmatmul.mubr.bf16.gmra.mrb[76].mxu0 %v7901_v47  ;;  %v3112_v11 = vsel %vm7086_vm2, %v3107_v10, %v3111_v49  ;;  %v2382_v27 = vrot.slane %v2380_v61, 5  ;;  %v5870_v2 = vrot.slane %v2638_v28, 9  ;;  %v2776_v20 = vrot.slane %v2639_v37, 5  ;;  %v7950_v57 = vpop.f32.mrb[0].mxu1  ;;  %4875 = vmatmul.mubr.bf16.gmra.mrb[76].mxu1 %v5827_v34  ;;  %v6948_v34 = vld [vmem:[#allocation2 + $0x18] sm:$0xff]  }
 0x11d   : > { %4979 = vmatprep.mubr.bf16.mxu0 %v5884_v50  ;;  %v5908_v30 = vcombine.low %v3102_v13, %v3112_v11  ;;  %v2367_v47 = vor.u32 %v2366_v7, %v2363_v3  ;;  %v2377_v16 = vor.u32 %v2376_v25, %v2372_v26  ;;  %v2779_v14 = vrot.slane %v2640_v60, 5  ;;  %v7958_v17 = vpop.f32.mrb[1].mxu1  ;;  %v2641_v49 = vld [vmem:[#allocation2 + $0x90] sm:$0xe]  ;;  %v2643_v61 = vld [vmem:[#allocation2 + $0x98] sm:$0x1] }
 0x11e   : > { %v7962_v19 = vsel %vm7345_vm13, %v5870_v2, %v2776_v20  ;;  %v2778_v9 = vrot.slane %v2776_v20, 4  ;;  %v3114_v21 = vshrl.u32 %v3044_v42, 16  ;;  %v3117_v55 = vshll.u32 %v3044_v42, 16  ;;  %v7964_v50 = vpop.f32.mrb[2].mxu1  ;;  %v3047_v42 = vld [vmem:[#allocation2 + $0x30] sm:$0xf] }
 0x11f   : > { %5076 = vmatprep.mubr.bf16.mxu1 %v5908_v30  ;;  %v2368_v38 = vrot.slane %v2367_v47, 4  ;;  %v2378_v43 = vrot.slane %v2377_v16, 4  ;;  %v3123_v44 = vshll.u32 %v3045_v29, 16  ;;  %v3127_v22 = vshrl.u32 %v3045_v29, 16  ;;  %v7970_v18 = vpop.f32.mrb[3].mxu1  ;;  %v7981_v11 = vpop.f32.mrb[6].mxu0 }
 0x120   : > { %v7968_v5 = vsel %vm7345_vm13, %v2778_v9, %v2779_v14  ;;  %v3116_v15 = vrot.slane %v3114_v21, 4  ;;  %v3119_v54 = vrot.slane %v3117_v55, 5  ;;  %v3133_v23 = vshll.u32 %v3046_v36, 16  ;;  %v3048_v30 = vld [vmem:[#allocation2 + $0x34] sm:$0xf]  ;;  %v7988_v36 = vpop.f32.mrb[7].mxu0 }
 0x121   : > { %v2373_v39 = vsel %vm7086_vm2, %v2368_v38, %v2372_v26  ;;  %v2383_v40 = vsel %vm7086_vm2, %v2378_v43, %v2382_v27  ;;  %v5886_v28 = vcombine.low %v7962_v19, %v7968_v5  ;;  %v3125_v31 = vrot.slane %v3123_v44, 5  ;;  %v6949_v55 = vld [vmem:[#allocation2 + $0x24] sm:$0xff]   ;;  %v2130_v44 = vld [vmem:[#allocation2 + $0x94] sm:$0xf] }
 0x122   : > { %v5853_v37 = vcombine.low %v2373_v39, %v2383_v40  ;;  %v3120_v35 = vor.u32 %v3119_v54, %v3116_v15  ;;  %v3129_v59 = vrot.slane %v3127_v22, 4  ;;  %v3135_v6 = vrot.slane %v3133_v23, 5 }
 0x123   : > { %v2385_v60 = vshrl.u32 %v2126_v46, 16  ;;  %v2388_v62 = vshll.u32 %v2126_v46, 16  ;;  %v2394_v10 = vshll.u32 %v2127_v32, 16  ;;  %v2398_v3 = vshrl.u32 %v2127_v32, 16 }
 0x124   : > { %4980 = vmatmul.mubr.bf16.gmra.mrb[80].mxu0 %v7937_v53  ;;  %v3121_v13 = vrot.slane %v3120_v35, 4  ;;  %v3130_v7 = vor.u32 %v3129_v59, %v3125_v31  ;;  %v2404_v26 = vshll.u32 %v2128_v45, 16  ;;  %v5871_v25 = vrot.slane %v2641_v49, 9  ;;  %5077 = vmatmul.mubr.bf16.vlgmr.msra.gmra.mrb[80].mxu1 %v6948_v34  ;;  %v2129_v34 = vld [vmem:[#allocation2 + $0x90] sm:$0xf] }
 0x125   : > { %4987 = vmatprep.mubr.bf16.mxu0 %v5885_v52  ;;  %v2387_v27 = vrot.slane %v2385_v60, 4  ;;  %v2390_v2 = vrot.slane %v2388_v62, 5  ;;  %v2396_v20 = vrot.slane %v2394_v10, 5  ;;  %v2400_v29 = vrot.slane %v2398_v3, 4  ;;  %v2131_v62 = vld [vmem:[#allocation2 + $0x98] sm:$0x1] }
 0x126   : > { %v3126_v53 = vsel %vm7086_vm2, %v3121_v13, %v3125_v31  ;;  %v3131_v47 = vrot.slane %v3130_v7, 4  ;;  %v2406_v16 = vrot.slane %v2404_v26, 5  ;;  %v2783_v14 = vrot.slane %v2642_v8, 5  ;;  %v2644_v26 = vld [vmem:[#allocation2 + $0x9c] sm:$0xe] }
 0x127   : > { %v2391_v9 = vor.u32 %v2390_v2, %v2387_v27  ;;  %v2401_v21 = vor.u32 %v2400_v29, %v2396_v20  ;;  %v2786_v46 = vrot.slane %v2643_v61, 5  ;;  %v3138_v56 = vshrl.u32 %v3047_v42, 16  ;;  %v2646_v29 = vld [vmem:[#allocation2 + $0xa4] sm:$0x1] }
 0x128   : > { %v3136_v52 = vsel %vm7086_vm2, %v3131_v47, %v3135_v6  ;;  %v7994_v32 = vsel %vm7345_vm13, %v5871_v25, %v2783_v14  ;;  %v2785_v38 = vrot.slane %v2783_v14, 4  ;;  %v3141_v43 = vshll.u32 %v3047_v42, 16  ;;  %v2645_v25 = vld [vmem:[#allocation2 + $0xa0] sm:$0xf] }
 0x129   : > { %v5909_v22 = vcombine.low %v3126_v53, %v3136_v52  ;;  %v2392_v45 = vrot.slane %v2391_v9, 4  ;;  %v2402_v15 = vrot.slane %v2401_v21, 4  ;;  %v3140_v54 = vrot.slane %v3138_v56, 4  ;;  %v7996_v23 = vpop.f32.mrb[8].mxu0  ;;  %v3051_v56 = vld [vmem:[#allocation2 + $0x40] sm:$0xf] }
 0x12a   : > { %v8000_v39 = vsel %vm7345_vm13, %v2785_v38, %v2786_v46  ;;  %v3143_v40 = vrot.slane %v3141_v43, 5  ;;  %v3147_v31 = vshll.u32 %v3048_v30, 16  ;;  %v3151_v49 = vshrl.u32 %v3048_v30, 16  ;;  %v8002_v35 = vpop.f32.mrb[9].mxu0 }
 0x12b   : > { %5084 = vmatprep.mubr.bf16.mxu1 %v5909_v22  ;;  %v2397_v59 = vsel %vm7086_vm2, %v2392_v45, %v2396_v20  ;;  %v2407_v6 = vsel %vm7086_vm2, %v2402_v15, %v2406_v16  ;;  %v5887_v8 = vcombine.low %v7994_v32, %v8000_v39  ;;  %v3157_v60 = vshll.u32 %v3049_v63, 16  ;;  %v8010_v10 = vpop.f32.mrb[10].mxu0  ;;  %v3050_v16 = vld [vmem:[#allocation2 + $0x3c] sm:$0xf]  ;;  %v6951_v32 = vld [vmem:[#allocation2 + $0x30] sm:$0xff]  }
 0x12c   : > { %4988 = vmatmul.mubr.bf16.gmra.mrb[84].mxu0 %v5853_v37  ;;  %v5854_v3 = vcombine.low %v2397_v59, %v2407_v6  ;;  %v3144_v61 = vor.u32 %v3143_v40, %v3140_v54  ;;  %v3149_v13 = vrot.slane %v3147_v31, 5  ;;  %v3153_v7 = vrot.slane %v3151_v49, 4  ;;  %5085 = vmatmul.mubr.bf16.gmra.mrb[84].mxu1 %v6949_v55  ;;  %v8015_v14 = vpop.f32.mrb[11].mxu0  ;;  %v2132_v59 = vld [vmem:[#allocation2 + $0x9c] sm:$0xf] }
 0x12d   : > { %4995 = vmatprep.mubr.bf16.mxu0 %v5886_v28  ;;  %v3159_v42 = vrot.slane %v3157_v60, 5  ;;  %v2409_v27 = vshrl.u32 %v2129_v34, 16  ;;  %v2412_v2 = vshll.u32 %v2129_v34, 16  ;;  %v2418_v20 = vshll.u32 %v2130_v44, 16  ;;  %v3052_v34 = vld [vmem:[#allocation2 + $0x44] sm:$0x1] }
 0x12e   : > { %v3145_v30 = vrot.slane %v3144_v61, 4  ;;  %v3154_v53 = vor.u32 %v3153_v7, %v3149_v13  ;;  %v2422_v47 = vshrl.u32 %v2130_v44, 16  ;;  %v2428_v37 = vshll.u32 %v2131_v62, 16  ;;  %v2133_v6 = vld [vmem:[#allocation2 + $0xa0] sm:$0xf] }
 0x12f   : > { %v2411_v9 = vrot.slane %v2409_v27, 4  ;;  %v2414_v21 = vrot.slane %v2412_v2, 5  ;;  %v2420_v46 = vrot.slane %v2418_v20, 5  ;;  %v5872_v63 = vrot.slane %v2644_v26, 9  ;;  %v2134_v7 = vld [vmem:[#allocation2 + $0xa4] sm:$0x1] }
 0x130   : > { %v3150_v19 = vsel %vm7086_vm2, %v3145_v30, %v3149_v13  ;;  %v3155_v5 = vrot.slane %v3154_v53, 4  ;;  %v2424_v28 = vrot.slane %v2422_v47, 4  ;;  %v2430_v55 = vrot.slane %v2428_v37, 5  ;;  %v2647_v2 = vld [vmem:[#allocation2 + $0xa8] sm:$0xe] }
 0x131   : > { %v2415_v52 = vor.u32 %v2414_v21, %v2411_v9  ;;  %v2790_v38 = vrot.slane %v2645_v25, 5  ;;  %v2793_v43 = vrot.slane %v2646_v29, 5  ;;  %v3162_v44 = vshrl.u32 %v3050_v16, 16  ;;  %v2648_v20 = vld [vmem:[#allocation2 + $0xac] sm:$0xf] }
 0x132   : > { %v3160_v22 = vsel %vm7086_vm2, %v3155_v5, %v3159_v42  ;;  %v2425_v45 = vor.u32 %v2424_v28, %v2420_v46  ;;  %v3165_v15 = vshll.u32 %v3050_v16, 16  ;;  %v3171_v54 = vshll.u32 %v3051_v56, 16  ;;  %v2649_v47 = vld [vmem:[#allocation2 + $0xb0] sm:$0x1]  ;;  %v3053_v28 = vld [vmem:[#allocation2 + $0x48] sm:$0xf] }
 0x133   : > { %v5910_v39 = vcombine.low %v3150_v19, %v3160_v22  ;;  %v2416_v40 = vrot.slane %v2415_v52, 4  ;;  %v2791_v31 = vsel %vm7345_vm13, %v5872_v63, %v2790_v38  ;;  %v2792_v49 = vrot.slane %v2790_v38, 4 }
 0x134   : > { %4996 = vmatmul.mubr.bf16.gmra.mrb[88].mxu0 %v5854_v3  ;;  %v2426_v60 = vrot.slane %v2425_v45, 4  ;;  %v3164_v62 = vrot.slane %v3162_v44, 4  ;;  %v3167_v61 = vrot.slane %v3165_v15, 5  ;;  %v3173_v13 = vrot.slane %v3171_v54, 5 }
 0x135   : > { %5003 = vmatprep.mubr.bf16.mxu0 %v5887_v8  ;;  %5092 = vmatprep.mubr.bf16.mxu1 %v5910_v39  ;;  %v2421_v26 = vsel %vm7086_vm2, %v2416_v40, %v2420_v46  ;;  %v2794_v25 = vsel %vm7345_vm13, %v2792_v49, %v2793_v43  ;;  %v3175_v42 = vshrl.u32 %v3051_v56, 16  ;;  %v3181_v27 = vshll.u32 %v3052_v34, 16  ;;  %v8029_v8 = vpop.f32.mrb[4].mxu1  ;;  %v3054_v43 = vld [vmem:[#allocation2 + $0x4c] sm:$0xf] }
 0x136   : > { %v2431_v3 = vsel %vm7086_vm2, %v2426_v60, %v2430_v55  ;;  %5093 = vmatmul.mubr.bf16.gmra.mrb[88].mxu1 %v6951_v32  ;;  %v5888_v29 = vcombine.low %v2791_v31, %v2794_v25  ;;  %v3168_v30 = vor.u32 %v3167_v61, %v3164_v62  ;;  %v2433_v53 = vshrl.u32 %v2132_v59, 16  ;;  %v8031_v46 = vpop.f32.mrb[5].mxu1  ;;  %v3055_v61 = vld [vmem:[#allocation2 + $0x50] sm:$0x1] }
 0x137   : > { %v5855_v37 = vcombine.low %v2421_v26, %v2431_v3  ;;  %v3177_v16 = vrot.slane %v3175_v42, 4  ;;  %v3183_v9 = vrot.slane %v3181_v27, 5  ;;  %v2436_v21 = vshll.u32 %v2132_v59, 16  ;;  %v8033_v34 = vpop.f32.mrb[6].mxu1  ;;  %v2135_v27 = vld [vmem:[#allocation2 + $0xa8] sm:$0xf] }
 0x138   : > { %v3169_v63 = vrot.slane %v3168_v30, 4  ;;  %v2435_v56 = vrot.slane %v2433_v53, 4  ;;  %v2442_v19 = vshll.u32 %v2133_v6, 16  ;;  %v2446_v5 = vshrl.u32 %v2133_v6, 16  ;;  %v8037_v54 = vpop.f32.mrb[7].mxu1  ;;  %v6952_v6 = vld [vmem:[#allocation2 + $0x3c] sm:$0xff]  }
 0x139   : > { %v3178_v52 = vor.u32 %v3177_v16, %v3173_v13  ;;  %v2438_v55 = vrot.slane %v2436_v21, 5  ;;  %v2452_v32 = vshll.u32 %v2134_v7, 16  ;;  %v5873_v38 = vrot.slane %v2647_v2, 9 }
 0x13a   : > { %v3174_v44 = vsel %vm7086_vm2, %v3169_v63, %v3173_v13  ;;  %v2444_v22 = vrot.slane %v2442_v19, 5  ;;  %v2448_v45 = vrot.slane %v2446_v5, 4  ;;  %v2797_v15 = vrot.slane %v2648_v20, 5 }
 0x13b   : > { %v3179_v39 = vrot.slane %v3178_v52, 4  ;;  %v2439_v40 = vor.u32 %v2438_v55, %v2435_v56  ;;  %v2454_v31 = vrot.slane %v2452_v32, 5  ;;  %v2800_v49 = vrot.slane %v2649_v47, 5  ;;  %v2136_v47 = vld [vmem:[#allocation2 + $0xac] sm:$0xf] }
 0x13c   : > { %5004 = vmatmul.mubr.bf16.gmra.mrb[92].mxu0 %v5855_v37  ;;  %v2449_v59 = vor.u32 %v2448_v45, %v2444_v22  ;;  %v2798_v60 = vsel %vm7345_vm13, %v5873_v38, %v2797_v15  ;;  %v2799_v62 = vrot.slane %v2797_v15, 4  ;;  %v3186_v7 = vshrl.u32 %v3053_v28, 16 }
 0x13d   : > { %5011 = vmatprep.mubr.bf16.mxu0 %v5888_v29  ;;  %v3184_v13 = vsel %vm7086_vm2, %v3179_v39, %v3183_v9  ;;  %v2440_v26 = vrot.slane %v2439_v40, 4  ;;  %v3189_v25 = vshll.u32 %v3053_v28, 16  ;;  %v3195_v42 = vshll.u32 %v3054_v43, 16  ;;  %v8043_v2 = vpop.f32.mrb[12].mxu0  ;;  %v2137_v9 = vld [vmem:[#allocation2 + $0xb0] sm:$0x1] }
 0x13e   : > { %v5911_v20 = vcombine.low %v3174_v44, %v3184_v13  ;;  %v2450_v3 = vrot.slane %v2449_v59, 4  ;;  %v2801_v30 = vsel %vm7345_vm13, %v2799_v62, %v2800_v49  ;;  %v3188_v53 = vrot.slane %v3186_v7, 4  ;;  %v8051_v28 = vpop.f32.mrb[13].mxu0  ;;  %v2650_v44 = vld [vmem:[#allocation2 + $0xb4] sm:$0xe] }
 0x13f   : > { %v2445_v37 = vsel %vm7086_vm2, %v2440_v26, %v2444_v22  ;;  %v5889_v29 = vcombine.low %v2798_v60, %v2801_v30  ;;  %v3191_v16 = vrot.slane %v3189_v25, 5  ;;  %v3197_v21 = vrot.slane %v3195_v42, 5  ;;  %v2651_v22 = vld [vmem:[#allocation2 + $0xb8] sm:$0xf]  ;;  %v2652_v49 = vld [vmem:[#allocation2 + $0xbc] sm:$0x1] }
 0x140   : > { %5100 = vmatprep.mubr.bf16.mxu1 %v5911_v20  ;;  %v2455_v63 = vsel %vm7086_vm2, %v2450_v3, %v2454_v31  ;;  %v3199_v56 = vshrl.u32 %v3054_v43, 16  ;;  %v3205_v19 = vshll.u32 %v3055_v61, 16  ;;  %v2457_v5 = vshrl.u32 %v2135_v27, 16  ;;  %v3056_v62 = vld [vmem:[#allocation2 + $0x54] sm:$0xf] }
 0x141   : > { %v5856_v52 = vcombine.low %v2445_v37, %v2455_v63  ;;  %5101 = vmatmul.mubr.bf16.gmra.mrb[92].mxu1 %v6952_v6  ;;  %v3192_v55 = vor.u32 %v3191_v16, %v3188_v53  ;;  %v2460_v32 = vshll.u32 %v2135_v27, 16  ;;  %v2466_v38 = vshll.u32 %v2136_v47, 16  ;;  %v3057_v26 = vld [vmem:[#allocation2 + $0x58] sm:$0xf] }
 0x142   : > { %v3201_v45 = vrot.slane %v3199_v56, 4  ;;  %v3207_v15 = vrot.slane %v3205_v19, 5  ;;  %v2459_v39 = vrot.slane %v2457_v5, 4  ;;  %v2470_v40 = vshrl.u32 %v2136_v47, 16  ;;  %v8053_v25 = vpop.f32.mrb[8].mxu1  ;;  %v6954_v47 = vld [vmem:[#allocation2 + $0x48] sm:$0xff]  }
 0x143   : > { %v3193_v59 = vrot.slane %v3192_v55, 4  ;;  %v2462_v60 = vrot.slane %v2460_v32, 5  ;;  %v2468_v31 = vrot.slane %v2466_v38, 5  ;;  %v2476_v43 = vshll.u32 %v2137_v9, 16  ;;  %v3058_v9 = vld [vmem:[#allocation2 + $0x5c] sm:$0x1] }
 0x144   : > { %5012 = vmatmul.mubr.bf16.gmra.mrb[96].mxu0 %v5856_v52  ;;  %v3202_v61 = vor.u32 %v3201_v45, %v3197_v21  ;;  %v2472_v7 = vrot.slane %v2470_v40, 4  ;;  %v5874_v13 = vrot.slane %v2650_v44, 9  ;;  %v2804_v6 = vrot.slane %v2651_v22, 5  ;;  %v2138_v32 = vld [vmem:[#allocation2 + $0xb4] sm:$0xf]  ;;  %v8065_v40 = vpop.f32.mrb[9].mxu1 }
 0x145   : > { %5019 = vmatprep.mubr.bf16.mxu0 %v5889_v29  ;;  %v3198_v42 = vsel %vm7086_vm2, %v3193_v59, %v3197_v21  ;;  %v2463_v27 = vor.u32 %v2462_v60, %v2459_v39  ;;  %v2478_v20 = vrot.slane %v2476_v43, 5  ;;  %v2807_v3 = vrot.slane %v2652_v49, 5  ;;  %v2139_v39 = vld [vmem:[#allocation2 + $0xb8] sm:$0xf]  ;;  %v2140_v43 = vld [vmem:[#allocation2 + $0xbc] sm:$0x1] }
 0x146   : > { %v3203_v30 = vrot.slane %v3202_v61, 4  ;;  %v2473_v53 = vor.u32 %v2472_v7, %v2468_v31  ;;  %v2805_v37 = vsel %vm7345_vm13, %v5874_v13, %v2804_v6  ;;  %v2806_v16 = vrot.slane %v2804_v6, 4 }
 0x147   : > { %v2464_v63 = vrot.slane %v2463_v27, 4  ;;  %v3210_v56 = vshrl.u32 %v3056_v62, 16  ;;  %v3213_v19 = vshll.u32 %v3056_v62, 16  ;;  %v3219_v5 = vshll.u32 %v3057_v26, 16  ;;  %v8069_v62 = vpop.f32.mrb[10].mxu1 }
 0x148   : > { %v3208_v29 = vsel %vm7086_vm2, %v3203_v30, %v3207_v15  ;;  %v2474_v52 = vrot.slane %v2473_v53, 4  ;;  %v2808_v21 = vsel %vm7345_vm13, %v2806_v16, %v2807_v3  ;;  %v3223_v55 = vshrl.u32 %v3057_v26, 16  ;;  %v8071_v26 = vpop.f32.mrb[11].mxu1  ;;  %v2654_v53 = vld [vmem:[#allocation2 + $0xc4] sm:$0xf] }
 0x149   : > { %v5912_v38 = vcombine.low %v3198_v42, %v3208_v29  ;;  %v2469_v44 = vsel %vm7086_vm2, %v2464_v63, %v2468_v31  ;;  %v5890_v22 = vcombine.low %v2805_v37, %v2808_v21  ;;  %v3212_v45 = vrot.slane %v3210_v56, 4  ;;  %v999_v31 = vld [vmem:[#allocation2 + $0xc8] sm:$0x1]  ;;  %v3060_v21 = vld [vmem:[#allocation2 + $0x64] sm:$0xf] }
 0x14a   : > { %v2479_v49 = vsel %vm7086_vm2, %v2474_v52, %v2478_v20  ;;  %v3215_v59 = vrot.slane %v3213_v19, 5  ;;  %v3221_v15 = vrot.slane %v3219_v5, 5  ;;  %v3225_v60 = vrot.slane %v3223_v55, 4  ;;  %v2653_v20 = vld [vmem:[#allocation2 + $0xc0] sm:$0xe] }
 0x14b   : > { %5108 = vmatprep.mubr.bf16.mxu1 %v5912_v38  ;;  %v5857_v61 = vcombine.low %v2469_v44, %v2479_v49  ;;  %v3229_v7 = vshll.u32 %v3058_v9, 16  ;;  %v2481_v13 = vshrl.u32 %v2138_v32, 16  ;;  %v2484_v6 = vshll.u32 %v2138_v32, 16  ;;  %v3059_v19 = vld [vmem:[#allocation2 + $0x60] sm:$0xf] }
 0x14c   : > { %5109 = vmatmul.mubr.bf16.gmra.mrb[96].mxu1 %v6954_v47  ;;  %v3216_v42 = vor.u32 %v3215_v59, %v3212_v45  ;;  %v3226_v27 = vor.u32 %v3225_v60, %v3221_v15  ;;  %v2490_v3 = vshll.u32 %v2139_v39, 16  ;;  %v2494_v30 = vshrl.u32 %v2139_v39, 16  ;;  %v6955_v39 = vld [vmem:[#allocation2 + $0x54] sm:$0xff]   ;;  %v3061_v59 = vld [vmem:[#allocation2 + $0x68] sm:$0x1]  ;;  %v8081_v60 = vpop.f32.mrb[14].mxu0 }
 0x14d   : > { %5020 = vmatmul.mubr.bf16.gmra.mrb[100].mxu0 %v5857_v61  ;;  %v3231_v37 = vrot.slane %v3229_v7, 5  ;;  %v2483_v16 = vrot.slane %v2481_v13, 4  ;;  %v2486_v63 = vrot.slane %v2484_v6, 5  ;;  %v2500_v56 = vshll.u32 %v2140_v43, 16 }
 0x14e   : > { %5027 = vmatprep.mubr.bf16.mxu0 %v5890_v22  ;;  %v3217_v9 = vrot.slane %v3216_v42, 4  ;;  %v3227_v5 = vrot.slane %v3226_v27, 4  ;;  %v2492_v29 = vrot.slane %v2490_v3, 5  ;;  %v2496_v52 = vrot.slane %v2494_v30, 4 }
 0x14f   : > { %v2487_v55 = vor.u32 %v2486_v63, %v2483_v16  ;;  %v2502_v47 = vrot.slane %v2500_v56, 5  ;;  %v1000_v32 = vsel %vm7137_vm10, %v835_v1, %v999_v31  ;;  %v5875_v38 = vrot.slane %v2653_v20, 9  ;;  %v8083_v1 = vpop.f32.mrb[15].mxu0 }
 0x150   : > { %v3222_v44 = vsel %vm7086_vm2, %v3217_v9, %v3221_v15  ;;  %v3232_v45 = vsel %vm7086_vm2, %v3227_v5, %v3231_v37  ;;  %v2497_v22 = vor.u32 %v2496_v52, %v2492_v29  ;;  %1001 = vst [vmem:[#allocation2 + $0xc8] sm:$0x1] %v1000_v32  ;;  %v2811_v49 = vrot.slane %v2654_v53, 5  ;;  %v2142_v53 = vld [vmem:[#allocation2 + $0xc4] sm:$0xf] }
 0x151   : > { %v5913_v43 = vcombine.low %v3222_v44, %v3232_v45  ;;  %v2488_v61 = vrot.slane %v2487_v55, 4  ;;  %v3234_v58 = vshrl.u32 %v3059_v19, 16  ;;  %v3237_v7 = vshll.u32 %v3059_v19, 16  ;;  %v8089_v42 = vpop.f32.mrb[16].mxu0  ;;  %v3062_v45 = vld [vmem:[#allocation2 + $0x6c] sm:$0xf] }
 0x152   : > { %v2498_v13 = vrot.slane %v2497_v22, 4  ;;  %v8087_v15 = vsel %vm7345_vm13, %v5875_v38, %v2811_v49  ;;  %v2813_v6 = vrot.slane %v2811_v49, 4  ;;  %v3243_v31 = vshll.u32 %v3060_v21, 16  ;;  %v8093_v37 = vpop.f32.mrb[17].mxu0 }
 0x153   : > { %5116 = vmatprep.mubr.bf16.mxu1 %v5913_v43  ;;  %v2493_v27 = vsel %vm7086_vm2, %v2488_v61, %v2492_v29  ;;  %v3236_v3 = vrot.slane %v3234_v58, 4  ;;  %v3239_v30 = vrot.slane %v3237_v7, 5  ;;  %v3247_v20 = vshrl.u32 %v3060_v21, 16  ;;  %v8097_v9 = vpop.f32.mrb[18].mxu0  ;;  %v3063_v61 = vld [vmem:[#allocation2 + $0x70] sm:$0xf] }
 0x154   : > { %v2503_v16 = vsel %vm7086_vm2, %v2498_v13, %v2502_v47  ;;  %5117 = vmatmul.mubr.bf16.gmra.mrb[100].mxu1 %v6955_v39  ;;  %v3245_v63 = vrot.slane %v3243_v31, 5  ;;  %v3253_v56 = vshll.u32 %v3061_v59, 16  ;;  %v2505_v19 = vshrl.u32 %v2141_v24, 16 }
 0x155   : > { %v5858_v5 = vcombine.low %v2493_v27, %v2503_v16  ;;  %v3240_v52 = vor.u32 %v3239_v30, %v3236_v3  ;;  %v3249_v55 = vrot.slane %v3247_v20, 4  ;;  %v2508_v32 = vshll.u32 %v2141_v24, 16  ;;  %v3064_v20 = vld [vmem:[#allocation2 + $0x74] sm:$0x1] }
 0x156   : > { %v3255_v29 = vrot.slane %v3253_v56, 5  ;;  %v2507_v38 = vrot.slane %v2505_v19, 4  ;;  %v2514_v44 = vshll.u32 %v2142_v53, 16  ;;  %v2518_v21 = vshrl.u32 %v2142_v53, 16  ;;  %v8109_v53 = vpop.f32.mrb[19].mxu0 }
 0x157   : > { %5028 = vmatmul.mubr.bf16.gmra.mrb[104].mxu0 %v5858_v5  ;;  %v2655_v22 = vld [vmem:[#allocation2 + $0xc8] sm:$0x1]  ;;  %v3241_v49 = vrot.slane %v3240_v52, 4  ;;  %v3250_v43 = vor.u32 %v3249_v55, %v3245_v63  ;;  %v2510_v39 = vrot.slane %v2508_v32, 5  ;;  %v8101_v59 = vadd.f32 %v7876_v12, %v7869_v51  ;;  %v3553_v19 = vld [vmem:[#allocation2 + $0x18] sm:$0xe] }
 0x158   : > { %v2143_v47 = vld [vmem:[#allocation2 + $0xc8] sm:$0x1]  ;;  %v2814_v58 = vrot.slane %v2655_v22, 5  ;;  %v2516_v7 = vrot.slane %v2514_v44, 5  ;;  %v2520_v13 = vrot.slane %v2518_v21, 4  ;;  %v8107_v30 = vadd.f32 %v7958_v17, %v7950_v57  ;;  %v6957_v52 = vld [vmem:[#allocation2 + $0x60] sm:$0xff]  }
 0x159   : > { %v2524_v24 = vshll.u32 %v2143_v47, 16  ;;  %v3246_v31 = vsel %vm7086_vm2, %v3241_v49, %v3245_v63  ;;  %v3251_v27 = vrot.slane %v3250_v43, 4  ;;  %v2511_v3 = vor.u32 %v2510_v39, %v2507_v38  ;;  %v3554_v63 = vld [vmem:[#allocation2 + $0x1c] sm:$0xf]  ;;  %v3555_v32 = vld [vmem:[#allocation2 + $0x20] sm:$0x1] }
 0x15a   : > { %8766 = vst [vmem:[#allocation4_spill] sm:$0xff] %v8107_v30  ;;  %v2815_v51 = vsel %vm7345_vm13, %v2813_v6, %v2814_v58  ;;  %v2521_v12 = vor.u32 %v2520_v13, %v2516_v7  ;;  %v8115_v56 = vadd.f32 %v7970_v18, %v7964_v50  ;;  %v3258_v55 = vshrl.u32 %v3062_v45, 16  ;;  %v3556_v49 = vld [vmem:[#allocation2 + $0x24] sm:$0xe]  ;;  %v3557_v47 = vld [vmem:[#allocation2 + $0x28] sm:$0xf] }
 0x15b   : > { %v2526_v16 = vrot.slane %v2524_v24, 5  ;;  %v5891_v5 = vcombine.low %v8087_v15, %v2815_v51  ;;  %v3256_v57 = vsel %vm7086_vm2, %v3251_v27, %v3255_v29  ;;  %v2512_v17 = vrot.slane %v2511_v3, 4 }
 0x15c   : > { %8767 = vst [vmem:[#allocation5_spill] sm:$0xff] %v8115_v56  ;;  %v8120_v38 = vpop.f32.mrb[12].mxu1  ;;  %v5914_v6 = vcombine.low %v3246_v31, %v3256_v57  ;;  %v2522_v44 = vrot.slane %v2521_v12, 4  ;;  %v3261_v21 = vshll.u32 %v3062_v45, 16  ;;  %v3267_v22 = vshll.u32 %v3063_v61, 16 }
 0x15d   : > { %v8122_v50 = vpop.f32.mrb[13].mxu1  ;;  %5035 = vmatprep.mubr.bf16.mxu0 %v5891_v5  ;;  %v2517_v18 = vsel %vm7086_vm2, %v2512_v17, %v2516_v7  ;;  %v3260_v15 = vrot.slane %v3258_v55, 4  ;;  %v3271_v43 = vshrl.u32 %v3063_v61, 16  ;;  %v3277_v29 = vshll.u32 %v3064_v20, 16  ;;  %v3558_v31 = vld [vmem:[#allocation2 + $0x2c] sm:$0x1] }
 0x15e   : > { %v8126_v39 = vpop.f32.mrb[14].mxu1  ;;  %5124 = vmatprep.mubr.bf16.mxu1 %v5914_v6  ;;  %v2527_v58 = vsel %vm7086_vm2, %v2522_v44, %v2526_v16  ;;  %v3263_v13 = vrot.slane %v3261_v21, 5  ;;  %v3269_v45 = vrot.slane %v3267_v22, 5  ;;  %v5924_v24 = vrot.slane %v3553_v19, 9  ;;  %v3065_v17 = vld [vmem:[#allocation2 + $0x78] sm:$0xf] }
 0x15f   : > { %v8130_v27 = vpop.f32.mrb[15].mxu1  ;;  %v5859_v3 = vcombine.low %v2517_v18, %v2527_v58  ;;  %5125 = vmatmul.mubr.bf16.gmra.mrb[104].mxu1 %v6957_v52  ;;  %v3273_v51 = vrot.slane %v3271_v43, 4  ;;  %v3279_v7 = vrot.slane %v3277_v29, 5  ;;  %v3651_v12 = vrot.slane %v3554_v63, 5  ;;  %v3066_v44 = vld [vmem:[#allocation2 + $0x7c] sm:$0xf] }
 0x160   : > { %v3264_v61 = vor.u32 %v3263_v13, %v3260_v15  ;;  %v3654_v20 = vrot.slane %v3555_v32, 5  ;;  %v5925_v5 = vrot.slane %v3556_v49, 9  ;;  %v3658_v57 = vrot.slane %v3557_v47, 5  ;;  %v3067_v32 = vld [vmem:[#allocation2 + $0x80] sm:$0x1]  ;;  %v6958_v43 = vld [vmem:[#allocation2 + $0x6c] sm:$0xff]  }
 0x161   : > { %5036 = vmatmul.mubr.bf16.gmra.mrb[108].mxu0 %v5859_v3  ;;  %v3274_v55 = vor.u32 %v3273_v51, %v3269_v45  ;;  %v3652_v16 = vsel %vm7345_vm13, %v5924_v24, %v3651_v12  ;;  %v3653_v6 = vrot.slane %v3651_v12, 4  ;;  %v3661_v19 = vrot.slane %v3558_v31, 5  ;;  %v3559_v49 = vld [vmem:[#allocation2 + $0x30] sm:$0xe]  ;;  %v3560_v58 = vld [vmem:[#allocation2 + $0x34] sm:$0xf] }
 0x162   : > { %v3265_v21 = vrot.slane %v3264_v61, 4  ;;  %v3659_v52 = vsel %vm7345_vm13, %v5925_v5, %v3658_v57  ;;  %v3660_v22 = vrot.slane %v3658_v57, 4  ;;  %v8138_v63 = vadd.f32 %v7978_v48, %v7945_v0  ;;  %v3562_v3 = vld [vmem:[#allocation2 + $0x3c] sm:$0xe] }
 0x163   : > { %v3275_v18 = vrot.slane %v3274_v55, 4  ;;  %v3655_v15 = vsel %vm7345_vm13, %v3653_v6, %v3654_v20  ;;  %v8144_v29 = vadd.f32 %v7988_v36, %v7981_v11  ;;  %v8148_v47 = vadd.f32 %v8031_v46, %v8029_v8  ;;  %v3561_v36 = vld [vmem:[#allocation2 + $0x38] sm:$0x1]  ;;  %v3563_v20 = vld [vmem:[#allocation2 + $0x40] sm:$0xf] }
 0x164   : > { %v8150_v13 = vpop.f32.mrb[16].mxu1  ;;  %v8152_v0 = vpop.f32.mrb[20].mxu0  ;;  %v3270_v48 = vsel %vm7086_vm2, %v3265_v21, %v3269_v45  ;;  %v5940_v24 = vcombine.low %v3652_v16, %v3655_v15  ;;  %v3662_v31 = vsel %vm7345_vm13, %v3660_v22, %v3661_v19  ;;  %v8160_v11 = vadd.f32 %v8037_v54, %v8033_v34 }
 0x165   : > { %8768 = vst [vmem:[#allocation6_spill] sm:$0xff] %v8148_v47  ;;  %v8162_v8 = vpop.f32.mrb[17].mxu1  ;;  %v8164_v46 = vpop.f32.mrb[21].mxu0  ;;  %v3280_v51 = vsel %vm7086_vm2, %v3275_v18, %v3279_v7  ;;  %v5941_v12 = vcombine.low %v3659_v52, %v3662_v31  ;;  %v3282_v61 = vshrl.u32 %v3065_v17, 16  ;;  %v3285_v45 = vshll.u32 %v3065_v17, 16 }
 0x166   : > { %8769 = vst [vmem:[#allocation7_spill] sm:$0xff] %v8160_v11  ;;  %v8168_v5 = vpop.f32.mrb[18].mxu1  ;;  %v8170_v57 = vpop.f32.mrb[22].mxu0  ;;  %v5915_v55 = vcombine.low %v3270_v48, %v3280_v51  ;;  %6790 = vmatprep.mubr.bf16.mxu0 %v5940_v24  ;;  %v3291_v34 = vshll.u32 %v3066_v44, 16  ;;  %v3295_v54 = vshrl.u32 %v3066_v44, 16  ;;  %v3301_v16 = vshll.u32 %v3067_v32, 16 }
 0x167   : > { %v8172_v6 = vpop.f32.mrb[19].mxu1  ;;  %v8174_v19 = vpop.f32.mrb[23].mxu0  ;;  %v3284_v21 = vrot.slane %v3282_v61, 4  ;;  %v3287_v22 = vrot.slane %v3285_v45, 5  ;;  %v5926_v7 = vrot.slane %v3559_v49, 9  ;;  %v3665_v52 = vrot.slane %v3560_v58, 5 }
 0x168   : > { %v3564_v18 = vld [vmem:[#allocation2 + $0x44] sm:$0x1]  ;;  %5132 = vmatprep.mubr.bf16.mxu1 %v5915_v55  ;;  %v3293_v17 = vrot.slane %v3291_v34, 5  ;;  %v3297_v15 = vrot.slane %v3295_v54, 4  ;;  %v3303_v31 = vrot.slane %v3301_v16, 5  ;;  %v3668_v11 = vrot.slane %v3561_v36, 5 }
 0x169   : > { %5133 = vmatmul.mubr.bf16.gmra.mrb[108].mxu1 %v6958_v43  ;;  %6791 = vmatmul.mubr.bf16.vlgmr.msra.gmra.mrb[112].mxu0 %v5941_v12  ;;  %v3288_v48 = vor.u32 %v3287_v22, %v3284_v21  ;;  %v3666_v44 = vsel %vm7345_vm13, %v5926_v7, %v3665_v52  ;;  %v3667_v32 = vrot.slane %v3665_v52, 4  ;;  %v5927_v24 = vrot.slane %v3562_v3, 9  ;;  %v3068_v51 = vld [vmem:[#allocation2 + $0x84] sm:$0xf]  ;;  %v3069_v58 = vld [vmem:[#allocation2 + $0x88] sm:$0xf] }
 0x16a   : > { %v3298_v47 = vor.u32 %v3297_v15, %v3293_v17  ;;  %v3672_v61 = vrot.slane %v3563_v20, 5  ;;  %v3675_v45 = vrot.slane %v3564_v18, 5  ;;  %v8180_v49 = vadd.f32 %v8002_v35, %v7996_v23  ;;  %v3070_v12 = vld [vmem:[#allocation2 + $0x8c] sm:$0x1]  ;;  %v3565_v20 = vld [vmem:[#allocation2 + $0x48] sm:$0xe] }
 0x16b   : > { %v3289_v55 = vrot.slane %v3288_v48, 4  ;;  %v3669_v43 = vsel %vm7345_vm13, %v3667_v32, %v3668_v11  ;;  %v8186_v36 = vadd.f32 %v8015_v14, %v8010_v10  ;;  %v8190_v3 = vadd.f32 %v8065_v40, %v8053_v25  ;;  %v3566_v21 = vld [vmem:[#allocation2 + $0x4c] sm:$0xf]  ;;  %v3567_v22 = vld [vmem:[#allocation2 + $0x50] sm:$0x1]  ;;  %v6959_v52 = vld [vmem:[#allocation2 + $0x78] sm:$0xff]  }
 0x16c   : > { %v8192_v34 = vpop.f32.mrb[20].mxu1  ;;  %v3299_v54 = vrot.slane %v3298_v47, 4  ;;  %v5942_v23 = vcombine.low %v3666_v44, %v3669_v43  ;;  %v3673_v35 = vsel %vm7345_vm13, %v5927_v24, %v3672_v61  ;;  %v3674_v16 = vrot.slane %v3672_v61, 4  ;;  %v3570_v61 = vld [vmem:[#allocation2 + $0x5c] sm:$0x1] }
 0x16d   : > { %8770 = vst [vmem:[#allocation8_spill] sm:$0xff] %v8190_v3  ;;  %v8196_v11 = vpop.f32.mrb[21].mxu1  ;;  %v3294_v10 = vsel %vm7086_vm2, %v3289_v55, %v3293_v17  ;;  %v8202_v14 = vadd.f32 %v8071_v26, %v8069_v62  ;;  %v3306_v25 = vshrl.u32 %v3068_v51, 16  ;;  %v3309_v40 = vshll.u32 %v3068_v51, 16  ;;  %v3568_v17 = vld [vmem:[#allocation2 + $0x54] sm:$0xe] }
 0x16e   : > { %v8204_v7 = vpop.f32.mrb[22].mxu1  ;;  %v3304_v47 = vsel %vm7086_vm2, %v3299_v54, %v3303_v31  ;;  %6794 = vmatprep.mubr.bf16.mxu0 %v5942_v23  ;;  %v3676_v18 = vsel %vm7345_vm13, %v3674_v16, %v3675_v45  ;;  %v3315_v15 = vshll.u32 %v3069_v58, 16  ;;  %v3319_v48 = vshrl.u32 %v3069_v58, 16  ;;  %v3569_v51 = vld [vmem:[#allocation2 + $0x58] sm:$0xf] }
 0x16f   : > { %8771 = vst [vmem:[#allocation9_spill] sm:$0xff] %v8202_v14  ;;  %v8210_v44 = vpop.f32.mrb[23].mxu1  ;;  %v5916_v62 = vcombine.low %v3294_v10, %v3304_v47  ;;  %v5943_v26 = vcombine.low %v3673_v35, %v3676_v18  ;;  %v3308_v32 = vrot.slane %v3306_v25, 4  ;;  %v3311_v24 = vrot.slane %v3309_v40, 5  ;;  %v3071_v58 = vld [vmem:[#allocation2 + $0x90] sm:$0xf] }
 0x170   : > { %v3317_v55 = vrot.slane %v3315_v15, 5  ;;  %v3321_v43 = vrot.slane %v3319_v48, 4  ;;  %v3325_v14 = vshll.u32 %v3070_v12, 16  ;;  %v5928_v31 = vrot.slane %v3565_v20, 9  ;;  %v3072_v25 = vld [vmem:[#allocation2 + $0x94] sm:$0xf] }
 0x171   : > { %5140 = vmatprep.mubr.bf16.mxu1 %v5916_v62  ;;  %6795 = vmatmul.mubr.bf16.gmra.mrb[116].mxu0 %v5943_v26  ;;  %v3312_v54 = vor.u32 %v3311_v24, %v3308_v32  ;;  %v3679_v23 = vrot.slane %v3566_v21, 5  ;;  %v3682_v45 = vrot.slane %v3567_v22, 5  ;;  %v5929_v16 = vrot.slane %v3568_v17, 9  ;;  %v3073_v20 = vld [vmem:[#allocation2 + $0x98] sm:$0x1] }
 0x172   : > { %5141 = vmatmul.mubr.bf16.gmra.mrb[112].mxu1 %v6959_v52  ;;  %v3322_v3 = vor.u32 %v3321_v43, %v3317_v55  ;;  %v3327_v56 = vrot.slane %v3325_v14, 5  ;;  %v3686_v10 = vrot.slane %v3569_v51, 5  ;;  %v3689_v35 = vrot.slane %v3570_v61, 5  ;;  %v3571_v21 = vld [vmem:[#allocation2 + $0x60] sm:$0xe] }
 0x173   : > { %v3313_v40 = vrot.slane %v3312_v54, 4  ;;  %v3680_v47 = vsel %vm7345_vm13, %v5928_v31, %v3679_v23  ;;  %v3681_v18 = vrot.slane %v3679_v23, 4  ;;  %v8216_v12 = vadd.f32 %v8051_v28, %v8043_v2  ;;  %v3572_v62 = vld [vmem:[#allocation2 + $0x64] sm:$0xf] }
 0x174   : > { %v8218_v22 = vpop.f32.mrb[24].mxu0  ;;  %v8220_v15 = vpop.f32.mrb[24].mxu1  ;;  %v3323_v52 = vrot.slane %v3322_v3, 4  ;;  %v3687_v14 = vsel %vm7345_vm13, %v5929_v16, %v3686_v10  ;;  %v3688_v48 = vrot.slane %v3686_v10, 4  ;;  %v8226_v17 = vadd.f32 %v8083_v1, %v8081_v60  ;;  %v3573_v60 = vld [vmem:[#allocation2 + $0x68] sm:$0x1] }
 0x175   : > { %v8228_v26 = vpop.f32.mrb[25].mxu0  ;;  %v8230_v2 = vpop.f32.mrb[25].mxu1  ;;  %v3318_v28 = vsel %vm7086_vm2, %v3313_v40, %v3317_v55  ;;  %v3683_v32 = vsel %vm7345_vm13, %v3681_v18, %v3682_v45  ;;  %v8238_v3 = vadd.f32 %v8122_v50, %v8120_v38  ;;  %v8242_v24 = vadd.f32 %v8130_v27, %v8126_v39  ;;  %v3574_v1 = vld [vmem:[#allocation2 + $0x6c] sm:$0xe]  ;;  %v6960_v31 = vld [vmem:[#allocation2 + $0x84] sm:$0xff]  }
 0x176   : > { %8772 = vst [vmem:[#allocation10_spill] sm:$0xff] %v8226_v17  ;;  %v8244_v51 = vpop.f32.mrb[26].mxu0  ;;  %v8246_v61 = vpop.f32.mrb[26].mxu1  ;;  %v3328_v55 = vsel %vm7086_vm2, %v3323_v52, %v3327_v56  ;;  %v5944_v43 = vcombine.low %v3680_v47, %v3683_v32  ;;  %v3690_v54 = vsel %vm7345_vm13, %v3688_v48, %v3689_v35  ;;  %v3330_v38 = vshrl.u32 %v3071_v58, 16  ;;  %v3575_v50 = vld [vmem:[#allocation2 + $0x70] sm:$0xf] }
 0x177   : > { %8773 = vst [vmem:[#allocation11_spill] sm:$0xff] %v8238_v3  ;;  %8774 = vst [vmem:[#allocation12_spill] sm:$0xff] %v8242_v24  ;;  %v8252_v23 = vpop.f32.mrb[27].mxu0  ;;  %v8254_v39 = vpop.f32.mrb[27].mxu1  ;;  %v5917_v27 = vcombine.low %v3318_v28, %v3328_v55  ;;  %v5945_v45 = vcombine.low %v3687_v14, %v3690_v54  ;;  %v3333_v16 = vshll.u32 %v3071_v58, 16  ;;  %v3339_v10 = vshll.u32 %v3072_v25, 16 }
 0x178   : > { %v3576_v40 = vld [vmem:[#allocation2 + $0x74] sm:$0x1]  ;;  %6798 = vmatprep.mubr.bf16.mxu0 %v5944_v43  ;;  %v3332_v18 = vrot.slane %v3330_v38, 4  ;;  %v3343_v24 = vshrl.u32 %v3072_v25, 16  ;;  %v3349_v56 = vshll.u32 %v3073_v20, 16  ;;  %v5930_v47 = vrot.slane %v3571_v21, 9 }
 0x179   : > { %5148 = vmatprep.mubr.bf16.mxu1 %v5917_v27  ;;  %6799 = vmatmul.mubr.bf16.gmra.mrb[120].mxu0 %v5945_v45  ;;  %v3335_v52 = vrot.slane %v3333_v16, 5  ;;  %v3341_v35 = vrot.slane %v3339_v10, 5  ;;  %v3693_v48 = vrot.slane %v3572_v62, 5  ;;  %v3696_v32 = vrot.slane %v3573_v60, 5  ;;  %v3074_v25 = vld [vmem:[#allocation2 + $0x9c] sm:$0xf] }
 0x17a   : > { %5149 = vmatmul.mubr.bf16.gmra.mrb[116].mxu1 %v6960_v31  ;;  %v3345_v3 = vrot.slane %v3343_v24, 4  ;;  %v3351_v30 = vrot.slane %v3349_v56, 5  ;;  %v5931_v17 = vrot.slane %v3574_v1, 9  ;;  %v3700_v28 = vrot.slane %v3575_v50, 5  ;;  %v3075_v60 = vld [vmem:[#allocation2 + $0xa0] sm:$0xf] }
 0x17b   : > { %v3336_v14 = vor.u32 %v3335_v52, %v3332_v18  ;;  %v3694_v58 = vsel %vm7345_vm13, %v5930_v47, %v3693_v48  ;;  %v3695_v55 = vrot.slane %v3693_v48, 4  ;;  %v3703_v43 = vrot.slane %v3576_v40, 5  ;;  %v3076_v1 = vld [vmem:[#allocation2 + $0xa4] sm:$0x1]  ;;  %v3578_v45 = vld [vmem:[#allocation2 + $0x7c] sm:$0xf] }
 0x17c   : > { %v8258_v20 = vpop.f32.mrb[28].mxu1  ;;  %v3346_v21 = vor.u32 %v3345_v3, %v3341_v35  ;;  %v3701_v54 = vsel %vm7345_vm13, %v5931_v17, %v3700_v28  ;;  %v3702_v62 = vrot.slane %v3700_v28, 4  ;;  %v8264_v24 = vadd.f32 %v8093_v37, %v8089_v42  ;;  %v3577_v3 = vld [vmem:[#allocation2 + $0x78] sm:$0xe]  ;;  %v3579_v56 = vld [vmem:[#allocation2 + $0x80] sm:$0x1] }
 0x17d   : > { %v8266_v31 = vpop.f32.mrb[29].mxu1  ;;  %v3337_v38 = vrot.slane %v3336_v14, 4  ;;  %v3697_v50 = vsel %vm7345_vm13, %v3695_v55, %v3696_v32  ;;  %v8272_v27 = vadd.f32 %v8109_v53, %v8097_v9  ;;  %v6432_v17 = vadd.f32 %v8162_v8, %v8150_v13  ;;  %v3580_v48 = vld [vmem:[#allocation2 + $0x84] sm:$0xe]  ;;  %v3581_v32 = vld [vmem:[#allocation2 + $0x88] sm:$0xf] }
 0x17e   : > { %v8276_v16 = vpop.f32.mrb[28].mxu0  ;;  %v8278_v42 = vpop.f32.mrb[30].mxu1  ;;  %v3347_v37 = vrot.slane %v3346_v21, 4  ;;  %v5946_v10 = vcombine.low %v3694_v58, %v3697_v50  ;;  %v3704_v40 = vsel %vm7345_vm13, %v3702_v62, %v3703_v43  ;;  %v6435_v18 = vadd.f32 %v8172_v6, %v8168_v5  ;;  %v6961_v6 = vld [vmem:[#allocation2 + $0x90] sm:$0xff]  }
 0x17f   : > { %v8284_v9 = vpop.f32.mrb[29].mxu0  ;;  %v8286_v53 = vpop.f32.mrb[31].mxu1  ;;  %v3342_v13 = vsel %vm7086_vm2, %v3337_v38, %v3341_v35  ;;  %v5947_v8 = vcombine.low %v3701_v54, %v3704_v40  ;;  %v8291_v47 = vadd.f32 %v6432_v17, %v7941_v4  ;;  %v3354_v52 = vshrl.u32 %v3074_v25, 16  ;;  %v3582_v40 = vld [vmem:[#allocation2 + $0x8c] sm:$0x1] }
 0x180   : > { %v8293_v28 = vpop.f32.mrb[30].mxu0  ;;  %v3352_v5 = vsel %vm7086_vm2, %v3347_v37, %v3351_v30  ;;  %6802 = vmatprep.mubr.bf16.mxu0 %v5946_v10  ;;  %v8298_v14 = vadd.f32 %v6435_v18, %v8101_v59  ;;  %v3357_v58 = vshll.u32 %v3074_v25, 16  ;;  %v3363_v55 = vshll.u32 %v3075_v60, 16 }
 0x181   : > { %v8300_v35 = vpop.f32.mrb[31].mxu0  ;;  %v5918_v43 = vcombine.low %v3342_v13, %v3352_v5  ;;  %6803 = vmatmul.mubr.bf16.gmra.mrb[124].mxu0 %v5947_v8  ;;  %v3356_v4 = vrot.slane %v3354_v52, 4  ;;  %v3367_v21 = vshrl.u32 %v3075_v60, 16  ;;  %v3373_v54 = vshll.u32 %v3076_v1, 16 }
 0x182   : > { %v3359_v62 = vrot.slane %v3357_v58, 5  ;;  %v3365_v38 = vrot.slane %v3363_v55, 5  ;;  %v5932_v50 = vrot.slane %v3577_v3, 9  ;;  %v3707_v17 = vrot.slane %v3578_v45, 5 }
 0x183   : > { %5156 = vmatprep.mubr.bf16.mxu1 %v5918_v43  ;;  %v3369_v30 = vrot.slane %v3367_v21, 4  ;;  %v3375_v37 = vrot.slane %v3373_v54, 5  ;;  %v3710_v10 = vrot.slane %v3579_v56, 5  ;;  %v5933_v59 = vrot.slane %v3580_v48, 9  ;;  %v3077_v48 = vld [vmem:[#allocation2 + $0xa8] sm:$0xf] }
 0x184   : > { %v8302_v18 = vpop.f32.mrb[32].mxu1  ;;  %5157 = vmatmul.mubr.bf16.gmra.mrb[120].mxu1 %v6961_v6  ;;  %v3360_v25 = vor.u32 %v3359_v62, %v3356_v4  ;;  %v3708_v13 = vsel %vm7345_vm13, %v5932_v50, %v3707_v17  ;;  %v3709_v8 = vrot.slane %v3707_v17, 4  ;;  %v3714_v60 = vrot.slane %v3581_v32, 5  ;;  %v3078_v21 = vld [vmem:[#allocation2 + $0xac] sm:$0xf] }
 0x185   : > { %v8306_v1 = vpop.f32.mrb[33].mxu1  ;;  %v3370_v52 = vor.u32 %v3369_v30, %v3365_v38  ;;  %v3717_v3 = vrot.slane %v3582_v40, 5  ;;  %v8310_v45 = vadd.f32 %v8164_v46, %v8152_v0  ;;  %v8314_v56 = vadd.f32 %v8174_v19, %v8170_v57  ;;  %v6962_v46 = vld [vmem:[#allocation2 + $0x9c] sm:$0xff]   ;;  %v3079_v54 = vld [vmem:[#allocation2 + $0xb0] sm:$0x1] }
 0x186   : > { %v8316_v5 = vpop.f32.mrb[34].mxu1  ;;  %v3361_v6 = vrot.slane %v3360_v25, 4  ;;  %v3711_v58 = vsel %vm7345_vm13, %v3709_v8, %v3710_v10  ;;  %v3715_v32 = vsel %vm7345_vm13, %v5933_v59, %v3714_v60  ;;  %v3716_v55 = vrot.slane %v3714_v60, 4  ;;  %v3583_v30 = vld [vmem:[#allocation2 + $0x90] sm:$0xe] }
 0x187   : > { %v8322_v43 = vpop.f32.mrb[35].mxu1  ;;  %v3371_v4 = vrot.slane %v3370_v52, 4  ;;  %v5948_v0 = vcombine.low %v3708_v13, %v3711_v58  ;;  %v6438_v57 = vadd.f32 %v8196_v11, %v8192_v34  ;;  %v6441_v19 = vadd.f32 %v8210_v44, %v8204_v7  ;;  %v3584_v10 = vld [vmem:[#allocation2 + $0x94] sm:$0xf]  ;;  %v3585_v44 = vld [vmem:[#allocation2 + $0x98] sm:$0x1] }
 0x188   : > { %v3366_v62 = vsel %vm7086_vm2, %v3361_v6, %v3365_v38  ;;  %v3718_v50 = vsel %vm7345_vm13, %v3716_v55, %v3717_v3  ;;  %v3378_v17 = vshrl.u32 %v3077_v48, 16  ;;  %v3381_v40 = vshll.u32 %v3077_v48, 16  ;;  %v3586_v38 = vld [vmem:[#allocation2 + $0x9c] sm:$0xe]  ;;  %v3587_v25 = vld [vmem:[#allocation2 + $0xa0] sm:$0xf] }
 0x189   : > { %v3376_v59 = vsel %vm7086_vm2, %v3371_v4, %v3375_v37  ;;  %6806 = vmatprep.mubr.bf16.mxu0 %v5948_v0  ;;  %v5949_v34 = vcombine.low %v3715_v32, %v3718_v50  ;;  %v8335_v11 = vadd.f32 %v6438_v57, %v8138_v63  ;;  %v8338_v7 = vadd.f32 %v6441_v19, %v8144_v29  ;;  %v3588_v3 = vld [vmem:[#allocation2 + $0xa4] sm:$0x1]  ;;  %v3080_v0 = vld [vmem:[#allocation2 + $0xb4] sm:$0xf] }
 0x18a   : > { %v5919_v13 = vcombine.low %v3366_v62, %v3376_v59  ;;  %v3380_v8 = vrot.slane %v3378_v17, 4  ;;  %v3383_v60 = vrot.slane %v3381_v40, 5  ;;  %v3387_v52 = vshll.u32 %v3078_v21, 16 }
 0x18b   : > { %6807 = vmatmul.mubr.bf16.gmra.mrb[128].mxu0 %v5949_v34  ;;  %v3391_v48 = vshrl.u32 %v3078_v21, 16  ;;  %v3397_v6 = vshll.u32 %v3079_v54, 16  ;;  %v5934_v37 = vrot.slane %v3583_v30, 9  ;;  %v3721_v58 = vrot.slane %v3584_v10, 5 }
 0x18c   : > { %v8340_v32 = vpop.f32.mrb[32].mxu0  ;;  %5164 = vmatprep.mubr.bf16.mxu1 %v5919_v13  ;;  %v3384_v63 = vor.u32 %v3383_v60, %v3380_v8  ;;  %v3389_v55 = vrot.slane %v3387_v52, 5  ;;  %v3724_v29 = vrot.slane %v3585_v44, 5  ;;  %v5935_v4 = vrot.slane %v3586_v38, 9  ;;  %v3081_v60 = vld [vmem:[#allocation2 + $0xb8] sm:$0xf] }
 0x18d   : > { %v8342_v57 = vpop.f32.mrb[33].mxu0  ;;  %v8344_v19 = vpop.f32.mrb[36].mxu1  ;;  %5165 = vmatmul.mubr.bf16.gmra.mrb[124].mxu1 %v6962_v46  ;;  %v3393_v62 = vrot.slane %v3391_v48, 4  ;;  %v3399_v50 = vrot.slane %v3397_v6, 5  ;;  %v3722_v21 = vsel %vm7345_vm13, %v5934_v37, %v3721_v58  ;;  %v3723_v54 = vrot.slane %v3721_v58, 4 }
 0x18e   : > { %v8348_v17 = vpop.f32.mrb[34].mxu0  ;;  %v8350_v40 = vpop.f32.mrb[37].mxu1  ;;  %v3385_v30 = vrot.slane %v3384_v63, 4  ;;  %v3728_v10 = vrot.slane %v3587_v25, 5  ;;  %v3731_v59 = vrot.slane %v3588_v3, 5  ;;  %v8354_v34 = vadd.f32 %v8228_v26, %v8218_v22 }
 0x18f   : > { %v8356_v44 = vpop.f32.mrb[35].mxu0  ;;  %v8358_v46 = vpop.f32.mrb[38].mxu1  ;;  %v3394_v38 = vor.u32 %v3393_v62, %v3389_v55  ;;  %v3725_v13 = vsel %vm7345_vm13, %v3723_v54, %v3724_v29  ;;  %v8364_v8 = vadd.f32 %v8252_v23, %v8244_v51  ;;  %v6444_v25 = vadd.f32 %v8230_v2, %v8220_v15  ;;  %v3082_v6 = vld [vmem:[#allocation2 + $0xbc] sm:$0x1]  ;;  %v3589_v37 = vld [vmem:[#allocation2 + $0xa8] sm:$0xe] }
 0x190   : > { %v8368_v52 = vpop.f32.mrb[39].mxu1  ;;  %v3390_v22 = vsel %vm7086_vm2, %v3385_v30, %v3389_v55  ;;  %v5950_v26 = vcombine.low %v3722_v21, %v3725_v13  ;;  %v3729_v3 = vsel %vm7345_vm13, %v5935_v4, %v3728_v10  ;;  %v3730_v48 = vrot.slane %v3728_v10, 4  ;;  %v3590_v23 = vld [vmem:[#allocation2 + $0xac] sm:$0xf]  ;;  %v3591_v63 = vld [vmem:[#allocation2 + $0xb0] sm:$0x1] }
 0x191   : > { %v3395_v58 = vrot.slane %v3394_v38, 4  ;;  %v8375_v51 = vadd.f32 %v6444_v25, %v8180_v49  ;;  %v6447_v15 = vadd.f32 %v8254_v39, %v8246_v61  ;;  %v3402_v2 = vshrl.u32 %v3080_v0, 16  ;;  %v6963_v29 = vld [vmem:[#allocation2 + $0xa8] sm:$0xff]   ;;  %v3592_v54 = vld [vmem:[#allocation2 + $0xb4] sm:$0xe] }
 0x192   : > { %6810 = vmatprep.mubr.bf16.mxu0 %v5950_v26  ;;  %v3732_v55 = vsel %vm7345_vm13, %v3730_v48, %v3731_v59  ;;  %v3405_v62 = vshll.u32 %v3080_v0, 16  ;;  %v3411_v4 = vshll.u32 %v3081_v60, 16  ;;  %v3415_v21 = vshrl.u32 %v3081_v60, 16  ;;  %v3593_v39 = vld [vmem:[#allocation2 + $0xb8] sm:$0xf] }
 0x193   : > { %8775 = vst [vmem:[#allocation13_spill] sm:$0xff] %v8375_v51  ;;  %v3400_v30 = vsel %vm7086_vm2, %v3395_v58, %v3399_v50  ;;  %v5951_v49 = vcombine.low %v3729_v3, %v3732_v55  ;;  %v8384_v10 = vadd.f32 %v6447_v15, %v8186_v36  ;;  %v3404_v61 = vrot.slane %v3402_v2, 4  ;;  %v3594_v38 = vld [vmem:[#allocation2 + $0xbc] sm:$0x1] }
 0x194   : > { %v8386_v13 = vpop.f32.mrb[36].mxu0  ;;  %v5920_v25 = vcombine.low %v3390_v22, %v3400_v30  ;;  %v3407_v26 = vrot.slane %v3405_v62, 5  ;;  %v3413_v51 = vrot.slane %v3411_v4, 5  ;;  %v3417_v59 = vrot.slane %v3415_v21, 4 }
 0x195   : > { %8776 = vst [vmem:[#allocation14_spill] sm:$0xff] %v8384_v10  ;;  %v8388_v0 = vpop.f32.mrb[37].mxu0  ;;  %v8390_v60 = vpop.f32.mrb[40].mxu1  ;;  %6811 = vmatmul.mubr.bf16.gmra.mrb[132].mxu0 %v5951_v49  ;;  %v3421_v48 = vshll.u32 %v3082_v6, 16  ;;  %v5936_v50 = vrot.slane %v3589_v37, 9  ;;  %v3735_v3 = vrot.slane %v3590_v23, 5 }
 0x196   : > { %v3738_v58 = vrot.slane %v3591_v63, 5  ;;  %v8392_v36 = vpop.f32.mrb[38].mxu0  ;;  %v8394_v15 = vpop.f32.mrb[41].mxu1  ;;  %5172 = vmatprep.mubr.bf16.mxu1 %v5920_v25  ;;  %v3408_v2 = vor.u32 %v3407_v26, %v3404_v61  ;;  %v3418_v55 = vor.u32 %v3417_v59, %v3413_v51  ;;  %v5937_v22 = vrot.slane %v3592_v54, 9  ;;  %v3083_v26 = vld [vmem:[#allocation2 + $0xc0] sm:$0xf] }
 0x197   : > { %v3742_v62 = vrot.slane %v3593_v39, 5  ;;  %v8396_v4 = vpop.f32.mrb[39].mxu0  ;;  %v8398_v21 = vpop.f32.mrb[42].mxu1  ;;  %5173 = vmatmul.mubr.bf16.gmra.mrb[128].mxu1 %v6963_v29  ;;  %v3423_v30 = vrot.slane %v3421_v48, 5  ;;  %v3736_v6 = vsel %vm7345_vm13, %v5936_v50, %v3735_v3  ;;  %v3737_v37 = vrot.slane %v3735_v3, 4 }
 0x198   : > { %v3745_v23 = vrot.slane %v3594_v38, 5  ;;  %v8402_v63 = vpop.f32.mrb[43].mxu1  ;;  %v3409_v49 = vrot.slane %v3408_v2, 4  ;;  %v3419_v10 = vrot.slane %v3418_v55, 4  ;;  %v8410_v29 = vadd.f32 %v8284_v9, %v8276_v16  ;;  %v3084_v59 = vld [vmem:[#allocation2 + $0xc4] sm:$0xf] }
 0x199   : > { %v3743_v61 = vsel %vm7345_vm13, %v5937_v22, %v3742_v62  ;;  %v3744_v54 = vrot.slane %v3742_v62, 4  ;;  %v3739_v39 = vsel %vm7345_vm13, %v3737_v37, %v3738_v58  ;;  %v8414_v25 = vadd.f32 %v8300_v35, %v8293_v28  ;;  %v3085_v9 = vld [vmem:[#allocation2 + $0xc8] sm:$0x1]  ;;  %v6964_v2 = vld [vmem:[#allocation2 + $0xb4] sm:$0xff]   ;;  %v3596_v55 = vld [vmem:[#allocation2 + $0xc4] sm:$0xf] }
 0x19a   : > { %v6450_v38 = vadd.f32 %v8266_v31, %v8258_v20  ;;  %v3414_v48 = vsel %vm7086_vm2, %v3409_v49, %v3413_v51  ;;  %v3424_v50 = vsel %vm7086_vm2, %v3419_v10, %v3423_v30  ;;  %v5952_v3 = vcombine.low %v3736_v6, %v3739_v39  ;;  %v3595_v31 = vld [vmem:[#allocation2 + $0xc0] sm:$0xe]  ;;  %v3597_v30 = vld [vmem:[#allocation2 + $0xc8] sm:$0x1]  ;;  %v3599_v49 = vld [vmem:[#allocation2 + $0xd0] sm:$0xf] }
 0x19b   : > { %v3746_v16 = vsel %vm7345_vm13, %v3744_v54, %v3745_v23  ;;  %v5921_v58 = vcombine.low %v3414_v48, %v3424_v50  ;;  %v6453_v20 = vadd.f32 %v8286_v53, %v8278_v42  ;;  %v3426_v51 = vshrl.u32 %v3083_v26, 16  ;;  %v8777_v6 = vld [vmem:[#allocation10_spill] sm:$0xff] }
 0x19c   : > { %v5953_v28 = vcombine.low %v3743_v61, %v3746_v16  ;;  %v8425_v35 = vadd.f32 %v6450_v38, %v8216_v12  ;;  %6814 = vmatprep.mubr.bf16.mxu0 %v5952_v3  ;;  %v3429_v22 = vshll.u32 %v3083_v26, 16  ;;  %v3435_v10 = vshll.u32 %v3084_v59, 16  ;;  %v3598_v53 = vld [vmem:[#allocation2 + $0xcc] sm:$0xe]  ;;  %v3600_v26 = vld [vmem:[#allocation2 + $0xd4] sm:$0x1] }
 0x19d   : > { %v3439_v62 = vshrl.u32 %v3084_v59, 16  ;;  %5180 = vmatprep.mubr.bf16.mxu1 %v5921_v58  ;;  %v8430_v37 = vadd.f32 %v6453_v20, %v8777_v6  ;;  %v3445_v23 = vshll.u32 %v3085_v9, 16  ;;  %v8434_v12 = vadd.f32 %v8342_v57, %v8340_v32  ;;  %v3086_v58 = vld [vmem:[#allocation2 + $0xcc] sm:$0xf] }
 0x19e   : > { %6815 = vmatmul.mubr.bf16.gmra.mrb[136].mxu0 %v5953_v28  ;;  %v8438_v42 = vadd.f32 %v8356_v44, %v8348_v17  ;;  %v3428_v61 = vrot.slane %v3426_v51, 4  ;;  %v3431_v54 = vrot.slane %v3429_v22, 5  ;;  %v3437_v39 = vrot.slane %v3435_v10, 5 }
 0x19f   : > { %v3441_v38 = vrot.slane %v3439_v62, 4  ;;  %5181 = vmatmul.mubr.bf16.gmra.mrb[132].mxu1 %v6964_v2  ;;  %v3447_v59 = vrot.slane %v3445_v23, 5  ;;  %v5938_v48 = vrot.slane %v3595_v31, 9  ;;  %v3749_v50 = vrot.slane %v3596_v55, 5  ;;  %v6378_v16 = vpop.f32.mrb[40].mxu0  ;;  %v6472_v9 = vpop.f32.mrb[44].mxu1 }
 0x1a0   : > { %v3752_v3 = vrot.slane %v3597_v30, 5  ;;  %v3432_v32 = vor.u32 %v3431_v54, %v3428_v61  ;;  %v6456_v17 = vadd.f32 %v8306_v1, %v8302_v18  ;;  %v5939_v44 = vrot.slane %v3598_v53, 9  ;;  %v6379_v28 = vpop.f32.mrb[41].mxu0  ;;  %v6473_v20 = vpop.f32.mrb[45].mxu1  ;;  %v3087_v54 = vld [vmem:[#allocation2 + $0xd0] sm:$0xf] }
 0x1a1   : > { %v3442_v57 = vor.u32 %v3441_v38, %v3437_v39  ;;  %v3750_v51 = vsel %vm7345_vm13, %v5938_v48, %v3749_v50  ;;  %v3751_v22 = vrot.slane %v3749_v50, 4  ;;  %v3756_v2 = vrot.slane %v3599_v49, 5  ;;  %v6381_v31 = vpop.f32.mrb[42].mxu0  ;;  %v6475_v55 = vpop.f32.mrb[46].mxu1  ;;  %v3088_v38 = vld [vmem:[#allocation2 + $0xd4] sm:$0x1] }
 0x1a2   : > { %v3759_v10 = vrot.slane %v3600_v26, 5  ;;  %v3433_v62 = vrot.slane %v3432_v32, 4  ;;  %v8445_v6 = vadd.f32 %v6456_v17, %v8264_v24  ;;  %v6459_v18 = vadd.f32 %v8322_v43, %v8316_v5  ;;  %v6382_v1 = vpop.f32.mrb[43].mxu0  ;;  %v6476_v23 = vpop.f32.mrb[47].mxu1  ;;  %v6965_v50 = vld [vmem:[#allocation2 + $0xc0] sm:$0xff]  }
 0x1a3   : > { %v3443_v30 = vrot.slane %v3442_v57, 4  ;;  %v3753_v53 = vsel %vm7345_vm13, %v3751_v22, %v3752_v3  ;;  %v3757_v61 = vsel %vm7345_vm13, %v5939_v44, %v3756_v2  ;;  %v3758_v49 = vrot.slane %v3756_v2, 4 }
 0x1a4   : > { %8778 = vst [vmem:[#allocation10_spill] sm:$0xff] %v8445_v6  ;;  %v3450_v26 = vshrl.u32 %v3086_v58, 16  ;;  %v3438_v48 = vsel %vm7086_vm2, %v3433_v62, %v3437_v39  ;;  %v5954_v5 = vcombine.low %v3750_v51, %v3753_v53  ;;  %v8458_v43 = vadd.f32 %v6459_v18, %v8272_v27 }
 0x1a5   : > { %v3448_v24 = vsel %vm7086_vm2, %v3443_v30, %v3447_v59  ;;  %v3760_v3 = vsel %vm7345_vm13, %v3758_v49, %v3759_v10  ;;  %v3453_v17 = vshll.u32 %v3086_v58, 16  ;;  %v3459_v22 = vshll.u32 %v3087_v54, 16 }
 0x1a6   : > { %v5922_v32 = vcombine.low %v3438_v48, %v3448_v24  ;;  %v3452_v57 = vrot.slane %v3450_v26, 4  ;;  %6818 = vmatprep.mubr.bf16.mxu0 %v5954_v5  ;;  %v5955_v44 = vcombine.low %v3757_v61, %v3760_v3  ;;  %v3463_v2 = vshrl.u32 %v3087_v54, 16 }
 0x1a7   : > { %v3469_v6 = vshll.u32 %v3088_v38, 16  ;;  %v3455_v39 = vrot.slane %v3453_v17, 5  ;;  %v6374_v59 = vadd.f32 %v8388_v0, %v8386_v13  ;;  %v6377_v27 = vadd.f32 %v8396_v4, %v8392_v36 }
 0x1a8   : > { %5188 = vmatprep.mubr.bf16.mxu1 %v5922_v32  ;;  %v6462_v51 = vadd.f32 %v8350_v40, %v8344_v19  ;;  %6819 = vmatmul.mubr.bf16.gmra.mrb[140].mxu0 %v5955_v44  ;;  %v3461_v41 = vrot.slane %v3459_v22, 5  ;;  %v3465_v58 = vrot.slane %v3463_v2, 4  ;;  %v6465_v62 = vadd.f32 %v8368_v52, %v8358_v46 }
 0x1a9   : > { %5189 = vmatmul.mubr.bf16.gmra.mrb[136].mxu1 %v6965_v50  ;;  %v3471_v10 = vrot.slane %v3469_v6, 5  ;;  %v3456_v30 = vor.u32 %v3455_v39, %v3452_v57  ;;  %v6380_v53 = vadd.f32 %v6379_v28, %v6378_v16  ;;  %v6383_v13 = vadd.f32 %v6382_v1, %v6381_v31  ;;  %v6478_v0 = vpop.f32.mrb[48].mxu1 }
 0x1aa   : > { %v8471_v18 = vadd.f32 %v6462_v51, %v8310_v45  ;;  %v3466_v61 = vor.u32 %v3465_v58, %v3461_v41  ;;  %v8474_v36 = vadd.f32 %v6465_v62, %v8314_v56  ;;  %v6468_v19 = vadd.f32 %v8394_v15, %v8390_v60  ;;  %v6479_v4 = vpop.f32.mrb[49].mxu1 }
 0x1ab   : > { %v6471_v40 = vadd.f32 %v8402_v63, %v8398_v21  ;;  %v3457_v6 = vrot.slane %v3456_v30, 4  ;;  %v6474_v46 = vadd.f32 %v6473_v20, %v6472_v9  ;;  %v6477_v52 = vadd.f32 %v6476_v23, %v6475_v55  ;;  %v6481_v45 = vpop.f32.mrb[50].mxu1  ;;  %v6966_v9 = vld [vmem:[#allocation2 + $0xcc] sm:$0xff]  }
 0x1ac   : > { %v6480_v49 = vadd.f32 %v6479_v4, %v6478_v0  ;;  %v3467_v54 = vrot.slane %v3466_v61, 4  ;;  %v8481_v16 = vadd.f32 %v6468_v19, %v8354_v34  ;;  %v6482_v56 = vpop.f32.mrb[51].mxu1 }
 0x1ad   : > { %v8484_v28 = vadd.f32 %v6471_v40, %v8364_v8  ;;  %v3462_v60 = vsel %vm7086_vm2, %v3457_v6, %v3461_v41  ;;  %v8489_v15 = vadd.f32 %v6474_v46, %v8410_v29  ;;  %v8492_v21 = vadd.f32 %v6477_v52, %v8414_v25 }
 0x1ae   : > { %v8495_v63 = vadd.f32 %v6480_v49, %v8434_v12  ;;  %v3472_v34 = vsel %vm7086_vm2, %v3467_v54, %v3471_v10  ;;  %v6483_v20 = vadd.f32 %v6482_v56, %v6481_v45 }
 0x1af   : > { %v5923_v8 = vcombine.low %v3462_v60, %v3472_v34  ;;  %v6384_v31 = vpop.f32.mrb[44].mxu0 }
 0x1b0   : > { %v6385_v55 = vpop.f32.mrb[45].mxu0  ;;  %v8500_v1 = vadd.f32 %v6483_v20, %v8438_v42 }
 0x1b1   : > { %5196 = vmatprep.mubr.bf16.mxu1 %v5923_v8  ;;  %v6386_v29 = vadd.f32 %v6385_v55, %v6384_v31  ;;  %v6387_v23 = vpop.f32.mrb[46].mxu0 }
 0x1b2   : > { %5197 = vmatmul.mubr.bf16.gmra.mrb[140].mxu1 %v6966_v9  ;;  %v6388_v25 = vpop.f32.mrb[47].mxu0 }
 0x1b3   : > { %v6389_v38 = vadd.f32 %v6388_v25, %v6387_v23  ;;  %v8780_v23 = vld [vmem:[#allocation14_spill] sm:$0xff] }
 0x1b4   : > { %v6484_v26 = vpop.f32.mrb[52].mxu1 }
 0x1b5   : > { %v6485_v12 = vpop.f32.mrb[53].mxu1 }
 0x1b6   : > { %v6486_v48 = vadd.f32 %v6485_v12, %v6484_v26  ;;  %v6487_v24 = vpop.f32.mrb[54].mxu1 }
 0x1b7   : > { %v6542_v33 = vpop.f32.mrb[48].mxu0  ;;  %v6488_v50 = vpop.f32.mrb[55].mxu1 }
 0x1b8   : > { %v6543_v5 = vpop.f32.mrb[49].mxu0  ;;  %v8502_v32 = vadd.f32 %v6486_v48, %v6374_v59  ;;  %v6489_v3 = vadd.f32 %v6488_v50, %v6487_v24  ;;  %v8781_v50 = vld [vmem:[#allocation4_spill] sm:$0xff] }
 0x1b9   : > { %v6544_v57 = vadd.f32 %v6543_v5, %v6542_v33  ;;  %v6545_v17 = vpop.f32.mrb[50].mxu0 }
 0x1ba   : > { %v6546_v42 = vpop.f32.mrb[51].mxu0  ;;  %v8504_v44 = vadd.f32 %v6489_v3, %v6377_v27 }
 0x1bb   : > { %v8507_v22 = vadd.f32 %v6544_v57, %v8291_v47  ;;  %v6547_v2 = vadd.f32 %v6546_v42, %v6545_v17  ;;  %v8782_v42 = vld [vmem:[#allocation5_spill] sm:$0xff] }
 0x1bc   : > { %v6490_v39 = vpop.f32.mrb[56].mxu1 }
 0x1bd   : > { %v8510_v51 = vadd.f32 %v6547_v2, %v8298_v14  ;;  %v6491_v41 = vpop.f32.mrb[57].mxu1 }
 0x1be   : > { %v6492_v58 = vadd.f32 %v6491_v41, %v6490_v39  ;;  %v6493_v10 = vpop.f32.mrb[58].mxu1 }
 0x1bf   : > { %v6548_v62 = vpop.f32.mrb[52].mxu0  ;;  %v6494_v59 = vpop.f32.mrb[59].mxu1 }
 0x1c0   : > { %v6549_v30 = vpop.f32.mrb[53].mxu0  ;;  %v8512_v0 = vadd.f32 %v6492_v58, %v6380_v53  ;;  %v6495_v61 = vadd.f32 %v6494_v59, %v6493_v10 }
 0x1c1   : > { %v6550_v19 = vadd.f32 %v6549_v30, %v6548_v62  ;;  %v6551_v27 = vpop.f32.mrb[54].mxu0 }
 0x1c2   : > { %v6552_v40 = vpop.f32.mrb[55].mxu0  ;;  %v8514_v4 = vadd.f32 %v6495_v61, %v6383_v13 }
 0x1c3   : > { %v8517_v47 = vadd.f32 %v6550_v19, %v8335_v11  ;;  %v6553_v6 = vadd.f32 %v6552_v40, %v6551_v27  ;;  %v8779_v11 = vld [vmem:[#allocation13_spill] sm:$0xff]  ;;  %v8783_v40 = vld [vmem:[#allocation6_spill] sm:$0xff] }
 0x1c4   : > { %v6496_v14 = vpop.f32.mrb[60].mxu1 }
 0x1c5   : > { %v8520_v46 = vadd.f32 %v6553_v6, %v8338_v7  ;;  %v6497_v52 = vpop.f32.mrb[61].mxu1 }
 0x1c6   : > { %v6498_v49 = vadd.f32 %v6497_v52, %v6496_v14  ;;  %v6499_v45 = vpop.f32.mrb[62].mxu1 }
 0x1c7   : > { %v6554_v54 = vpop.f32.mrb[56].mxu0  ;;  %v6500_v53 = vpop.f32.mrb[63].mxu1 }
 0x1c8   : > { %v6555_v56 = vpop.f32.mrb[57].mxu0  ;;  %v8522_v60 = vadd.f32 %v6498_v49, %v6386_v29  ;;  %v6501_v34 = vadd.f32 %v6500_v53, %v6499_v45  ;;  %v8785_v53 = vld [vmem:[#allocation10_spill] sm:$0xff] }
 0x1c9   : > { %v6556_v9 = vadd.f32 %v6555_v56, %v6554_v54  ;;  %v6557_v13 = vpop.f32.mrb[58].mxu0 }
 0x1ca   : > { %v6558_v20 = vpop.f32.mrb[59].mxu0  ;;  %v8524_v8 = vadd.f32 %v6501_v34, %v6389_v38 }
 0x1cb   : > { %v8527_v31 = vadd.f32 %v6556_v9, %v8779_v11  ;;  %v6559_v55 = vadd.f32 %v6558_v20, %v6557_v13 }
 0x1cc   : > { %v6502_v7 = vpop.f32.mrb[64].mxu1 }
 0x1cd   : > { %v8530_v25 = vadd.f32 %v6559_v55, %v8780_v23  ;;  %v6503_v26 = vpop.f32.mrb[65].mxu1 }
 0x1ce   : > { %v6504_v12 = vadd.f32 %v6503_v26, %v6502_v7  ;;  %v6505_v48 = vpop.f32.mrb[66].mxu1  ;;  %v8786_v26 = vld [vmem:[#allocation8_spill] sm:$0xff] }
 0x1cf   : > { %v6560_v24 = vpop.f32.mrb[60].mxu0  ;;  %v6506_v29 = vpop.f32.mrb[67].mxu1 }
 0x1d0   : > { %v6561_v33 = vpop.f32.mrb[61].mxu0  ;;  %v8533_v5 = vadd.f32 %v6504_v12, %v8781_v50  ;;  %v6507_v3 = vadd.f32 %v6506_v29, %v6505_v48  ;;  %v8787_v50 = vld [vmem:[#allocation9_spill] sm:$0xff] }
 0x1d1   : > { %v6562_v38 = vadd.f32 %v6561_v33, %v6560_v24  ;;  %v6563_v57 = vpop.f32.mrb[62].mxu0 }
 0x1d2   : > { %v6564_v17 = vpop.f32.mrb[63].mxu0  ;;  %v8536_v2 = vadd.f32 %v6507_v3, %v8782_v42 }
 0x1d3   : > { %v8539_v39 = vadd.f32 %v6562_v38, %v8425_v35  ;;  %v6565_v41 = vadd.f32 %v6564_v17, %v6563_v57  ;;  %v8784_v35 = vld [vmem:[#allocation7_spill] sm:$0xff] }
 0x1d4   : > { %v6508_v58 = vpop.f32.mrb[68].mxu1 }
 0x1d5   : > { %v8542_v10 = vadd.f32 %v6565_v41, %v8430_v37  ;;  %v6509_v62 = vpop.f32.mrb[69].mxu1 }
 0x1d6   : > { %v6510_v59 = vadd.f32 %v6509_v62, %v6508_v58  ;;  %v6511_v30 = vpop.f32.mrb[70].mxu1 }
 0x1d7   : > { %v6566_v61 = vpop.f32.mrb[64].mxu0  ;;  %v6512_v19 = vpop.f32.mrb[71].mxu1 }
 0x1d8   : > { %v6567_v27 = vpop.f32.mrb[65].mxu0  ;;  %v8545_v6 = vadd.f32 %v6510_v59, %v8783_v40  ;;  %v6513_v14 = vadd.f32 %v6512_v19, %v6511_v30 }
 0x1d9   : > { %v6568_v52 = vadd.f32 %v6567_v27, %v6566_v61  ;;  %v6569_v49 = vpop.f32.mrb[66].mxu0 }
 0x1da   : > { %v6570_v45 = vpop.f32.mrb[67].mxu0  ;;  %v8548_v54 = vadd.f32 %v6513_v14, %v8784_v35 }
 0x1db   : > { %v8551_v56 = vadd.f32 %v6568_v52, %v8785_v53  ;;  %v6571_v37 = vadd.f32 %v6570_v45, %v6569_v49 }
 0x1dc   : > { %v6514_v34 = vpop.f32.mrb[72].mxu1 }
 0x1dd   : > { %v8554_v9 = vadd.f32 %v6571_v37, %v8458_v43  ;;  %v6515_v13 = vpop.f32.mrb[73].mxu1 }
 0x1de   : > { %v6516_v20 = vadd.f32 %v6515_v13, %v6514_v34  ;;  %v6517_v11 = vpop.f32.mrb[74].mxu1 }
 0x1df   : > { %v6572_v55 = vpop.f32.mrb[68].mxu0  ;;  %v6518_v7 = vpop.f32.mrb[75].mxu1 }
 0x1e0   : > { %v6573_v23 = vpop.f32.mrb[69].mxu0  ;;  %v8557_v12 = vadd.f32 %v6516_v20, %v8786_v26  ;;  %v6519_v48 = vadd.f32 %v6518_v7, %v6517_v11  ;;  %v8789_v20 = vld [vmem:[#allocation12_spill] sm:$0xff] }
 0x1e1   : > { %v6574_v24 = vadd.f32 %v6573_v23, %v6572_v55  ;;  %v6575_v29 = vpop.f32.mrb[70].mxu0 }
 0x1e2   : > { %v6576_v33 = vpop.f32.mrb[71].mxu0  ;;  %v8560_v3 = vadd.f32 %v6519_v48, %v8787_v50 }
 0x1e3   : > { %v8563_v38 = vadd.f32 %v6574_v24, %v8471_v18  ;;  %v6577_v43 = vadd.f32 %v6576_v33, %v6575_v29 }
 0x1e5   : > { %v8566_v57 = vadd.f32 %v6577_v43, %v8474_v36 }
 0x1e7   : > { %v6578_v17 = vpop.f32.mrb[72].mxu0 }
 0x1e8   : > { %v6579_v42 = vpop.f32.mrb[73].mxu0 }
 0x1e9   : > { %v6580_v41 = vadd.f32 %v6579_v42, %v6578_v17  ;;  %v6581_v58 = vpop.f32.mrb[74].mxu0 }
 0x1ea   : > { %v6582_v62 = vpop.f32.mrb[75].mxu0 }
 0x1eb   : > { %v8569_v59 = vadd.f32 %v6580_v41, %v8481_v16  ;;  %v6583_v30 = vadd.f32 %v6582_v62, %v6581_v58  ;;  %v8788_v16 = vld [vmem:[#allocation11_spill] sm:$0xff] }
 0x1ed   : > { %v8572_v61 = vadd.f32 %v6583_v30, %v8484_v28 }
 0x1ef   : > { %v6584_v19 = vpop.f32.mrb[76].mxu0  ;;  %v6520_v18 = vpop.f32.mrb[76].mxu1 }
 0x1f0   : > { %v6585_v27 = vpop.f32.mrb[77].mxu0  ;;  %v6521_v52 = vpop.f32.mrb[77].mxu1 }
 0x1f1   : > { %v6586_v40 = vadd.f32 %v6585_v27, %v6584_v19  ;;  %v6587_v14 = vpop.f32.mrb[78].mxu0  ;;  %v6522_v49 = vadd.f32 %v6521_v52, %v6520_v18  ;;  %v6523_v45 = vpop.f32.mrb[78].mxu1 }
 0x1f2   : > { %v6588_v36 = vpop.f32.mrb[79].mxu0  ;;  %v6524_v37 = vpop.f32.mrb[79].mxu1 }
 0x1f3   : > { %v8575_v35 = vadd.f32 %v6586_v40, %v8489_v15  ;;  %v6589_v53 = vadd.f32 %v6588_v36, %v6587_v14  ;;  %v8578_v34 = vadd.f32 %v6522_v49, %v8788_v16  ;;  %v6525_v13 = vadd.f32 %v6524_v37, %v6523_v45 }
 0x1f5   : > { %v8581_v28 = vadd.f32 %v6589_v53, %v8492_v21  ;;  %v8584_v11 = vadd.f32 %v6525_v13, %v8789_v20 }
 0x1f7   : > { %v6590_v55 = vpop.f32.mrb[80].mxu0  ;;  %v6654_v23 = vpop.f32.mrb[80].mxu1 }
 0x1f8   : > { %v6591_v7 = vpop.f32.mrb[81].mxu0  ;;  %v6655_v24 = vpop.f32.mrb[81].mxu1 }
 0x1f9   : > { %v6592_v26 = vadd.f32 %v6591_v7, %v6590_v55  ;;  %v6593_v48 = vpop.f32.mrb[82].mxu0  ;;  %v6656_v29 = vadd.f32 %v6655_v24, %v6654_v23  ;;  %v6657_v33 = vpop.f32.mrb[82].mxu1 }
 0x1fa   : > { %v6594_v15 = vpop.f32.mrb[83].mxu0  ;;  %v6658_v17 = vpop.f32.mrb[83].mxu1 }
 0x1fb   : > { %v8587_v50 = vadd.f32 %v6592_v26, %v8495_v63  ;;  %v6595_v43 = vadd.f32 %v6594_v15, %v6593_v48  ;;  %v6659_v42 = vadd.f32 %v6658_v17, %v6657_v33  ;;  %v8590_v21 = vadd.f32 %v6656_v29, %v8507_v22 }
 0x1fd   : > { %v8593_v41 = vadd.f32 %v6595_v43, %v8500_v1  ;;  %v8596_v58 = vadd.f32 %v6659_v42, %v8510_v51 }
 0x1ff   : > { %v6596_v62 = vpop.f32.mrb[84].mxu0  ;;  %v6660_v19 = vpop.f32.mrb[84].mxu1 }
 0x200   : > { %v6597_v30 = vpop.f32.mrb[85].mxu0  ;;  %v6661_v40 = vpop.f32.mrb[85].mxu1 }
 0x201   : > { %v6598_v27 = vadd.f32 %v6597_v30, %v6596_v62  ;;  %v6599_v18 = vpop.f32.mrb[86].mxu0  ;;  %v6662_v14 = vadd.f32 %v6661_v40, %v6660_v19  ;;  %v6663_v52 = vpop.f32.mrb[86].mxu1 }
 0x202   : > { %v6600_v63 = vpop.f32.mrb[87].mxu0  ;;  %v6664_v49 = vpop.f32.mrb[87].mxu1 }
 0x203   : > { %v8599_v36 = vadd.f32 %v6598_v27, %v8502_v32  ;;  %v6601_v22 = vadd.f32 %v6600_v63, %v6599_v18  ;;  %v6665_v45 = vadd.f32 %v6664_v49, %v6663_v52  ;;  %v8602_v1 = vadd.f32 %v6662_v14, %v8517_v47 }
 0x205   : > { %v8605_v51 = vadd.f32 %v6601_v22, %v8504_v44  ;;  %v8608_v53 = vadd.f32 %v6665_v45, %v8520_v46 }
 0x207   : > { %v6602_v37 = vpop.f32.mrb[88].mxu0 }
 0x208   : > { %v6603_v16 = vpop.f32.mrb[89].mxu0 }
 0x209   : > { %v6604_v13 = vadd.f32 %v6603_v16, %v6602_v37  ;;  %v6605_v20 = vpop.f32.mrb[90].mxu0  ;;  %v6666_v55 = vpop.f32.mrb[88].mxu1 }
 0x20a   : > { %v6606_v7 = vpop.f32.mrb[91].mxu0  ;;  %v6667_v32 = vpop.f32.mrb[89].mxu1 }
 0x20b   : > { %v8611_v23 = vadd.f32 %v6604_v13, %v8512_v0  ;;  %v6607_v26 = vadd.f32 %v6606_v7, %v6605_v20  ;;  %v6668_v48 = vadd.f32 %v6667_v32, %v6666_v55  ;;  %v6669_v47 = vpop.f32.mrb[90].mxu1 }
 0x20c   : > { %v6670_v24 = vpop.f32.mrb[91].mxu1 }
 0x20d   : > { %v8614_v44 = vadd.f32 %v6607_v26, %v8514_v4  ;;  %v6671_v15 = vadd.f32 %v6670_v24, %v6669_v47  ;;  %v8617_v46 = vadd.f32 %v6668_v48, %v8527_v31 }
 0x20f   : > { %v6608_v29 = vpop.f32.mrb[92].mxu0  ;;  %v8620_v33 = vadd.f32 %v6671_v15, %v8530_v25 }
 0x210   : > { %v6609_v43 = vpop.f32.mrb[93].mxu0 }
 0x211   : > { %v6610_v17 = vadd.f32 %v6609_v43, %v6608_v29  ;;  %v6611_v42 = vpop.f32.mrb[94].mxu0 }
 0x212   : > { %v6612_v0 = vpop.f32.mrb[95].mxu0 }
 0x213   : > { %v8623_v62 = vadd.f32 %v6610_v17, %v8522_v60  ;;  %v6613_v30 = vadd.f32 %v6612_v0, %v6611_v42 }
 0x214   : > { %v6672_v19 = vpop.f32.mrb[92].mxu1 }
 0x215   : > { %v8626_v4 = vadd.f32 %v6613_v30, %v8524_v8  ;;  %v6673_v27 = vpop.f32.mrb[93].mxu1 }
 0x216   : > { %v6674_v18 = vadd.f32 %v6673_v27, %v6672_v19  ;;  %v6675_v31 = vpop.f32.mrb[94].mxu1 }
 0x217   : > { %v6614_v40 = vpop.f32.mrb[96].mxu0  ;;  %v6676_v63 = vpop.f32.mrb[95].mxu1 }
 0x218   : > { %v6615_v14 = vpop.f32.mrb[97].mxu0  ;;  %v6677_v25 = vadd.f32 %v6676_v63, %v6675_v31  ;;  %v8629_v52 = vadd.f32 %v6674_v18, %v8539_v39 }
 0x219   : > { %v6616_v22 = vadd.f32 %v6615_v14, %v6614_v40  ;;  %v6617_v49 = vpop.f32.mrb[98].mxu0 }
 0x21a   : > { %v6618_v45 = vpop.f32.mrb[99].mxu0  ;;  %v8632_v60 = vadd.f32 %v6677_v25, %v8542_v10 }
 0x21b   : > { %v8635_v37 = vadd.f32 %v6616_v22, %v8533_v5  ;;  %v6619_v8 = vadd.f32 %v6618_v45, %v6617_v49 }
 0x21d   : > { %v8638_v16 = vadd.f32 %v6619_v8, %v8536_v2 }
 0x21f   : > { %v6678_v13 = vpop.f32.mrb[96].mxu1 }
 0x220   : > { %v6620_v20 = vpop.f32.mrb[100].mxu0  ;;  %v6679_v55 = vpop.f32.mrb[97].mxu1 }
 0x221   : > { %v6621_v7 = vpop.f32.mrb[101].mxu0  ;;  %v6680_v32 = vadd.f32 %v6679_v55, %v6678_v13  ;;  %v6681_v39 = vpop.f32.mrb[98].mxu1 }
 0x222   : > { %v6622_v26 = vadd.f32 %v6621_v7, %v6620_v20  ;;  %v6623_v48 = vpop.f32.mrb[102].mxu0  ;;  %v6682_v47 = vpop.f32.mrb[99].mxu1 }
 0x223   : > { %v6624_v24 = vpop.f32.mrb[103].mxu0  ;;  %v6683_v15 = vadd.f32 %v6682_v47, %v6681_v39  ;;  %v8641_v10 = vadd.f32 %v6680_v32, %v8551_v56 }
 0x224   : > { %v8644_v5 = vadd.f32 %v6622_v26, %v8545_v6  ;;  %v6625_v29 = vadd.f32 %v6624_v24, %v6623_v48 }
 0x225   : > { %v8647_v2 = vadd.f32 %v6683_v15, %v8554_v9 }
 0x226   : > { %v8650_v43 = vadd.f32 %v6625_v29, %v8548_v54 }
 0x227   : > { %v6684_v17 = vpop.f32.mrb[100].mxu1 }
 0x228   : > { %v6685_v42 = vpop.f32.mrb[101].mxu1 }
 0x229   : > { %v6686_v0 = vadd.f32 %v6685_v42, %v6684_v17  ;;  %v6687_v30 = vpop.f32.mrb[102].mxu1 }
 0x22a   : > { %v6626_v19 = vpop.f32.mrb[104].mxu0  ;;  %v6688_v27 = vpop.f32.mrb[103].mxu1 }
 0x22b   : > { %v6627_v18 = vpop.f32.mrb[105].mxu0  ;;  %v6689_v31 = vadd.f32 %v6688_v27, %v6687_v30  ;;  %v8653_v56 = vadd.f32 %v6686_v0, %v8563_v38 }
 0x22c   : > { %v6628_v6 = vadd.f32 %v6627_v18, %v6626_v19  ;;  %v6629_v40 = vpop.f32.mrb[106].mxu0 }
 0x22d   : > { %v6630_v63 = vpop.f32.mrb[107].mxu0  ;;  %v8656_v9 = vadd.f32 %v6689_v31, %v8566_v57 }
 0x22e   : > { %v8659_v54 = vadd.f32 %v6628_v6, %v8557_v12  ;;  %v6631_v14 = vadd.f32 %v6630_v63, %v6629_v40 }
 0x230   : > { %v8662_v25 = vadd.f32 %v6631_v14, %v8560_v3 }
 0x232   : > { %v6690_v22 = vpop.f32.mrb[104].mxu1 }
 0x233   : > { %v6691_v49 = vpop.f32.mrb[105].mxu1 }
 0x234   : > { %v6632_v45 = vpop.f32.mrb[108].mxu0  ;;  %v6692_v8 = vadd.f32 %v6691_v49, %v6690_v22  ;;  %v6693_v13 = vpop.f32.mrb[106].mxu1 }
 0x235   : > { %v6633_v38 = vpop.f32.mrb[109].mxu0  ;;  %v6694_v20 = vpop.f32.mrb[107].mxu1 }
 0x236   : > { %v6634_v55 = vadd.f32 %v6633_v38, %v6632_v45  ;;  %v6635_v7 = vpop.f32.mrb[110].mxu0  ;;  %v6695_v32 = vadd.f32 %v6694_v20, %v6693_v13  ;;  %v8665_v57 = vadd.f32 %v6692_v8, %v8569_v59 }
 0x237   : > { %v6636_v39 = vpop.f32.mrb[111].mxu0 }
 0x238   : > { %v8668_v12 = vadd.f32 %v6634_v55, %v8578_v34  ;;  %v6637_v3 = vadd.f32 %v6636_v39, %v6635_v7  ;;  %v8671_v26 = vadd.f32 %v6695_v32, %v8572_v61 }
 0x23a   : > { %v8674_v48 = vadd.f32 %v6637_v3, %v8584_v11 }
 0x23c   : > { %v6696_v47 = vpop.f32.mrb[108].mxu1  ;;  %v6792_v24 = vpop.f32.mrb[112].mxu0 }
 0x23d   : > { %v5248_v15 = vadd.f32 %v6792_v24, %v8602_v1  ;;  %v6697_v29 = vpop.f32.mrb[109].mxu1  ;;  %v5239_v17 = vpop.f32.mrb[113].mxu0 }
 0x23e   : > { %v6698_v59 = vadd.f32 %v6697_v29, %v6696_v47  ;;  %v5240_v42 = vadd.f32 %v5239_v17, %v8590_v21  ;;  %v6699_v0 = vpop.f32.mrb[110].mxu1  ;;  %v6793_v34 = vpop.f32.mrb[114].mxu0 }
 0x23f   : > { %v5251_v30 = vadd.f32 %v6793_v34, %v8608_v53  ;;  %v6700_v19 = vpop.f32.mrb[111].mxu1  ;;  %v5242_v27 = vpop.f32.mrb[115].mxu0  ;;  %v5566_v63 = vmul.f32 %v5248_v15, %v5248_v15 }
 0x240   : > { %v6701_v61 = vadd.f32 %v6700_v19, %v6699_v0  ;;  %v5243_v11 = vadd.f32 %v5242_v27, %v8596_v58  ;;  %v8688_v1 = vadd.f32 %v6698_v59, %v8575_v35  ;;  %v5564_v21 = vmul.f32 %v5240_v42, %v5240_v42 }
 0x241   : > { %v6200_v18 = vpack.c.bf16 %v5251_v30, %v5248_v15  ;;  %v5567_v35 = vmul.f32 %v5251_v30, %v5251_v30 }
 0x242   : > { %v6195_v31 = vpack.c.bf16 %v5243_v11, %v5240_v42  ;;  %v5526_v53 = vadd.f32 %v5243_v11, %v5240_v42  ;;  %v5565_v6 = vmul.f32 %v5243_v11, %v5243_v11  ;;  %v8691_v40 = vadd.f32 %v6701_v61, %v8581_v28 }
 0x243   : > { %6287 = vst [vmem:[%s8684_s9 + $0x8] sm:$0xff] %v6200_v18  }
 0x244   : > { %6196 = vst [vmem:[%s8684_s9] sm:$0xff] %v6195_v31   ;;  %v5527_v14 = vadd.f32 %v5526_v53, %v5248_v15  ;;  %v5596_v22 = vadd.f32 %v5565_v6, %v5564_v21  ;;  %v6796_v49 = vpop.f32.mrb[116].mxu0 }
 0x245   : > { %v6702_v45 = vpop.f32.mrb[112].mxu1  ;;  %v5264_v58 = vadd.f32 %v6796_v49, %v8629_v52  ;;  %v5255_v8 = vpop.f32.mrb[117].mxu0 }
 0x246   : > { %v5597_v13 = vadd.f32 %v5596_v22, %v5566_v63  ;;  %v6703_v38 = vpop.f32.mrb[113].mxu1  ;;  %v5256_v20 = vadd.f32 %v5255_v8, %v8617_v46  ;;  %v5528_v55 = vadd.f32 %v5527_v14, %v5251_v30  ;;  %v6797_v7 = vpop.f32.mrb[118].mxu0 }
 0x247   : > { %v6704_v32 = vadd.f32 %v6703_v38, %v6702_v45  ;;  %v6705_v28 = vpop.f32.mrb[114].mxu1  ;;  %v5267_v39 = vadd.f32 %v6797_v7, %v8632_v60  ;;  %v5258_v3 = vpop.f32.mrb[119].mxu0  ;;  %v5570_v19 = vmul.f32 %v5264_v58, %v5264_v58 }
 0x248   : > { %v5529_v47 = vadd.f32 %v5528_v55, %v5256_v20  ;;  %v5568_v24 = vmul.f32 %v5256_v20, %v5256_v20  ;;  %v5598_v15 = vadd.f32 %v5597_v13, %v5567_v35  ;;  %v6706_v29 = vpop.f32.mrb[115].mxu1  ;;  %v5259_v52 = vadd.f32 %v5258_v3, %v8620_v33 }
 0x249   : > { %v6210_v17 = vpack.c.bf16 %v5267_v39, %v5264_v58  ;;  %v6707_v59 = vadd.f32 %v6706_v29, %v6705_v28  ;;  %v8700_v42 = vadd.f32 %v6704_v32, %v8587_v50  ;;  %v5571_v31 = vmul.f32 %v5267_v39, %v5267_v39 }
 0x24a   : > { %v5599_v46 = vadd.f32 %v5598_v15, %v5568_v24  ;;  %v6205_v0 = vpack.c.bf16 %v5259_v52, %v5256_v20  ;;  %v5530_v34 = vadd.f32 %v5529_v47, %v5259_v52  ;;  %v5569_v30 = vmul.f32 %v5259_v52, %v5259_v52 }
 0x24b   : > { %6289 = vst [vmem:[%s8684_s9 + $0x18] sm:$0xff] %v6210_v17   ;;  %v8704_v60 = vadd.f32 %v6707_v59, %v8593_v41 }
 0x24c   : > { %6288 = vst [vmem:[%s8684_s9 + $0x10] sm:$0xff] %v6205_v0   ;;  %v5531_v27 = vadd.f32 %v5530_v34, %v5264_v58  ;;  %v5600_v61 = vadd.f32 %v5599_v46, %v5569_v30  ;;  %v6800_v11 = vpop.f32.mrb[120].mxu0 }
 0x24d   : > { %v6708_v21 = vpop.f32.mrb[116].mxu1  ;;  %v5280_v33 = vadd.f32 %v6800_v11, %v8653_v56  ;;  %v5271_v18 = vpop.f32.mrb[121].mxu0 }
 0x24e   : > { %v5601_v50 = vadd.f32 %v5600_v61, %v5570_v19  ;;  %v6709_v53 = vpop.f32.mrb[117].mxu1  ;;  %v5272_v6 = vadd.f32 %v5271_v18, %v8641_v10  ;;  %v5532_v63 = vadd.f32 %v5531_v27, %v5267_v39  ;;  %v6801_v14 = vpop.f32.mrb[122].mxu0 }
 0x24f   : > { %v6710_v22 = vadd.f32 %v6709_v53, %v6708_v21  ;;  %v6711_v41 = vpop.f32.mrb[118].mxu1  ;;  %v5283_v49 = vadd.f32 %v6801_v14, %v8656_v9  ;;  %v5274_v45 = vpop.f32.mrb[123].mxu0  ;;  %v5574_v9 = vmul.f32 %v5280_v33, %v5280_v33 }
 0x250   : > { %v5533_v58 = vadd.f32 %v5532_v63, %v5272_v6  ;;  %v5572_v8 = vmul.f32 %v5272_v6, %v5272_v6  ;;  %v5602_v35 = vadd.f32 %v5601_v50, %v5571_v31  ;;  %v6712_v13 = vpop.f32.mrb[119].mxu1  ;;  %v5275_v56 = vadd.f32 %v5274_v45, %v8647_v2 }
 0x251   : > { %v6220_v38 = vpack.c.bf16 %v5283_v49, %v5280_v33  ;;  %v6713_v20 = vadd.f32 %v6712_v13, %v6711_v41  ;;  %v5151_v55 = vadd.f32 %v6710_v22, %v8599_v36  ;;  %v5575_v2 = vmul.f32 %v5283_v49, %v5283_v49 }
 0x252   : > { %v5603_v10 = vadd.f32 %v5602_v35, %v5572_v8  ;;  %v6215_v7 = vpack.c.bf16 %v5275_v56, %v5272_v6  ;;  %v5534_v32 = vadd.f32 %v5533_v58, %v5275_v56  ;;  %v5573_v28 = vmul.f32 %v5275_v56, %v5275_v56 }
 0x253   : > { %6291 = vst [vmem:[%s8684_s9 + $0x28] sm:$0xff] %v6220_v38   ;;  %v5154_v39 = vadd.f32 %v6713_v20, %v8605_v51 }
 0x254   : > { %6290 = vst [vmem:[%s8684_s9 + $0x20] sm:$0xff] %v6215_v7   ;;  %v5535_v3 = vadd.f32 %v5534_v32, %v5280_v33  ;;  %v5604_v47 = vadd.f32 %v5603_v10, %v5573_v28  ;;  %v6804_v24 = vpop.f32.mrb[124].mxu0 }
 0x255   : > { %v5296_v15 = vadd.f32 %v6804_v24, %v8688_v1  ;;  %v5287_v29 = vpop.f32.mrb[125].mxu0 }
 0x256   : > { %v5605_v52 = vadd.f32 %v5604_v47, %v5574_v9  ;;  %v5288_v17 = vadd.f32 %v5287_v29, %v8665_v57  ;;  %v5536_v36 = vadd.f32 %v5535_v3, %v5283_v49  ;;  %v6805_v59 = vpop.f32.mrb[126].mxu0 }
 0x257   : > { %v6714_v46 = vpop.f32.mrb[120].mxu1  ;;  %v5299_v0 = vadd.f32 %v6805_v59, %v8691_v40  ;;  %v5290_v34 = vpop.f32.mrb[127].mxu0  ;;  %v5578_v6 = vmul.f32 %v5296_v15, %v5296_v15 }
 0x258   : > { %v6715_v51 = vpop.f32.mrb[121].mxu1  ;;  %v5537_v30 = vadd.f32 %v5536_v36, %v5288_v17  ;;  %v5576_v19 = vmul.f32 %v5288_v17, %v5288_v17  ;;  %v5606_v27 = vadd.f32 %v5605_v52, %v5575_v2  ;;  %v5291_v61 = vadd.f32 %v5290_v34, %v8671_v26 }
 0x259   : > { %v6716_v1 = vadd.f32 %v6715_v51, %v6714_v46  ;;  %v6717_v11 = vpop.f32.mrb[122].mxu1  ;;  %v6230_v21 = vpack.c.bf16 %v5299_v0, %v5296_v15  ;;  %v5579_v41 = vmul.f32 %v5299_v0, %v5299_v0 }
 0x25a   : > { %v5607_v33 = vadd.f32 %v5606_v27, %v5576_v19  ;;  %v6718_v18 = vpop.f32.mrb[123].mxu1  ;;  %v6225_v57 = vpack.c.bf16 %v5291_v61, %v5288_v17  ;;  %v5538_v31 = vadd.f32 %v5537_v30, %v5291_v61  ;;  %v5577_v50 = vmul.f32 %v5291_v61, %v5291_v61 }
 0x25b   : > { %6293 = vst [vmem:[%s8684_s9 + $0x38] sm:$0xff] %v6230_v21   ;;  %v6719_v53 = vadd.f32 %v6718_v18, %v6717_v11  ;;  %v5159_v40 = vadd.f32 %v6716_v1, %v8611_v23 }
 0x25c   : > { %6292 = vst [vmem:[%s8684_s9 + $0x30] sm:$0xff] %v6225_v57   ;;  %v5539_v63 = vadd.f32 %v5538_v31, %v5296_v15  ;;  %v5608_v14 = vadd.f32 %v5607_v33, %v5577_v50 }
 0x25d   : > { %v5162_v22 = vadd.f32 %v6719_v53, %v8614_v44 }
 0x25e   : > { %v5609_v26 = vadd.f32 %v5608_v14, %v5578_v6  ;;  %v6808_v49 = vpop.f32.mrb[128].mxu0  ;;  %v5540_v45 = vadd.f32 %v5539_v63, %v5299_v0 }
 0x25f   : > { %v5312_v58 = vadd.f32 %v6808_v49, %v5151_v55  ;;  %v5303_v8 = vpop.f32.mrb[129].mxu0 }
 0x260   : > { %v6720_v35 = vpop.f32.mrb[124].mxu1  ;;  %v5304_v13 = vadd.f32 %v5303_v8, %v8700_v42  ;;  %v5610_v56 = vadd.f32 %v5609_v26, %v5579_v41  ;;  %v6809_v38 = vpop.f32.mrb[130].mxu0 }
 0x261   : > { %v6721_v20 = vpop.f32.mrb[125].mxu1  ;;  %v5315_v23 = vadd.f32 %v6809_v38, %v5154_v39  ;;  %v5306_v10 = vpop.f32.mrb[131].mxu0  ;;  %v5582_v17 = vmul.f32 %v5312_v58, %v5312_v58 }
 0x262   : > { %v6722_v7 = vadd.f32 %v6721_v20, %v6720_v35  ;;  %v5541_v32 = vadd.f32 %v5540_v45, %v5304_v13  ;;  %v5580_v28 = vmul.f32 %v5304_v13, %v5304_v13  ;;  %v6723_v44 = vpop.f32.mrb[126].mxu1  ;;  %v5307_v9 = vadd.f32 %v5306_v10, %v8704_v60 }
 0x263   : > { %v6240_v3 = vpack.c.bf16 %v5315_v23, %v5312_v58  ;;  %v6724_v47 = vpop.f32.mrb[127].mxu1  ;;  %v5583_v0 = vmul.f32 %v5315_v23, %v5315_v23 }
 0x264   : > { %v5611_v55 = vadd.f32 %v5610_v56, %v5580_v28  ;;  %v6725_v24 = vadd.f32 %v6724_v47, %v6723_v44  ;;  %v6235_v15 = vpack.c.bf16 %v5307_v9, %v5304_v13  ;;  %v5542_v29 = vadd.f32 %v5541_v32, %v5307_v9 }
 0x265   : > { %6295 = vst [vmem:[%s8684_s9 + $0x48] sm:$0xff] %v6240_v3   ;;  %v5581_v42 = vmul.f32 %v5307_v9, %v5307_v9  ;;  %v5167_v2 = vadd.f32 %v6722_v7, %v8623_v62 }
 0x266   : > { %6294 = vst [vmem:[%s8684_s9 + $0x40] sm:$0xff] %v6235_v15   ;;  %v5543_v39 = vadd.f32 %v5542_v29, %v5312_v58  ;;  %v5170_v52 = vadd.f32 %v6725_v24, %v8626_v4 }
 0x267   : > { %v5612_v36 = vadd.f32 %v5611_v55, %v5581_v42 }
 0x268   : > { %v6812_v59 = vpop.f32.mrb[132].mxu0  ;;  %v5544_v46 = vadd.f32 %v5543_v39, %v5315_v23 }
 0x269   : > { %v5613_v60 = vadd.f32 %v5612_v36, %v5582_v17  ;;  %v5328_v34 = vadd.f32 %v6812_v59, %v5167_v2  ;;  %v5319_v51 = vpop.f32.mrb[133].mxu0 }
 0x26a   : > { %v6726_v30 = vpop.f32.mrb[128].mxu1  ;;  %v5320_v19 = vadd.f32 %v5319_v51, %v5159_v40  ;;  %v6813_v27 = vpop.f32.mrb[134].mxu0 }
 0x26b   : > { %v6727_v61 = vpop.f32.mrb[129].mxu1  ;;  %v5614_v1 = vadd.f32 %v5613_v60, %v5583_v0  ;;  %v5331_v11 = vadd.f32 %v6813_v27, %v5170_v52  ;;  %v5322_v62 = vpop.f32.mrb[135].mxu0  ;;  %v5586_v58 = vmul.f32 %v5328_v34, %v5328_v34 }
 0x26c   : > { %v6728_v21 = vadd.f32 %v6727_v61, %v6726_v30  ;;  %v5545_v33 = vadd.f32 %v5544_v46, %v5320_v19  ;;  %v5584_v4 = vmul.f32 %v5320_v19, %v5320_v19  ;;  %v6729_v18 = vpop.f32.mrb[130].mxu1  ;;  %v5323_v57 = vadd.f32 %v5322_v62, %v5162_v22 }
 0x26d   : > { %v6250_v31 = vpack.c.bf16 %v5331_v11, %v5328_v34  ;;  %v6730_v50 = vpop.f32.mrb[131].mxu1  ;;  %v5587_v20 = vmul.f32 %v5331_v11, %v5331_v11 }
 0x26e   : > { %v5615_v53 = vadd.f32 %v5614_v1, %v5584_v4  ;;  %v6731_v6 = vadd.f32 %v6730_v50, %v6729_v18  ;;  %v6245_v63 = vpack.c.bf16 %v5323_v57, %v5320_v19  ;;  %v5546_v14 = vadd.f32 %v5545_v33, %v5323_v57 }
 0x26f   : > { %6297 = vst [vmem:[%s8684_s9 + $0x58] sm:$0xff] %v6250_v31   ;;  %v5585_v40 = vmul.f32 %v5323_v57, %v5323_v57  ;;  %v5175_v41 = vadd.f32 %v6728_v21, %v8635_v37 }
 0x270   : > { %6296 = vst [vmem:[%s8684_s9 + $0x50] sm:$0xff] %v6245_v63   ;;  %v5547_v26 = vadd.f32 %v5546_v14, %v5328_v34  ;;  %v5178_v45 = vadd.f32 %v6731_v6, %v8638_v16 }
 0x271   : > { %v6816_v49 = vpop.f32.mrb[136].mxu0  ;;  %v5616_v8 = vadd.f32 %v5615_v53, %v5585_v40 }
 0x272   : > { %v5335_v35 = vpop.f32.mrb[137].mxu0  ;;  %v6732_v13 = vpop.f32.mrb[132].mxu1  ;;  %v5548_v56 = vadd.f32 %v5547_v26, %v5331_v11 }
 0x273   : > { %v5336_v22 = vadd.f32 %v5335_v35, %v5175_v41  ;;  %v6817_v38 = vpop.f32.mrb[138].mxu0  ;;  %v5617_v23 = vadd.f32 %v5616_v8, %v5586_v58  ;;  %v6733_v10 = vpop.f32.mrb[133].mxu1 }
 0x274   : > { %v5338_v7 = vpop.f32.mrb[139].mxu0  ;;  %v6734_v32 = vadd.f32 %v6733_v10, %v6732_v13  ;;  %v6735_v44 = vpop.f32.mrb[134].mxu1 }
 0x275   : > { %v5549_v28 = vadd.f32 %v5548_v56, %v5336_v22  ;;  %v5588_v37 = vmul.f32 %v5336_v22, %v5336_v22  ;;  %v5339_v9 = vadd.f32 %v5338_v7, %v5178_v45  ;;  %v5618_v3 = vadd.f32 %v5617_v23, %v5587_v20  ;;  %v6736_v47 = vpop.f32.mrb[135].mxu1 }
 0x276   : > { %v5183_v16 = vadd.f32 %v6734_v32, %v8644_v5  ;;  %v6737_v55 = vadd.f32 %v6736_v47, %v6735_v44 }
 0x277   : > { %v6255_v24 = vpack.c.bf16 %v5339_v9, %v5336_v22  ;;  %v5550_v15 = vadd.f32 %v5549_v28, %v5339_v9  ;;  %v5619_v29 = vadd.f32 %v5618_v3, %v5588_v37  ;;  %v5589_v42 = vmul.f32 %v5339_v9, %v5339_v9 }
 0x278   : > { %v5344_v2 = vadd.f32 %v6816_v49, %v5183_v16  ;;  %v5186_v39 = vadd.f32 %v6737_v55, %v8650_v43 }
 0x279   : > { %6298 = vst [vmem:[%s8684_s9 + $0x60] sm:$0xff] %v6255_v24   ;;  %v5620_v52 = vadd.f32 %v5619_v29, %v5589_v42 }
 0x27a   : > { %v5590_v17 = vmul.f32 %v5344_v2, %v5344_v2  ;;  %v5347_v36 = vadd.f32 %v6817_v38, %v5186_v39  ;;  %v5551_v59 = vadd.f32 %v5550_v15, %v5344_v2 }
 0x27b   : > { %v6820_v0 = vpop.f32.mrb[140].mxu0 }
 0x27c   : > { %v6738_v46 = vpop.f32.mrb[136].mxu1  ;;  %v6260_v60 = vpack.c.bf16 %v5347_v36, %v5344_v2  ;;  %v5591_v34 = vmul.f32 %v5347_v36, %v5347_v36  ;;  %v5621_v51 = vadd.f32 %v5620_v52, %v5590_v17  ;;  %v5351_v30 = vpop.f32.mrb[141].mxu0  ;;  %v5552_v19 = vadd.f32 %v5551_v59, %v5347_v36 }
 0x27d   : > { %v6739_v5 = vpop.f32.mrb[137].mxu1  ;;  %v6821_v1 = vpop.f32.mrb[142].mxu0 }
 0x27e   : > { %v6740_v27 = vadd.f32 %v6739_v5, %v6738_v46  ;;  %v6741_v61 = vpop.f32.mrb[138].mxu1  ;;  %6299 = vst [vmem:[%s8684_s9 + $0x68] sm:$0xff] %v6260_v60   ;;  %v5622_v43 = vadd.f32 %v5621_v51, %v5591_v34  ;;  %v5354_v62 = vpop.f32.mrb[143].mxu0 }
 0x27f   : > { %v6742_v11 = vpop.f32.mrb[139].mxu1 }
 0x280   : > { %v6743_v21 = vadd.f32 %v6742_v11, %v6741_v61  ;;  %v5191_v33 = vadd.f32 %v6740_v27, %v8659_v54 }
 0x282   : > { %v5352_v4 = vadd.f32 %v5351_v30, %v5191_v33  ;;  %v5194_v18 = vadd.f32 %v6743_v21, %v8662_v25 }
 0x284   : > { %v5553_v57 = vadd.f32 %v5552_v19, %v5352_v4  ;;  %v5592_v31 = vmul.f32 %v5352_v4, %v5352_v4  ;;  %v5355_v50 = vadd.f32 %v5354_v62, %v5194_v18 }
 0x285   : > { %v6744_v40 = vpop.f32.mrb[140].mxu1 }
 0x286   : > { %v5623_v53 = vadd.f32 %v5622_v43, %v5592_v31  ;;  %v6265_v6 = vpack.c.bf16 %v5355_v50, %v5352_v4  ;;  %v5554_v63 = vadd.f32 %v5553_v57, %v5355_v50  ;;  %v5593_v14 = vmul.f32 %v5355_v50, %v5355_v50  ;;  %v6745_v41 = vpop.f32.mrb[141].mxu1 }
 0x287   : > { %v6746_v49 = vadd.f32 %v6745_v41, %v6744_v40  ;;  %v6747_v45 = vpop.f32.mrb[142].mxu1 }
 0x288   : > { %6300 = vst [vmem:[%s8684_s9 + $0x70] sm:$0xff] %v6265_v6   ;;  %v5624_v26 = vadd.f32 %v5623_v53, %v5593_v14  ;;  %v6748_v58 = vpop.f32.mrb[143].mxu1 }
 0x289   : > { %v5199_v54 = vadd.f32 %v6746_v49, %v8668_v12  ;;  %v6749_v8 = vadd.f32 %v6748_v58, %v6747_v45 }
 0x28b   : > { %v5360_v35 = vadd.f32 %v6820_v0, %v5199_v54  ;;  %v5202_v25 = vadd.f32 %v6749_v8, %v8674_v48 }
 0x28d   : > { %v5555_v13 = vadd.f32 %v5554_v63, %v5360_v35  ;;  %v5594_v22 = vmul.f32 %v5360_v35, %v5360_v35  ;;  %v5363_v56 = vadd.f32 %v6821_v1, %v5202_v25 }
 0x28f   : > { %v5625_v38 = vadd.f32 %v5624_v26, %v5594_v22  ;;  %v6270_v20 = vpack.c.bf16 %v5363_v56, %v5360_v35  ;;  %v5556_v23 = vadd.f32 %v5555_v13, %v5363_v56  ;;  %v5595_v10 = vmul.f32 %v5363_v56, %v5363_v56 }
 0x291   : > { %6301 = vst [vmem:[%s8684_s9 + $0x78] sm:$0xff] %v6270_v20   ;;  %v5557_v7 = vrot.slane %v5556_v23, 4  ;;  %v5626_v32 = vadd.f32 %v5625_v38, %v5595_v10 }
 0x293   : > { %v5558_v28 = vadd.f32 %v5557_v7, %v5556_v23  ;;  %v5627_v37 = vrot.slane %v5626_v32, 4 }
 0x295   : > { %v5559_v44 = vrot.slane %v5558_v28, 2  ;;  %v5628_v9 = vadd.f32 %v5627_v37, %v5626_v32 }
 0x297   : > { %v5560_v12 = vadd.f32 %v5559_v44, %v5558_v28  ;;  %v5629_v3 = vrot.slane %v5628_v9, 2 }
 0x299   : > { %v5561_v47 = vrot.slane %v5560_v12, 1  ;;  %v5630_v16 = vadd.f32 %v5629_v3, %v5628_v9 }
 0x29b   : > { %v5562_v48 = vadd.f32 %v5561_v47, %v5560_v12  ;;  %v5631_v55 = vrot.slane %v5630_v16, 1 }
 0x29d   : > { %5563 = vst [vmem:[%s235_s11] sm:$0x1] %v5562_v48  ;;  %v5632_v24 = vadd.f32 %v5631_v55, %v5630_v16 }
 0x29f   : > { %5633 = vst [vmem:[%s235_s11 + $0x1] sm:$0x1] %v5632_v24 }
 0x2a0 PF: > { %s16_s18 = sadd.s32 1, %s6978_s18  }
 0x2a1   : > { %p13_p4 = scmp.ge.s32.totalorder %s16_s18, 4  }
 0x2a3   :  { %15 = sbr.rel (!%p13_p4) target bundleno = 1 (0x1), region = 80 }

</bundles_post_ra>
